<compile_context>
chip_gen: v5e
topology: v5e:2x2
jax: 0.10.0
libtpu: 0.0.40
codegen_flags: <defaults>
</compile_context>

<pallas_src>
import functools
import math

import jax
import jax.numpy as jnp
from jax import lax
from jax.experimental import pallas as pl
from jax.experimental.pallas import tpu as pltpu

_LANES = 128


def _round_up(c, m=_LANES):
    return ((c + m - 1) // m) * m


# ------------------------------ fused kernel -------------------------------- #

def _basic_block_kernel(n, ho, wo, stride, wp1, m1, wp2, m2, has_shortcut, *refs):
    """Fused BasicBlock: conv1+BN1+ReLU -> conv2+BN2 -> (+shortcut) -> ReLU.

    Inputs are in flat-shift, K-packed layout: x3[r, c*C:(c+1)*C] holds the
    channels of flattened padded-image row (r - halo + c*wp), so a 3x3 conv is
    3 matmuls (one per kw) with K = 3*C against kh-stacked weights.
    """
    refs = list(refs)
    x3_ref = refs.pop(0)       # (n*m1 + 2, 3*Cin)  bf16  conv1 input (K-packed)
    xs_ref = refs.pop(0)       # (n*ho*wo, Cin)     bf16  strided input (residual src)
    w1_ref = refs.pop(0)       # (3, 3*Cin, C)      bf16  kh-stacked, BN1-folded
    b1_ref = refs.pop(0)       # (1, C)             f32
    w2_ref = refs.pop(0)       # (3, 3*C, C)        bf16  kh-stacked, BN2-folded
    b2_ref = refs.pop(0)       # (1, C)             f32
    if has_shortcut:
        ws_ref = refs.pop(0)   # (Cin, C)           bf16  1x1 conv, BN-folded
        bs_ref = refs.pop(0)   # (1, C)             f32
    out_ref = refs.pop(0)      # (n*ho*wo, C)       f32
    act1_ref = refs.pop(0)     # (n*m1, C)          f32   scratch: conv1 output
    mid3_ref = refs.pop(0)     # (n*m2 + 2, 3*C)    bf16  scratch: conv2 input

    M1 = n * m1
    M2 = n * m2
    C = out_ref.shape[1]
    halo2 = wp2 + 1

    # ---- conv1 (3x3) + folded-BN1 bias + ReLU: 3 K=3*Cin matmuls ------------
    acc1 = jnp.dot(x3_ref[pl.ds(0, M1), :], w1_ref[0],
                   preferred_element_type=jnp.float32)
    for kw in (1, 2):
        acc1 = acc1 + jnp.dot(x3_ref[pl.ds(kw, M1), :], w1_ref[kw],
                              preferred_element_type=jnp.float32)
    act1_ref[...] = jnp.maximum(acc1 + b1_ref[...], 0.0)

    # ---- shortcut branch (1x1 conv + folded BN, or identity) ----------------
    if has_shortcut:
        res = jnp.dot(xs_ref[...], ws_ref[...],
                      preferred_element_type=jnp.float32) + bs_ref[...]
    else:
        res = xs_ref[...].astype(jnp.float32)

    # ---- build conv2's K-packed flat input in VMEM (halo / borders stay 0) --
    mid3_ref[...] = jnp.zeros_like(mid3_ref)
    for b in range(n):
        for y in range(ho):
            src = b * m1 + (1 + y * stride) * wp1 + 1
            if stride == 1:
                chunk = act1_ref[pl.ds(src, wo), :]
            else:
                # In-kernel subsampling of the valid strided columns.
                chunk = act1_ref[pl.ds(src, wo, stride=stride), :]
            chunk = chunk.astype(jnp.bfloat16)
            # Row in the conceptual padded+halo conv2 input buffer.
            e = halo2 + b * m2 + (1 + y) * wp2 + 1
            for c in range(3):
                mid3_ref[pl.ds(e - c * wp2, wo), pl.ds(c * C, C)] = chunk

    # ---- conv2 (3x3, stride 1): 3 K=3*C matmuls ------------------------------
    acc2 = jnp.dot(mid3_ref[pl.ds(0, M2), :], w2_ref[0],
                   preferred_element_type=jnp.float32)
    for kw in (1, 2):
        acc2 = acc2 + jnp.dot(mid3_ref[pl.ds(kw, M2), :], w2_ref[kw],
                              preferred_element_type=jnp.float32)

    # ---- epilogue: valid rows only, + BN2 bias + residual, ReLU, store ------
    bias2 = b2_ref[...]
    for b in range(n):
        for y in range(ho):
            r2 = b * m2 + (1 + y) * wp2 + 1
            o = (b * ho + y) * wo
            rows = acc2[r2:r2 + wo, :] + bias2 + res[o:o + wo, :]
            out_ref[pl.ds(o, wo), :] = jnp.maximum(rows, 0.0)


# ------------------------------ host wrapper -------------------------------- #

def basic_block_forward(x_nchw, params):
    """One BasicBlock forward pass as a single fused Pallas kernel.  NCHW in/out."""
    stride = params['stride']
    planes = params['planes']
    n, cin, h, w = x_nchw.shape
    cin_p = _round_up(cin)
    c_p = _round_up(planes)
    ho = (h - 1) // stride + 1
    wo = (w - 1) // stride + 1
    has_shortcut = 'ws' in params
    if not has_shortcut:
        assert stride == 1 and cin == planes, "identity shortcut needs stride=1, cin==planes"

    # One-time input prep: NCHW -> NHWC, channel pad to 128 lanes, bf16.
    x = jnp.transpose(x_nchw, (0, 2, 3, 1))
    x = jnp.pad(x, ((0, 0), (0, 0), (0, 0), (0, cin_p - cin))).astype(jnp.bfloat16)

    # conv1 input in flat-shift, K-packed (kh-stacked) layout; batch folded into M.
    hp1, wp1 = h + 2, w + 2
    m1 = hp1 * wp1
    M1 = n * m1
    halo1 = wp1 + 1
    xflat = jnp.pad(x, ((0, 0), (1, 1), (1, 1), (0, 0))).reshape(M1, cin_p)
    xext = jnp.pad(xflat, ((halo1, halo1), (0, 0)))
    x3 = jnp.concatenate([xext[c * wp1:c * wp1 + M1 + 2] for c in range(3)], axis=1)

    # Residual / shortcut source: (strided) block input, valid pixels only, unpadded rows.
    xs = x[:, ::stride, ::stride, :].reshape(n * ho * wo, cin_p)

    hp2, wp2 = ho + 2, wo + 2
    m2 = hp2 * wp2
    M2 = n * m2

    args = [x3, xs, params['w1'], params['b1'], params['w2'], params['b2']]
    in_specs = [
        pl.BlockSpec(x3.shape, lambda i: (0, 0)),
        pl.BlockSpec(xs.shape, lambda i: (0, 0)),
        pl.BlockSpec(params['w1'].shape, lambda i: (0, 0, 0)),
        pl.BlockSpec(params['b1'].shape, lambda i: (0, 0)),
        pl.BlockSpec(params['w2'].shape, lambda i: (0, 0, 0)),
        pl.BlockSpec(params['b2'].shape, lambda i: (0, 0)),
    ]
    if has_shortcut:
        args += [params['ws'], params['bs']]
        in_specs += [pl.BlockSpec(params['ws'].shape, lambda i: (0, 0)),
                     pl.BlockSpec(params['bs'].shape, lambda i: (0, 0))]

    kernel = functools.partial(_basic_block_kernel, n, ho, wo, stride,
                               wp1, m1, wp2, m2, has_shortcut)
    out = pl.pallas_call(
        kernel,
        grid=(1,),
        in_specs=in_specs,
        out_specs=pl.BlockSpec((n * ho * wo, c_p), lambda i: (0, 0)),
        out_shape=jax.ShapeDtypeStruct((n * ho * wo, c_p), jnp.float32),
        scratch_shapes=[pltpu.VMEM((M1, c_p), jnp.float32),
                        pltpu.VMEM((M2 + 2, 3 * c_p), jnp.bfloat16)],
        compiler_params=pltpu.CompilerParams(dimension_semantics=("arbitrary",)),
    )(*args)

    out = out.reshape(n, ho, wo, c_p)[:, :, :, :planes]
    return jnp.transpose(out, (0, 3, 1, 2))          # NCHW f32 (PyTorch convention)


# ------------------------------- parameters --------------------------------- #

def make_basic_block_params(key, in_planes, planes, stride, eps=1e-5):
    """Random BasicBlock params with inference-mode BN folded into the convs."""
    ks = jax.random.split(key, 8)
    cin_p, c_p = _round_up(in_planes), _round_up(planes)

    def conv_w(k, ksz, cin, cout):
        fan_in = ksz * ksz * cin
        return jax.random.normal(k, (ksz, ksz, cin, cout), jnp.float32) / math.sqrt(fan_in)

    def bn(k, c):
        kg, kb, km, kv = jax.random.split(k, 4)
        gamma = 1.0 + 0.1 * jax.random.normal(kg, (c,), jnp.float32)
        beta = 0.1 * jax.random.normal(kb, (c,), jnp.float32)
        mean = 0.1 * jax.random.normal(km, (c,), jnp.float32)
        var = 1.0 + 0.1 * jax.random.uniform(kv, (c,), jnp.float32)
        return gamma, beta, mean, var

    def fold(w, bnp):                     # fold BN scale into conv weights
        gamma, beta, mean, var = bnp
        scale = gamma / jnp.sqrt(var + eps)
        return (w * scale).astype(jnp.bfloat16), beta - mean * scale

    def pack3(wf, cinp, coutp):           # (3,3,cin,cout) -> (3 [kw], 3*cinp, coutp)
        cin, cout = wf.shape[2], wf.shape[3]
        wpad = jnp.zeros((3, 3, cinp, coutp), wf.dtype).at[:, :, :cin, :cout].set(wf)
        return jnp.stack(
            [jnp.concatenate([wpad[0, kw], wpad[1, kw], wpad[2, kw]], axis=0)
             for kw in range(3)], axis=0)

    def pad_bias(b, coutp):
        return jnp.zeros((1, coutp), jnp.float32).at[0, :b.shape[0]].set(b)

    w1 = conv_w(ks[0], 3, in_planes, planes)
    w2 = conv_w(ks[1], 3, planes, planes)
    w1f, b1 = fold(w1, bn(ks[2], planes))
    w2f, b2 = fold(w2, bn(ks[3], planes))

    p = {
        'stride': stride, 'planes': planes, 'in_planes': in_planes,
        'w1': pack3(w1f, cin_p, c_p), 'b1': pad_bias(b1, c_p),
        'w2': pack3(w2f, c_p, c_p),   'b2': pad_bias(b2, c_p),
        # Unpadded copies for the pure-JAX reference (same folded bf16 numerics).
        'ref_w1': w1f, 'ref_b1': b1, 'ref_w2': w2f, 'ref_b2': b2,
    }
    if stride != 1 or in_planes != planes:
        ws = conv_w(ks[4], 1, in_planes, planes)
        wsf, bs = fold(ws, bn(ks[5], planes))
        ws_pad = jnp.zeros((cin_p, c_p), jnp.bfloat16).at[:in_planes, :planes].set(wsf[0, 0])
        p.update({'ws': ws_pad, 'bs': pad_bias(bs, c_p),
                  'ref_ws': wsf, 'ref_bs': bs})
    return p


# ------------------------------- reference ---------------------------------- #

def basic_block_reference(x_nchw, params):
    """Pure-JAX reference mirroring the kernel's bf16/f32 numerics (folded BN)."""
    s = params['stride']
    x = jnp.transpose(x_nchw, (0, 2, 3, 1)).astype(jnp.bfloat16)

    def conv(inp, w, stride, pad):
        return lax.conv_general_dilated(
            inp, w, (stride, stride), ((pad, pad), (pad, pad)),
            dimension_numbers=('NHWC', 'HWIO', 'NHWC'),
            preferred_element_type=jnp.float32)

    h1 = jnp.maximum(conv(x, params['ref_w1'], s, 1) + params['ref_b1'],
                     0.0).astype(jnp.bfloat16)
    out = conv(h1, params['ref_w2'], 1, 1) + params['ref_b2']
    if 'ref_ws' in params:
        sc = conv(x, params['ref_ws'], s, 0) + params['ref_bs']
    else:
        sc = x[:, ::s, ::s, :].astype(jnp.float32)
    out = jnp.maximum(out + sc, 0.0)
    return jnp.transpose(out, (0, 3, 1, 2))


# ---------------------------------- main ------------------------------------ #

if __name__ == "__main__":
    root = jax.random.PRNGKey(0)
    kx1, kp1, kx2, kp2 = jax.random.split(root, 4)

    # Config A: downsampling block (stride=2, in_planes != planes -> 1x1-conv shortcut).
    xA = jax.random.normal(kx1, (2, 4, 16, 16), jnp.float32)
    pA = make_basic_block_params(kp1, in_planes=4, planes=8, stride=2)
    outA = jax.block_until_ready(jax.jit(lambda v: basic_block_forward(v, pA))(xA))
    refA = basic_block_reference(xA, pA)
    assert outA.shape == (2, 8, 8, 8), outA.shape
    assert bool(jnp.all(jnp.isfinite(outA)))
    assert float(jnp.max(jnp.abs(outA - refA))) < 2e-2

    # Config B: identity-shortcut block (stride=1, in_planes == planes).
    xB = jax.random.normal(kx2, (2, 8, 16, 16), jnp.float32)
    pB = make_basic_block_params(kp2, in_planes=8, planes=8, stride=1)
    outB = jax.block_until_ready(jax.jit(lambda v: basic_block_forward(v, pB))(xB))
    refB = basic_block_reference(xB, pB)
    assert outB.shape == (2, 8, 16, 16), outB.shape
    assert bool(jnp.all(jnp.isfinite(outB)))
    assert float(jnp.max(jnp.abs(outB - refB))) < 2e-2

    print("KERNEL_OK")
</pallas_src>

<mosaic_0001>
module attributes {stable_mosaic.version = 11 : i64} {
  func.func @_basic_block_kernel(%arg0: i32, %arg1: memref<650x384xbf16, #tpu.memory_space<vmem>>, %arg2: memref<128x128xbf16, #tpu.memory_space<vmem>>, %arg3: memref<3x384x128xbf16, #tpu.memory_space<vmem>>, %arg4: memref<1x128xf32, #tpu.memory_space<vmem>>, %arg5: memref<3x384x128xbf16, #tpu.memory_space<vmem>>, %arg6: memref<1x128xf32, #tpu.memory_space<vmem>>, %arg7: memref<128x128xbf16, #tpu.memory_space<vmem>>, %arg8: memref<1x128xf32, #tpu.memory_space<vmem>>, %arg9: memref<128x128xf32, #tpu.memory_space<vmem>>, %arg10: memref<648x128xf32, #tpu.memory_space<vmem>>, %arg11: memref<202x384xbf16, #tpu.memory_space<vmem>>) attributes {dimension_semantics = [#tpu.dimension_semantics<arbitrary>], iteration_bounds = array<i64: 1>, scalar_prefetch = 0 : i64, scratch_operands = 2 : i64, tpu.core_type = #tpu.core_type<tc>, window_params = [{pipeline_mode = #tpu.pipeline_mode<synchronous>, transform_indices = @transform_0, window_bounds = array<i64: 650, 384>}, {pipeline_mode = #tpu.pipeline_mode<synchronous>, transform_indices = @transform_1, window_bounds = array<i64: 128, 128>}, {pipeline_mode = #tpu.pipeline_mode<synchronous>, transform_indices = @transform_2, window_bounds = array<i64: 3, 384, 128>}, {pipeline_mode = #tpu.pipeline_mode<synchronous>, transform_indices = @transform_3, window_bounds = array<i64: 1, 128>}, {pipeline_mode = #tpu.pipeline_mode<synchronous>, transform_indices = @transform_4, window_bounds = array<i64: 3, 384, 128>}, {pipeline_mode = #tpu.pipeline_mode<synchronous>, transform_indices = @transform_5, window_bounds = array<i64: 1, 128>}, {pipeline_mode = #tpu.pipeline_mode<synchronous>, transform_indices = @transform_6, window_bounds = array<i64: 128, 128>}, {pipeline_mode = #tpu.pipeline_mode<synchronous>, transform_indices = @transform_7, window_bounds = array<i64: 1, 128>}, {pipeline_mode = #tpu.pipeline_mode<synchronous>, transform_indices = @transform_8, window_bounds = array<i64: 128, 128>}]} {
    %c0 = arith.constant 0 : index
    %c0_0 = arith.constant 0 : index
    %0 = vector.load %arg1[%c0, %c0_0] : memref<650x384xbf16, #tpu.memory_space<vmem>>, vector<648x384xbf16>
    %c0_1 = arith.constant 0 : index
    %c0_2 = arith.constant 0 : index
    %c0_3 = arith.constant 0 : index
    %1 = vector.load %arg3[%c0_1, %c0_2, %c0_3] : memref<3x384x128xbf16, #tpu.memory_space<vmem>>, vector<1x384x128xbf16>
    %2 = vector.shape_cast %1 : vector<1x384x128xbf16> to vector<384x128xbf16>
    %cst = arith.constant dense<0.000000e+00> : vector<648x128xf32>
    %3 = tpu.matmul %0, %2, %cst {dimension_numbers = #tpu.dot_dimension_numbers<[1], [0], [0], [1], [0, 0, 1, 1], [], []>} : vector<648x384xbf16>, vector<384x128xbf16>, vector<648x128xf32> -> vector<648x128xf32>
    %c1 = arith.constant 1 : index
    %c0_4 = arith.constant 0 : index
    %4 = vector.load %arg1[%c1, %c0_4] : memref<650x384xbf16, #tpu.memory_space<vmem>>, vector<648x384xbf16>
    %c1_5 = arith.constant 1 : index
    %c0_6 = arith.constant 0 : index
    %c0_7 = arith.constant 0 : index
    %5 = vector.load %arg3[%c1_5, %c0_6, %c0_7] : memref<3x384x128xbf16, #tpu.memory_space<vmem>>, vector<1x384x128xbf16>
    %6 = vector.shape_cast %5 : vector<1x384x128xbf16> to vector<384x128xbf16>
    %cst_8 = arith.constant dense<0.000000e+00> : vector<648x128xf32>
    %7 = tpu.matmul %4, %6, %cst_8 {dimension_numbers = #tpu.dot_dimension_numbers<[1], [0], [0], [1], [0, 0, 1, 1], [], []>} : vector<648x384xbf16>, vector<384x128xbf16>, vector<648x128xf32> -> vector<648x128xf32>
    %8 = arith.addf %3, %7 : vector<648x128xf32>
    %c2 = arith.constant 2 : index
    %c0_9 = arith.constant 0 : index
    %9 = vector.load %arg1[%c2, %c0_9] : memref<650x384xbf16, #tpu.memory_space<vmem>>, vector<648x384xbf16>
    %c2_10 = arith.constant 2 : index
    %c0_11 = arith.constant 0 : index
    %c0_12 = arith.constant 0 : index
    %10 = vector.load %arg3[%c2_10, %c0_11, %c0_12] : memref<3x384x128xbf16, #tpu.memory_space<vmem>>, vector<1x384x128xbf16>
    %11 = vector.shape_cast %10 : vector<1x384x128xbf16> to vector<384x128xbf16>
    %cst_13 = arith.constant dense<0.000000e+00> : vector<648x128xf32>
    %12 = tpu.matmul %9, %11, %cst_13 {dimension_numbers = #tpu.dot_dimension_numbers<[1], [0], [0], [1], [0, 0, 1, 1], [], []>} : vector<648x384xbf16>, vector<384x128xbf16>, vector<648x128xf32> -> vector<648x128xf32>
    %13 = arith.addf %8, %12 : vector<648x128xf32>
    %c0_14 = arith.constant 0 : index
    %c0_15 = arith.constant 0 : index
    %14 = vector.load %arg4[%c0_14, %c0_15] : memref<1x128xf32, #tpu.memory_space<vmem>>, vector<1x128xf32>
    %15 = vector.broadcast %14 : vector<1x128xf32> to vector<648x128xf32>
    %16 = arith.addf %13, %15 : vector<648x128xf32>
    %cst_16 = arith.constant 0.000000e+00 : f32
    %17 = vector.broadcast %cst_16 : f32 to vector<648x128xf32>
    %18 = arith.maximumf %16, %17 : vector<648x128xf32>
    %c0_17 = arith.constant 0 : index
    %c0_18 = arith.constant 0 : index
    %19 = vector.load %arg10[%c0_17, %c0_18] : memref<648x128xf32, #tpu.memory_space<vmem>>, vector<648x128xf32>
    tpu.vector_store %arg10[%c0_17, %c0_18], %18 {strides = array<i32>} : memref<648x128xf32, #tpu.memory_space<vmem>>, vector<648x128xf32>,
    %c0_19 = arith.constant 0 : index
    %c0_20 = arith.constant 0 : index
    %20 = vector.load %arg2[%c0_19, %c0_20] : memref<128x128xbf16, #tpu.memory_space<vmem>>, vector<128x128xbf16>
    %c0_21 = arith.constant 0 : index
    %c0_22 = arith.constant 0 : index
    %21 = vector.load %arg7[%c0_21, %c0_22] : memref<128x128xbf16, #tpu.memory_space<vmem>>, vector<128x128xbf16>
    %cst_23 = arith.constant dense<0.000000e+00> : vector<128x128xf32>
    %22 = tpu.matmul %20, %21, %cst_23 {dimension_numbers = #tpu.dot_dimension_numbers<[1], [0], [0], [1], [0, 0, 1, 1], [], []>} : vector<128x128xbf16>, vector<128x128xbf16>, vector<128x128xf32> -> vector<128x128xf32>
    %c0_24 = arith.constant 0 : index
    %c0_25 = arith.constant 0 : index
    %23 = vector.load %arg8[%c0_24, %c0_25] : memref<1x128xf32, #tpu.memory_space<vmem>>, vector<1x128xf32>
    %24 = vector.broadcast %23 : vector<1x128xf32> to vector<128x128xf32>
    %25 = arith.addf %22, %24 : vector<128x128xf32>
    %cst_26 = arith.constant 0.000000e+00 : bf16
    %26 = vector.broadcast %cst_26 : bf16 to vector<202x384xbf16>
    %c0_27 = arith.constant 0 : index
    %c0_28 = arith.constant 0 : index
    %27 = vector.load %arg11[%c0_27, %c0_28] : memref<202x384xbf16, #tpu.memory_space<vmem>>, vector<202x384xbf16>
    tpu.vector_store %arg11[%c0_27, %c0_28], %26 {strides = array<i32>} : memref<202x384xbf16, #tpu.memory_space<vmem>>, vector<202x384xbf16>,
    %c19 = arith.constant 19 : index
    %c0_29 = arith.constant 0 : index
    %28 = tpu.strided_load %arg10[%c19, %c0_29] {strides = array<i32: 2, 1>} : memref<648x128xf32, #tpu.memory_space<vmem>>, vector<8x128xf32>
    %29 = arith.truncf %28 : vector<8x128xf32> to vector<8x128xbf16>
    %c22 = arith.constant 22 : index
    %c0_30 = arith.constant 0 : index
    %30 = vector.load %arg11[%c22, %c0_30] : memref<202x384xbf16, #tpu.memory_space<vmem>>, vector<8x128xbf16>
    tpu.vector_store %arg11[%c22, %c0_30], %29 {strides = array<i32>} : memref<202x384xbf16, #tpu.memory_space<vmem>>, vector<8x128xbf16>,
    %c12 = arith.constant 12 : index
    %c128 = arith.constant 128 : index
    %31 = vector.load %arg11[%c12, %c128] : memref<202x384xbf16, #tpu.memory_space<vmem>>, vector<8x128xbf16>
    tpu.vector_store %arg11[%c12, %c128], %29 {strides = array<i32>} : memref<202x384xbf16, #tpu.memory_space<vmem>>, vector<8x128xbf16>,
    %c2_31 = arith.constant 2 : index
    %c256 = arith.constant 256 : index
    %32 = vector.load %arg11[%c2_31, %c256] : memref<202x384xbf16, #tpu.memory_space<vmem>>, vector<8x128xbf16>
    tpu.vector_store %arg11[%c2_31, %c256], %29 {strides = array<i32>} : memref<202x384xbf16, #tpu.memory_space<vmem>>, vector<8x128xbf16>,
    %c55 = arith.constant 55 : index
    %c0_32 = arith.constant 0 : index
    %33 = tpu.strided_load %arg10[%c55, %c0_32] {strides = array<i32: 2, 1>} : memref<648x128xf32, #tpu.memory_space<vmem>>, vector<8x128xf32>
    %34 = arith.truncf %33 : vector<8x128xf32> to vector<8x128xbf16>
    %c32 = arith.constant 32 : index
    %c0_33 = arith.constant 0 : index
    %35 = vector.load %arg11[%c32, %c0_33] : memref<202x384xbf16, #tpu.memory_space<vmem>>, vector<8x128xbf16>
    tpu.vector_store %arg11[%c32, %c0_33], %34 {strides = array<i32>} : memref<202x384xbf16, #tpu.memory_space<vmem>>, vector<8x128xbf16>,
    %c22_34 = arith.constant 22 : index
    %c128_35 = arith.constant 128 : index
    %36 = vector.load %arg11[%c22_34, %c128_35] : memref<202x384xbf16, #tpu.memory_space<vmem>>, vector<8x128xbf16>
    tpu.vector_store %arg11[%c22_34, %c128_35], %34 {strides = array<i32>} : memref<202x384xbf16, #tpu.memory_space<vmem>>, vector<8x128xbf16>,
    %c12_36 = arith.constant 12 : index
    %c256_37 = arith.constant 256 : index
    %37 = vector.load %arg11[%c12_36, %c256_37] : memref<202x384xbf16, #tpu.memory_space<vmem>>, vector<8x128xbf16>
    tpu.vector_store %arg11[%c12_36, %c256_37], %34 {strides = array<i32>} : memref<202x384xbf16, #tpu.memory_space<vmem>>, vector<8x128xbf16>,
    %c91 = arith.constant 91 : index
    %c0_38 = arith.constant 0 : index
    %38 = tpu.strided_load %arg10[%c91, %c0_38] {strides = array<i32: 2, 1>} : memref<648x128xf32, #tpu.memory_space<vmem>>, vector<8x128xf32>
    %39 = arith.truncf %38 : vector<8x128xf32> to vector<8x128xbf16>
    %c42 = arith.constant 42 : index
    %c0_39 = arith.constant 0 : index
    %40 = vector.load %arg11[%c42, %c0_39] : memref<202x384xbf16, #tpu.memory_space<vmem>>, vector<8x128xbf16>
    tpu.vector_store %arg11[%c42, %c0_39], %39 {strides = array<i32>} : memref<202x384xbf16, #tpu.memory_space<vmem>>, vector<8x128xbf16>,
    %c32_40 = arith.constant 32 : index
    %c128_41 = arith.constant 128 : index
    %41 = vector.load %arg11[%c32_40, %c128_41] : memref<202x384xbf16, #tpu.memory_space<vmem>>, vector<8x128xbf16>
    tpu.vector_store %arg11[%c32_40, %c128_41], %39 {strides = array<i32>} : memref<202x384xbf16, #tpu.memory_space<vmem>>, vector<8x128xbf16>,
    %c22_42 = arith.constant 22 : index
    %c256_43 = arith.constant 256 : index
    %42 = vector.load %arg11[%c22_42, %c256_43] : memref<202x384xbf16, #tpu.memory_space<vmem>>, vector<8x128xbf16>
    tpu.vector_store %arg11[%c22_42, %c256_43], %39 {strides = array<i32>} : memref<202x384xbf16, #tpu.memory_space<vmem>>, vector<8x128xbf16>,
    %c127 = arith.constant 127 : index
    %c0_44 = arith.constant 0 : index
    %43 = tpu.strided_load %arg10[%c127, %c0_44] {strides = array<i32: 2, 1>} : memref<648x128xf32, #tpu.memory_space<vmem>>, vector<8x128xf32>
    %44 = arith.truncf %43 : vector<8x128xf32> to vector<8x128xbf16>
    %c52 = arith.constant 52 : index
    %c0_45 = arith.constant 0 : index
    %45 = vector.load %arg11[%c52, %c0_45] : memref<202x384xbf16, #tpu.memory_space<vmem>>, vector<8x128xbf16>
    tpu.vector_store %arg11[%c52, %c0_45], %44 {strides = array<i32>} : memref<202x384xbf16, #tpu.memory_space<vmem>>, vector<8x128xbf16>,
    %c42_46 = arith.constant 42 : index
    %c128_47 = arith.constant 128 : index
    %46 = vector.load %arg11[%c42_46, %c128_47] : memref<202x384xbf16, #tpu.memory_space<vmem>>, vector<8x128xbf16>
    tpu.vector_store %arg11[%c42_46, %c128_47], %44 {strides = array<i32>} : memref<202x384xbf16, #tpu.memory_space<vmem>>, vector<8x128xbf16>,
    %c32_48 = arith.constant 32 : index
    %c256_49 = arith.constant 256 : index
    %47 = vector.load %arg11[%c32_48, %c256_49] : memref<202x384xbf16, #tpu.memory_space<vmem>>, vector<8x128xbf16>
    tpu.vector_store %arg11[%c32_48, %c256_49], %44 {strides = array<i32>} : memref<202x384xbf16, #tpu.memory_space<vmem>>, vector<8x128xbf16>,
    %c163 = arith.constant 163 : index
    %c0_50 = arith.constant 0 : index
    %48 = tpu.strided_load %arg10[%c163, %c0_50] {strides = array<i32: 2, 1>} : memref<648x128xf32, #tpu.memory_space<vmem>>, vector<8x128xf32>
    %49 = arith.truncf %48 : vector<8x128xf32> to vector<8x128xbf16>
    %c62 = arith.constant 62 : index
    %c0_51 = arith.constant 0 : index
    %50 = vector.load %arg11[%c62, %c0_51] : memref<202x384xbf16, #tpu.memory_space<vmem>>, vector<8x128xbf16>
    tpu.vector_store %arg11[%c62, %c0_51], %49 {strides = array<i32>} : memref<202x384xbf16, #tpu.memory_space<vmem>>, vector<8x128xbf16>,
    %c52_52 = arith.constant 52 : index
    %c128_53 = arith.constant 128 : index
    %51 = vector.load %arg11[%c52_52, %c128_53] : memref<202x384xbf16, #tpu.memory_space<vmem>>, vector<8x128xbf16>
    tpu.vector_store %arg11[%c52_52, %c128_53], %49 {strides = array<i32>} : memref<202x384xbf16, #tpu.memory_space<vmem>>, vector<8x128xbf16>,
    %c42_54 = arith.constant 42 : index
    %c256_55 = arith.constant 256 : index
    %52 = vector.load %arg11[%c42_54, %c256_55] : memref<202x384xbf16, #tpu.memory_space<vmem>>, vector<8x128xbf16>
    tpu.vector_store %arg11[%c42_54, %c256_55], %49 {strides = array<i32>} : memref<202x384xbf16, #tpu.memory_space<vmem>>, vector<8x128xbf16>,
    %c199 = arith.constant 199 : index
    %c0_56 = arith.constant 0 : index
    %53 = tpu.strided_load %arg10[%c199, %c0_56] {strides = array<i32: 2, 1>} : memref<648x128xf32, #tpu.memory_space<vmem>>, vector<8x128xf32>
    %54 = arith.truncf %53 : vector<8x128xf32> to vector<8x128xbf16>
    %c72 = arith.constant 72 : index
    %c0_57 = arith.constant 0 : index
    %55 = vector.load %arg11[%c72, %c0_57] : memref<202x384xbf16, #tpu.memory_space<vmem>>, vector<8x128xbf16>
    tpu.vector_store %arg11[%c72, %c0_57], %54 {strides = array<i32>} : memref<202x384xbf16, #tpu.memory_space<vmem>>, vector<8x128xbf16>,
    %c62_58 = arith.constant 62 : index
    %c128_59 = arith.constant 128 : index
    %56 = vector.load %arg11[%c62_58, %c128_59] : memref<202x384xbf16, #tpu.memory_space<vmem>>, vector<8x128xbf16>
    tpu.vector_store %arg11[%c62_58, %c128_59], %54 {strides = array<i32>} : memref<202x384xbf16, #tpu.memory_space<vmem>>, vector<8x128xbf16>,
    %c52_60 = arith.constant 52 : index
    %c256_61 = arith.constant 256 : index
    %57 = vector.load %arg11[%c52_60, %c256_61] : memref<202x384xbf16, #tpu.memory_space<vmem>>, vector<8x128xbf16>
    tpu.vector_store %arg11[%c52_60, %c256_61], %54 {strides = array<i32>} : memref<202x384xbf16, #tpu.memory_space<vmem>>, vector<8x128xbf16>,
    %c235 = arith.constant 235 : index
    %c0_62 = arith.constant 0 : index
    %58 = tpu.strided_load %arg10[%c235, %c0_62] {strides = array<i32: 2, 1>} : memref<648x128xf32, #tpu.memory_space<vmem>>, vector<8x128xf32>
    %59 = arith.truncf %58 : vector<8x128xf32> to vector<8x128xbf16>
    %c82 = arith.constant 82 : index
    %c0_63 = arith.constant 0 : index
    %60 = vector.load %arg11[%c82, %c0_63] : memref<202x384xbf16, #tpu.memory_space<vmem>>, vector<8x128xbf16>
    tpu.vector_store %arg11[%c82, %c0_63], %59 {strides = array<i32>} : memref<202x384xbf16, #tpu.memory_space<vmem>>, vector<8x128xbf16>,
    %c72_64 = arith.constant 72 : index
    %c128_65 = arith.constant 128 : index
    %61 = vector.load %arg11[%c72_64, %c128_65] : memref<202x384xbf16, #tpu.memory_space<vmem>>, vector<8x128xbf16>
    tpu.vector_store %arg11[%c72_64, %c128_65], %59 {strides = array<i32>} : memref<202x384xbf16, #tpu.memory_space<vmem>>, vector<8x128xbf16>,
    %c62_66 = arith.constant 62 : index
    %c256_67 = arith.constant 256 : index
    %62 = vector.load %arg11[%c62_66, %c256_67] : memref<202x384xbf16, #tpu.memory_space<vmem>>, vector<8x128xbf16>
    tpu.vector_store %arg11[%c62_66, %c256_67], %59 {strides = array<i32>} : memref<202x384xbf16, #tpu.memory_space<vmem>>, vector<8x128xbf16>,
    %c271 = arith.constant 271 : index
    %c0_68 = arith.constant 0 : index
    %63 = tpu.strided_load %arg10[%c271, %c0_68] {strides = array<i32: 2, 1>} : memref<648x128xf32, #tpu.memory_space<vmem>>, vector<8x128xf32>
    %64 = arith.truncf %63 : vector<8x128xf32> to vector<8x128xbf16>
    %c92 = arith.constant 92 : index
    %c0_69 = arith.constant 0 : index
    %65 = vector.load %arg11[%c92, %c0_69] : memref<202x384xbf16, #tpu.memory_space<vmem>>, vector<8x128xbf16>
    tpu.vector_store %arg11[%c92, %c0_69], %64 {strides = array<i32>} : memref<202x384xbf16, #tpu.memory_space<vmem>>, vector<8x128xbf16>,
    %c82_70 = arith.constant 82 : index
    %c128_71 = arith.constant 128 : index
    %66 = vector.load %arg11[%c82_70, %c128_71] : memref<202x384xbf16, #tpu.memory_space<vmem>>, vector<8x128xbf16>
    tpu.vector_store %arg11[%c82_70, %c128_71], %64 {strides = array<i32>} : memref<202x384xbf16, #tpu.memory_space<vmem>>, vector<8x128xbf16>,
    %c72_72 = arith.constant 72 : index
    %c256_73 = arith.constant 256 : index
    %67 = vector.load %arg11[%c72_72, %c256_73] : memref<202x384xbf16, #tpu.memory_space<vmem>>, vector<8x128xbf16>
    tpu.vector_store %arg11[%c72_72, %c256_73], %64 {strides = array<i32>} : memref<202x384xbf16, #tpu.memory_space<vmem>>, vector<8x128xbf16>,
    %c343 = arith.constant 343 : index
    %c0_74 = arith.constant 0 : index
    %68 = tpu.strided_load %arg10[%c343, %c0_74] {strides = array<i32: 2, 1>} : memref<648x128xf32, #tpu.memory_space<vmem>>, vector<8x128xf32>
    %69 = arith.truncf %68 : vector<8x128xf32> to vector<8x128xbf16>
    %c122 = arith.constant 122 : index
    %c0_75 = arith.constant 0 : index
    %70 = vector.load %arg11[%c122, %c0_75] : memref<202x384xbf16, #tpu.memory_space<vmem>>, vector<8x128xbf16>
    tpu.vector_store %arg11[%c122, %c0_75], %69 {strides = array<i32>} : memref<202x384xbf16, #tpu.memory_space<vmem>>, vector<8x128xbf16>,
    %c112 = arith.constant 112 : index
    %c128_76 = arith.constant 128 : index
    %71 = vector.load %arg11[%c112, %c128_76] : memref<202x384xbf16, #tpu.memory_space<vmem>>, vector<8x128xbf16>
    tpu.vector_store %arg11[%c112, %c128_76], %69 {strides = array<i32>} : memref<202x384xbf16, #tpu.memory_space<vmem>>, vector<8x128xbf16>,
    %c102 = arith.constant 102 : index
    %c256_77 = arith.constant 256 : index
    %72 = vector.load %arg11[%c102, %c256_77] : memref<202x384xbf16, #tpu.memory_space<vmem>>, vector<8x128xbf16>
    tpu.vector_store %arg11[%c102, %c256_77], %69 {strides = array<i32>} : memref<202x384xbf16, #tpu.memory_space<vmem>>, vector<8x128xbf16>,
    %c379 = arith.constant 379 : index
    %c0_78 = arith.constant 0 : index
    %73 = tpu.strided_load %arg10[%c379, %c0_78] {strides = array<i32: 2, 1>} : memref<648x128xf32, #tpu.memory_space<vmem>>, vector<8x128xf32>
    %74 = arith.truncf %73 : vector<8x128xf32> to vector<8x128xbf16>
    %c132 = arith.constant 132 : index
    %c0_79 = arith.constant 0 : index
    %75 = vector.load %arg11[%c132, %c0_79] : memref<202x384xbf16, #tpu.memory_space<vmem>>, vector<8x128xbf16>
    tpu.vector_store %arg11[%c132, %c0_79], %74 {strides = array<i32>} : memref<202x384xbf16, #tpu.memory_space<vmem>>, vector<8x128xbf16>,
    %c122_80 = arith.constant 122 : index
    %c128_81 = arith.constant 128 : index
    %76 = vector.load %arg11[%c122_80, %c128_81] : memref<202x384xbf16, #tpu.memory_space<vmem>>, vector<8x128xbf16>
    tpu.vector_store %arg11[%c122_80, %c128_81], %74 {strides = array<i32>} : memref<202x384xbf16, #tpu.memory_space<vmem>>, vector<8x128xbf16>,
    %c112_82 = arith.constant 112 : index
    %c256_83 = arith.constant 256 : index
    %77 = vector.load %arg11[%c112_82, %c256_83] : memref<202x384xbf16, #tpu.memory_space<vmem>>, vector<8x128xbf16>
    tpu.vector_store %arg11[%c112_82, %c256_83], %74 {strides = array<i32>} : memref<202x384xbf16, #tpu.memory_space<vmem>>, vector<8x128xbf16>,
    %c415 = arith.constant 415 : index
    %c0_84 = arith.constant 0 : index
    %78 = tpu.strided_load %arg10[%c415, %c0_84] {strides = array<i32: 2, 1>} : memref<648x128xf32, #tpu.memory_space<vmem>>, vector<8x128xf32>
    %79 = arith.truncf %78 : vector<8x128xf32> to vector<8x128xbf16>
    %c142 = arith.constant 142 : index
    %c0_85 = arith.constant 0 : index
    %80 = vector.load %arg11[%c142, %c0_85] : memref<202x384xbf16, #tpu.memory_space<vmem>>, vector<8x128xbf16>
    tpu.vector_store %arg11[%c142, %c0_85], %79 {strides = array<i32>} : memref<202x384xbf16, #tpu.memory_space<vmem>>, vector<8x128xbf16>,
    %c132_86 = arith.constant 132 : index
    %c128_87 = arith.constant 128 : index
    %81 = vector.load %arg11[%c132_86, %c128_87] : memref<202x384xbf16, #tpu.memory_space<vmem>>, vector<8x128xbf16>
    tpu.vector_store %arg11[%c132_86, %c128_87], %79 {strides = array<i32>} : memref<202x384xbf16, #tpu.memory_space<vmem>>, vector<8x128xbf16>,
    %c122_88 = arith.constant 122 : index
    %c256_89 = arith.constant 256 : index
    %82 = vector.load %arg11[%c122_88, %c256_89] : memref<202x384xbf16, #tpu.memory_space<vmem>>, vector<8x128xbf16>
    tpu.vector_store %arg11[%c122_88, %c256_89], %79 {strides = array<i32>} : memref<202x384xbf16, #tpu.memory_space<vmem>>, vector<8x128xbf16>,
    %c451 = arith.constant 451 : index
    %c0_90 = arith.constant 0 : index
    %83 = tpu.strided_load %arg10[%c451, %c0_90] {strides = array<i32: 2, 1>} : memref<648x128xf32, #tpu.memory_space<vmem>>, vector<8x128xf32>
    %84 = arith.truncf %83 : vector<8x128xf32> to vector<8x128xbf16>
    %c152 = arith.constant 152 : index
    %c0_91 = arith.constant 0 : index
    %85 = vector.load %arg11[%c152, %c0_91] : memref<202x384xbf16, #tpu.memory_space<vmem>>, vector<8x128xbf16>
    tpu.vector_store %arg11[%c152, %c0_91], %84 {strides = array<i32>} : memref<202x384xbf16, #tpu.memory_space<vmem>>, vector<8x128xbf16>,
    %c142_92 = arith.constant 142 : index
    %c128_93 = arith.constant 128 : index
    %86 = vector.load %arg11[%c142_92, %c128_93] : memref<202x384xbf16, #tpu.memory_space<vmem>>, vector<8x128xbf16>
    tpu.vector_store %arg11[%c142_92, %c128_93], %84 {strides = array<i32>} : memref<202x384xbf16, #tpu.memory_space<vmem>>, vector<8x128xbf16>,
    %c132_94 = arith.constant 132 : index
    %c256_95 = arith.constant 256 : index
    %87 = vector.load %arg11[%c132_94, %c256_95] : memref<202x384xbf16, #tpu.memory_space<vmem>>, vector<8x128xbf16>
    tpu.vector_store %arg11[%c132_94, %c256_95], %84 {strides = array<i32>} : memref<202x384xbf16, #tpu.memory_space<vmem>>, vector<8x128xbf16>,
    %c487 = arith.constant 487 : index
    %c0_96 = arith.constant 0 : index
    %88 = tpu.strided_load %arg10[%c487, %c0_96] {strides = array<i32: 2, 1>} : memref<648x128xf32, #tpu.memory_space<vmem>>, vector<8x128xf32>
    %89 = arith.truncf %88 : vector<8x128xf32> to vector<8x128xbf16>
    %c162 = arith.constant 162 : index
    %c0_97 = arith.constant 0 : index
    %90 = vector.load %arg11[%c162, %c0_97] : memref<202x384xbf16, #tpu.memory_space<vmem>>, vector<8x128xbf16>
    tpu.vector_store %arg11[%c162, %c0_97], %89 {strides = array<i32>} : memref<202x384xbf16, #tpu.memory_space<vmem>>, vector<8x128xbf16>,
    %c152_98 = arith.constant 152 : index
    %c128_99 = arith.constant 128 : index
    %91 = vector.load %arg11[%c152_98, %c128_99] : memref<202x384xbf16, #tpu.memory_space<vmem>>, vector<8x128xbf16>
    tpu.vector_store %arg11[%c152_98, %c128_99], %89 {strides = array<i32>} : memref<202x384xbf16, #tpu.memory_space<vmem>>, vector<8x128xbf16>,
    %c142_100 = arith.constant 142 : index
    %c256_101 = arith.constant 256 : index
    %92 = vector.load %arg11[%c142_100, %c256_101] : memref<202x384xbf16, #tpu.memory_space<vmem>>, vector<8x128xbf16>
    tpu.vector_store %arg11[%c142_100, %c256_101], %89 {strides = array<i32>} : memref<202x384xbf16, #tpu.memory_space<vmem>>, vector<8x128xbf16>,
    %c523 = arith.constant 523 : index
    %c0_102 = arith.constant 0 : index
    %93 = tpu.strided_load %arg10[%c523, %c0_102] {strides = array<i32: 2, 1>} : memref<648x128xf32, #tpu.memory_space<vmem>>, vector<8x128xf32>
    %94 = arith.truncf %93 : vector<8x128xf32> to vector<8x128xbf16>
    %c172 = arith.constant 172 : index
    %c0_103 = arith.constant 0 : index
    %95 = vector.load %arg11[%c172, %c0_103] : memref<202x384xbf16, #tpu.memory_space<vmem>>, vector<8x128xbf16>
    tpu.vector_store %arg11[%c172, %c0_103], %94 {strides = array<i32>} : memref<202x384xbf16, #tpu.memory_space<vmem>>, vector<8x128xbf16>,
    %c162_104 = arith.constant 162 : index
    %c128_105 = arith.constant 128 : index
    %96 = vector.load %arg11[%c162_104, %c128_105] : memref<202x384xbf16, #tpu.memory_space<vmem>>, vector<8x128xbf16>
    tpu.vector_store %arg11[%c162_104, %c128_105], %94 {strides = array<i32>} : memref<202x384xbf16, #tpu.memory_space<vmem>>, vector<8x128xbf16>,
    %c152_106 = arith.constant 152 : index
    %c256_107 = arith.constant 256 : index
    %97 = vector.load %arg11[%c152_106, %c256_107] : memref<202x384xbf16, #tpu.memory_space<vmem>>, vector<8x128xbf16>
    tpu.vector_store %arg11[%c152_106, %c256_107], %94 {strides = array<i32>} : memref<202x384xbf16, #tpu.memory_space<vmem>>, vector<8x128xbf16>,
    %c559 = arith.constant 559 : index
    %c0_108 = arith.constant 0 : index
    %98 = tpu.strided_load %arg10[%c559, %c0_108] {strides = array<i32: 2, 1>} : memref<648x128xf32, #tpu.memory_space<vmem>>, vector<8x128xf32>
    %99 = arith.truncf %98 : vector<8x128xf32> to vector<8x128xbf16>
    %c182 = arith.constant 182 : index
    %c0_109 = arith.constant 0 : index
    %100 = vector.load %arg11[%c182, %c0_109] : memref<202x384xbf16, #tpu.memory_space<vmem>>, vector<8x128xbf16>
    tpu.vector_store %arg11[%c182, %c0_109], %99 {strides = array<i32>} : memref<202x384xbf16, #tpu.memory_space<vmem>>, vector<8x128xbf16>,
    %c172_110 = arith.constant 172 : index
    %c128_111 = arith.constant 128 : index
    %101 = vector.load %arg11[%c172_110, %c128_111] : memref<202x384xbf16, #tpu.memory_space<vmem>>, vector<8x128xbf16>
    tpu.vector_store %arg11[%c172_110, %c128_111], %99 {strides = array<i32>} : memref<202x384xbf16, #tpu.memory_space<vmem>>, vector<8x128xbf16>,
    %c162_112 = arith.constant 162 : index
    %c256_113 = arith.constant 256 : index
    %102 = vector.load %arg11[%c162_112, %c256_113] : memref<202x384xbf16, #tpu.memory_space<vmem>>, vector<8x128xbf16>
    tpu.vector_store %arg11[%c162_112, %c256_113], %99 {strides = array<i32>} : memref<202x384xbf16, #tpu.memory_space<vmem>>, vector<8x128xbf16>,
    %c595 = arith.constant 595 : index
    %c0_114 = arith.constant 0 : index
    %103 = tpu.strided_load %arg10[%c595, %c0_114] {strides = array<i32: 2, 1>} : memref<648x128xf32, #tpu.memory_space<vmem>>, vector<8x128xf32>
    %104 = arith.truncf %103 : vector<8x128xf32> to vector<8x128xbf16>
    %c192 = arith.constant 192 : index
    %c0_115 = arith.constant 0 : index
    %105 = vector.load %arg11[%c192, %c0_115] : memref<202x384xbf16, #tpu.memory_space<vmem>>, vector<8x128xbf16>
    tpu.vector_store %arg11[%c192, %c0_115], %104 {strides = array<i32>} : memref<202x384xbf16, #tpu.memory_space<vmem>>, vector<8x128xbf16>,
    %c182_116 = arith.constant 182 : index
    %c128_117 = arith.constant 128 : index
    %106 = vector.load %arg11[%c182_116, %c128_117] : memref<202x384xbf16, #tpu.memory_space<vmem>>, vector<8x128xbf16>
    tpu.vector_store %arg11[%c182_116, %c128_117], %104 {strides = array<i32>} : memref<202x384xbf16, #tpu.memory_space<vmem>>, vector<8x128xbf16>,
    %c172_118 = arith.constant 172 : index
    %c256_119 = arith.constant 256 : index
    %107 = vector.load %arg11[%c172_118, %c256_119] : memref<202x384xbf16, #tpu.memory_space<vmem>>, vector<8x128xbf16>
    tpu.vector_store %arg11[%c172_118, %c256_119], %104 {strides = array<i32>} : memref<202x384xbf16, #tpu.memory_space<vmem>>, vector<8x128xbf16>,
    %c0_120 = arith.constant 0 : index
    %c0_121 = arith.constant 0 : index
    %108 = vector.load %arg11[%c0_120, %c0_121] : memref<202x384xbf16, #tpu.memory_space<vmem>>, vector<200x384xbf16>
    %c0_122 = arith.constant 0 : index
    %c0_123 = arith.constant 0 : index
    %c0_124 = arith.constant 0 : index
    %109 = vector.load %arg5[%c0_122, %c0_123, %c0_124] : memref<3x384x128xbf16, #tpu.memory_space<vmem>>, vector<1x384x128xbf16>
    %110 = vector.shape_cast %109 : vector<1x384x128xbf16> to vector<384x128xbf16>
    %cst_125 = arith.constant dense<0.000000e+00> : vector<200x128xf32>
    %111 = tpu.matmul %108, %110, %cst_125 {dimension_numbers = #tpu.dot_dimension_numbers<[1], [0], [0], [1], [0, 0, 1, 1], [], []>} : vector<200x384xbf16>, vector<384x128xbf16>, vector<200x128xf32> -> vector<200x128xf32>
    %c1_126 = arith.constant 1 : index
    %c0_127 = arith.constant 0 : index
    %112 = vector.load %arg11[%c1_126, %c0_127] : memref<202x384xbf16, #tpu.memory_space<vmem>>, vector<200x384xbf16>
    %c1_128 = arith.constant 1 : index
    %c0_129 = arith.constant 0 : index
    %c0_130 = arith.constant 0 : index
    %113 = vector.load %arg5[%c1_128, %c0_129, %c0_130] : memref<3x384x128xbf16, #tpu.memory_space<vmem>>, vector<1x384x128xbf16>
    %114 = vector.shape_cast %113 : vector<1x384x128xbf16> to vector<384x128xbf16>
    %cst_131 = arith.constant dense<0.000000e+00> : vector<200x128xf32>
    %115 = tpu.matmul %112, %114, %cst_131 {dimension_numbers = #tpu.dot_dimension_numbers<[1], [0], [0], [1], [0, 0, 1, 1], [], []>} : vector<200x384xbf16>, vector<384x128xbf16>, vector<200x128xf32> -> vector<200x128xf32>
    %116 = arith.addf %111, %115 : vector<200x128xf32>
    %c2_132 = arith.constant 2 : index
    %c0_133 = arith.constant 0 : index
    %117 = vector.load %arg11[%c2_132, %c0_133] : memref<202x384xbf16, #tpu.memory_space<vmem>>, vector<200x384xbf16>
    %c2_134 = arith.constant 2 : index
    %c0_135 = arith.constant 0 : index
    %c0_136 = arith.constant 0 : index
    %118 = vector.load %arg5[%c2_134, %c0_135, %c0_136] : memref<3x384x128xbf16, #tpu.memory_space<vmem>>, vector<1x384x128xbf16>
    %119 = vector.shape_cast %118 : vector<1x384x128xbf16> to vector<384x128xbf16>
    %cst_137 = arith.constant dense<0.000000e+00> : vector<200x128xf32>
    %120 = tpu.matmul %117, %119, %cst_137 {dimension_numbers = #tpu.dot_dimension_numbers<[1], [0], [0], [1], [0, 0, 1, 1], [], []>} : vector<200x384xbf16>, vector<384x128xbf16>, vector<200x128xf32> -> vector<200x128xf32>
    %121 = arith.addf %116, %120 : vector<200x128xf32>
    %c0_138 = arith.constant 0 : index
    %c0_139 = arith.constant 0 : index
    %122 = vector.load %arg6[%c0_138, %c0_139] : memref<1x128xf32, #tpu.memory_space<vmem>>, vector<1x128xf32>
    %123 = vector.extract_strided_slice %121 {offsets = [11, 0], sizes = [8, 128], strides = [1, 1]} : vector<200x128xf32> to vector<8x128xf32>
    %124 = vector.broadcast %122 : vector<1x128xf32> to vector<8x128xf32>
    %125 = arith.addf %123, %124 : vector<8x128xf32>
    %126 = vector.extract_strided_slice %25 {offsets = [0, 0], sizes = [8, 128], strides = [1, 1]} : vector<128x128xf32> to vector<8x128xf32>
    %127 = arith.addf %125, %126 : vector<8x128xf32>
    %cst_140 = arith.constant 0.000000e+00 : f32
    %128 = vector.broadcast %cst_140 : f32 to vector<8x128xf32>
    %129 = arith.maximumf %127, %128 : vector<8x128xf32>
    %c0_141 = arith.constant 0 : index
    %c0_142 = arith.constant 0 : index
    %130 = vector.load %arg9[%c0_141, %c0_142] : memref<128x128xf32, #tpu.memory_space<vmem>>, vector<8x128xf32>
    tpu.vector_store %arg9[%c0_141, %c0_142], %129 {strides = array<i32>} : memref<128x128xf32, #tpu.memory_space<vmem>>, vector<8x128xf32>,
    %131 = vector.extract_strided_slice %121 {offsets = [21, 0], sizes = [8, 128], strides = [1, 1]} : vector<200x128xf32> to vector<8x128xf32>
    %132 = vector.broadcast %122 : vector<1x128xf32> to vector<8x128xf32>
    %133 = arith.addf %131, %132 : vector<8x128xf32>
    %134 = vector.extract_strided_slice %25 {offsets = [8, 0], sizes = [8, 128], strides = [1, 1]} : vector<128x128xf32> to vector<8x128xf32>
    %135 = arith.addf %133, %134 : vector<8x128xf32>
    %cst_143 = arith.constant 0.000000e+00 : f32
    %136 = vector.broadcast %cst_143 : f32 to vector<8x128xf32>
    %137 = arith.maximumf %135, %136 : vector<8x128xf32>
    %c8 = arith.constant 8 : index
    %c0_144 = arith.constant 0 : index
    %138 = vector.load %arg9[%c8, %c0_144] : memref<128x128xf32, #tpu.memory_space<vmem>>, vector<8x128xf32>
    tpu.vector_store %arg9[%c8, %c0_144], %137 {strides = array<i32>} : memref<128x128xf32, #tpu.memory_space<vmem>>, vector<8x128xf32>,
    %139 = vector.extract_strided_slice %121 {offsets = [31, 0], sizes = [8, 128], strides = [1, 1]} : vector<200x128xf32> to vector<8x128xf32>
    %140 = vector.broadcast %122 : vector<1x128xf32> to vector<8x128xf32>
    %141 = arith.addf %139, %140 : vector<8x128xf32>
    %142 = vector.extract_strided_slice %25 {offsets = [16, 0], sizes = [8, 128], strides = [1, 1]} : vector<128x128xf32> to vector<8x128xf32>
    %143 = arith.addf %141, %142 : vector<8x128xf32>
    %cst_145 = arith.constant 0.000000e+00 : f32
    %144 = vector.broadcast %cst_145 : f32 to vector<8x128xf32>
    %145 = arith.maximumf %143, %144 : vector<8x128xf32>
    %c16 = arith.constant 16 : index
    %c0_146 = arith.constant 0 : index
    %146 = vector.load %arg9[%c16, %c0_146] : memref<128x128xf32, #tpu.memory_space<vmem>>, vector<8x128xf32>
    tpu.vector_store %arg9[%c16, %c0_146], %145 {strides = array<i32>} : memref<128x128xf32, #tpu.memory_space<vmem>>, vector<8x128xf32>,
    %147 = vector.extract_strided_slice %121 {offsets = [41, 0], sizes = [8, 128], strides = [1, 1]} : vector<200x128xf32> to vector<8x128xf32>
    %148 = vector.broadcast %122 : vector<1x128xf32> to vector<8x128xf32>
    %149 = arith.addf %147, %148 : vector<8x128xf32>
    %150 = vector.extract_strided_slice %25 {offsets = [24, 0], sizes = [8, 128], strides = [1, 1]} : vector<128x128xf32> to vector<8x128xf32>
    %151 = arith.addf %149, %150 : vector<8x128xf32>
    %cst_147 = arith.constant 0.000000e+00 : f32
    %152 = vector.broadcast %cst_147 : f32 to vector<8x128xf32>
    %153 = arith.maximumf %151, %152 : vector<8x128xf32>
    %c24 = arith.constant 24 : index
    %c0_148 = arith.constant 0 : index
    %154 = vector.load %arg9[%c24, %c0_148] : memref<128x128xf32, #tpu.memory_space<vmem>>, vector<8x128xf32>
    tpu.vector_store %arg9[%c24, %c0_148], %153 {strides = array<i32>} : memref<128x128xf32, #tpu.memory_space<vmem>>, vector<8x128xf32>,
    %155 = vector.extract_strided_slice %121 {offsets = [51, 0], sizes = [8, 128], strides = [1, 1]} : vector<200x128xf32> to vector<8x128xf32>
    %156 = vector.broadcast %122 : vector<1x128xf32> to vector<8x128xf32>
    %157 = arith.addf %155, %156 : vector<8x128xf32>
    %158 = vector.extract_strided_slice %25 {offsets = [32, 0], sizes = [8, 128], strides = [1, 1]} : vector<128x128xf32> to vector<8x128xf32>
    %159 = arith.addf %157, %158 : vector<8x128xf32>
    %cst_149 = arith.constant 0.000000e+00 : f32
    %160 = vector.broadcast %cst_149 : f32 to vector<8x128xf32>
    %161 = arith.maximumf %159, %160 : vector<8x128xf32>
    %c32_150 = arith.constant 32 : index
    %c0_151 = arith.constant 0 : index
    %162 = vector.load %arg9[%c32_150, %c0_151] : memref<128x128xf32, #tpu.memory_space<vmem>>, vector<8x128xf32>
    tpu.vector_store %arg9[%c32_150, %c0_151], %161 {strides = array<i32>} : memref<128x128xf32, #tpu.memory_space<vmem>>, vector<8x128xf32>,
    %163 = vector.extract_strided_slice %121 {offsets = [61, 0], sizes = [8, 128], strides = [1, 1]} : vector<200x128xf32> to vector<8x128xf32>
    %164 = vector.broadcast %122 : vector<1x128xf32> to vector<8x128xf32>
    %165 = arith.addf %163, %164 : vector<8x128xf32>
    %166 = vector.extract_strided_slice %25 {offsets = [40, 0], sizes = [8, 128], strides = [1, 1]} : vector<128x128xf32> to vector<8x128xf32>
    %167 = arith.addf %165, %166 : vector<8x128xf32>
    %cst_152 = arith.constant 0.000000e+00 : f32
    %168 = vector.broadcast %cst_152 : f32 to vector<8x128xf32>
    %169 = arith.maximumf %167, %168 : vector<8x128xf32>
    %c40 = arith.constant 40 : index
    %c0_153 = arith.constant 0 : index
    %170 = vector.load %arg9[%c40, %c0_153] : memref<128x128xf32, #tpu.memory_space<vmem>>, vector<8x128xf32>
    tpu.vector_store %arg9[%c40, %c0_153], %169 {strides = array<i32>} : memref<128x128xf32, #tpu.memory_space<vmem>>, vector<8x128xf32>,
    %171 = vector.extract_strided_slice %121 {offsets = [71, 0], sizes = [8, 128], strides = [1, 1]} : vector<200x128xf32> to vector<8x128xf32>
    %172 = vector.broadcast %122 : vector<1x128xf32> to vector<8x128xf32>
    %173 = arith.addf %171, %172 : vector<8x128xf32>
    %174 = vector.extract_strided_slice %25 {offsets = [48, 0], sizes = [8, 128], strides = [1, 1]} : vector<128x128xf32> to vector<8x128xf32>
    %175 = arith.addf %173, %174 : vector<8x128xf32>
    %cst_154 = arith.constant 0.000000e+00 : f32
    %176 = vector.broadcast %cst_154 : f32 to vector<8x128xf32>
    %177 = arith.maximumf %175, %176 : vector<8x128xf32>
    %c48 = arith.constant 48 : index
    %c0_155 = arith.constant 0 : index
    %178 = vector.load %arg9[%c48, %c0_155] : memref<128x128xf32, #tpu.memory_space<vmem>>, vector<8x128xf32>
    tpu.vector_store %arg9[%c48, %c0_155], %177 {strides = array<i32>} : memref<128x128xf32, #tpu.memory_space<vmem>>, vector<8x128xf32>,
    %179 = vector.extract_strided_slice %121 {offsets = [81, 0], sizes = [8, 128], strides = [1, 1]} : vector<200x128xf32> to vector<8x128xf32>
    %180 = vector.broadcast %122 : vector<1x128xf32> to vector<8x128xf32>
    %181 = arith.addf %179, %180 : vector<8x128xf32>
    %182 = vector.extract_strided_slice %25 {offsets = [56, 0], sizes = [8, 128], strides = [1, 1]} : vector<128x128xf32> to vector<8x128xf32>
    %183 = arith.addf %181, %182 : vector<8x128xf32>
    %cst_156 = arith.constant 0.000000e+00 : f32
    %184 = vector.broadcast %cst_156 : f32 to vector<8x128xf32>
    %185 = arith.maximumf %183, %184 : vector<8x128xf32>
    %c56 = arith.constant 56 : index
    %c0_157 = arith.constant 0 : index
    %186 = vector.load %arg9[%c56, %c0_157] : memref<128x128xf32, #tpu.memory_space<vmem>>, vector<8x128xf32>
    tpu.vector_store %arg9[%c56, %c0_157], %185 {strides = array<i32>} : memref<128x128xf32, #tpu.memory_space<vmem>>, vector<8x128xf32>,
    %187 = vector.extract_strided_slice %121 {offsets = [111, 0], sizes = [8, 128], strides = [1, 1]} : vector<200x128xf32> to vector<8x128xf32>
    %188 = vector.broadcast %122 : vector<1x128xf32> to vector<8x128xf32>
    %189 = arith.addf %187, %188 : vector<8x128xf32>
    %190 = vector.extract_strided_slice %25 {offsets = [64, 0], sizes = [8, 128], strides = [1, 1]} : vector<128x128xf32> to vector<8x128xf32>
    %191 = arith.addf %189, %190 : vector<8x128xf32>
    %cst_158 = arith.constant 0.000000e+00 : f32
    %192 = vector.broadcast %cst_158 : f32 to vector<8x128xf32>
    %193 = arith.maximumf %191, %192 : vector<8x128xf32>
    %c64 = arith.constant 64 : index
    %c0_159 = arith.constant 0 : index
    %194 = vector.load %arg9[%c64, %c0_159] : memref<128x128xf32, #tpu.memory_space<vmem>>, vector<8x128xf32>
    tpu.vector_store %arg9[%c64, %c0_159], %193 {strides = array<i32>} : memref<128x128xf32, #tpu.memory_space<vmem>>, vector<8x128xf32>,
    %195 = vector.extract_strided_slice %121 {offsets = [121, 0], sizes = [8, 128], strides = [1, 1]} : vector<200x128xf32> to vector<8x128xf32>
    %196 = vector.broadcast %122 : vector<1x128xf32> to vector<8x128xf32>
    %197 = arith.addf %195, %196 : vector<8x128xf32>
    %198 = vector.extract_strided_slice %25 {offsets = [72, 0], sizes = [8, 128], strides = [1, 1]} : vector<128x128xf32> to vector<8x128xf32>
    %199 = arith.addf %197, %198 : vector<8x128xf32>
    %cst_160 = arith.constant 0.000000e+00 : f32
    %200 = vector.broadcast %cst_160 : f32 to vector<8x128xf32>
    %201 = arith.maximumf %199, %200 : vector<8x128xf32>
    %c72_161 = arith.constant 72 : index
    %c0_162 = arith.constant 0 : index
    %202 = vector.load %arg9[%c72_161, %c0_162] : memref<128x128xf32, #tpu.memory_space<vmem>>, vector<8x128xf32>
    tpu.vector_store %arg9[%c72_161, %c0_162], %201 {strides = array<i32>} : memref<128x128xf32, #tpu.memory_space<vmem>>, vector<8x128xf32>,
    %203 = vector.extract_strided_slice %121 {offsets = [131, 0], sizes = [8, 128], strides = [1, 1]} : vector<200x128xf32> to vector<8x128xf32>
    %204 = vector.broadcast %122 : vector<1x128xf32> to vector<8x128xf32>
    %205 = arith.addf %203, %204 : vector<8x128xf32>
    %206 = vector.extract_strided_slice %25 {offsets = [80, 0], sizes = [8, 128], strides = [1, 1]} : vector<128x128xf32> to vector<8x128xf32>
    %207 = arith.addf %205, %206 : vector<8x128xf32>
    %cst_163 = arith.constant 0.000000e+00 : f32
    %208 = vector.broadcast %cst_163 : f32 to vector<8x128xf32>
    %209 = arith.maximumf %207, %208 : vector<8x128xf32>
    %c80 = arith.constant 80 : index
    %c0_164 = arith.constant 0 : index
    %210 = vector.load %arg9[%c80, %c0_164] : memref<128x128xf32, #tpu.memory_space<vmem>>, vector<8x128xf32>
    tpu.vector_store %arg9[%c80, %c0_164], %209 {strides = array<i32>} : memref<128x128xf32, #tpu.memory_space<vmem>>, vector<8x128xf32>,
    %211 = vector.extract_strided_slice %121 {offsets = [141, 0], sizes = [8, 128], strides = [1, 1]} : vector<200x128xf32> to vector<8x128xf32>
    %212 = vector.broadcast %122 : vector<1x128xf32> to vector<8x128xf32>
    %213 = arith.addf %211, %212 : vector<8x128xf32>
    %214 = vector.extract_strided_slice %25 {offsets = [88, 0], sizes = [8, 128], strides = [1, 1]} : vector<128x128xf32> to vector<8x128xf32>
    %215 = arith.addf %213, %214 : vector<8x128xf32>
    %cst_165 = arith.constant 0.000000e+00 : f32
    %216 = vector.broadcast %cst_165 : f32 to vector<8x128xf32>
    %217 = arith.maximumf %215, %216 : vector<8x128xf32>
    %c88 = arith.constant 88 : index
    %c0_166 = arith.constant 0 : index
    %218 = vector.load %arg9[%c88, %c0_166] : memref<128x128xf32, #tpu.memory_space<vmem>>, vector<8x128xf32>
    tpu.vector_store %arg9[%c88, %c0_166], %217 {strides = array<i32>} : memref<128x128xf32, #tpu.memory_space<vmem>>, vector<8x128xf32>,
    %219 = vector.extract_strided_slice %121 {offsets = [151, 0], sizes = [8, 128], strides = [1, 1]} : vector<200x128xf32> to vector<8x128xf32>
    %220 = vector.broadcast %122 : vector<1x128xf32> to vector<8x128xf32>
    %221 = arith.addf %219, %220 : vector<8x128xf32>
    %222 = vector.extract_strided_slice %25 {offsets = [96, 0], sizes = [8, 128], strides = [1, 1]} : vector<128x128xf32> to vector<8x128xf32>
    %223 = arith.addf %221, %222 : vector<8x128xf32>
    %cst_167 = arith.constant 0.000000e+00 : f32
    %224 = vector.broadcast %cst_167 : f32 to vector<8x128xf32>
    %225 = arith.maximumf %223, %224 : vector<8x128xf32>
    %c96 = arith.constant 96 : index
    %c0_168 = arith.constant 0 : index
    %226 = vector.load %arg9[%c96, %c0_168] : memref<128x128xf32, #tpu.memory_space<vmem>>, vector<8x128xf32>
    tpu.vector_store %arg9[%c96, %c0_168], %225 {strides = array<i32>} : memref<128x128xf32, #tpu.memory_space<vmem>>, vector<8x128xf32>,
    %227 = vector.extract_strided_slice %121 {offsets = [161, 0], sizes = [8, 128], strides = [1, 1]} : vector<200x128xf32> to vector<8x128xf32>
    %228 = vector.broadcast %122 : vector<1x128xf32> to vector<8x128xf32>
    %229 = arith.addf %227, %228 : vector<8x128xf32>
    %230 = vector.extract_strided_slice %25 {offsets = [104, 0], sizes = [8, 128], strides = [1, 1]} : vector<128x128xf32> to vector<8x128xf32>
    %231 = arith.addf %229, %230 : vector<8x128xf32>
    %cst_169 = arith.constant 0.000000e+00 : f32
    %232 = vector.broadcast %cst_169 : f32 to vector<8x128xf32>
    %233 = arith.maximumf %231, %232 : vector<8x128xf32>
    %c104 = arith.constant 104 : index
    %c0_170 = arith.constant 0 : index
    %234 = vector.load %arg9[%c104, %c0_170] : memref<128x128xf32, #tpu.memory_space<vmem>>, vector<8x128xf32>
    tpu.vector_store %arg9[%c104, %c0_170], %233 {strides = array<i32>} : memref<128x128xf32, #tpu.memory_space<vmem>>, vector<8x128xf32>,
    %235 = vector.extract_strided_slice %121 {offsets = [171, 0], sizes = [8, 128], strides = [1, 1]} : vector<200x128xf32> to vector<8x128xf32>
    %236 = vector.broadcast %122 : vector<1x128xf32> to vector<8x128xf32>
    %237 = arith.addf %235, %236 : vector<8x128xf32>
    %238 = vector.extract_strided_slice %25 {offsets = [112, 0], sizes = [8, 128], strides = [1, 1]} : vector<128x128xf32> to vector<8x128xf32>
    %239 = arith.addf %237, %238 : vector<8x128xf32>
    %cst_171 = arith.constant 0.000000e+00 : f32
    %240 = vector.broadcast %cst_171 : f32 to vector<8x128xf32>
    %241 = arith.maximumf %239, %240 : vector<8x128xf32>
    %c112_172 = arith.constant 112 : index
    %c0_173 = arith.constant 0 : index
    %242 = vector.load %arg9[%c112_172, %c0_173] : memref<128x128xf32, #tpu.memory_space<vmem>>, vector<8x128xf32>
    tpu.vector_store %arg9[%c112_172, %c0_173], %241 {strides = array<i32>} : memref<128x128xf32, #tpu.memory_space<vmem>>, vector<8x128xf32>,
    %243 = vector.extract_strided_slice %121 {offsets = [181, 0], sizes = [8, 128], strides = [1, 1]} : vector<200x128xf32> to vector<8x128xf32>
    %244 = vector.broadcast %122 : vector<1x128xf32> to vector<8x128xf32>
    %245 = arith.addf %243, %244 : vector<8x128xf32>
    %246 = vector.extract_strided_slice %25 {offsets = [120, 0], sizes = [8, 128], strides = [1, 1]} : vector<128x128xf32> to vector<8x128xf32>
    %247 = arith.addf %245, %246 : vector<8x128xf32>
    %cst_174 = arith.constant 0.000000e+00 : f32
    %248 = vector.broadcast %cst_174 : f32 to vector<8x128xf32>
    %249 = arith.maximumf %247, %248 : vector<8x128xf32>
    %c120 = arith.constant 120 : index
    %c0_175 = arith.constant 0 : index
    %250 = vector.load %arg9[%c120, %c0_175] : memref<128x128xf32, #tpu.memory_space<vmem>>, vector<8x128xf32>
    tpu.vector_store %arg9[%c120, %c0_175], %249 {strides = array<i32>} : memref<128x128xf32, #tpu.memory_space<vmem>>, vector<8x128xf32>,
    return
  }
  func.func @transform_0(%arg0: i32) -> (i32, i32) {
    %c0_i32 = arith.constant 0 : i32
    %c0_i32_0 = arith.constant 0 : i32
    %c0_i32_1 = arith.constant 0 : i32
    return %c0_i32, %c0_i32_0 : i32, i32
  }
  func.func @transform_1(%arg0: i32) -> (i32, i32) {
    %c0_i32 = arith.constant 0 : i32
    %c0_i32_0 = arith.constant 0 : i32
    %c0_i32_1 = arith.constant 0 : i32
    return %c0_i32, %c0_i32_0 : i32, i32
  }
  func.func @transform_2(%arg0: i32) -> (i32, i32, i32) {
    %c0_i32 = arith.constant 0 : i32
    %c0_i32_0 = arith.constant 0 : i32
    %c0_i32_1 = arith.constant 0 : i32
    %c0_i32_2 = arith.constant 0 : i32
    return %c0_i32, %c0_i32_0, %c0_i32_1 : i32, i32, i32
  }
  func.func @transform_3(%arg0: i32) -> (i32, i32) {
    %c0_i32 = arith.constant 0 : i32
    %c0_i32_0 = arith.constant 0 : i32
    %c0_i32_1 = arith.constant 0 : i32
    return %c0_i32, %c0_i32_0 : i32, i32
  }
  func.func @transform_4(%arg0: i32) -> (i32, i32, i32) {
    %c0_i32 = arith.constant 0 : i32
    %c0_i32_0 = arith.constant 0 : i32
    %c0_i32_1 = arith.constant 0 : i32
    %c0_i32_2 = arith.constant 0 : i32
    return %c0_i32, %c0_i32_0, %c0_i32_1 : i32, i32, i32
  }
  func.func @transform_5(%arg0: i32) -> (i32, i32) {
    %c0_i32 = arith.constant 0 : i32
    %c0_i32_0 = arith.constant 0 : i32
    %c0_i32_1 = arith.constant 0 : i32
    return %c0_i32, %c0_i32_0 : i32, i32
  }
  func.func @transform_6(%arg0: i32) -> (i32, i32) {
    %c0_i32 = arith.constant 0 : i32
    %c0_i32_0 = arith.constant 0 : i32
    %c0_i32_1 = arith.constant 0 : i32
    return %c0_i32, %c0_i32_0 : i32, i32
  }
  func.func @transform_7(%arg0: i32) -> (i32, i32) {
    %c0_i32 = arith.constant 0 : i32
    %c0_i32_0 = arith.constant 0 : i32
    %c0_i32_1 = arith.constant 0 : i32
    return %c0_i32, %c0_i32_0 : i32, i32
  }
  func.func @transform_8(%arg0: i32) -> (i32, i32) {
    %c0_i32 = arith.constant 0 : i32
    %c0_i32_0 = arith.constant 0 : i32
    %c0_i32_1 = arith.constant 0 : i32
    return %c0_i32, %c0_i32_0 : i32, i32
  }
}

</mosaic_0001>

<bundles_post_ra>
// kernel: _lambda_.1
= control target key start
LH: loop header
LB: loop body
LE: loop exit
PB: predicated region body
PF: predicated region fallthrough
CT: control target
= control target key end

     0   :  { %vm824_vm0 = vsmask.f32 7424  ;;  %vm3680_vm1 = vcmask 1046528   ;;  %s13478_s2 = inlined_call_operand.vmem [shape: bf16[3,384,128], index: 2, kind: input, shape index: {}]   ;;  %s13479_s0 = inlined_call_operand.vmem [shape: bf16[650,384], index: 0, kind: input, shape index: {}]   ;;  %s13480_s6 = inlined_call_operand.vmem [shape: bf16[128,128], index: 6, kind: input, shape index: {}]   ;;  %s13481_s4 = inlined_call_operand.vmem [shape: bf16[3,384,128], index: 4, kind: input, shape index: {}]   ;;  %s13482_s3 = inlined_call_operand.vmem [shape: f32[1,128], index: 3, kind: input, shape index: {}]   ;;  %s13483_s1 = inlined_call_operand.vmem [shape: bf16[128,128], index: 1, kind: input, shape index: {}]   ;;  %s13484_s7 = inlined_call_operand.vmem [shape: f32[1,128], index: 7, kind: input, shape index: {}]   ;;  %s13485_s5 = inlined_call_operand.vmem [shape: f32[1,128], index: 5, kind: input, shape index: {}]   ;;  %s13486_s8 = inlined_call_operand.vmem [shape: f32[128,128], index: 8, kind: output, shape index: {}]  }
   0x1   :  { %v9402_v0 = vld [vmem:[%s13478_s2 + $0xf8] sm:$0xff]  ;;  %v9401_v2 = vld [vmem:[%s13478_s2 + $0xf0] sm:$0xff]  ;;  %v9400_v4 = vld [vmem:[%s13478_s2 + $0xe8] sm:$0xff] }
   0x2   :  { %v9410_v1 = vld [vmem:[%s13478_s2 + $0x138] sm:$0xff]  ;;  %2073 = vmatpush.bf16.msra.mxu0 %v9402_v0  ;;  %v9409_v3 = vld [vmem:[%s13478_s2 + $0x130] sm:$0xff]  ;;  %v9408_v5 = vld [vmem:[%s13478_s2 + $0x128] sm:$0xff] }
   0x3   :  { %2286 = vmatpush.bf16.msra.mxu1 %v9410_v1  ;;  %9564 = vmatpush.bf16.msra.mxu2 %v9410_v1  ;;  %v30_v6 = vld [vmem:[%s13479_s0] sm:$0xff]  ;;  %v9658_v7 = vld [vmem:[%s13479_s0 + $0xc] sm:$0xff]  ;;  %v9365_v16 = vld [vmem:[%s13479_s0 + $0x394] sm:$0xf] }
   0x4   :  { %9565 = vmatpush.bf16.msra.mxu3 %v9410_v1  ;;  %13688 = vst [vmem:[#allocation4_spill] sm:$0xff] %v9658_v7  ;;  %v9399_v8 = vld [vmem:[%s13478_s2 + $0xe0] sm:$0xff]  ;;  %v455_v10 = vunpack.c.l.b16 %v30_v6  ;;  %v13489_v11 = vunpack.c.l.b16 %v9658_v7  ;;  %v456_v12 = vunpack.c.h.b16 %v30_v6  ;;  %v13488_v13 = vunpack.c.h.b16 %v9658_v7  ;;  %v8294_v15 = vld [vmem:[%s13479_s0 + $0x36c] sm:$0xf0]  ;;  %v9398_v18 = vld [vmem:[%s13478_s2 + $0xd8] sm:$0xff] }
   0x5   :  { %v9407_v9 = vld [vmem:[%s13478_s2 + $0x120] sm:$0xff]  ;;  %v9406_v19 = vld [vmem:[%s13478_s2 + $0x118] sm:$0xff]  ;;  %v7874_v24 = vld [vmem:[%s13479_s0 + $0x24] sm:$0xf0] }
   0x6   :  { %2074 = vmatpush.bf16.msra.mxu0 %v9401_v2  ;;  %v9359_v14 = vld [vmem:[%s13479_s0 + $0x364] sm:$0xf]  ;;  %v8318_v17 = vld [vmem:[%s13479_s0 + $0x39c] sm:$0xf0]  ;;  %v7872_v20 = vld [vmem:[%s13479_s0 + $0x18] sm:$0xf]  ;;  %v9694_v22 = vpack.c.b16 %v13489_v11, %v455_v10  ;;  %v9704_v25 = vpack.c.b16 %v13488_v13, %v456_v12 }
   0x7   :  { %2287 = vmatpush.bf16.msra.mxu1 %v9409_v3  ;;  %9566 = vmatpush.bf16.msra.mxu2 %v9409_v3  ;;  %v9255_v21 = vld [vmem:[%s13479_s0 + $0x20] sm:$0xf0]  ;;  %v9254_v23 = vld [vmem:[%s13479_s0 + $0x1c] sm:$0xf]  ;;  %v8306_v27 = vld [vmem:[%s13479_s0 + $0x384] sm:$0xf0]  ;;  %v9712_v28 = vor.u32 %v9359_v14, %v8294_v15  ;;  %v9714_v29 = vor.u32 %v9365_v16, %v8318_v17 }
   0x8   :  { %9567 = vmatpush.bf16.msra.mxu3 %v9409_v3  ;;  %v9362_v26 = vld [vmem:[%s13479_s0 + $0x37c] sm:$0xf]  ;;  %v9368_v30 = vld [vmem:[%s13479_s0 + $0x3ac] sm:$0xf]  ;;  %v8330_v31 = vld [vmem:[%s13479_s0 + $0x3b4] sm:$0xf0]  ;;  %v9722_v32 = vor.u32 %v9255_v21, %v7872_v20  ;;  %v9724_v33 = vor.u32 %v9254_v23, %v7874_v24 }
   0x9   :  { %13689 = vst [vmem:[#allocation5_spill] sm:$0xff] %v9712_v28  ;;  %v9397_v34 = vld [vmem:[%s13478_s2 + $0xd0] sm:$0xff]  ;;  %v828_v36 = vshll.u32 %v9694_v22, 16  ;;  %v840_v37 = vshll.u32 %v9704_v25, 16  ;;  %v9734_v38 = vor.u32 %v9362_v26, %v8306_v27  ;;  %v1689_v39 = vshll.u32 %v9712_v28, 16  ;;  %v9396_v46 = vld [vmem:[%s13478_s2 + $0xc8] sm:$0xff] }
   0xa   :  { %2075 = vmatpush.bf16.msra.mxu0 %v9400_v4  ;;  %13690 = vst [vmem:[#allocation6_spill] sm:$0xff] %v9714_v29  ;;  %v9405_v35 = vld [vmem:[%s13478_s2 + $0x110] sm:$0xff]  ;;  %v9737_v40 = vor.u32 %v9368_v30, %v8330_v31  ;;  %v1737_v41 = vshll.u32 %v9714_v29, 16  ;;  %v826_v42 = vshrl.u32 %v9694_v22, 16  ;;  %v833_v43 = vshll.u32 %v9722_v32, 16  ;;  %v9404_v47 = vld [vmem:[%s13478_s2 + $0x108] sm:$0xff] }
   0xb   :  { %2288 = vmatpush.bf16.msra.mxu1 %v9408_v5  ;;  %9568 = vmatpush.bf16.msra.mxu2 %v9408_v5  ;;  %13691 = vst [vmem:[#allocation7_spill] sm:$0xff] %v9722_v32  ;;  %v838_v44 = vshrl.u32 %v9704_v25, 16  ;;  %v845_v45 = vshll.u32 %v9724_v33, 16  ;;  %v830_v48 = vrot.slane %v828_v36, 1  ;;  %v842_v49 = vrot.slane %v840_v37, 1  ;;  %v9395_v56 = vld [vmem:[%s13478_s2 + $0xc0] sm:$0xff] }
   0xc   :  { %9569 = vmatpush.bf16.msra.mxu3 %v9408_v5  ;;  %13692 = vst [vmem:[#allocation8_spill] sm:$0xff] %v9734_v38  ;;  %v1709_v50 = vshrl.u32 %v9712_v28, 16  ;;  %v1713_v51 = vshll.u32 %v9734_v38, 16  ;;  %v9752_v52 = vrot.slane %v1689_v39, 1  ;;  %v9754_v53 = vrot.slane %v1737_v41, 1  ;;  %v9403_v57 = vld [vmem:[%s13478_s2 + $0x100] sm:$0xff] }
   0xd   :  { %13693 = vst [vmem:[#allocation9_spill] sm:$0xff] %v9737_v40  ;;  %v1757_v54 = vshrl.u32 %v9714_v29, 16  ;;  %v1761_v55 = vshll.u32 %v9737_v40, 16  ;;  %v831_v58 = vor.u32 %v830_v48, %v826_v42  ;;  %v835_v59 = vrot.slane %v833_v43, 1  ;;  %v9386_v2 = vld [vmem:[%s13478_s2 + $0x78] sm:$0xff]  ;;  %v190_v4 = vld [vmem:[%s13479_s0 + $0x3c0] sm:$0xff] }
   0xe   :  { %2076 = vmatpush.bf16.msra.mxu0 %v9399_v8  ;;  %v843_v60 = vor.u32 %v842_v49, %v838_v44  ;;  %v847_v61 = vrot.slane %v845_v45, 1  ;;  %v1711_v62 = vor.u32 %v1709_v50, %v9752_v52  ;;  %v1715_v63 = vrot.slane %v1713_v51, 1  ;;  %v9418_v3 = vld [vmem:[%s13478_s2 + $0x178] sm:$0xff]  ;;  %v240_v5 = vld [vmem:[%s13479_s0 + $0x3cc] sm:$0x11]  ;;  %v9415_v42 = vld [vmem:[%s13478_s2 + $0x160] sm:$0xff] }
   0xf   :  { %2289 = vmatpush.bf16.msra.mxu1 %v9407_v9  ;;  %9570 = vmatpush.bf16.msra.mxu2 %v9407_v9  ;;  %v1759_v0 = vor.u32 %v1757_v54, %v9754_v53  ;;  %v1763_v1 = vrot.slane %v1761_v55, 1  ;;  %v836_v6 = vsel %vm824_vm0, %v831_v58, %v835_v59  ;;  %v9258_v10 = vld [vmem:[%s13479_s0 + $0x38] sm:$0xf0]  ;;  %v9257_v15 = vld [vmem:[%s13479_s0 + $0x34] sm:$0xf]  ;;  %v9794_v17 = vunpack.c.h.b16 %v190_v4  ;;  %v9416_v27 = vld [vmem:[%s13478_s2 + $0x168] sm:$0xff] }
  0x10   :  { %9571 = vmatpush.bf16.msra.mxu3 %v9407_v9  ;;  %v848_v8 = vsel %vm824_vm0, %v843_v60, %v847_v61  ;;  %v7884_v9 = vld [vmem:[%s13479_s0 + $0x30] sm:$0xf]  ;;  %v1716_v12 = vsel %vm824_vm0, %v1711_v62, %v1715_v63  ;;  %v7886_v16 = vld [vmem:[%s13479_s0 + $0x3c] sm:$0xf0]  ;;  %v861_v30 = vshrl.u32 %v9722_v32, 16  ;;  %v1733_v36 = vshrl.u32 %v9734_v38, 16 }
  0x11   :  { %v1764_v14 = vsel %vm824_vm0, %v1759_v0, %v1763_v1  ;;  %13694 = vst [vmem:[#allocation10_spill] sm:$0xff] %v9794_v17  ;;  %v9417_v20 = vld [vmem:[%s13478_s2 + $0x170] sm:$0xff]  ;;  %v9802_v21 = vor.u32 %v9258_v10, %v7884_v9  ;;  %v9804_v23 = vor.u32 %v9257_v15, %v7886_v16  ;;  %v1781_v37 = vshrl.u32 %v9737_v40, 16  ;;  %v9376_v41 = vld [vmem:[%s13478_s2 + $0x28] sm:$0xff]  ;;  %v9375_v54 = vld [vmem:[%s13478_s2 + $0x20] sm:$0xff] }
  0x12   :  { %2077 = vmatpush.bf16.msra.mxu0 %v9398_v18  ;;  %v699_v18 = vunpack.c.h.b16 %v240_v5  ;;  %v9377_v26 = vld [vmem:[%s13478_s2 + $0x30] sm:$0xff]  ;;  %v31_v43 = vld [vmem:[%s13479_s0 + $0x8] sm:$0xf]  ;;  %v863_v45 = vor.u32 %v861_v30, %v835_v59  ;;  %v1735_v49 = vor.u32 %v1733_v36, %v1715_v63  ;;  %v9260_v0 = vld [vmem:[%s13479_s0 + $0x4c] sm:$0xf] }
  0x13   :  { %2290 = vmatpush.bf16.msra.mxu1 %v9406_v19  ;;  %9572 = vmatpush.bf16.msra.mxu2 %v9406_v19  ;;  %13695 = vst [vmem:[#allocation11_spill] sm:$0xff] %v9802_v21  ;;  %v865_v31 = vshll.u32 %v9802_v21, 16  ;;  %v9834_v44 = vld [vmem:[%s13479_s0 + $0x14] sm:$0xf]  ;;  %v1783_v50 = vor.u32 %v1781_v37, %v1763_v1  ;;  %v457_v55 = vunpack.c.l.b16 %v31_v43  ;;  %v7896_v60 = vld [vmem:[%s13479_s0 + $0x48] sm:$0xf] }
  0x14   :  { %9573 = vmatpush.bf16.msra.mxu3 %v9406_v19  ;;  %v9378_v19 = vld [vmem:[%s13478_s2 + $0x38] sm:$0xff]  ;;  %v9807_v24 = vpack.c.b16 %v699_v18, %v9794_v17  ;;  %13697 = vst [vmem:[#allocation13_spill] sm:$0xff] %v9834_v44  ;;  %v1740_v62 = vsel %vm824_vm0, %v1735_v49, %v9754_v53  ;;  %v9413_v53 = vld [vmem:[%s13478_s2 + $0x150] sm:$0xff]  ;;  %v7880_v4 = vld [vmem:[%s13479_s0 + $0x20] sm:$0xf]  ;;  %v885_v15 = vshrl.u32 %v9802_v21, 16 }
  0x15   :  { %v7898_v1 = vld [vmem:[%s13479_s0 + $0x54] sm:$0xf0]  ;;  %v9256_v5 = vld [vmem:[%s13479_s0 + $0x28] sm:$0xf0]  ;;  %v893_v18 = vshrl.u32 %v9804_v23, 16  ;;  %v9371_v43 = vld [vmem:[%s13478_s2] sm:$0xff] }
  0x16   :  { %2078 = vmatpush.bf16.msra.mxu0 %v9397_v34  ;;  %13696 = vst [vmem:[#allocation12_spill] sm:$0xff] %v9807_v24  ;;  %v869_v34 = vshrl.u32 %v9724_v33, 16  ;;  %v1785_v39 = vshll.u32 %v9807_v24, 16  ;;  %v9880_v9 = vor.u32 %v9256_v5, %v7880_v4  ;;  %v9372_v30 = vld [vmem:[%s13478_s2 + $0x8] sm:$0xff] }
  0x17   :  { %2291 = vmatpush.bf16.msra.mxu1 %v9405_v35  ;;  %9574 = vmatpush.bf16.msra.mxu2 %v9405_v35  ;;  %v7992_v13 = vld [vmem:[%s13479_s0 + $0x108] sm:$0xf] }
  0x18   :  { %9575 = vmatpush.bf16.msra.mxu3 %v9405_v35  ;;  %v873_v35 = vshll.u32 %v9804_v23, 16  ;;  %v1787_v51 = vrot.slane %v1785_v39, 1  ;;  %v1800_v39 = vshrl.u32 %v9807_v24, 16 }
  0x1a   :  { %2079 = vmatpush.bf16.msra.mxu0 %v9396_v46  ;;  %v867_v46 = vrot.slane %v865_v31, 1  ;;  %v875_v48 = vrot.slane %v873_v35, 1  ;;  %v1788_v63 = vsel %vm824_vm0, %v1783_v50, %v1787_v51  ;;  %v9411_v31 = vld [vmem:[%s13478_s2 + $0x140] sm:$0xff]  ;;  %v1802_v49 = vor.u32 %v1800_v39, %v1787_v51  ;;  %v9264_v50 = vld [vmem:[%s13479_s0 + $0x68] sm:$0xf0] }
  0x1b   :  { %2292 = vmatpush.bf16.msra.mxu1 %v9404_v47  ;;  %9576 = vmatpush.bf16.msra.mxu2 %v9404_v47  ;;  %v7892_v51 = vld [vmem:[%s13479_s0 + $0x38] sm:$0xf] }
  0x1c   :  { %9577 = vmatpush.bf16.msra.mxu3 %v9404_v47  ;;  %v871_v47 = vor.u32 %v869_v34, %v847_v61  ;;  %v868_v58 = vsel %vm824_vm0, %v863_v45, %v867_v46  ;;  %v9261_v61 = vld [vmem:[%s13479_s0 + $0x50] sm:$0xf0]  ;;  %v887_v34 = vor.u32 %v885_v15, %v867_v46  ;;  %v895_v36 = vor.u32 %v893_v18, %v875_v48  ;;  %v7908_v46 = vld [vmem:[%s13479_s0 + $0x60] sm:$0xf]  ;;  %v7920_v18 = vld [vmem:[%s13479_s0 + $0x78] sm:$0xf] }
  0x1e   :  { %2080 = vmatpush.bf16.msra.mxu0 %v9395_v56  ;;  %v13487_v56 = vunpack.c.l.b16 %v9834_v44  ;;  %v876_v59 = vsel %vm824_vm0, %v871_v47, %v875_v48 }
  0x1f   :  { %2293 = vmatpush.bf16.msra.mxu1 %v9403_v57  ;;  %9578 = vmatpush.bf16.msra.mxu2 %v9403_v57 }
  0x20   :  { %9579 = vmatpush.bf16.msra.mxu3 %v9403_v57  ;;  %v9414_v57 = vld [vmem:[%s13478_s2 + $0x158] sm:$0xff] }
  0x21   :  { %2081 = vmatmul.bf16.vlgmr.msra.gmra.mxu0 %v836_v6  ;;  %v9876_v6 = vor.u32 %v9261_v61, %v7896_v60 }
  0x22   :  { %3195 = vmatpush.bf16.msrb.mxu0 %v9386_v2  ;;  %2294 = vmatmul.bf16.vlgmr.msra.gmra.mxu1 %v848_v8  ;;  %v9862_v2 = vpack.c.b16 %v13487_v56, %v457_v55  ;;  %v9878_v8 = vor.u32 %v9260_v0, %v7898_v1  ;;  %v7910_v55 = vld [vmem:[%s13479_s0 + $0x6c] sm:$0xf0]  ;;  %v877_v1 = vshrl.u32 %v9880_v9, 16 }
  0x23   :  { %2499 = vmatpush.bf16.msrb.mxu2 %v9418_v3  ;;  %2484 = vmatmul.bf16.vlgmr.msra.gmra.mxu3 %v1764_v14  ;;  %v9374_v3 = vld [vmem:[%s13478_s2 + $0x18] sm:$0xff]  ;;  %13698 = vst [vmem:[#allocation14_spill] sm:$0xff] %v9876_v6  ;;  %v9412_v14 = vld [vmem:[%s13478_s2 + $0x148] sm:$0xff]  ;;  %v889_v16 = vshll.u32 %v9876_v6, 16  ;;  %v909_v61 = vshrl.u32 %v9876_v6, 16 }
  0x24   :  { %2474 = vmatmul.bf16.vlgmr.msra.gmra.mxu2 %v1716_v12  ;;  %2982 = vmatpush.bf16.msrb.mxu3 %v9378_v19  ;;  %v852_v10 = vshll.u32 %v9862_v2, 16  ;;  %v9373_v12 = vld [vmem:[%s13478_s2 + $0x10] sm:$0xff]  ;;  %v897_v19 = vshll.u32 %v9878_v8, 16 }
  0x25   :  { %v891_v35 = vrot.slane %v889_v16, 1 }
  0x26   :  { %v899_v37 = vrot.slane %v897_v19, 1 }
  0x27   :  { %2500 = vmatpush.bf16.msrb.mxu2 %v9417_v20  ;;  %v850_v20 = vshrl.u32 %v9862_v2, 16  ;;  %v892_v45 = vsel %vm824_vm0, %v887_v34, %v891_v35 }
  0x28   :  { %2983 = vmatpush.bf16.msrb.mxu3 %v9377_v26  ;;  %v854_v26 = vrot.slane %v852_v10, 1  ;;  %v900_v47 = vsel %vm824_vm0, %v895_v36, %v899_v37  ;;  %v9385_v36 = vld [vmem:[%s13478_s2 + $0x70] sm:$0xff] }
  0x29   :  { %3196 = vmatpush.bf16.msrb.mxu0 %v9385_v36 }
  0x2b   :  { %2501 = vmatpush.bf16.msrb.mxu2 %v9416_v27  ;;  %v857_v27 = vshll.u32 %v9880_v9, 16 }
  0x2c   :  { %2984 = vmatpush.bf16.msrb.mxu3 %v9376_v41  ;;  %v855_v41 = vor.u32 %v854_v26, %v850_v20  ;;  %v9267_v20 = vld [vmem:[%s13479_s0 + $0x80] sm:$0xf0]  ;;  %v9266_v26 = vld [vmem:[%s13479_s0 + $0x7c] sm:$0xf] }
  0x2d   :  { %v9960_v34 = vor.u32 %v9267_v20, %v7920_v18 }
  0x2f   :  { %2502 = vmatpush.bf16.msrb.mxu2 %v9415_v42  ;;  %v859_v42 = vrot.slane %v857_v27, 1  ;;  %v7922_v27 = vld [vmem:[%s13479_s0 + $0x84] sm:$0xf0]  ;;  %13700 = vst [vmem:[#allocation16_spill] sm:$0xff] %v9960_v34 }
  0x30   :  { %2985 = vmatpush.bf16.msrb.mxu3 %v9375_v54  ;;  %v9263_v54 = vld [vmem:[%s13479_s0 + $0x64] sm:$0xf] }
  0x31   :  { %2086 = vmatmul.bf16.gmra.mxu0 %v868_v58  ;;  %v860_v48 = vsel %vm824_vm0, %v855_v41, %v859_v42  ;;  %v9926_v58 = vor.u32 %v9264_v50, %v7908_v46  ;;  %v937_v41 = vshll.u32 %v9960_v34, 16 }
  0x32   :  { %2299 = vmatmul.bf16.gmra.mxu1 %v876_v59  ;;  %v9928_v59 = vor.u32 %v9263_v54, %v7910_v55 }
  0x33   :  { %2503 = vmatpush.bf16.msrb.mxu2 %v9414_v57  ;;  %2489 = vmatmul.bf16.gmra.mxu3 %v1788_v63  ;;  %v9259_v57 = vld [vmem:[%s13479_s0 + $0x40] sm:$0xf0]  ;;  %13699 = vst [vmem:[#allocation15_spill] sm:$0xff] %v9926_v58  ;;  %v917_v63 = vshrl.u32 %v9878_v8, 16  ;;  %v933_v39 = vshrl.u32 %v9926_v58, 16 }
  0x34   :  { %2479 = vmatmul.bf16.gmra.mxu2 %v1740_v62  ;;  %2986 = vmatpush.bf16.msrb.mxu3 %v9374_v3  ;;  %v9930_v60 = vor.u32 %v9259_v57, %v7892_v51  ;;  %v913_v62 = vshll.u32 %v9926_v58, 16  ;;  %v921_v0 = vshll.u32 %v9928_v59, 16  ;;  %v7932_v57 = vld [vmem:[%s13479_s0 + $0x90] sm:$0xf] }
  0x35   :  { %v919_v5 = vor.u32 %v917_v63, %v899_v37  ;;  %v9269_v63 = vld [vmem:[%s13479_s0 + $0x94] sm:$0xf] }
  0x36   :  { %v881_v3 = vshll.u32 %v9930_v60, 16  ;;  %v915_v4 = vrot.slane %v913_v62, 1  ;;  %v923_v10 = vrot.slane %v921_v0, 1  ;;  %v9270_v62 = vld [vmem:[%s13479_s0 + $0x98] sm:$0xf0] }
  0x37   :  { %2504 = vmatpush.bf16.msrb.mxu2 %v9413_v53  ;;  %v911_v53 = vor.u32 %v909_v61, %v891_v35  ;;  %v9962_v35 = vor.u32 %v9266_v26, %v7922_v27  ;;  %v7934_v0 = vld [vmem:[%s13479_s0 + $0x9c] sm:$0xf0] }
  0x38   :  { %2987 = vmatpush.bf16.msrb.mxu3 %v9373_v12  ;;  %v879_v12 = vor.u32 %v877_v1, %v859_v42  ;;  %v924_v16 = vsel %vm824_vm0, %v919_v5, %v923_v10  ;;  %v941_v42 = vshrl.u32 %v9928_v59, 16  ;;  %v7916_v1 = vld [vmem:[%s13479_s0 + $0x68] sm:$0xf] }
  0x39   :  { %v916_v15 = vsel %vm824_vm0, %v911_v53, %v915_v4  ;;  %v9997_v53 = vor.u32 %v9270_v62, %v7932_v57 }
  0x3a   :  { %v943_v46 = vor.u32 %v941_v42, %v923_v10  ;;  %v957_v10 = vshrl.u32 %v9960_v34, 16 }
  0x3b   :  { %2505 = vmatpush.bf16.msrb.mxu2 %v9412_v14  ;;  %v883_v14 = vrot.slane %v881_v3, 1  ;;  %v9265_v3 = vld [vmem:[%s13479_s0 + $0x70] sm:$0xf0]  ;;  %13702 = vst [vmem:[#allocation18_spill] sm:$0xff] %v9997_v53 }
  0x3c   :  { %2988 = vmatpush.bf16.msrb.mxu3 %v9372_v30  ;;  %v7904_v30 = vld [vmem:[%s13479_s0 + $0x50] sm:$0xf]  ;;  %v10001_v5 = vor.u32 %v9265_v3, %v7916_v1 }
  0x3d   :  { %v884_v19 = vsel %vm824_vm0, %v879_v12, %v883_v14  ;;  %v961_v12 = vshll.u32 %v9997_v53, 16 }
  0x3e   :  { %13703 = vst [vmem:[#allocation19_spill] sm:$0xff] %v10001_v5  ;;  %v929_v18 = vshll.u32 %v10001_v5, 16 }
  0x3f   :  { %2506 = vmatpush.bf16.msrb.mxu2 %v9411_v31  ;;  %v9262_v31 = vld [vmem:[%s13479_s0 + $0x58] sm:$0xf0]  ;;  %v963_v20 = vrot.slane %v961_v12, 1 }
  0x40   :  { %2989 = vmatpush.bf16.msrb.mxu3 %v9371_v43  ;;  %v9967_v37 = vor.u32 %v9262_v31, %v7904_v30  ;;  %v945_v43 = vshll.u32 %v9962_v35, 16  ;;  %v931_v31 = vrot.slane %v929_v18, 1 }
  0x41   :  { %2091 = vmatmul.bf16.gmra.mxu0 %v892_v45 }
  0x42   :  { %2304 = vmatmul.bf16.gmra.mxu1 %v900_v47  ;;  %13701 = vst [vmem:[#allocation17_spill] sm:$0xff] %v9967_v37  ;;  %v905_v45 = vshll.u32 %v9967_v37, 16  ;;  %v935_v47 = vor.u32 %v933_v39, %v915_v4  ;;  %v9999_v4 = vor.u32 %v9269_v63, %v7934_v0 }
  0x43   :  { %2494 = vmatmul.bf16.gmra.mxu3 %v1802_v49  ;;  %v939_v49 = vrot.slane %v937_v41, 1  ;;  %v7944_v41 = vld [vmem:[%s13479_s0 + $0xa8] sm:$0xf] }
  0x44   :  { %2507 = vmatmul.bf16.vlgmr.msrb.gmra.mxu2 %v860_v48  ;;  %v947_v48 = vrot.slane %v945_v43, 1  ;;  %v907_v54 = vrot.slane %v905_v45, 1  ;;  %v9273_v43 = vld [vmem:[%s13479_s0 + $0xb0] sm:$0xf0]  ;;  %v7946_v45 = vld [vmem:[%s13479_s0 + $0xb4] sm:$0xf0] }
  0x45   :  { %v940_v55 = vsel %vm824_vm0, %v935_v47, %v939_v49  ;;  %v7928_v47 = vld [vmem:[%s13479_s0 + $0x80] sm:$0xf] }
  0x46   :  { %v948_v51 = vsel %vm824_vm0, %v943_v46, %v947_v48  ;;  %v10031_v46 = vor.u32 %v9273_v43, %v7944_v41 }
  0x48   :  { %13704 = vst [vmem:[#allocation20_spill] sm:$0xff] %v10031_v46  ;;  %v1005_v41 = vshrl.u32 %v10031_v46, 16 }
  0x51   :  { %2096 = vmatmul.bf16.gmra.mxu0 %v916_v15  ;;  %v969_v15 = vshll.u32 %v9999_v4, 16 }
  0x52   :  { %2309 = vmatmul.bf16.gmra.mxu1 %v924_v16  ;;  %v925_v16 = vshrl.u32 %v9967_v37, 16 }
  0x53   :  { %2990 = vmatmul.bf16.vlgmr.msrb.gmra.mxu3 %v9694_v22  ;;  %v901_v22 = vshrl.u32 %v9930_v60, 16  ;;  %v971_v27 = vrot.slane %v969_v15, 1 }
  0x54   :  { %2512 = vmatmul.bf16.gmra.mxu2 %v884_v19  ;;  %v959_v19 = vor.u32 %v957_v10, %v939_v49  ;;  %v927_v30 = vor.u32 %v925_v16, %v907_v54  ;;  %v9268_v49 = vld [vmem:[%s13479_s0 + $0x88] sm:$0xf0]  ;;  %v7956_v16 = vld [vmem:[%s13479_s0 + $0xc0] sm:$0xf] }
  0x55   :  { %v903_v50 = vor.u32 %v901_v22, %v883_v14  ;;  %v965_v14 = vshrl.u32 %v9962_v35, 16  ;;  %v9272_v22 = vld [vmem:[%s13479_s0 + $0xac] sm:$0xf] }
  0x56   :  { %v964_v36 = vsel %vm824_vm0, %v959_v19, %v963_v20  ;;  %v932_v42 = vsel %vm824_vm0, %v927_v30, %v931_v31  ;;  %v9276_v19 = vld [vmem:[%s13479_s0 + $0xc8] sm:$0xf0]  ;;  %v9271_v30 = vld [vmem:[%s13479_s0 + $0xa0] sm:$0xf0] }
  0x57   :  { %v908_v61 = vsel %vm824_vm0, %v903_v50, %v907_v54  ;;  %v967_v26 = vor.u32 %v965_v14, %v947_v48  ;;  %v10033_v48 = vor.u32 %v9272_v22, %v7946_v45  ;;  %v10035_v50 = vor.u32 %v9268_v49, %v7928_v47 }
  0x58   :  { %v981_v54 = vshrl.u32 %v9997_v53, 16 }
  0x59   :  { %v972_v39 = vsel %vm824_vm0, %v967_v26, %v971_v27  ;;  %13705 = vst [vmem:[#allocation21_spill] sm:$0xff] %v10035_v50  ;;  %v993_v57 = vshll.u32 %v10033_v48, 16  ;;  %v953_v62 = vshll.u32 %v10035_v50, 16  ;;  %v7958_v26 = vld [vmem:[%s13479_s0 + $0xcc] sm:$0xf0]  ;;  %v1013_v43 = vshrl.u32 %v10033_v48, 16 }
  0x5a   :  { %v983_v63 = vor.u32 %v981_v54, %v963_v20  ;;  %v9275_v20 = vld [vmem:[%s13479_s0 + $0xc4] sm:$0xf]  ;;  %v973_v45 = vshrl.u32 %v10035_v50, 16 }
  0x5b   :  { %v995_v3 = vrot.slane %v993_v57, 1  ;;  %v955_v12 = vrot.slane %v953_v62, 1 }
  0x5d   :  { %v975_v57 = vor.u32 %v973_v45, %v955_v12 }
  0x61   :  { %2101 = vmatmul.bf16.gmra.mxu0 %v940_v55  ;;  %v985_v55 = vshll.u32 %v10031_v46, 16 }
  0x62   :  { %2314 = vmatmul.bf16.gmra.mxu1 %v948_v51  ;;  %v989_v51 = vshrl.u32 %v9999_v4, 16 }
  0x63   :  { %2995 = vmatmul.bf16.gmra.mxu3 %v9722_v32  ;;  %v987_v0 = vrot.slane %v985_v55, 1  ;;  %v1015_v55 = vor.u32 %v1013_v43, %v995_v3 }
  0x64   :  { %2517 = vmatmul.bf16.gmra.mxu2 %v908_v61  ;;  %v949_v61 = vshrl.u32 %v10001_v5, 16  ;;  %v991_v1 = vor.u32 %v989_v51, %v971_v27  ;;  %v7940_v27 = vld [vmem:[%s13479_s0 + $0x98] sm:$0xf] }
  0x65   :  { %v988_v14 = vsel %vm824_vm0, %v983_v63, %v987_v0  ;;  %v1007_v49 = vor.u32 %v1005_v41, %v987_v0  ;;  %v9278_v0 = vld [vmem:[%s13479_s0 + $0xdc] sm:$0xf] }
  0x66   :  { %v951_v10 = vor.u32 %v949_v61, %v931_v31  ;;  %v996_v15 = vsel %vm824_vm0, %v991_v1, %v995_v3  ;;  %v10065_v31 = vor.u32 %v9276_v19, %v7956_v16  ;;  %v7968_v1 = vld [vmem:[%s13479_s0 + $0xd8] sm:$0xf]  ;;  %v7970_v3 = vld [vmem:[%s13479_s0 + $0xe4] sm:$0xf0] }
  0x68   :  { %v956_v18 = vsel %vm824_vm0, %v951_v10, %v955_v12  ;;  %13706 = vst [vmem:[#allocation22_spill] sm:$0xff] %v10065_v31  ;;  %v7952_v12 = vld [vmem:[%s13479_s0 + $0xb0] sm:$0xf] }
  0x71   :  { %2106 = vmatmul.bf16.gmra.mxu0 %v964_v36  ;;  %v10067_v36 = vor.u32 %v9275_v20, %v7958_v26  ;;  %v1029_v20 = vshrl.u32 %v10065_v31, 16 }
  0x72   :  { %2319 = vmatmul.bf16.gmra.mxu1 %v972_v39  ;;  %v10069_v39 = vor.u32 %v9271_v30, %v7940_v27 }
  0x73   :  { %3000 = vmatmul.bf16.gmra.mxu3 %v9802_v21  ;;  %v1017_v22 = vshll.u32 %v10067_v36, 16  ;;  %v1037_v27 = vshrl.u32 %v10067_v36, 16 }
  0x74   :  { %2522 = vmatmul.bf16.gmra.mxu2 %v932_v42  ;;  %13707 = vst [vmem:[#allocation23_spill] sm:$0xff] %v10069_v39  ;;  %v1009_v42 = vshll.u32 %v10065_v31, 16  ;;  %v977_v47 = vshll.u32 %v10069_v39, 16  ;;  %v997_v41 = vshrl.u32 %v10069_v39, 16 }
  0x75   :  { %v1019_v51 = vrot.slane %v1017_v22, 1 }
  0x76   :  { %v1011_v54 = vrot.slane %v1009_v42, 1  ;;  %v979_v61 = vrot.slane %v977_v47, 1 }
  0x77   :  { %v1020_v63 = vsel %vm824_vm0, %v1015_v55, %v1019_v51  ;;  %v1039_v45 = vor.u32 %v1037_v27, %v1019_v51  ;;  %v9281_v51 = vld [vmem:[%s13479_s0 + $0xf4] sm:$0xf] }
  0x78   :  { %v1012_v62 = vsel %vm824_vm0, %v1007_v49, %v1011_v54  ;;  %v980_v10 = vsel %vm824_vm0, %v975_v57, %v979_v61  ;;  %v1031_v43 = vor.u32 %v1029_v20, %v1011_v54  ;;  %v999_v49 = vor.u32 %v997_v41, %v979_v61  ;;  %v9282_v54 = vld [vmem:[%s13479_s0 + $0xf8] sm:$0xf0]  ;;  %v7982_v61 = vld [vmem:[%s13479_s0 + $0xfc] sm:$0xf0] }
  0x81   :  { %2111 = vmatmul.bf16.gmra.mxu0 %v988_v14  ;;  %v9279_v14 = vld [vmem:[%s13479_s0 + $0xe0] sm:$0xf0] }
  0x82   :  { %2324 = vmatmul.bf16.gmra.mxu1 %v996_v15  ;;  %v9274_v15 = vld [vmem:[%s13479_s0 + $0xb8] sm:$0xf0]  ;;  %v10099_v16 = vor.u32 %v9279_v14, %v7968_v1 }
  0x83   :  { %3005 = vmatmul.bf16.gmra.mxu3 %v9876_v6  ;;  %v10103_v19 = vor.u32 %v9274_v15, %v7952_v12  ;;  %v10135_v15 = vor.u32 %v9281_v51, %v7982_v61 }
  0x84   :  { %2527 = vmatmul.bf16.gmra.mxu2 %v956_v18  ;;  %13708 = vst [vmem:[#allocation24_spill] sm:$0xff] %v10099_v16  ;;  %v10101_v18 = vor.u32 %v9278_v0, %v7970_v3  ;;  %v1033_v26 = vshll.u32 %v10099_v16, 16  ;;  %v7964_v0 = vld [vmem:[%s13479_s0 + $0xc8] sm:$0xf]  ;;  %v9277_v3 = vld [vmem:[%s13479_s0 + $0xd0] sm:$0xf0] }
  0x85   :  { %13709 = vst [vmem:[#allocation25_spill] sm:$0xff] %v10103_v19  ;;  %v1001_v42 = vshll.u32 %v10103_v19, 16  ;;  %v10137_v20 = vor.u32 %v9277_v3, %v7964_v0 }
  0x86   :  { %v1041_v30 = vshll.u32 %v10101_v18, 16  ;;  %v1035_v22 = vrot.slane %v1033_v26, 1  ;;  %13711 = vst [vmem:[#allocation27_spill] sm:$0xff] %v10135_v15 }
  0x87   :  { %v1003_v55 = vrot.slane %v1001_v42, 1  ;;  %13712 = vst [vmem:[#allocation28_spill] sm:$0xff] %v10137_v20  ;;  %v1053_v42 = vshrl.u32 %v10099_v16, 16 }
  0x88   :  { %v1043_v47 = vrot.slane %v1041_v30, 1 }
  0x89   :  { %v1004_v14 = vsel %vm824_vm0, %v999_v49, %v1003_v55  ;;  %v1065_v49 = vshll.u32 %v10135_v15, 16 }
  0x8a   :  { %v1044_v1 = vsel %vm824_vm0, %v1039_v45, %v1043_v47  ;;  %v1061_v45 = vshrl.u32 %v10101_v18, 16 }
  0x91   :  { %2116 = vmatmul.bf16.gmra.mxu0 %v1012_v62 }
  0x92   :  { %2329 = vmatmul.bf16.gmra.mxu1 %v1020_v63  ;;  %v1036_v63 = vsel %vm824_vm0, %v1031_v43, %v1035_v22 }
  0x93   :  { %3010 = vmatmul.bf16.gmra.mxu3 %v9926_v58 }
  0x94   :  { %2532 = vmatmul.bf16.gmra.mxu2 %v980_v10  ;;  %v7980_v10 = vld [vmem:[%s13479_s0 + $0xf0] sm:$0xf] }
  0x95   :  { %v10133_v12 = vor.u32 %v9282_v54, %v7980_v10  ;;  %v1067_v54 = vrot.slane %v1065_v49, 1 }
  0x97   :  { %13710 = vst [vmem:[#allocation26_spill] sm:$0xff] %v10133_v12  ;;  %v1057_v43 = vshll.u32 %v10133_v12, 16 }
  0x99   :  { %v1059_v10 = vrot.slane %v1057_v43, 1  ;;  %v7976_v43 = vld [vmem:[%s13479_s0 + $0xe0] sm:$0xf] }
  0x9e   :  { %v2082_v57 = vpop.f32.mrf.mxu0 }
  0x9f   :  { %v2295_v62 = vpop.f32.mrf.mxu1  ;;  %v9384_v57 = vld [vmem:[%s13478_s2 + $0x68] sm:$0xff] }
  0xa0   :  { %v1021_v62 = vshrl.u32 %v10103_v19, 16  ;;  %3197 = vmatpush.bf16.msrb.mxu0 %v9384_v57 }
  0xa1   :  { %2121 = vmatmul.bf16.gmra.mxu0 %v1036_v63  ;;  %v1025_v63 = vshll.u32 %v10137_v20, 16 }
  0xa2   :  { %2334 = vmatmul.bf16.gmra.mxu1 %v1044_v1  ;;  %v1055_v1 = vor.u32 %v1053_v42, %v1035_v22  ;;  %v1023_v51 = vor.u32 %v1021_v62, %v1003_v55  ;;  %v9284_v55 = vld [vmem:[%s13479_s0 + $0x10c] sm:$0xf]  ;;  %v7994_v42 = vld [vmem:[%s13479_s0 + $0x114] sm:$0xf0] }
  0xa3   :  { %3015 = vmatmul.bf16.gmra.mxu3 %v9960_v34  ;;  %v1027_v61 = vrot.slane %v1025_v63, 1  ;;  %v10176_v57 = vor.u32 %v9284_v55, %v7994_v42 }
  0xa4   :  { %2537 = vmatmul.bf16.gmra.mxu2 %v1004_v14  ;;  %v1063_v14 = vor.u32 %v1061_v45, %v1043_v47  ;;  %v9285_v47 = vld [vmem:[%s13479_s0 + $0x110] sm:$0xf0]  ;;  %v9280_v45 = vld [vmem:[%s13479_s0 + $0xe8] sm:$0xf0] }
  0xa5   :  { %v1028_v22 = vsel %vm824_vm0, %v1023_v51, %v1027_v61  ;;  %v10174_v49 = vor.u32 %v9285_v47, %v7992_v13  ;;  %13714 = vst [vmem:[#allocation30_spill] sm:$0xff] %v10176_v57  ;;  %v10178_v62 = vor.u32 %v9280_v45, %v7976_v43  ;;  %v1045_v13 = vshrl.u32 %v10137_v20, 16 }
  0xa6   :  { %v10139_v27 = vpop.f32.mrf.mxu3  ;;  %v2084_v30 = vpop.f32.mrf.mxu0  ;;  %v1068_v56 = vsel %vm824_vm0, %v1063_v14, %v1067_v54 }
  0xa7   :  { %v2475_v26 = vpop.f32.mrf.mxu2  ;;  %v2297_v41 = vpop.f32.mrf.mxu1  ;;  %13713 = vst [vmem:[#allocation29_spill] sm:$0xff] %v10174_v49  ;;  %v1047_v43 = vor.u32 %v1045_v13, %v1027_v61  ;;  %v8006_v61 = vld [vmem:[%s13479_s0 + $0x12c] sm:$0xf0] }
  0xa8   :  { %v1060_v41 = vsel %vm824_vm0, %v1055_v1, %v1059_v10  ;;  %13715 = vst [vmem:[#allocation31_spill] sm:$0xff] %v10178_v62 }
  0xae   :  { %v2487_v3 = vpop.f32.mrf.mxu3  ;;  %v2087_v26 = vpop.f32.mrf.mxu0 }
  0xaf   :  { %v2477_v0 = vpop.f32.mrf.mxu2  ;;  %v2300_v30 = vpop.f32.mrf.mxu1  ;;  %v1081_v3 = vshll.u32 %v10174_v49, 16 }
  0xb0   :  { %v10155_v11 = vadd.f32 %v2300_v30, %v2087_v26  ;;  %v1077_v0 = vshrl.u32 %v10133_v12, 16  ;;  %v1089_v26 = vshll.u32 %v10176_v57, 16 }
  0xb1   :  { %2126 = vmatmul.bf16.gmra.mxu0 %v1060_v41  ;;  %v1049_v41 = vshll.u32 %v10178_v62, 16  ;;  %v1083_v47 = vrot.slane %v1081_v3, 1 }
  0xb2   :  { %2339 = vmatmul.bf16.gmra.mxu1 %v1068_v56  ;;  %v1085_v56 = vshrl.u32 %v10135_v15, 16  ;;  %v1091_v42 = vrot.slane %v1089_v26, 1 }
  0xb3   :  { %3020 = vmatmul.bf16.gmra.mxu3 %v9997_v53  ;;  %v1051_v45 = vrot.slane %v1049_v41, 1  ;;  %v1101_v41 = vshrl.u32 %v10174_v49, 16 }
  0xb4   :  { %2542 = vmatmul.bf16.gmra.mxu2 %v1028_v22  ;;  %v1079_v22 = vor.u32 %v1077_v0, %v1059_v10  ;;  %v1087_v55 = vor.u32 %v1085_v56, %v1067_v54  ;;  %v9288_v54 = vld [vmem:[%s13479_s0 + $0x128] sm:$0xf0]  ;;  %v7988_v0 = vld [vmem:[%s13479_s0 + $0xf8] sm:$0xf] }
  0xb5   :  { %v1052_v10 = vsel %vm824_vm0, %v1047_v43, %v1051_v45 }
  0xb6   :  { %v2490_v1 = vpop.f32.mrf.mxu3  ;;  %v2089_v14 = vpop.f32.mrf.mxu0  ;;  %v1084_v40 = vsel %vm824_vm0, %v1079_v22, %v1083_v47 }
  0xb7   :  { %v10180_v63 = vpop.f32.mrf.mxu2  ;;  %v2302_v51 = vpop.f32.mrf.mxu1 }
  0xb8   :  { %v10186_v30 = vadd.f32 %v2302_v51, %v2089_v14  ;;  %v1092_v14 = vsel %vm824_vm0, %v1087_v55, %v1091_v42  ;;  %v8004_v51 = vld [vmem:[%s13479_s0 + $0x120] sm:$0xf] }
  0xbe   :  { %v2492_v24 = vpop.f32.mrf.mxu3  ;;  %v2092_v44 = vpop.f32.mrf.mxu0 }
  0xbf   :  { %v10190_v1 = vpop.f32.mrf.mxu2  ;;  %v2305_v17 = vpop.f32.mrf.mxu1  ;;  %v9287_v24 = vld [vmem:[%s13479_s0 + $0x124] sm:$0xf] }
  0xc0   :  { %13716 = vst [vmem:[#allocation32_spill] sm:$0xff] %v10190_v1  ;;  %v10197_v29 = vadd.f32 %v2305_v17, %v2092_v44  ;;  %v9283_v17 = vld [vmem:[%s13479_s0 + $0x100] sm:$0xf0]  ;;  %v10216_v44 = vor.u32 %v9288_v54, %v8004_v51  ;;  %v10218_v3 = vor.u32 %v9287_v24, %v8006_v61  ;;  %v1103_v54 = vor.u32 %v1101_v41, %v1083_v47  ;;  %v8018_v41 = vld [vmem:[%s13479_s0 + $0x144] sm:$0xf0] }
  0xc1   :  { %2131 = vmatmul.bf16.gmra.mxu0 %v1084_v40  ;;  %v10220_v56 = vor.u32 %v9283_v17, %v7988_v0  ;;  %v1109_v40 = vshrl.u32 %v10176_v57, 16  ;;  %v9291_v47 = vld [vmem:[%s13479_s0 + $0x140] sm:$0xf0] }
  0xc2   :  { %2344 = vmatmul.bf16.gmra.mxu1 %v1092_v14  ;;  %13717 = vst [vmem:[#allocation33_spill] sm:$0xff] %v10216_v44  ;;  %v1105_v43 = vshll.u32 %v10216_v44, 16  ;;  %v1113_v14 = vshll.u32 %v10218_v3, 16 }
  0xc3   :  { %3025 = vmatmul.bf16.gmra.mxu3 %v10031_v46  ;;  %13718 = vst [vmem:[#allocation34_spill] sm:$0xff] %v10218_v3  ;;  %v1073_v51 = vshll.u32 %v10220_v56, 16  ;;  %v1111_v61 = vor.u32 %v1109_v40, %v1091_v42  ;;  %v8016_v46 = vld [vmem:[%s13479_s0 + $0x138] sm:$0xf]  ;;  %v9286_v40 = vld [vmem:[%s13479_s0 + $0x118] sm:$0xf0] }
  0xc4   :  { %2547 = vmatmul.bf16.gmra.mxu2 %v1052_v10  ;;  %13719 = vst [vmem:[#allocation35_spill] sm:$0xff] %v10220_v56  ;;  %v1069_v10 = vshrl.u32 %v10178_v62, 16  ;;  %v1107_v24 = vrot.slane %v1105_v43, 1  ;;  %v1115_v0 = vrot.slane %v1113_v14, 1  ;;  %v8000_v43 = vld [vmem:[%s13479_s0 + $0x110] sm:$0xf]  ;;  %v10251_v14 = vor.u32 %v9291_v47, %v8016_v46 }
  0xc6   :  { %v2495_v26 = vpop.f32.mrf.mxu3  ;;  %v2094_v22 = vpop.f32.mrf.mxu0  ;;  %v1071_v17 = vor.u32 %v1069_v10, %v1051_v45  ;;  %v1108_v38 = vsel %vm824_vm0, %v1103_v54, %v1107_v24  ;;  %v1116_v28 = vsel %vm824_vm0, %v1111_v61, %v1115_v0  ;;  %13720 = vst [vmem:[#allocation36_spill] sm:$0xff] %v10251_v14 }
  0xc7   :  { %v2508_v13 = vpop.f32.mrf.mxu2  ;;  %v2307_v55 = vpop.f32.mrf.mxu1  ;;  %v1075_v26 = vrot.slane %v1073_v51, 1  ;;  %v10256_v51 = vor.u32 %v9286_v40, %v8000_v43 }
  0xc9   :  { %v1076_v45 = vsel %vm824_vm0, %v1071_v17, %v1075_v26  ;;  %13722 = vst [vmem:[#allocation38_spill] sm:$0xff] %v10256_v51  ;;  %v1125_v17 = vshrl.u32 %v10216_v44, 16 }
  0xce   :  { %v2497_v13 = vpop.f32.mrf.mxu3  ;;  %v2097_v22 = vpop.f32.mrf.mxu0 }
  0xcf   :  { %v2510_v1 = vpop.f32.mrf.mxu2  ;;  %v2310_v55 = vpop.f32.mrf.mxu1  ;;  %v1129_v13 = vshll.u32 %v10251_v14, 16 }
  0xd0   :  { %v10236_v42 = vadd.f32 %v2310_v55, %v2097_v22  ;;  %v9290_v1 = vld [vmem:[%s13479_s0 + $0x13c] sm:$0xf] }
  0xd1   :  { %2136 = vmatmul.bf16.gmra.mxu0 %v1108_v38  ;;  %v10254_v10 = vor.u32 %v9290_v1, %v8018_v41  ;;  %v1097_v1 = vshll.u32 %v10256_v51, 16  ;;  %v1127_v41 = vor.u32 %v1125_v17, %v1107_v24  ;;  %v1131_v43 = vrot.slane %v1129_v13, 1  ;;  %v9294_v24 = vld [vmem:[%s13479_s0 + $0x158] sm:$0xf0]  ;;  %v8012_v17 = vld [vmem:[%s13479_s0 + $0x128] sm:$0xf] }
  0xd2   :  { %2349 = vmatmul.bf16.gmra.mxu1 %v1116_v28  ;;  %v1133_v28 = vshrl.u32 %v10218_v3, 16  ;;  %v9289_v13 = vld [vmem:[%s13479_s0 + $0x130] sm:$0xf0] }
  0xd3   :  { %3030 = vmatmul.bf16.gmra.mxu3 %v10065_v31  ;;  %13721 = vst [vmem:[#allocation37_spill] sm:$0xff] %v10254_v10  ;;  %v1137_v46 = vshll.u32 %v10254_v10, 16  ;;  %v1099_v53 = vrot.slane %v1097_v1, 1  ;;  %v1132_v3 = vsel %vm824_vm0, %v1127_v41, %v1131_v43 }
  0xd4   :  { %2552 = vmatmul.bf16.gmra.mxu2 %v1076_v45  ;;  %v1093_v45 = vshrl.u32 %v10220_v56, 16  ;;  %v1135_v40 = vor.u32 %v1133_v28, %v1115_v0 }
  0xd6   :  { %v2991_v61 = vpop.f32.mrf.mxu3  ;;  %v2099_v55 = vpop.f32.mrf.mxu0  ;;  %v1095_v31 = vor.u32 %v1093_v45, %v1075_v26  ;;  %v1149_v45 = vshrl.u32 %v10251_v14, 16 }
  0xd7   :  { %v2513_v54 = vpop.f32.mrf.mxu2  ;;  %v2312_v38 = vpop.f32.mrf.mxu1  ;;  %v1139_v61 = vrot.slane %v1137_v46, 1 }
  0xd8   :  { %v2514_v22 = vadd.f32 %v2513_v54, %v10155_v11  ;;  %v10263_v47 = vadd.f32 %v2312_v38, %v2099_v55  ;;  %v8028_v38 = vld [vmem:[%s13479_s0 + $0x150] sm:$0xf]  ;;  %v1100_v26 = vsel %vm824_vm0, %v1095_v31, %v1099_v53  ;;  %v10296_v31 = vor.u32 %v9289_v13, %v8012_v17 }
  0xd9   :  { %v1140_v55 = vsel %vm824_vm0, %v1135_v40, %v1139_v61 }
  0xda   :  { %13725 = vst [vmem:[#allocation41_spill] sm:$0xff] %v10296_v31 }
  0xde   :  { %v2993_v11 = vpop.f32.mrf.mxu3  ;;  %v2102_v58 = vpop.f32.mrf.mxu0 }
  0xdf   :  { %v2515_v34 = vpop.f32.mrf.mxu2  ;;  %v2315_v6 = vpop.f32.mrf.mxu1 }
  0xe0   :  { %v2516_v54 = vadd.f32 %v2515_v34, %v10186_v30  ;;  %v10276_v0 = vadd.f32 %v2315_v6, %v2102_v58  ;;  %v9293_v34 = vld [vmem:[%s13479_s0 + $0x154] sm:$0xf]  ;;  %v8030_v30 = vld [vmem:[%s13479_s0 + $0x15c] sm:$0xf0]  ;;  %v10291_v6 = vor.u32 %v9294_v24, %v8028_v38  ;;  %v1117_v24 = vshrl.u32 %v10256_v51, 16 }
  0xe1   :  { %2141 = vmatmul.bf16.gmra.mxu0 %v1132_v3  ;;  %v10294_v58 = vor.u32 %v9293_v34, %v8030_v30  ;;  %v1151_v34 = vor.u32 %v1149_v45, %v1131_v43  ;;  %v9297_v43 = vld [vmem:[%s13479_s0 + $0x170] sm:$0xf0]  ;;  %v9292_v45 = vld [vmem:[%s13479_s0 + $0x148] sm:$0xf0] }
  0xe2   :  { %2354 = vmatmul.bf16.gmra.mxu1 %v1140_v55  ;;  %13723 = vst [vmem:[#allocation39_spill] sm:$0xff] %v10291_v6  ;;  %v1153_v1 = vshll.u32 %v10291_v6, 16  ;;  %v1157_v55 = vshrl.u32 %v10254_v10, 16  ;;  %v8040_v10 = vld [vmem:[%s13479_s0 + $0x168] sm:$0xf] }
  0xe3   :  { %3035 = vmatmul.bf16.gmra.mxu3 %v10099_v16  ;;  %13724 = vst [vmem:[#allocation40_spill] sm:$0xff] %v10294_v58  ;;  %v1161_v38 = vshll.u32 %v10294_v58, 16  ;;  %v1119_v16 = vor.u32 %v1117_v24, %v1099_v53 }
  0xe4   :  { %2557 = vmatmul.bf16.gmra.mxu2 %v1100_v26  ;;  %v1121_v26 = vshll.u32 %v10296_v31, 16  ;;  %v1155_v30 = vrot.slane %v1153_v1, 1  ;;  %v1159_v17 = vor.u32 %v1157_v55, %v1139_v61  ;;  %v8042_v61 = vld [vmem:[%s13479_s0 + $0x174] sm:$0xf0]  ;;  %v10330_v1 = vor.u32 %v9297_v43, %v8040_v10 }
  0xe5   :  { %v1163_v13 = vrot.slane %v1161_v38, 1  ;;  %v1141_v43 = vshrl.u32 %v10296_v31, 16 }
  0xe6   :  { %v2996_v46 = vpop.f32.mrf.mxu3  ;;  %v2104_v3 = vpop.f32.mrf.mxu0  ;;  %v1123_v21 = vrot.slane %v1121_v26, 1  ;;  %13726 = vst [vmem:[#allocation42_spill] sm:$0xff] %v10330_v1  ;;  %v1173_v26 = vshrl.u32 %v10291_v6, 16 }
  0xe7   :  { %v2518_v28 = vpop.f32.mrf.mxu2  ;;  %v10301_v40 = vadd.f32 %v2996_v46, %v2514_v22  ;;  %v2317_v11 = vpop.f32.mrf.mxu1  ;;  %v1156_v3 = vsel %vm824_vm0, %v1151_v34, %v1155_v30  ;;  %v1177_v34 = vshll.u32 %v10330_v1, 16 }
  0xe8   :  { %v2519_v41 = vadd.f32 %v2518_v28, %v10197_v29  ;;  %v1164_v11 = vsel %vm824_vm0, %v1159_v17, %v1163_v13  ;;  %v1124_v53 = vsel %vm824_vm0, %v1119_v16, %v1123_v21 }
  0xee   :  { %v2998_v29 = vpop.f32.mrf.mxu3  ;;  %v2107_v28 = vpop.f32.mrf.mxu0 }
  0xef   :  { %v2520_v57 = vpop.f32.mrf.mxu2  ;;  %v10307_v22 = vadd.f32 %v2998_v29, %v2516_v54  ;;  %v2320_v46 = vpop.f32.mrf.mxu1  ;;  %v8024_v54 = vld [vmem:[%s13479_s0 + $0x140] sm:$0xf] }
  0xf0   :  { %v9296_v57 = vld [vmem:[%s13479_s0 + $0x16c] sm:$0xf]  ;;  %v10335_v55 = vor.u32 %v9292_v45, %v8024_v54  ;;  %v1181_v46 = vshrl.u32 %v10294_v58, 16  ;;  %v1143_v45 = vor.u32 %v1141_v43, %v1123_v21 }
  0xf1   :  { %2146 = vmatmul.bf16.gmra.mxu0 %v1156_v3  ;;  %v10333_v16 = vor.u32 %v9296_v57, %v8042_v61  ;;  %v9383_v57 = vld [vmem:[%s13478_s2 + $0x60] sm:$0xff] }
  0xf2   :  { %2359 = vmatmul.bf16.gmra.mxu1 %v1164_v11  ;;  %13728 = vst [vmem:[#allocation44_spill] sm:$0xff] %v10335_v55  ;;  %3198 = vmatpush.bf16.msrb.mxu0 %v9383_v57  ;;  %v1183_v61 = vor.u32 %v1181_v46, %v1163_v13  ;;  %v8052_v57 = vld [vmem:[%s13479_s0 + $0x180] sm:$0xf]  ;;  %v8054_v13 = vld [vmem:[%s13479_s0 + $0x18c] sm:$0xf0] }
  0xf3   :  { %3040 = vmatmul.bf16.gmra.mxu3 %v10133_v12  ;;  %13727 = vst [vmem:[#allocation43_spill] sm:$0xff] %v10333_v16  ;;  %v1185_v3 = vshll.u32 %v10333_v16, 16 }
  0xf4   :  { %2562 = vmatmul.bf16.gmra.mxu2 %v1124_v53  ;;  %v1145_v53 = vshll.u32 %v10335_v55, 16 }
  0xf5   :  { %v1187_v54 = vrot.slane %v1185_v3, 1 }
  0xf6   :  { %v3001_v24 = vpop.f32.mrf.mxu3  ;;  %v2109_v28 = vpop.f32.mrf.mxu0 }
  0xf7   :  { %v2523_v38 = vpop.f32.mrf.mxu2  ;;  %v10340_v29 = vadd.f32 %v3001_v24, %v2519_v41  ;;  %v2322_v10 = vpop.f32.mrf.mxu1  ;;  %v1179_v41 = vrot.slane %v1177_v34, 1  ;;  %v1188_v31 = vsel %vm824_vm0, %v1183_v61, %v1187_v54  ;;  %v9295_v34 = vld [vmem:[%s13479_s0 + $0x160] sm:$0xf0] }
  0xf8   :  { %v2524_v17 = vadd.f32 %v2523_v38, %v10236_v42  ;;  %v10344_v11 = vadd.f32 %v2322_v10, %v2109_v28  ;;  %v1175_v42 = vor.u32 %v1173_v26, %v1155_v30  ;;  %v1147_v38 = vrot.slane %v1145_v53, 1  ;;  %v9300_v30 = vld [vmem:[%s13479_s0 + $0x188] sm:$0xf0]  ;;  %v8036_v26 = vld [vmem:[%s13479_s0 + $0x158] sm:$0xf] }
  0xf9   :  { %13729 = vst [vmem:[#allocation45_spill] sm:$0xff] %v10340_v29  ;;  %v10380_v3 = vor.u32 %v9295_v34, %v8036_v26 }
  0xfa   :  { %v1180_v32 = vsel %vm824_vm0, %v1175_v42, %v1179_v41  ;;  %v1197_v42 = vshrl.u32 %v10330_v1, 16 }
  0xfb   :  { %13732 = vst [vmem:[#allocation48_spill] sm:$0xff] %v10380_v3 }
  0xfe   :  { %v3003_v12 = vpop.f32.mrf.mxu3  ;;  %v2112_v10 = vpop.f32.mrf.mxu0 }
  0xff   :  { %v2525_v24 = vpop.f32.mrf.mxu2  ;;  %v2325_v58 = vpop.f32.mrf.mxu1  ;;  %v1148_v12 = vsel %vm824_vm0, %v1143_v45, %v1147_v38 }
 0x100   :  { %v2526_v28 = vadd.f32 %v2525_v24, %v10263_v47  ;;  %v10360_v21 = vadd.f32 %v2325_v58, %v2112_v10  ;;  %v9299_v47 = vld [vmem:[%s13479_s0 + $0x184] sm:$0xf]  ;;  %v10375_v58 = vor.u32 %v9300_v30, %v8052_v57  ;;  %v1205_v10 = vshrl.u32 %v10333_v16, 16 }
 0x101   :  { %2151 = vmatmul.bf16.gmra.mxu0 %v1180_v32  ;;  %v10378_v46 = vor.u32 %v9299_v47, %v8054_v13  ;;  %v1169_v47 = vshll.u32 %v10380_v3, 16  ;;  %v1199_v13 = vor.u32 %v1197_v42, %v1179_v41  ;;  %v9303_v41 = vld [vmem:[%s13479_s0 + $0x1a0] sm:$0xf0]  ;;  %v9298_v42 = vld [vmem:[%s13479_s0 + $0x178] sm:$0xf0] }
 0x102   :  { %2364 = vmatmul.bf16.gmra.mxu1 %v1188_v31  ;;  %13730 = vst [vmem:[#allocation46_spill] sm:$0xff] %v10375_v58  ;;  %v1201_v61 = vshll.u32 %v10375_v58, 16  ;;  %v1207_v34 = vor.u32 %v1205_v10, %v1187_v54 }
 0x103   :  { %3045 = vmatmul.bf16.gmra.mxu3 %v10174_v49  ;;  %13731 = vst [vmem:[#allocation47_spill] sm:$0xff] %v10378_v46  ;;  %v1209_v57 = vshll.u32 %v10378_v46, 16 }
 0x104   :  { %2567 = vmatmul.bf16.gmra.mxu2 %v1148_v12  ;;  %v1165_v12 = vshrl.u32 %v10335_v55, 16  ;;  %v1203_v26 = vrot.slane %v1201_v61, 1 }
 0x105   :  { %v1211_v49 = vrot.slane %v1209_v57, 1 }
 0x106   :  { %v3006_v53 = vpop.f32.mrf.mxu3  ;;  %v2114_v32 = vpop.f32.mrf.mxu0  ;;  %v1167_v7 = vor.u32 %v1165_v12, %v1147_v38  ;;  %v1204_v15 = vsel %vm824_vm0, %v1199_v13, %v1203_v26  ;;  %v9302_v38 = vld [vmem:[%s13479_s0 + $0x19c] sm:$0xf]  ;;  %v1221_v12 = vshrl.u32 %v10375_v58, 16 }
 0x107   :  { %v2528_v43 = vpop.f32.mrf.mxu2  ;;  %v10385_v24 = vadd.f32 %v3006_v53, %v2524_v17  ;;  %v2327_v31 = vpop.f32.mrf.mxu1 }
 0x108   :  { %v2529_v45 = vadd.f32 %v2528_v43, %v10276_v0  ;;  %v10389_v30 = vadd.f32 %v2327_v31, %v2114_v32  ;;  %v1171_v0 = vrot.slane %v1169_v47, 1  ;;  %v1212_v32 = vsel %vm824_vm0, %v1207_v34, %v1211_v49  ;;  %v8064_v31 = vld [vmem:[%s13479_s0 + $0x198] sm:$0xf] }
 0x109   :  { %13733 = vst [vmem:[#allocation49_spill] sm:$0xff] %v10385_v24  ;;  %v10416_v61 = vor.u32 %v9303_v41, %v8064_v31  ;;  %v1189_v31 = vshrl.u32 %v10380_v3, 16 }
 0x10a   :  { %v1172_v54 = vsel %vm824_vm0, %v1167_v7, %v1171_v0 }
 0x10b   :  { %13735 = vst [vmem:[#allocation51_spill] sm:$0xff] %v10416_v61  ;;  %v1225_v47 = vshll.u32 %v10416_v61, 16 }
 0x10e   :  { %v3008_v43 = vpop.f32.mrf.mxu3  ;;  %v2117_v24 = vpop.f32.mrf.mxu0 }
 0x10f   :  { %v2530_v17 = vpop.f32.mrf.mxu2  ;;  %v10393_v53 = vadd.f32 %v3008_v43, %v2526_v28  ;;  %v2330_v16 = vpop.f32.mrf.mxu1  ;;  %v8048_v28 = vld [vmem:[%s13479_s0 + $0x170] sm:$0xf] }
 0x110   :  { %v8066_v16 = vld [vmem:[%s13479_s0 + $0x1a4] sm:$0xf0]  ;;  %v10421_v24 = vor.u32 %v9298_v42, %v8048_v28  ;;  %v1229_v17 = vshrl.u32 %v10378_v46, 16  ;;  %v1191_v42 = vor.u32 %v1189_v31, %v1171_v0 }
 0x111   :  { %13734 = vst [vmem:[#allocation50_spill] sm:$0xff] %v10393_v53  ;;  %2156 = vmatmul.bf16.gmra.mxu0 %v1204_v15  ;;  %v10419_v7 = vor.u32 %v9302_v38, %v8066_v16  ;;  %v1227_v38 = vrot.slane %v1225_v47, 1  ;;  %v8060_v47 = vld [vmem:[%s13479_s0 + $0x188] sm:$0xf] }
 0x112   :  { %2369 = vmatmul.bf16.gmra.mxu1 %v1212_v32  ;;  %13737 = vst [vmem:[#allocation53_spill] sm:$0xff] %v10421_v24  ;;  %v1193_v41 = vshll.u32 %v10421_v24, 16  ;;  %v1231_v16 = vor.u32 %v1229_v17, %v1211_v49  ;;  %v9306_v49 = vld [vmem:[%s13479_s0 + $0x1b8] sm:$0xf0]  ;;  %v9301_v17 = vld [vmem:[%s13479_s0 + $0x190] sm:$0xf0] }
 0x113   :  { %3050 = vmatmul.bf16.gmra.mxu3 %v10216_v44  ;;  %13736 = vst [vmem:[#allocation52_spill] sm:$0xff] %v10419_v7  ;;  %v1233_v43 = vshll.u32 %v10419_v7, 16 }
 0x114   :  { %2572 = vmatmul.bf16.gmra.mxu2 %v1172_v54  ;;  %v1223_v54 = vor.u32 %v1221_v12, %v1203_v26  ;;  %v8078_v12 = vld [vmem:[%s13479_s0 + $0x1bc] sm:$0xf0] }
 0x115   :  { %v1235_v28 = vrot.slane %v1233_v43, 1  ;;  %v10462_v43 = vor.u32 %v9301_v17, %v8060_v47 }
 0x116   :  { %v3011_v57 = vpop.f32.mrf.mxu3  ;;  %v2119_v34 = vpop.f32.mrf.mxu0  ;;  %v1228_v53 = vsel %vm824_vm0, %v1223_v54, %v1227_v38  ;;  %v1245_v54 = vshrl.u32 %v10416_v61, 16 }
 0x117   :  { %v2533_v10 = vpop.f32.mrf.mxu2  ;;  %v10425_v13 = vadd.f32 %v3011_v57, %v2529_v45  ;;  %v2332_v15 = vpop.f32.mrf.mxu1  ;;  %13741 = vst [vmem:[#allocation57_spill] sm:$0xff] %v10462_v43 }
 0x118   :  { %v10429_v32 = vadd.f32 %v2332_v15, %v2119_v34  ;;  %v1195_v10 = vrot.slane %v1193_v41, 1  ;;  %v1236_v34 = vsel %vm824_vm0, %v1231_v16, %v1235_v28  ;;  %v8076_v15 = vld [vmem:[%s13479_s0 + $0x1b0] sm:$0xf] }
 0x119   :  { %13738 = vst [vmem:[#allocation54_spill] sm:$0xff] %v10425_v13 }
 0x11a   :  { %v1196_v0 = vsel %vm824_vm0, %v1191_v42, %v1195_v10 }
 0x11e   :  { %v3013_v57 = vpop.f32.mrf.mxu3  ;;  %v2122_v13 = vpop.f32.mrf.mxu0 }
 0x11f   :  { %v2535_v45 = vpop.f32.mrf.mxu2  ;;  %v2335_v46 = vpop.f32.mrf.mxu1  ;;  %v1253_v57 = vshrl.u32 %v10419_v7, 16 }
 0x120   :  { %v2536_v44 = vadd.f32 %v2535_v45, %v10344_v11  ;;  %v10442_v26 = vadd.f32 %v2335_v46, %v2122_v13  ;;  %v9305_v11 = vld [vmem:[%s13479_s0 + $0x1b4] sm:$0xf]  ;;  %v10457_v46 = vor.u32 %v9306_v49, %v8076_v15  ;;  %v1213_v49 = vshrl.u32 %v10421_v24, 16 }
 0x121   :  { %2161 = vmatmul.bf16.gmra.mxu0 %v1228_v53  ;;  %v10460_v13 = vor.u32 %v9305_v11, %v8078_v12  ;;  %v1247_v11 = vor.u32 %v1245_v54, %v1227_v38  ;;  %v1255_v47 = vor.u32 %v1253_v57, %v1235_v28  ;;  %v8088_v38 = vld [vmem:[%s13479_s0 + $0x1c8] sm:$0xf]  ;;  %v9309_v28 = vld [vmem:[%s13479_s0 + $0x1d0] sm:$0xf0] }
 0x122   :  { %2374 = vmatmul.bf16.gmra.mxu1 %v1236_v34  ;;  %13739 = vst [vmem:[#allocation55_spill] sm:$0xff] %v10457_v46  ;;  %v1249_v16 = vshll.u32 %v10457_v46, 16 }
 0x123   :  { %3055 = vmatmul.bf16.gmra.mxu3 %v10251_v14  ;;  %13740 = vst [vmem:[#allocation56_spill] sm:$0xff] %v10460_v13  ;;  %v1257_v34 = vshll.u32 %v10460_v13, 16 }
 0x124   :  { %2577 = vmatmul.bf16.gmra.mxu2 %v1196_v0  ;;  %v1217_v0 = vshll.u32 %v10462_v43, 16  ;;  %v1251_v12 = vrot.slane %v1249_v16, 1 }
 0x125   :  { %v1259_v17 = vrot.slane %v1257_v34, 1 }
 0x126   :  { %v3016_v41 = vpop.f32.mrf.mxu3  ;;  %v2124_v45 = vpop.f32.mrf.mxu0  ;;  %v1219_v14 = vrot.slane %v1217_v0, 1 }
 0x127   :  { %v2538_v31 = vpop.f32.mrf.mxu2  ;;  %v2337_v53 = vpop.f32.mrf.mxu1  ;;  %v1215_v41 = vor.u32 %v1213_v49, %v1195_v10  ;;  %v1269_v49 = vshrl.u32 %v10457_v46, 16 }
 0x128   :  { %v2539_v42 = vadd.f32 %v2538_v31, %v10360_v21  ;;  %v10469_v15 = vadd.f32 %v2337_v53, %v2124_v45  ;;  %v1252_v45 = vsel %vm824_vm0, %v1247_v11, %v1251_v12  ;;  %v1260_v53 = vsel %vm824_vm0, %v1255_v47, %v1259_v17 }
 0x129   :  { %v1220_v10 = vsel %vm824_vm0, %v1215_v41, %v1219_v14 }
 0x12e   :  { %v3018_v21 = vpop.f32.mrf.mxu3  ;;  %v2127_v7 = vpop.f32.mrf.mxu0 }
 0x12f   :  { %v2540_v3 = vpop.f32.mrf.mxu2  ;;  %v10474_v55 = vadd.f32 %v3018_v21, %v2536_v44  ;;  %v2340_v29 = vpop.f32.mrf.mxu1  ;;  %v9308_v44 = vld [vmem:[%s13479_s0 + $0x1cc] sm:$0xf]  ;;  %v10497_v7 = vor.u32 %v9309_v28, %v8088_v38  ;;  %v1277_v21 = vshrl.u32 %v10460_v13, 16  ;;  %v1271_v28 = vor.u32 %v1269_v49, %v1251_v12  ;;  %v8100_v12 = vld [vmem:[%s13479_s0 + $0x1e0] sm:$0xf] }
 0x130   :  { %v2541_v31 = vadd.f32 %v2540_v3, %v10389_v30  ;;  %v8090_v29 = vld [vmem:[%s13479_s0 + $0x1d4] sm:$0xf0]  ;;  %v8072_v3 = vld [vmem:[%s13479_s0 + $0x1a0] sm:$0xf]  ;;  %v9304_v30 = vld [vmem:[%s13479_s0 + $0x1a8] sm:$0xf0] }
 0x131   :  { %13742 = vst [vmem:[#allocation58_spill] sm:$0xff] %v10474_v55  ;;  %2166 = vmatmul.bf16.gmra.mxu0 %v1252_v45  ;;  %v10500_v54 = vor.u32 %v9308_v44, %v8090_v29  ;;  %v10502_v16 = vor.u32 %v9304_v30, %v8072_v3  ;;  %v1273_v0 = vshll.u32 %v10497_v7, 16  ;;  %v1279_v44 = vor.u32 %v1277_v21, %v1259_v17  ;;  %v8084_v49 = vld [vmem:[%s13479_s0 + $0x1b8] sm:$0xf] }
 0x132   :  { %2379 = vmatmul.bf16.gmra.mxu1 %v1260_v53  ;;  %13743 = vst [vmem:[#allocation59_spill] sm:$0xff] %v10497_v7  ;;  %v1237_v53 = vshrl.u32 %v10462_v43, 16 }
 0x133   :  { %3060 = vmatmul.bf16.gmra.mxu3 %v10291_v6  ;;  %13744 = vst [vmem:[#allocation60_spill] sm:$0xff] %v10500_v54  ;;  %v1281_v45 = vshll.u32 %v10500_v54, 16  ;;  %v1241_v38 = vshll.u32 %v10502_v16, 16 }
 0x134   :  { %2582 = vmatmul.bf16.gmra.mxu2 %v1220_v10  ;;  %13745 = vst [vmem:[#allocation61_spill] sm:$0xff] %v10502_v16  ;;  %v1275_v10 = vrot.slane %v1273_v0, 1  ;;  %v1239_v3 = vor.u32 %v1237_v53, %v1219_v14  ;;  %v9312_v14 = vld [vmem:[%s13479_s0 + $0x1e8] sm:$0xf0]  ;;  %v9307_v0 = vld [vmem:[%s13479_s0 + $0x1c0] sm:$0xf0] }
 0x135   :  { %v1283_v29 = vrot.slane %v1281_v45, 1  ;;  %v1243_v30 = vrot.slane %v1241_v38, 1  ;;  %v10538_v21 = vor.u32 %v9312_v14, %v8100_v12  ;;  %v10543_v53 = vor.u32 %v9307_v0, %v8084_v49 }
 0x136   :  { %v3021_v34 = vpop.f32.mrf.mxu3  ;;  %v2129_v47 = vpop.f32.mrf.mxu0  ;;  %v1276_v13 = vsel %vm824_vm0, %v1271_v28, %v1275_v10  ;;  %v1261_v14 = vshrl.u32 %v10502_v16, 16 }
 0x137   :  { %v2543_v57 = vpop.f32.mrf.mxu2  ;;  %v10506_v11 = vadd.f32 %v3021_v34, %v2539_v42  ;;  %v2342_v41 = vpop.f32.mrf.mxu1  ;;  %v1284_v43 = vsel %vm824_vm0, %v1279_v44, %v1283_v29  ;;  %13748 = vst [vmem:[#allocation64_spill] sm:$0xff] %v10538_v21  ;;  %v1293_v44 = vshrl.u32 %v10497_v7, 16 }
 0x138   :  { %13750 = vst [vmem:[#allocation66_spill] sm:$0xff] %v10543_v53 }
 0x139   :  { %13746 = vst [vmem:[#allocation62_spill] sm:$0xff] %v10506_v11 }
 0x13e   :  { %v3023_v6 = vpop.f32.mrf.mxu3  ;;  %v2132_v47 = vpop.f32.mrf.mxu0 }
 0x13f   :  { %v2545_v57 = vpop.f32.mrf.mxu2  ;;  %v10513_v34 = vadd.f32 %v3023_v6, %v2541_v31  ;;  %v2345_v41 = vpop.f32.mrf.mxu1  ;;  %v9311_v6 = vld [vmem:[%s13479_s0 + $0x1e4] sm:$0xf]  ;;  %v8102_v31 = vld [vmem:[%s13479_s0 + $0x1ec] sm:$0xf0] }
 0x140   :  { %v2546_v42 = vadd.f32 %v2545_v57, %v10429_v32  ;;  %v10523_v17 = vadd.f32 %v2345_v41, %v2132_v47  ;;  %v1244_v32 = vsel %vm824_vm0, %v1239_v3, %v1243_v30  ;;  %v10541_v45 = vor.u32 %v9311_v6, %v8102_v31  ;;  %v9382_v6 = vld [vmem:[%s13478_s2 + $0x58] sm:$0xff] }
 0x141   :  { %13747 = vst [vmem:[#allocation63_spill] sm:$0xff] %v10513_v34  ;;  %2171 = vmatmul.bf16.gmra.mxu0 %v1276_v13  ;;  %v1297_v3 = vshll.u32 %v10538_v21, 16  ;;  %v1295_v31 = vor.u32 %v1293_v44, %v1275_v10  ;;  %v8112_v10 = vld [vmem:[%s13479_s0 + $0x1f8] sm:$0xf]  ;;  %v9310_v44 = vld [vmem:[%s13479_s0 + $0x1d8] sm:$0xf0] }
 0x142   :  { %2384 = vmatmul.bf16.gmra.mxu1 %v1284_v43  ;;  %13749 = vst [vmem:[#allocation65_spill] sm:$0xff] %v10541_v45  ;;  %v1301_v43 = vshrl.u32 %v10500_v54, 16  ;;  %v1305_v41 = vshll.u32 %v10541_v45, 16  ;;  %3199 = vmatpush.bf16.msrb.mxu0 %v9382_v6 }
 0x143   :  { %3065 = vmatmul.bf16.gmra.mxu3 %v10330_v1  ;;  %v1299_v49 = vrot.slane %v1297_v3, 1 }
 0x144   :  { %2587 = vmatmul.bf16.gmra.mxu2 %v1244_v32  ;;  %v1265_v32 = vshll.u32 %v10543_v53, 16  ;;  %v1307_v0 = vrot.slane %v1305_v41, 1 }
 0x145   :  { %v1300_v11 = vsel %vm824_vm0, %v1295_v31, %v1299_v49 }
 0x146   :  { %v3026_v28 = vpop.f32.mrf.mxu3  ;;  %v2134_v47 = vpop.f32.mrf.mxu0 }
 0x147   :  { %v2548_v38 = vpop.f32.mrf.mxu2  ;;  %v2347_v13 = vpop.f32.mrf.mxu1  ;;  %v1267_v28 = vrot.slane %v1265_v32, 1 }
 0x148   :  { %v2549_v57 = vadd.f32 %v2548_v38, %v10442_v26  ;;  %v10550_v12 = vadd.f32 %v2347_v13, %v2134_v47  ;;  %v1303_v26 = vor.u32 %v1301_v43, %v1283_v29  ;;  %v1263_v38 = vor.u32 %v1261_v14, %v1243_v30  ;;  %v9315_v29 = vld [vmem:[%s13479_s0 + $0x200] sm:$0xf0] }
 0x149   :  { %v1317_v14 = vshrl.u32 %v10538_v21, 16 }
 0x14a   :  { %v1308_v55 = vsel %vm824_vm0, %v1303_v26, %v1307_v0 }
 0x14e   :  { %v3028_v54 = vpop.f32.mrf.mxu3  ;;  %v2137_v16 = vpop.f32.mrf.mxu0 }
 0x14f   :  { %v2550_v1 = vpop.f32.mrf.mxu2  ;;  %v10558_v13 = vadd.f32 %v3028_v54, %v2546_v42  ;;  %v2350_v34 = vpop.f32.mrf.mxu1  ;;  %v8114_v54 = vld [vmem:[%s13479_s0 + $0x204] sm:$0xf0]  ;;  %v8096_v42 = vld [vmem:[%s13479_s0 + $0x1d0] sm:$0xf] }
 0x150   :  { %v2551_v47 = vadd.f32 %v2550_v1, %v10469_v15  ;;  %v10568_v30 = vadd.f32 %v2350_v34, %v2137_v16  ;;  %v1268_v1 = vsel %vm824_vm0, %v1263_v38, %v1267_v28  ;;  %v9314_v15 = vld [vmem:[%s13479_s0 + $0x1fc] sm:$0xf]  ;;  %v10583_v16 = vor.u32 %v9315_v29, %v8112_v10 }
 0x151   :  { %13751 = vst [vmem:[#allocation67_spill] sm:$0xff] %v10558_v13  ;;  %2176 = vmatmul.bf16.gmra.mxu0 %v1300_v11  ;;  %v10586_v34 = vor.u32 %v9314_v15, %v8114_v54  ;;  %v10588_v3 = vor.u32 %v9310_v44, %v8096_v42  ;;  %v1285_v38 = vshrl.u32 %v10543_v53, 16  ;;  %v1319_v29 = vor.u32 %v1317_v14, %v1299_v49  ;;  %v8124_v53 = vld [vmem:[%s13479_s0 + $0x210] sm:$0xf]  ;;  %v9318_v49 = vld [vmem:[%s13479_s0 + $0x218] sm:$0xf0] }
 0x152   :  { %2389 = vmatmul.bf16.gmra.mxu1 %v1308_v55  ;;  %13752 = vst [vmem:[#allocation68_spill] sm:$0xff] %v10583_v16  ;;  %v1321_v32 = vshll.u32 %v10583_v16, 16  ;;  %v1325_v55 = vshrl.u32 %v10541_v45, 16  ;;  %v8108_v14 = vld [vmem:[%s13479_s0 + $0x1e8] sm:$0xf] }
 0x153   :  { %3070 = vmatmul.bf16.gmra.mxu3 %v10375_v58  ;;  %13753 = vst [vmem:[#allocation69_spill] sm:$0xff] %v10586_v34  ;;  %v1329_v26 = vshll.u32 %v10586_v34, 16  ;;  %v1289_v10 = vshll.u32 %v10588_v3, 16  ;;  %v1287_v42 = vor.u32 %v1285_v38, %v1267_v28 }
 0x154   :  { %2592 = vmatmul.bf16.gmra.mxu2 %v1268_v1  ;;  %13754 = vst [vmem:[#allocation70_spill] sm:$0xff] %v10588_v3  ;;  %v1323_v1 = vrot.slane %v1321_v32, 1  ;;  %v1327_v15 = vor.u32 %v1325_v55, %v1307_v0  ;;  %v9313_v32 = vld [vmem:[%s13479_s0 + $0x1f0] sm:$0xf0]  ;;  %v10623_v55 = vor.u32 %v9318_v49, %v8124_v53  ;;  %v1309_v49 = vshrl.u32 %v10588_v3, 16 }
 0x155   :  { %v1331_v54 = vrot.slane %v1329_v26, 1  ;;  %v1291_v44 = vrot.slane %v1289_v10, 1  ;;  %v10628_v38 = vor.u32 %v9313_v32, %v8108_v14 }
 0x156   :  { %v3031_v41 = vpop.f32.mrf.mxu3  ;;  %v2139_v31 = vpop.f32.mrf.mxu0  ;;  %13757 = vst [vmem:[#allocation73_spill] sm:$0xff] %v10623_v55 }
 0x157   :  { %v2553_v43 = vpop.f32.mrf.mxu2  ;;  %v10592_v6 = vadd.f32 %v3031_v41, %v2549_v57  ;;  %v2352_v11 = vpop.f32.mrf.mxu1  ;;  %v1332_v45 = vsel %vm824_vm0, %v1327_v15, %v1331_v54  ;;  %v1292_v28 = vsel %vm824_vm0, %v1287_v42, %v1291_v44  ;;  %13759 = vst [vmem:[#allocation75_spill] sm:$0xff] %v10628_v38  ;;  %v1341_v15 = vshrl.u32 %v10583_v16, 16 }
 0x158   :  { %v1324_v11 = vsel %vm824_vm0, %v1319_v29, %v1323_v1  ;;  %v1345_v42 = vshll.u32 %v10623_v55, 16 }
 0x159   :  { %13755 = vst [vmem:[#allocation71_spill] sm:$0xff] %v10592_v6 }
 0x15e   :  { %v3033_v58 = vpop.f32.mrf.mxu3  ;;  %v2142_v41 = vpop.f32.mrf.mxu0 }
 0x15f   :  { %v2555_v43 = vpop.f32.mrf.mxu2  ;;  %v10598_v57 = vadd.f32 %v3033_v58, %v2551_v47  ;;  %v2355_v31 = vpop.f32.mrf.mxu1  ;;  %v9317_v58 = vld [vmem:[%s13479_s0 + $0x214] sm:$0xf]  ;;  %v8126_v47 = vld [vmem:[%s13479_s0 + $0x21c] sm:$0xf0] }
 0x160   :  { %v10608_v0 = vadd.f32 %v2355_v31, %v2142_v41  ;;  %v10626_v26 = vor.u32 %v9317_v58, %v8126_v47  ;;  %v1343_v58 = vor.u32 %v1341_v15, %v1323_v1  ;;  %v1347_v47 = vrot.slane %v1345_v42, 1  ;;  %v9321_v1 = vld [vmem:[%s13479_s0 + $0x230] sm:$0xf0]  ;;  %v8120_v15 = vld [vmem:[%s13479_s0 + $0x200] sm:$0xf] }
 0x161   :  { %13756 = vst [vmem:[#allocation72_spill] sm:$0xff] %v10598_v57  ;;  %2181 = vmatmul.bf16.gmra.mxu0 %v1324_v11  ;;  %v9316_v42 = vld [vmem:[%s13479_s0 + $0x208] sm:$0xf0] }
 0x162   :  { %2394 = vmatmul.bf16.gmra.mxu1 %v1332_v45  ;;  %13758 = vst [vmem:[#allocation74_spill] sm:$0xff] %v10626_v26  ;;  %v1349_v45 = vshrl.u32 %v10586_v34, 16  ;;  %v1353_v53 = vshll.u32 %v10626_v26, 16  ;;  %v1348_v13 = vsel %vm824_vm0, %v1343_v58, %v1347_v47 }
 0x163   :  { %3075 = vmatmul.bf16.gmra.mxu3 %v10416_v61 }
 0x164   :  { %2597 = vmatmul.bf16.gmra.mxu2 %v1292_v28  ;;  %v1313_v28 = vshll.u32 %v10628_v38, 16  ;;  %v1351_v14 = vor.u32 %v1349_v45, %v1331_v54  ;;  %v1355_v32 = vrot.slane %v1353_v53, 1  ;;  %v10668_v45 = vor.u32 %v9316_v42, %v8120_v15 }
 0x166   :  { %v3036_v29 = vpop.f32.mrf.mxu3  ;;  %v2144_v41 = vpop.f32.mrf.mxu0  ;;  %v1315_v61 = vrot.slane %v1313_v28, 1  ;;  %13762 = vst [vmem:[#allocation78_spill] sm:$0xff] %v10668_v45  ;;  %v1365_v28 = vshrl.u32 %v10623_v55, 16 }
 0x167   :  { %v2558_v10 = vpop.f32.mrf.mxu2  ;;  %v2357_v31 = vpop.f32.mrf.mxu1  ;;  %v1311_v29 = vor.u32 %v1309_v49, %v1291_v44 }
 0x168   :  { %v2559_v43 = vadd.f32 %v2558_v10, %v10523_v17  ;;  %v10635_v11 = vadd.f32 %v2357_v31, %v2144_v41  ;;  %v1356_v41 = vsel %vm824_vm0, %v1351_v14, %v1355_v32  ;;  %v8136_v31 = vld [vmem:[%s13479_s0 + $0x228] sm:$0xf] }
 0x169   :  { %v1316_v44 = vsel %vm824_vm0, %v1311_v29, %v1315_v61 }
 0x16e   :  { %v3038_v17 = vpop.f32.mrf.mxu3  ;;  %v2147_v6 = vpop.f32.mrf.mxu0 }
 0x16f   :  { %v2560_v57 = vpop.f32.mrf.mxu2  ;;  %v2360_v34 = vpop.f32.mrf.mxu1 }
 0x170   :  { %v2561_v10 = vadd.f32 %v2560_v57, %v10550_v12  ;;  %v10648_v54 = vadd.f32 %v2360_v34, %v2147_v6  ;;  %v9320_v12 = vld [vmem:[%s13479_s0 + $0x22c] sm:$0xf]  ;;  %v8138_v57 = vld [vmem:[%s13479_s0 + $0x234] sm:$0xf0]  ;;  %v10663_v34 = vor.u32 %v9321_v1, %v8136_v31  ;;  %v1333_v1 = vshrl.u32 %v10628_v38, 16 }
 0x171   :  { %2186 = vmatmul.bf16.gmra.mxu0 %v1348_v13  ;;  %v10666_v6 = vor.u32 %v9320_v12, %v8138_v57  ;;  %v1367_v12 = vor.u32 %v1365_v28, %v1347_v47  ;;  %v9324_v47 = vld [vmem:[%s13479_s0 + $0x248] sm:$0xf0]  ;;  %v9319_v28 = vld [vmem:[%s13479_s0 + $0x220] sm:$0xf0] }
 0x172   :  { %2399 = vmatmul.bf16.gmra.mxu1 %v1356_v41  ;;  %13760 = vst [vmem:[#allocation76_spill] sm:$0xff] %v10663_v34  ;;  %v1369_v58 = vshll.u32 %v10663_v34, 16  ;;  %v1373_v41 = vshrl.u32 %v10626_v26, 16  ;;  %v8148_v26 = vld [vmem:[%s13479_s0 + $0x240] sm:$0xf] }
 0x173   :  { %3080 = vmatmul.bf16.gmra.mxu3 %v10457_v46  ;;  %13761 = vst [vmem:[#allocation77_spill] sm:$0xff] %v10666_v6  ;;  %v1377_v31 = vshll.u32 %v10666_v6, 16  ;;  %v1335_v46 = vor.u32 %v1333_v1, %v1315_v61 }
 0x174   :  { %2602 = vmatmul.bf16.gmra.mxu2 %v1316_v44  ;;  %v1337_v44 = vshll.u32 %v10668_v45, 16  ;;  %v1371_v57 = vrot.slane %v1369_v58, 1  ;;  %v1375_v15 = vor.u32 %v1373_v41, %v1355_v32  ;;  %v8150_v32 = vld [vmem:[%s13479_s0 + $0x24c] sm:$0xf0]  ;;  %v10702_v58 = vor.u32 %v9324_v47, %v8148_v26 }
 0x175   :  { %v1379_v42 = vrot.slane %v1377_v31, 1  ;;  %v1357_v47 = vshrl.u32 %v10668_v45, 16 }
 0x176   :  { %v3041_v49 = vpop.f32.mrf.mxu3  ;;  %v2149_v13 = vpop.f32.mrf.mxu0  ;;  %v1339_v3 = vrot.slane %v1337_v44, 1  ;;  %13765 = vst [vmem:[#allocation81_spill] sm:$0xff] %v10702_v58  ;;  %v1389_v44 = vshrl.u32 %v10663_v34, 16 }
 0x177   :  { %v2563_v53 = vpop.f32.mrf.mxu2  ;;  %v10673_v29 = vadd.f32 %v3041_v49, %v2559_v43  ;;  %v2362_v17 = vpop.f32.mrf.mxu1  ;;  %v1372_v13 = vsel %vm824_vm0, %v1367_v12, %v1371_v57  ;;  %v1393_v12 = vshll.u32 %v10702_v58, 16 }
 0x178   :  { %v2564_v14 = vadd.f32 %v2563_v53, %v10568_v30  ;;  %v1380_v17 = vsel %vm824_vm0, %v1375_v15, %v1379_v42  ;;  %v1340_v61 = vsel %vm824_vm0, %v1335_v46, %v1339_v3 }
 0x179   :  { %13763 = vst [vmem:[#allocation79_spill] sm:$0xff] %v10673_v29 }
 0x17e   :  { %v3043_v30 = vpop.f32.mrf.mxu3  ;;  %v2152_v53 = vpop.f32.mrf.mxu0 }
 0x17f   :  { %v2565_v24 = vpop.f32.mrf.mxu2  ;;  %v10679_v43 = vadd.f32 %v3043_v30, %v2561_v10  ;;  %v2365_v49 = vpop.f32.mrf.mxu1  ;;  %v8132_v10 = vld [vmem:[%s13479_s0 + $0x218] sm:$0xf] }
 0x180   :  { %v9323_v24 = vld [vmem:[%s13479_s0 + $0x244] sm:$0xf]  ;;  %v10707_v41 = vor.u32 %v9319_v28, %v8132_v10  ;;  %v1397_v49 = vshrl.u32 %v10666_v6, 16 }
 0x181   :  { %13764 = vst [vmem:[#allocation80_spill] sm:$0xff] %v10679_v43  ;;  %2191 = vmatmul.bf16.gmra.mxu0 %v1372_v13  ;;  %v10705_v46 = vor.u32 %v9323_v24, %v8150_v32  ;;  %v1391_v24 = vor.u32 %v1389_v44, %v1371_v57  ;;  %v1395_v32 = vrot.slane %v1393_v12, 1  ;;  %v9327_v57 = vld [vmem:[%s13479_s0 + $0x260] sm:$0xf0]  ;;  %v8162_v44 = vld [vmem:[%s13479_s0 + $0x264] sm:$0xf0] }
 0x182   :  { %2404 = vmatmul.bf16.gmra.mxu1 %v1380_v17  ;;  %13767 = vst [vmem:[#allocation83_spill] sm:$0xff] %v10707_v41  ;;  %v1399_v10 = vor.u32 %v1397_v49, %v1379_v42  ;;  %v8144_v12 = vld [vmem:[%s13479_s0 + $0x230] sm:$0xf]  ;;  %v9322_v49 = vld [vmem:[%s13479_s0 + $0x238] sm:$0xf0] }
 0x183   :  { %3085 = vmatmul.bf16.gmra.mxu3 %v10497_v7  ;;  %13766 = vst [vmem:[#allocation82_spill] sm:$0xff] %v10705_v46  ;;  %v1401_v13 = vshll.u32 %v10705_v46, 16  ;;  %v1359_v7 = vor.u32 %v1357_v47, %v1339_v3  ;;  %v1396_v43 = vsel %vm824_vm0, %v1391_v24, %v1395_v32 }
 0x184   :  { %2607 = vmatmul.bf16.gmra.mxu2 %v1340_v61  ;;  %v1361_v61 = vshll.u32 %v10707_v41, 16 }
 0x185   :  { %v1403_v28 = vrot.slane %v1401_v13, 1 }
 0x186   :  { %v3046_v1 = vpop.f32.mrf.mxu3  ;;  %v2154_v53 = vpop.f32.mrf.mxu0 }
 0x187   :  { %v2568_v31 = vpop.f32.mrf.mxu2  ;;  %v10712_v30 = vadd.f32 %v3046_v1, %v2564_v14  ;;  %v2367_v26 = vpop.f32.mrf.mxu1 }
 0x188   :  { %v2569_v15 = vadd.f32 %v2568_v31, %v10608_v0  ;;  %v10716_v17 = vadd.f32 %v2367_v26, %v2154_v53  ;;  %v1363_v0 = vrot.slane %v1361_v61, 1  ;;  %v1404_v53 = vsel %vm824_vm0, %v1399_v10, %v1403_v28  ;;  %v8160_v26 = vld [vmem:[%s13479_s0 + $0x258] sm:$0xf] }
 0x189   :  { %13768 = vst [vmem:[#allocation84_spill] sm:$0xff] %v10712_v30  ;;  %v1413_v61 = vshrl.u32 %v10702_v58, 16 }
 0x18a   :  { %v1364_v42 = vsel %vm824_vm0, %v1359_v7, %v1363_v0 }
 0x18e   :  { %v3048_v31 = vpop.f32.mrf.mxu3  ;;  %v2157_v30 = vpop.f32.mrf.mxu0 }
 0x18f   :  { %v2570_v14 = vpop.f32.mrf.mxu2  ;;  %v2370_v6 = vpop.f32.mrf.mxu1 }
 0x190   :  { %v2571_v1 = vadd.f32 %v2570_v14, %v10635_v11  ;;  %v10729_v3 = vadd.f32 %v2370_v6, %v2157_v30  ;;  %v9326_v11 = vld [vmem:[%s13479_s0 + $0x25c] sm:$0xf]  ;;  %v10744_v6 = vor.u32 %v9327_v57, %v8160_v26  ;;  %v10749_v30 = vor.u32 %v9322_v49, %v8144_v12 }
 0x191   :  { %2196 = vmatmul.bf16.gmra.mxu0 %v1396_v43  ;;  %v10747_v7 = vor.u32 %v9326_v11, %v8162_v44  ;;  %v9381_v44 = vld [vmem:[%s13478_s2 + $0x50] sm:$0xff] }
 0x192   :  { %2409 = vmatmul.bf16.gmra.mxu1 %v1404_v53  ;;  %13769 = vst [vmem:[#allocation85_spill] sm:$0xff] %v10744_v6  ;;  %v1417_v24 = vshll.u32 %v10744_v6, 16  ;;  %v1421_v53 = vshrl.u32 %v10705_v46, 16  ;;  %v1385_v11 = vshll.u32 %v10749_v30, 16  ;;  %3200 = vmatpush.bf16.msrb.mxu0 %v9381_v44  ;;  %v8172_v44 = vld [vmem:[%s13479_s0 + $0x270] sm:$0xf] }
 0x193   :  { %3090 = vmatmul.bf16.gmra.mxu3 %v10538_v21  ;;  %13770 = vst [vmem:[#allocation86_spill] sm:$0xff] %v10747_v7  ;;  %v1425_v26 = vshll.u32 %v10747_v7, 16 }
 0x194   :  { %2612 = vmatmul.bf16.gmra.mxu2 %v1364_v42  ;;  %13771 = vst [vmem:[#allocation87_spill] sm:$0xff] %v10749_v30  ;;  %v1381_v42 = vshrl.u32 %v10707_v41, 16  ;;  %v1423_v12 = vor.u32 %v1421_v53, %v1403_v28 }
 0x195   :  { %v1427_v49 = vrot.slane %v1425_v26, 1 }
 0x196   :  { %v3051_v47 = vpop.f32.mrf.mxu3  ;;  %v2159_v43 = vpop.f32.mrf.mxu0 }
 0x197   :  { %v2573_v13 = vpop.f32.mrf.mxu2  ;;  %v10754_v14 = vadd.f32 %v3051_v47, %v2569_v15  ;;  %v2372_v31 = vpop.f32.mrf.mxu1  ;;  %v1419_v15 = vrot.slane %v1417_v24, 1  ;;  %v1387_v47 = vrot.slane %v1385_v11, 1  ;;  %v1428_v45 = vsel %vm824_vm0, %v1423_v12, %v1427_v49 }
 0x198   :  { %v2574_v10 = vadd.f32 %v2573_v13, %v10648_v54  ;;  %v10758_v57 = vadd.f32 %v2372_v31, %v2159_v43  ;;  %v1415_v54 = vor.u32 %v1413_v61, %v1395_v32  ;;  %v1383_v13 = vor.u32 %v1381_v42, %v1363_v0  ;;  %v9330_v32 = vld [vmem:[%s13479_s0 + $0x278] sm:$0xf0]  ;;  %v8156_v0 = vld [vmem:[%s13479_s0 + $0x248] sm:$0xf] }
 0x199   :  { %13772 = vst [vmem:[#allocation88_spill] sm:$0xff] %v10754_v14  ;;  %v10788_v61 = vor.u32 %v9330_v32, %v8172_v44  ;;  %v1437_v11 = vshrl.u32 %v10744_v6, 16  ;;  %v1405_v44 = vshrl.u32 %v10749_v30, 16 }
 0x19a   :  { %v1420_v41 = vsel %vm824_vm0, %v1415_v54, %v1419_v15  ;;  %v1388_v28 = vsel %vm824_vm0, %v1383_v13, %v1387_v47 }
 0x19b   :  { %13774 = vst [vmem:[#allocation90_spill] sm:$0xff] %v10788_v61  ;;  %v1441_v54 = vshll.u32 %v10788_v61, 16 }
 0x19e   :  { %v3053_v46 = vpop.f32.mrf.mxu3  ;;  %v2162_v43 = vpop.f32.mrf.mxu0 }
 0x19f   :  { %v2575_v21 = vpop.f32.mrf.mxu2  ;;  %v10765_v14 = vadd.f32 %v3053_v46, %v2571_v1  ;;  %v2375_v31 = vpop.f32.mrf.mxu1  ;;  %v8174_v46 = vld [vmem:[%s13479_s0 + $0x27c] sm:$0xf0]  ;;  %v9325_v1 = vld [vmem:[%s13479_s0 + $0x250] sm:$0xf0] }
 0x1a0   :  { %v9329_v21 = vld [vmem:[%s13479_s0 + $0x274] sm:$0xf]  ;;  %v10793_v53 = vor.u32 %v9325_v1, %v8156_v0  ;;  %v1407_v1 = vor.u32 %v1405_v44, %v1387_v47 }
 0x1a1   :  { %13773 = vst [vmem:[#allocation89_spill] sm:$0xff] %v10765_v14  ;;  %2201 = vmatmul.bf16.gmra.mxu0 %v1420_v41  ;;  %v10791_v24 = vor.u32 %v9329_v21, %v8174_v46  ;;  %v1443_v21 = vrot.slane %v1441_v54, 1  ;;  %v8168_v54 = vld [vmem:[%s13479_s0 + $0x260] sm:$0xf] }
 0x1a2   :  { %2414 = vmatmul.bf16.gmra.mxu1 %v1428_v45  ;;  %13776 = vst [vmem:[#allocation92_spill] sm:$0xff] %v10793_v53  ;;  %v1445_v45 = vshrl.u32 %v10747_v7, 16  ;;  %v1409_v32 = vshll.u32 %v10793_v53, 16 }
 0x1a3   :  { %3095 = vmatmul.bf16.gmra.mxu3 %v10583_v16  ;;  %13775 = vst [vmem:[#allocation91_spill] sm:$0xff] %v10791_v24  ;;  %v1449_v43 = vshll.u32 %v10791_v24, 16 }
 0x1a4   :  { %2617 = vmatmul.bf16.gmra.mxu2 %v1388_v28  ;;  %v1439_v28 = vor.u32 %v1437_v11, %v1419_v15  ;;  %v1447_v46 = vor.u32 %v1445_v45, %v1427_v49  ;;  %v9333_v15 = vld [vmem:[%s13479_s0 + $0x290] sm:$0xf0]  ;;  %v8186_v11 = vld [vmem:[%s13479_s0 + $0x294] sm:$0xf0]  ;;  %v9328_v45 = vld [vmem:[%s13479_s0 + $0x268] sm:$0xf0] }
 0x1a5   :  { %v1451_v0 = vrot.slane %v1449_v43, 1  ;;  %v10834_v43 = vor.u32 %v9328_v45, %v8168_v54 }
 0x1a6   :  { %v3056_v42 = vpop.f32.mrf.mxu3  ;;  %v2164_v13 = vpop.f32.mrf.mxu0  ;;  %v1444_v14 = vsel %vm824_vm0, %v1439_v28, %v1443_v21  ;;  %v1461_v28 = vshrl.u32 %v10788_v61, 16 }
 0x1a7   :  { %v2578_v26 = vpop.f32.mrf.mxu2  ;;  %v10797_v12 = vadd.f32 %v3056_v42, %v2574_v10  ;;  %v2377_v41 = vpop.f32.mrf.mxu1  ;;  %13780 = vst [vmem:[#allocation96_spill] sm:$0xff] %v10834_v43 }
 0x1a8   :  { %v10801_v31 = vadd.f32 %v2377_v41, %v2164_v13  ;;  %v1411_v26 = vrot.slane %v1409_v32, 1  ;;  %v1452_v13 = vsel %vm824_vm0, %v1447_v46, %v1451_v0  ;;  %v8184_v41 = vld [vmem:[%s13479_s0 + $0x288] sm:$0xf] }
 0x1a9   :  { %13777 = vst [vmem:[#allocation93_spill] sm:$0xff] %v10797_v12 }
 0x1aa   :  { %v1412_v47 = vsel %vm824_vm0, %v1407_v1, %v1411_v26 }
 0x1ae   :  { %v3058_v42 = vpop.f32.mrf.mxu3  ;;  %v2167_v12 = vpop.f32.mrf.mxu0 }
 0x1af   :  { %v2580_v10 = vpop.f32.mrf.mxu2  ;;  %v2380_v7 = vpop.f32.mrf.mxu1  ;;  %v1469_v42 = vshrl.u32 %v10791_v24, 16 }
 0x1b0   :  { %v2581_v16 = vadd.f32 %v2580_v10, %v10716_v17  ;;  %v10814_v49 = vadd.f32 %v2380_v7, %v2167_v12  ;;  %v9332_v17 = vld [vmem:[%s13479_s0 + $0x28c] sm:$0xf]  ;;  %v10829_v7 = vor.u32 %v9333_v15, %v8184_v41  ;;  %v1429_v15 = vshrl.u32 %v10793_v53, 16 }
 0x1b1   :  { %2206 = vmatmul.bf16.gmra.mxu0 %v1444_v14  ;;  %v10832_v12 = vor.u32 %v9332_v17, %v8186_v11  ;;  %v1463_v17 = vor.u32 %v1461_v28, %v1443_v21  ;;  %v1471_v54 = vor.u32 %v1469_v42, %v1451_v0  ;;  %v8196_v21 = vld [vmem:[%s13479_s0 + $0x2a0] sm:$0xf]  ;;  %v9336_v0 = vld [vmem:[%s13479_s0 + $0x2a8] sm:$0xf0] }
 0x1b2   :  { %2419 = vmatmul.bf16.gmra.mxu1 %v1452_v13  ;;  %13778 = vst [vmem:[#allocation94_spill] sm:$0xff] %v10829_v7  ;;  %v1465_v46 = vshll.u32 %v10829_v7, 16 }
 0x1b3   :  { %3100 = vmatmul.bf16.gmra.mxu3 %v10623_v55  ;;  %13779 = vst [vmem:[#allocation95_spill] sm:$0xff] %v10832_v12  ;;  %v1473_v13 = vshll.u32 %v10832_v12, 16 }
 0x1b4   :  { %2622 = vmatmul.bf16.gmra.mxu2 %v1412_v47  ;;  %v1433_v47 = vshll.u32 %v10834_v43, 16  ;;  %v1467_v11 = vrot.slane %v1465_v46, 1 }
 0x1b5   :  { %v1475_v45 = vrot.slane %v1473_v13, 1 }
 0x1b6   :  { %v3061_v32 = vpop.f32.mrf.mxu3  ;;  %v2169_v10 = vpop.f32.mrf.mxu0  ;;  %v1435_v55 = vrot.slane %v1433_v47, 1 }
 0x1b7   :  { %v2583_v44 = vpop.f32.mrf.mxu2  ;;  %v2382_v14 = vpop.f32.mrf.mxu1  ;;  %v1431_v32 = vor.u32 %v1429_v15, %v1411_v26  ;;  %v1485_v15 = vshrl.u32 %v10829_v7, 16 }
 0x1b8   :  { %v2584_v1 = vadd.f32 %v2583_v44, %v10729_v3  ;;  %v10841_v41 = vadd.f32 %v2382_v14, %v2169_v10  ;;  %v1468_v10 = vsel %vm824_vm0, %v1463_v17, %v1467_v11  ;;  %v1476_v14 = vsel %vm824_vm0, %v1471_v54, %v1475_v45 }
 0x1b9   :  { %v1436_v26 = vsel %vm824_vm0, %v1431_v32, %v1435_v55 }
 0x1be   :  { %v3063_v3 = vpop.f32.mrf.mxu3  ;;  %v2172_v24 = vpop.f32.mrf.mxu0 }
 0x1bf   :  { %v2585_v30 = vpop.f32.mrf.mxu2  ;;  %v10846_v38 = vadd.f32 %v3063_v3, %v2581_v16  ;;  %v2385_v29 = vpop.f32.mrf.mxu1  ;;  %v9335_v16 = vld [vmem:[%s13479_s0 + $0x2a4] sm:$0xf]  ;;  %v10869_v24 = vor.u32 %v9336_v0, %v8196_v21  ;;  %v1493_v3 = vshrl.u32 %v10832_v12, 16  ;;  %v1487_v0 = vor.u32 %v1485_v15, %v1467_v11  ;;  %v8208_v11 = vld [vmem:[%s13479_s0 + $0x2b8] sm:$0xf] }
 0x1c0   :  { %v2586_v44 = vadd.f32 %v2585_v30, %v10758_v57  ;;  %v8198_v29 = vld [vmem:[%s13479_s0 + $0x2ac] sm:$0xf0]  ;;  %v8180_v30 = vld [vmem:[%s13479_s0 + $0x278] sm:$0xf]  ;;  %v9331_v57 = vld [vmem:[%s13479_s0 + $0x280] sm:$0xf0] }
 0x1c1   :  { %13781 = vst [vmem:[#allocation97_spill] sm:$0xff] %v10846_v38  ;;  %2211 = vmatmul.bf16.gmra.mxu0 %v1468_v10  ;;  %v10872_v28 = vor.u32 %v9335_v16, %v8198_v29  ;;  %v10874_v46 = vor.u32 %v9331_v57, %v8180_v30  ;;  %v1489_v47 = vshll.u32 %v10869_v24, 16  ;;  %v1495_v16 = vor.u32 %v1493_v3, %v1475_v45  ;;  %v9334_v15 = vld [vmem:[%s13479_s0 + $0x298] sm:$0xf0] }
 0x1c2   :  { %2424 = vmatmul.bf16.gmra.mxu1 %v1476_v14  ;;  %13782 = vst [vmem:[#allocation98_spill] sm:$0xff] %v10869_v24  ;;  %v1453_v14 = vshrl.u32 %v10834_v43, 16 }
 0x1c3   :  { %3105 = vmatmul.bf16.gmra.mxu3 %v10663_v34  ;;  %13783 = vst [vmem:[#allocation99_spill] sm:$0xff] %v10872_v28  ;;  %v1497_v10 = vshll.u32 %v10872_v28, 16  ;;  %v1457_v21 = vshll.u32 %v10874_v46, 16 }
 0x1c4   :  { %2627 = vmatmul.bf16.gmra.mxu2 %v1436_v26  ;;  %13784 = vst [vmem:[#allocation100_spill] sm:$0xff] %v10874_v46  ;;  %v1491_v26 = vrot.slane %v1489_v47, 1  ;;  %v1455_v30 = vor.u32 %v1453_v14, %v1435_v55  ;;  %v9339_v55 = vld [vmem:[%s13479_s0 + $0x2c0] sm:$0xf0] }
 0x1c5   :  { %v1499_v29 = vrot.slane %v1497_v10, 1  ;;  %v1459_v57 = vrot.slane %v1457_v21, 1  ;;  %v10908_v47 = vor.u32 %v9339_v55, %v8208_v11 }
 0x1c6   :  { %v3066_v13 = vpop.f32.mrf.mxu3  ;;  %v2174_v54 = vpop.f32.mrf.mxu0  ;;  %v1492_v12 = vsel %vm824_vm0, %v1487_v0, %v1491_v26  ;;  %v1509_v0 = vshrl.u32 %v10869_v24, 16 }
 0x1c7   :  { %v2588_v42 = vpop.f32.mrf.mxu2  ;;  %v10878_v17 = vadd.f32 %v3066_v13, %v2584_v1  ;;  %v2387_v32 = vpop.f32.mrf.mxu1  ;;  %v1500_v43 = vsel %vm824_vm0, %v1495_v16, %v1499_v29  ;;  %v1460_v45 = vsel %vm824_vm0, %v1455_v30, %v1459_v57  ;;  %13787 = vst [vmem:[#allocation103_spill] sm:$0xff] %v10908_v47  ;;  %v1513_v16 = vshll.u32 %v10908_v47, 16 }
 0x1c8   :  { %v1511_v55 = vor.u32 %v1509_v0, %v1491_v26  ;;  %v8220_v26 = vld [vmem:[%s13479_s0 + $0x2d0] sm:$0xf]  ;;  %v9337_v0 = vld [vmem:[%s13479_s0 + $0x2b0] sm:$0xf0] }
 0x1c9   :  { %13785 = vst [vmem:[#allocation101_spill] sm:$0xff] %v10878_v17 }
 0x1ce   :  { %v3068_v34 = vpop.f32.mrf.mxu3  ;;  %v2177_v54 = vpop.f32.mrf.mxu0 }
 0x1cf   :  { %v2590_v42 = vpop.f32.mrf.mxu2  ;;  %v10885_v13 = vadd.f32 %v3068_v34, %v2586_v44  ;;  %v2390_v32 = vpop.f32.mrf.mxu1  ;;  %v9338_v34 = vld [vmem:[%s13479_s0 + $0x2bc] sm:$0xf]  ;;  %v8192_v44 = vld [vmem:[%s13479_s0 + $0x290] sm:$0xf] }
 0x1d0   :  { %v2591_v1 = vadd.f32 %v2590_v42, %v10801_v31  ;;  %v8210_v31 = vld [vmem:[%s13479_s0 + $0x2c4] sm:$0xf0]  ;;  %v10913_v10 = vor.u32 %v9334_v15, %v8192_v44  ;;  %v1477_v32 = vshrl.u32 %v10874_v46, 16 }
 0x1d1   :  { %13786 = vst [vmem:[#allocation102_spill] sm:$0xff] %v10885_v13  ;;  %2216 = vmatmul.bf16.gmra.mxu0 %v1492_v12  ;;  %v10911_v3 = vor.u32 %v9338_v34, %v8210_v31 }
 0x1d2   :  { %2429 = vmatmul.bf16.gmra.mxu1 %v1500_v43  ;;  %13789 = vst [vmem:[#allocation105_spill] sm:$0xff] %v10913_v10  ;;  %v1517_v43 = vshrl.u32 %v10872_v28, 16  ;;  %v1481_v11 = vshll.u32 %v10913_v10, 16  ;;  %v1479_v44 = vor.u32 %v1477_v32, %v1459_v57 }
 0x1d3   :  { %3110 = vmatmul.bf16.gmra.mxu3 %v10702_v58  ;;  %13788 = vst [vmem:[#allocation104_spill] sm:$0xff] %v10911_v3  ;;  %v1521_v54 = vshll.u32 %v10911_v3, 16 }
 0x1d4   :  { %2632 = vmatmul.bf16.gmra.mxu2 %v1460_v45  ;;  %v1515_v45 = vrot.slane %v1513_v16, 1  ;;  %v1519_v34 = vor.u32 %v1517_v43, %v1499_v29  ;;  %v1483_v15 = vrot.slane %v1481_v11, 1  ;;  %v9342_v29 = vld [vmem:[%s13479_s0 + $0x2d8] sm:$0xf0] }
 0x1d5   :  { %v1523_v31 = vrot.slane %v1521_v54, 1  ;;  %v10946_v16 = vor.u32 %v9342_v29, %v8220_v26 }
 0x1d6   :  { %v3071_v21 = vpop.f32.mrf.mxu3  ;;  %v2179_v42 = vpop.f32.mrf.mxu0  ;;  %v1516_v28 = vsel %vm824_vm0, %v1511_v55, %v1515_v45  ;;  %v1484_v57 = vsel %vm824_vm0, %v1479_v44, %v1483_v15  ;;  %v1533_v55 = vshrl.u32 %v10908_v47, 16 }
 0x1d7   :  { %v2593_v14 = vpop.f32.mrf.mxu2  ;;  %v2392_v12 = vpop.f32.mrf.mxu1  ;;  %v1524_v46 = vsel %vm824_vm0, %v1519_v34, %v1523_v31  ;;  %13791 = vst [vmem:[#allocation107_spill] sm:$0xff] %v10946_v16  ;;  %v1537_v34 = vshll.u32 %v10946_v16, 16 }
 0x1d8   :  { %v2594_v30 = vadd.f32 %v2593_v14, %v10814_v49  ;;  %v1535_v29 = vor.u32 %v1533_v55, %v1515_v45  ;;  %v9345_v45 = vld [vmem:[%s13479_s0 + $0x2f0] sm:$0xf0]  ;;  %v8234_v55 = vld [vmem:[%s13479_s0 + $0x2f4] sm:$0xf0] }
 0x1de   :  { %v3073_v58 = vpop.f32.mrf.mxu3  ;;  %v2182_v42 = vpop.f32.mrf.mxu0 }
 0x1df   :  { %v2595_v21 = vpop.f32.mrf.mxu2  ;;  %v10923_v14 = vadd.f32 %v3073_v58, %v2591_v1  ;;  %v2395_v12 = vpop.f32.mrf.mxu1  ;;  %v9341_v58 = vld [vmem:[%s13479_s0 + $0x2d4] sm:$0xf]  ;;  %v8204_v1 = vld [vmem:[%s13479_s0 + $0x2a8] sm:$0xf] }
 0x1e0   :  { %v2596_v49 = vadd.f32 %v2595_v21, %v10841_v41  ;;  %v8222_v41 = vld [vmem:[%s13479_s0 + $0x2dc] sm:$0xf0]  ;;  %v10951_v54 = vor.u32 %v9337_v0, %v8204_v1  ;;  %v1501_v12 = vshrl.u32 %v10913_v10, 16  ;;  %v8232_v10 = vld [vmem:[%s13479_s0 + $0x2e8] sm:$0xf] }
 0x1e1   :  { %13790 = vst [vmem:[#allocation106_spill] sm:$0xff] %v10923_v14  ;;  %2221 = vmatmul.bf16.gmra.mxu0 %v1516_v28  ;;  %v10949_v43 = vor.u32 %v9341_v58, %v8222_v41 }
 0x1e2   :  { %2434 = vmatmul.bf16.gmra.mxu1 %v1524_v46  ;;  %13793 = vst [vmem:[#allocation109_spill] sm:$0xff] %v10951_v54  ;;  %v1541_v46 = vshrl.u32 %v10911_v3, 16  ;;  %v1505_v26 = vshll.u32 %v10951_v54, 16  ;;  %v1503_v1 = vor.u32 %v1501_v12, %v1483_v15 }
 0x1e3   :  { %3115 = vmatmul.bf16.gmra.mxu3 %v10744_v6  ;;  %13792 = vst [vmem:[#allocation108_spill] sm:$0xff] %v10949_v43  ;;  %v1545_v42 = vshll.u32 %v10949_v43, 16 }
 0x1e4   :  { %2637 = vmatmul.bf16.gmra.mxu2 %v1484_v57  ;;  %v1539_v57 = vrot.slane %v1537_v34, 1  ;;  %v1543_v58 = vor.u32 %v1541_v46, %v1523_v31  ;;  %v1507_v0 = vrot.slane %v1505_v26, 1  ;;  %v9380_v31 = vld [vmem:[%s13478_s2 + $0x48] sm:$0xff]  ;;  %v8216_v34 = vld [vmem:[%s13479_s0 + $0x2c0] sm:$0xf] }
 0x1e5   :  { %v1547_v41 = vrot.slane %v1545_v42, 1  ;;  %v9340_v46 = vld [vmem:[%s13479_s0 + $0x2c8] sm:$0xf0]  ;;  %3201 = vmatpush.bf16.msrb.mxu0 %v9380_v31  ;;  %v10989_v42 = vor.u32 %v9345_v45, %v8232_v10  ;;  %v1525_v45 = vshrl.u32 %v10951_v54, 16 }
 0x1e6   :  { %v3076_v11 = vpop.f32.mrf.mxu3  ;;  %v2184_v21 = vpop.f32.mrf.mxu0  ;;  %v1508_v15 = vsel %vm824_vm0, %v1503_v1, %v1507_v0  ;;  %v10994_v26 = vor.u32 %v9340_v46, %v8216_v34  ;;  %v1557_v1 = vshrl.u32 %v10946_v16, 16 }
 0x1e7   :  { %v2598_v32 = vpop.f32.mrf.mxu2  ;;  %v10955_v44 = vadd.f32 %v3076_v11, %v2594_v30  ;;  %v2397_v28 = vpop.f32.mrf.mxu1  ;;  %v1548_v3 = vsel %vm824_vm0, %v1543_v58, %v1547_v41  ;;  %13796 = vst [vmem:[#allocation112_spill] sm:$0xff] %v10989_v42  ;;  %v1527_v46 = vor.u32 %v1525_v45, %v1507_v0 }
 0x1e8   :  { %v1540_v28 = vsel %vm824_vm0, %v1535_v29, %v1539_v57  ;;  %13798 = vst [vmem:[#allocation114_spill] sm:$0xff] %v10994_v26  ;;  %v1529_v31 = vshll.u32 %v10994_v26, 16 }
 0x1e9   :  { %13794 = vst [vmem:[#allocation110_spill] sm:$0xff] %v10955_v44 }
 0x1ee   :  { %v3078_v6 = vpop.f32.mrf.mxu3  ;;  %v2187_v11 = vpop.f32.mrf.mxu0 }
 0x1ef   :  { %v2600_v32 = vpop.f32.mrf.mxu2  ;;  %v10961_v30 = vadd.f32 %v3078_v6, %v2596_v49  ;;  %v2400_v21 = vpop.f32.mrf.mxu1  ;;  %v9344_v49 = vld [vmem:[%s13479_s0 + $0x2ec] sm:$0xf] }
 0x1f0   :  { %v10974_v6 = vadd.f32 %v2400_v21, %v2187_v11  ;;  %v10992_v12 = vor.u32 %v9344_v49, %v8234_v55  ;;  %v1561_v32 = vshll.u32 %v10989_v42, 16 }
 0x1f1   :  { %13795 = vst [vmem:[#allocation111_spill] sm:$0xff] %v10961_v30  ;;  %2226 = vmatmul.bf16.gmra.mxu0 %v1540_v28  ;;  %v1565_v28 = vshrl.u32 %v10949_v43, 16 }
 0x1f2   :  { %2439 = vmatmul.bf16.gmra.mxu1 %v1548_v3  ;;  %13797 = vst [vmem:[#allocation113_spill] sm:$0xff] %v10992_v12  ;;  %v1569_v3 = vshll.u32 %v10992_v12, 16  ;;  %v1563_v49 = vrot.slane %v1561_v32, 1  ;;  %v8228_v32 = vld [vmem:[%s13479_s0 + $0x2d8] sm:$0xf] }
 0x1f3   :  { %3120 = vmatmul.bf16.gmra.mxu3 %v10788_v61  ;;  %v1567_v55 = vor.u32 %v1565_v28, %v1547_v41 }
 0x1f4   :  { %2642 = vmatmul.bf16.gmra.mxu2 %v1508_v15  ;;  %v1559_v15 = vor.u32 %v1557_v1, %v1539_v57  ;;  %v1571_v34 = vrot.slane %v1569_v3, 1  ;;  %v9348_v57 = vld [vmem:[%s13479_s0 + $0x308] sm:$0xf0]  ;;  %v8246_v1 = vld [vmem:[%s13479_s0 + $0x30c] sm:$0xf0] }
 0x1f6   :  { %v3081_v58 = vpop.f32.mrf.mxu3  ;;  %v2189_v11 = vpop.f32.mrf.mxu0  ;;  %v1564_v43 = vsel %vm824_vm0, %v1559_v15, %v1563_v49  ;;  %v1572_v14 = vsel %vm824_vm0, %v1567_v55, %v1571_v34 }
 0x1f7   :  { %v2603_v29 = vpop.f32.mrf.mxu2  ;;  %v2402_v21 = vpop.f32.mrf.mxu1 }
 0x1f8   :  { %v11000_v10 = vadd.f32 %v2402_v21, %v2189_v11  ;;  %v1531_v29 = vrot.slane %v1529_v31, 1  ;;  %v8244_v11 = vld [vmem:[%s13479_s0 + $0x300] sm:$0xf]  ;;  %v9343_v21 = vld [vmem:[%s13479_s0 + $0x2e0] sm:$0xf0]  ;;  %v1581_v31 = vshrl.u32 %v10989_v42, 16 }
 0x1f9   :  { %v11032_v28 = vor.u32 %v9343_v21, %v8228_v32 }
 0x1fa   :  { %v1532_v0 = vsel %vm824_vm0, %v1527_v46, %v1531_v29 }
 0x1fb   :  { %13801 = vst [vmem:[#allocation117_spill] sm:$0xff] %v11032_v28 }
 0x1fe   :  { %v3083_v61 = vpop.f32.mrf.mxu3  ;;  %v2192_v30 = vpop.f32.mrf.mxu0 }
 0x1ff   :  { %v2605_v58 = vpop.f32.mrf.mxu2  ;;  %v2405_v44 = vpop.f32.mrf.mxu1  ;;  %v9347_v61 = vld [vmem:[%s13479_s0 + $0x304] sm:$0xf] }
 0x200   :  { %v11012_v41 = vadd.f32 %v2405_v44, %v2192_v30  ;;  %v11027_v44 = vor.u32 %v9348_v57, %v8244_v11  ;;  %v11030_v30 = vor.u32 %v9347_v61, %v8246_v1  ;;  %v1549_v58 = vshrl.u32 %v10994_v26, 16 }
 0x201   :  { %2231 = vmatmul.bf16.gmra.mxu0 %v1564_v43  ;;  %v1589_v43 = vshrl.u32 %v10992_v12, 16  ;;  %v1553_v11 = vshll.u32 %v11032_v28, 16  ;;  %v1583_v57 = vor.u32 %v1581_v31, %v1563_v49  ;;  %v8256_v12 = vld [vmem:[%s13479_s0 + $0x318] sm:$0xf]  ;;  %v9351_v49 = vld [vmem:[%s13479_s0 + $0x320] sm:$0xf0] }
 0x202   :  { %2444 = vmatmul.bf16.gmra.mxu1 %v1572_v14  ;;  %13799 = vst [vmem:[#allocation115_spill] sm:$0xff] %v11027_v44  ;;  %v1585_v15 = vshll.u32 %v11027_v44, 16  ;;  %v1593_v14 = vshll.u32 %v11030_v30, 16  ;;  %v1551_v32 = vor.u32 %v1549_v58, %v1531_v29  ;;  %v9350_v29 = vld [vmem:[%s13479_s0 + $0x31c] sm:$0xf] }
 0x203   :  { %3125 = vmatmul.bf16.gmra.mxu3 %v10829_v7  ;;  %13800 = vst [vmem:[#allocation116_spill] sm:$0xff] %v11030_v30  ;;  %v1591_v61 = vor.u32 %v1589_v43, %v1571_v34  ;;  %v1555_v21 = vrot.slane %v1553_v11, 1  ;;  %v9346_v31 = vld [vmem:[%s13479_s0 + $0x2f8] sm:$0xf0] }
 0x204   :  { %2647 = vmatmul.bf16.gmra.mxu2 %v1532_v0  ;;  %v1587_v0 = vrot.slane %v1585_v15, 1  ;;  %v1595_v1 = vrot.slane %v1593_v14, 1  ;;  %v11061_v15 = vor.u32 %v9351_v49, %v8256_v12  ;;  %v1613_v12 = vshrl.u32 %v11030_v30, 16 }
 0x205   :  { %v1556_v34 = vsel %vm824_vm0, %v1551_v32, %v1555_v21  ;;  %v1573_v49 = vshrl.u32 %v11032_v28, 16 }
 0x206   :  { %v3086_v45 = vpop.f32.mrf.mxu3  ;;  %v2194_v55 = vpop.f32.mrf.mxu0  ;;  %13802 = vst [vmem:[#allocation118_spill] sm:$0xff] %v11061_v15 }
 0x207   :  { %v2608_v3 = vpop.f32.mrf.mxu2  ;;  %v2407_v46 = vpop.f32.mrf.mxu1  ;;  %v1588_v55 = vsel %vm824_vm0, %v1583_v57, %v1587_v0  ;;  %v1605_v57 = vshrl.u32 %v11027_v44, 16 }
 0x208   :  { %v1596_v46 = vsel %vm824_vm0, %v1591_v61, %v1595_v1  ;;  %v1609_v61 = vshll.u32 %v11061_v15, 16 }
 0x20e   :  { %v3088_v45 = vpop.f32.mrf.mxu3  ;;  %v2197_v7 = vpop.f32.mrf.mxu0 }
 0x20f   :  { %v2610_v3 = vpop.f32.mrf.mxu2  ;;  %v2410_v54 = vpop.f32.mrf.mxu1  ;;  %v8258_v7 = vld [vmem:[%s13479_s0 + $0x324] sm:$0xf0] }
 0x210   :  { %v8240_v54 = vld [vmem:[%s13479_s0 + $0x2f0] sm:$0xf]  ;;  %v11064_v43 = vor.u32 %v9350_v29, %v8258_v7  ;;  %v1607_v29 = vor.u32 %v1605_v57, %v1587_v0  ;;  %v1611_v7 = vrot.slane %v1609_v61, 1  ;;  %v9354_v0 = vld [vmem:[%s13479_s0 + $0x338] sm:$0xf0] }
 0x211   :  { %2236 = vmatmul.bf16.gmra.mxu0 %v1588_v55  ;;  %v11066_v14 = vor.u32 %v9346_v31, %v8240_v54  ;;  %v1615_v54 = vor.u32 %v1613_v12, %v1595_v1  ;;  %v8252_v57 = vld [vmem:[%s13479_s0 + $0x308] sm:$0xf]  ;;  %v9349_v61 = vld [vmem:[%s13479_s0 + $0x310] sm:$0xf0] }
 0x212   :  { %2449 = vmatmul.bf16.gmra.mxu1 %v1596_v46  ;;  %13803 = vst [vmem:[#allocation119_spill] sm:$0xff] %v11064_v43  ;;  %v1617_v55 = vshll.u32 %v11064_v43, 16  ;;  %v1612_v17 = vsel %vm824_vm0, %v1607_v29, %v1611_v7  ;;  %v11106_v12 = vor.u32 %v9349_v61, %v8252_v57 }
 0x213   :  { %3130 = vmatmul.bf16.gmra.mxu3 %v10869_v24  ;;  %13804 = vst [vmem:[#allocation120_spill] sm:$0xff] %v11066_v14 }
 0x214   :  { %2652 = vmatmul.bf16.gmra.mxu2 %v1556_v34  ;;  %v1577_v34 = vshll.u32 %v11066_v14, 16  ;;  %v1619_v31 = vrot.slane %v1617_v55, 1  ;;  %13807 = vst [vmem:[#allocation123_spill] sm:$0xff] %v11106_v12 }
 0x216   :  { %v3091_v11 = vpop.f32.mrf.mxu3  ;;  %v2199_v3 = vpop.f32.mrf.mxu0  ;;  %v1579_v24 = vrot.slane %v1577_v34, 1  ;;  %v1629_v34 = vshrl.u32 %v11061_v15, 16 }
 0x217   :  { %v2613_v58 = vpop.f32.mrf.mxu2  ;;  %v2412_v45 = vpop.f32.mrf.mxu1  ;;  %v1575_v11 = vor.u32 %v1573_v49, %v1555_v21 }
 0x218   :  { %v2614_v32 = vadd.f32 %v2613_v58, %v10974_v6  ;;  %v11073_v46 = vadd.f32 %v2412_v45, %v2199_v3  ;;  %v1620_v3 = vsel %vm824_vm0, %v1615_v54, %v1619_v31  ;;  %v8268_v45 = vld [vmem:[%s13479_s0 + $0x330] sm:$0xf] }
 0x219   :  { %v1580_v21 = vsel %vm824_vm0, %v1575_v11, %v1579_v24 }
 0x21e   :  { %v3093_v6 = vpop.f32.mrf.mxu3  ;;  %v2202_v13 = vpop.f32.mrf.mxu0 }
 0x21f   :  { %v2615_v26 = vpop.f32.mrf.mxu2  ;;  %v2415_v30 = vpop.f32.mrf.mxu1 }
 0x220   :  { %v2616_v58 = vadd.f32 %v2615_v26, %v11000_v10  ;;  %v11086_v1 = vadd.f32 %v2415_v30, %v2202_v13  ;;  %v9353_v26 = vld [vmem:[%s13479_s0 + $0x334] sm:$0xf]  ;;  %v8270_v10 = vld [vmem:[%s13479_s0 + $0x33c] sm:$0xf0]  ;;  %v11101_v13 = vor.u32 %v9354_v0, %v8268_v45  ;;  %v1597_v0 = vshrl.u32 %v11066_v14, 16 }
 0x221   :  { %2241 = vmatmul.bf16.gmra.mxu0 %v1612_v17  ;;  %v11104_v30 = vor.u32 %v9353_v26, %v8270_v10  ;;  %v1631_v26 = vor.u32 %v1629_v34, %v1611_v7  ;;  %v8280_v14 = vld [vmem:[%s13479_s0 + $0x348] sm:$0xf]  ;;  %v9357_v7 = vld [vmem:[%s13479_s0 + $0x350] sm:$0xf0]  ;;  %v9352_v34 = vld [vmem:[%s13479_s0 + $0x328] sm:$0xf0] }
 0x222   :  { %2454 = vmatmul.bf16.gmra.mxu1 %v1620_v3  ;;  %13805 = vst [vmem:[#allocation121_spill] sm:$0xff] %v11101_v13  ;;  %v1633_v29 = vshll.u32 %v11101_v13, 16  ;;  %v1637_v3 = vshrl.u32 %v11064_v43, 16 }
 0x223   :  { %3135 = vmatmul.bf16.gmra.mxu3 %v10908_v47  ;;  %13806 = vst [vmem:[#allocation122_spill] sm:$0xff] %v11104_v30  ;;  %v1641_v45 = vshll.u32 %v11104_v30, 16  ;;  %v1599_v47 = vor.u32 %v1597_v0, %v1579_v24  ;;  %v1653_v0 = vshrl.u32 %v11101_v13, 16 }
 0x224   :  { %2657 = vmatmul.bf16.gmra.mxu2 %v1580_v21  ;;  %v1601_v21 = vshll.u32 %v11106_v12, 16  ;;  %v1635_v10 = vrot.slane %v1633_v29, 1  ;;  %v1639_v57 = vor.u32 %v1637_v3, %v1619_v31  ;;  %v9356_v31 = vld [vmem:[%s13479_s0 + $0x34c] sm:$0xf]  ;;  %v11144_v29 = vor.u32 %v9357_v7, %v8280_v14 }
 0x225   :  { %v1643_v61 = vrot.slane %v1641_v45, 1 }
 0x226   :  { %v3096_v49 = vpop.f32.mrf.mxu3  ;;  %v11113_v17 = vpop.f32.mrf.mxu0  ;;  %v1636_v43 = vsel %vm824_vm0, %v1631_v26, %v1635_v10  ;;  %13810 = vst [vmem:[#allocation126_spill] sm:$0xff] %v11144_v29  ;;  %v1655_v7 = vor.u32 %v1653_v0, %v1635_v10  ;;  %v8292_v10 = vld [vmem:[%s13479_s0 + $0x360] sm:$0xf] }
 0x227   :  { %v2618_v55 = vpop.f32.mrf.mxu2  ;;  %v11111_v11 = vadd.f32 %v3096_v49, %v2614_v32  ;;  %v11115_v6 = vpop.f32.mrf.mxu1  ;;  %v1644_v38 = vsel %vm824_vm0, %v1639_v57, %v1643_v61 }
 0x228   :  { %v2619_v54 = vadd.f32 %v2618_v55, %v11012_v41  ;;  %v1603_v41 = vrot.slane %v1601_v21, 1  ;;  %v1657_v21 = vshll.u32 %v11144_v29, 16 }
 0x229   :  { %13808 = vst [vmem:[#allocation124_spill] sm:$0xff] %v11111_v11 }
 0x22a   :  { %v1604_v24 = vsel %vm824_vm0, %v1599_v47, %v1603_v41 }
 0x22e   :  { %v3098_v55 = vpop.f32.mrf.mxu3  ;;  %v2207_v11 = vpop.f32.mrf.mxu0 }
 0x22f   :  { %v2620_v32 = vpop.f32.mrf.mxu2  ;;  %v11121_v49 = vadd.f32 %v3098_v55, %v2616_v58  ;;  %v2420_v28 = vpop.f32.mrf.mxu1  ;;  %v8264_v58 = vld [vmem:[%s13479_s0 + $0x320] sm:$0xf] }
 0x230   :  { %v8282_v28 = vld [vmem:[%s13479_s0 + $0x354] sm:$0xf0]  ;;  %v11149_v11 = vor.u32 %v9352_v34, %v8264_v58  ;;  %v1621_v32 = vshrl.u32 %v11106_v12, 16 }
 0x231   :  { %13809 = vst [vmem:[#allocation125_spill] sm:$0xff] %v11121_v49  ;;  %2246 = vmatmul.bf16.gmra.mxu0 %v1636_v43  ;;  %v11147_v47 = vor.u32 %v9356_v31, %v8282_v28  ;;  %v1661_v43 = vshrl.u32 %v11104_v30, 16 }
 0x232   :  { %2459 = vmatmul.bf16.gmra.mxu1 %v1644_v38  ;;  %13812 = vst [vmem:[#allocation128_spill] sm:$0xff] %v11149_v11  ;;  %v1625_v55 = vshll.u32 %v11149_v11, 16  ;;  %v1623_v58 = vor.u32 %v1621_v32, %v1603_v41  ;;  %v8276_v41 = vld [vmem:[%s13479_s0 + $0x338] sm:$0xf]  ;;  %v1677_v32 = vshrl.u32 %v11144_v29, 16 }
 0x233   :  { %3140 = vmatmul.bf16.gmra.mxu3 %v10946_v16  ;;  %13811 = vst [vmem:[#allocation127_spill] sm:$0xff] %v11147_v47  ;;  %v1665_v14 = vshll.u32 %v11147_v47, 16  ;;  %v1663_v31 = vor.u32 %v1661_v43, %v1643_v61  ;;  %v9360_v61 = vld [vmem:[%s13479_s0 + $0x368] sm:$0xf0] }
 0x234   :  { %2662 = vmatmul.bf16.gmra.mxu2 %v1604_v24  ;;  %v1659_v24 = vrot.slane %v1657_v21, 1  ;;  %v1627_v34 = vrot.slane %v1625_v55, 1  ;;  %v11185_v0 = vor.u32 %v9360_v61, %v8292_v10  ;;  %v9394_v21 = vld [vmem:[%s13478_s2 + $0xb8] sm:$0xff] }
 0x235   :  { %v1667_v28 = vrot.slane %v1665_v14, 1  ;;  %3408 = vmatpush.bf16.msrb.mxu1 %v9394_v21 }
 0x236   :  { %v3101_v45 = vpop.f32.mrf.mxu3  ;;  %v11155_v57 = vpop.f32.mrf.mxu0  ;;  %v1660_v30 = vsel %vm824_vm0, %v1655_v7, %v1659_v24  ;;  %v1628_v12 = vsel %vm824_vm0, %v1623_v58, %v1627_v34  ;;  %13814 = vst [vmem:[#allocation130_spill] sm:$0xff] %v11185_v0  ;;  %v1681_v55 = vshll.u32 %v11185_v0, 16  ;;  %v1685_v7 = vshrl.u32 %v11147_v47, 16 }
 0x237   :  { %v2623_v3 = vpop.f32.mrf.mxu2  ;;  %v11153_v26 = vadd.f32 %v3101_v45, %v2619_v54  ;;  %v11157_v38 = vpop.f32.mrf.mxu1  ;;  %v1668_v49 = vsel %vm824_vm0, %v1663_v31, %v1667_v28  ;;  %v1645_v31 = vshrl.u32 %v11149_v11, 16 }
 0x238   :  { %v1687_v10 = vor.u32 %v1685_v7, %v1667_v28  ;;  %v8304_v28 = vld [vmem:[%s13479_s0 + $0x378] sm:$0xf] }
 0x239   :  { %13813 = vst [vmem:[#allocation129_spill] sm:$0xff] %v11153_v26  ;;  %v1647_v61 = vor.u32 %v1645_v31, %v1627_v34 }
 0x23a   :  { %v1692_v11 = vsel %vm824_vm0, %v1687_v10, %v9752_v52 }
 0x23e   :  { %v3103_v3 = vpop.f32.mrf.mxu3  ;;  %v2212_v16 = vpop.f32.mrf.mxu0 }
 0x23f   :  { %v2625_v54 = vpop.f32.mrf.mxu2  ;;  %v2425_v26 = vpop.f32.mrf.mxu1  ;;  %v1683_v3 = vrot.slane %v1681_v55, 1 }
 0x240   :  { %v2626_v45 = vadd.f32 %v2625_v54, %v11073_v46  ;;  %v11166_v53 = vadd.f32 %v2425_v26, %v2212_v16  ;;  %v9379_v46 = vld [vmem:[%s13478_s2 + $0x40] sm:$0xff]  ;;  %v1679_v54 = vor.u32 %v1677_v32, %v1659_v24 }
 0x241   :  { %v9355_v16 = vld [vmem:[%s13479_s0 + $0x340] sm:$0xf0]  ;;  %2251 = vmatmul.bf16.gmra.mxu0 %v1660_v30 }
 0x242   :  { %2464 = vmatmul.bf16.gmra.mxu1 %v1668_v49  ;;  %v11190_v26 = vor.u32 %v9355_v16, %v8276_v41  ;;  %3202 = vmatpush.bf16.msrb.mxu0 %v9379_v46  ;;  %v1684_v47 = vsel %vm824_vm0, %v1679_v54, %v1683_v3 }
 0x243   :  { %3145 = vmatmul.bf16.gmra.mxu3 %v10989_v42 }
 0x244   :  { %2667 = vmatmul.bf16.gmra.mxu2 %v1628_v12  ;;  %13815 = vst [vmem:[#allocation131_spill] sm:$0xff] %v11190_v26  ;;  %v1649_v58 = vshll.u32 %v11190_v26, 16 }
 0x246   :  { %v3106_v14 = vpop.f32.mrf.mxu3  ;;  %v11194_v49 = vpop.f32.mrf.mxu0  ;;  %v1651_v46 = vrot.slane %v1649_v58, 1  ;;  %v1701_v58 = vshrl.u32 %v11185_v0, 16 }
 0x247   :  { %v2628_v43 = vpop.f32.mrf.mxu2  ;;  %v11196_v12 = vpop.f32.mrf.mxu1 }
 0x248   :  { %v2629_v30 = vadd.f32 %v2628_v43, %v11086_v1  ;;  %v2418_v1 = vadd.f32 %v11115_v6, %v11113_v17  ;;  %v1652_v24 = vsel %vm824_vm0, %v1647_v61, %v1651_v46  ;;  %v9363_v17 = vld [vmem:[%s13479_s0 + $0x380] sm:$0xf0]  ;;  %v8288_v6 = vld [vmem:[%s13479_s0 + $0x350] sm:$0xf]  ;;  %v1703_v10 = vor.u32 %v1701_v58, %v1683_v3 }
 0x249   :  { %v11223_v52 = vor.u32 %v9363_v17, %v8304_v28  ;;  %v8316_v3 = vld [vmem:[%s13479_s0 + $0x390] sm:$0xf] }
 0x24b   :  { %13816 = vst [vmem:[#allocation132_spill] sm:$0xff] %v11223_v52  ;;  %v1705_v54 = vshll.u32 %v11223_v52, 16 }
 0x24d   :  { %v1707_v61 = vrot.slane %v1705_v54, 1 }
 0x24e   :  { %v3108_v16 = vpop.f32.mrf.mxu3  ;;  %v2217_v14 = vpop.f32.mrf.mxu0 }
 0x24f   :  { %v2630_v41 = vpop.f32.mrf.mxu2  ;;  %v11204_v43 = vadd.f32 %v3108_v16, %v2626_v45  ;;  %v2430_v42 = vpop.f32.mrf.mxu1  ;;  %v2423_v16 = vadd.f32 %v11157_v38, %v11155_v57  ;;  %v9366_v57 = vld [vmem:[%s13479_s0 + $0x398] sm:$0xf0]  ;;  %v8300_v38 = vld [vmem:[%s13479_s0 + $0x368] sm:$0xf] }
 0x250   :  { %v2631_v21 = vadd.f32 %v2630_v41, %v2418_v1  ;;  %v9358_v42 = vld [vmem:[%s13479_s0 + $0x358] sm:$0xf0] }
 0x251   :  { %2256 = vmatmul.bf16.gmra.mxu0 %v1684_v47  ;;  %v11225_v34 = vor.u32 %v9358_v42, %v8288_v6  ;;  %v1669_v47 = vshrl.u32 %v11190_v26, 16  ;;  %v1708_v42 = vsel %vm824_vm0, %v1703_v10, %v1707_v61  ;;  %v1725_v10 = vshrl.u32 %v11223_v52, 16 }
 0x252   :  { %2469 = vmatmul.bf16.gmra.mxu1 %v1692_v11 }
 0x253   :  { %3150 = vmatmul.bf16.gmra.mxu3 %v11027_v44  ;;  %13817 = vst [vmem:[#allocation133_spill] sm:$0xff] %v11225_v34  ;;  %v1673_v11 = vshll.u32 %v11225_v34, 16  ;;  %v1671_v1 = vor.u32 %v1669_v47, %v1651_v46  ;;  %v9361_v46 = vld [vmem:[%s13479_s0 + $0x370] sm:$0xf0] }
 0x254   :  { %2672 = vmatmul.bf16.gmra.mxu2 %v1652_v24 }
 0x255   :  { %v1675_v41 = vrot.slane %v1673_v11, 1 }
 0x256   :  { %v3111_v32 = vpop.f32.mrf.mxu3  ;;  %v2219_v7 = vpop.f32.mrf.mxu0 }
 0x257   :  { %v2633_v45 = vpop.f32.mrf.mxu2  ;;  %v11227_v55 = vadd.f32 %v3111_v32, %v2629_v30  ;;  %v2432_v31 = vpop.f32.mrf.mxu1  ;;  %v1676_v32 = vsel %vm824_vm0, %v1671_v1, %v1675_v41  ;;  %v11256_v7 = vor.u32 %v9361_v46, %v8300_v38 }
 0x259   :  { %13819 = vst [vmem:[#allocation135_spill] sm:$0xff] %v11256_v7 }
 0x25e   :  { %v3113_v30 = vpop.f32.mrf.mxu3  ;;  %v2222_v17 = vpop.f32.mrf.mxu0 }
 0x25f   :  { %v2635_v14 = vpop.f32.mrf.mxu2  ;;  %v11235_v28 = vadd.f32 %v3113_v30, %v2631_v21  ;;  %v2435_v6 = vpop.f32.mrf.mxu1  ;;  %v11254_v21 = vor.u32 %v9366_v57, %v8316_v3  ;;  %v1727_v30 = vor.u32 %v1725_v10, %v1707_v61  ;;  %v8328_v57 = vld [vmem:[%s13479_s0 + $0x3a8] sm:$0xf]  ;;  %v9369_v61 = vld [vmem:[%s13479_s0 + $0x3b0] sm:$0xf0]  ;;  %v8312_v10 = vld [vmem:[%s13479_s0 + $0x380] sm:$0xf] }
 0x260   :  { %v2636_v24 = vadd.f32 %v2635_v14, %v2423_v16  ;;  %v11238_v45 = vadd.f32 %v2435_v6, %v2222_v17  ;;  %v1693_v16 = vshrl.u32 %v11225_v34, 16  ;;  %v1697_v14 = vshll.u32 %v11256_v7, 16 }
 0x261   :  { %2261 = vmatmul.bf16.gmra.mxu0 %v1708_v42  ;;  %13818 = vst [vmem:[#allocation134_spill] sm:$0xff] %v11254_v21  ;;  %v1729_v1 = vshll.u32 %v11254_v21, 16 }
 0x262   :  { %v1695_v6 = vor.u32 %v1693_v16, %v1675_v41  ;;  %v1699_v42 = vrot.slane %v1697_v14, 1  ;;  %v11293_v16 = vor.u32 %v9369_v61, %v8328_v57  ;;  %v9393_v57 = vld [vmem:[%s13478_s2 + $0xb0] sm:$0xff] }
 0x263   :  { %3155 = vmatmul.bf16.gmra.mxu3 %v11061_v15  ;;  %v1731_v17 = vrot.slane %v1729_v1, 1  ;;  %v9364_v1 = vld [vmem:[%s13479_s0 + $0x388] sm:$0xf0]  ;;  %3409 = vmatpush.bf16.msrb.mxu1 %v9393_v57  ;;  %v8324_v57 = vld [vmem:[%s13479_s0 + $0x398] sm:$0xf] }
 0x264   :  { %2677 = vmatmul.bf16.gmra.mxu2 %v1676_v32  ;;  %v2428_v32 = vadd.f32 %v11196_v12, %v11194_v49  ;;  %v9426_v49 = vld [vmem:[%s13478_s2 + $0x1b8] sm:$0xff]  ;;  %13820 = vst [vmem:[#allocation136_spill] sm:$0xff] %v11293_v16  ;;  %v11296_v14 = vor.u32 %v9364_v1, %v8312_v10 }
 0x265   :  { %v1732_v15 = vsel %vm824_vm0, %v1727_v30, %v1731_v17  ;;  %v9434_v12 = vld [vmem:[%s13478_s2 + $0x1f8] sm:$0xff]  ;;  %4191 = vmatpush.bf16.msra.mxu2 %v9426_v49  ;;  %v1717_v49 = vshrl.u32 %v11256_v7, 16 }
 0x266   :  { %v3116_v58 = vpop.f32.mrf.mxu3  ;;  %v11259_v47 = vpop.f32.mrf.mxu0  ;;  %4404 = vmatpush.bf16.msra.mxu3 %v9434_v12  ;;  %13821 = vst [vmem:[#allocation137_spill] sm:$0xff] %v11296_v14 }
 0x267   :  { %v2638_v31 = vpop.f32.mrf.mxu2  ;;  %v11261_v11 = vpop.f32.mrf.mxu1 }
 0x268   :  { %v2639_v54 = vadd.f32 %v2638_v31, %v11166_v53 }
 0x26e   :  { %v3118_v3 = vpop.f32.mrf.mxu3  ;;  %v2227_v31 = vpop.f32.mrf.mxu0 }
 0x26f   :  { %v2640_v53 = vpop.f32.mrf.mxu2  ;;  %v11272_v46 = vadd.f32 %v3118_v3, %v2636_v24  ;;  %v2440_v58 = vpop.f32.mrf.mxu1  ;;  %v1700_v24 = vsel %vm824_vm0, %v1695_v6, %v1699_v42 }
 0x270   :  { %v2641_v38 = vadd.f32 %v2640_v53, %v2428_v32  ;;  %v11284_v41 = vadd.f32 %v2440_v58, %v2227_v31  ;;  %v1749_v32 = vshrl.u32 %v11254_v21, 16  ;;  %v1753_v53 = vshll.u32 %v11293_v16, 16 }
 0x271   :  { %2266 = vmatmul.bf16.gmra.mxu0 %v1732_v15  ;;  %v1721_v15 = vshll.u32 %v11296_v14, 16 }
 0x272   :  { %v1751_v61 = vor.u32 %v1749_v32, %v1731_v17  ;;  %v1755_v12 = vrot.slane %v1753_v53, 1  ;;  %v9584_v17 = vld [vmem:[%s13479_s0 + $0x3c0] sm:$0xff] }
 0x273   :  { %3160 = vmatmul.bf16.gmra.mxu3 %v11101_v13  ;;  %v1723_v10 = vrot.slane %v1721_v15, 1  ;;  %v11316_v32 = vunpack.c.l.b16 %v9584_v17 }
 0x274   :  { %2682 = vmatmul.bf16.gmra.mxu2 %v1700_v24  ;;  %v1719_v24 = vor.u32 %v1717_v49, %v1699_v42  ;;  %v9585_v42 = vld [vmem:[%s13479_s0 + $0x3cc] sm:$0x11] }
 0x275   :  { %v698_v53 = vunpack.c.l.b16 %v9585_v42  ;;  %v1773_v42 = vshrl.u32 %v11293_v16, 16 }
 0x276   :  { %v3121_v6 = vpop.f32.mrf.mxu3  ;;  %v2229_v31 = vpop.f32.mrf.mxu0  ;;  %v1724_v15 = vsel %vm824_vm0, %v1719_v24, %v1723_v10 }
 0x277   :  { %v2643_v30 = vpop.f32.mrf.mxu2  ;;  %v11300_v3 = vadd.f32 %v3121_v6, %v2639_v54  ;;  %v2442_v58 = vpop.f32.mrf.mxu1  ;;  %v9392_v54 = vld [vmem:[%s13478_s2 + $0xa8] sm:$0xff]  ;;  %v1756_v6 = vsel %vm824_vm0, %v1751_v61, %v1755_v12  ;;  %v9367_v61 = vld [vmem:[%s13479_s0 + $0x3a0] sm:$0xf0] }
 0x278   :  { %3410 = vmatpush.bf16.msrb.mxu1 %v9392_v54  ;;  %v11337_v24 = vor.u32 %v9367_v61, %v8324_v57  ;;  %v9390_v54 = vld [vmem:[%s13478_s2 + $0x98] sm:$0xff]  ;;  %v9389_v57 = vld [vmem:[%s13478_s2 + $0x90] sm:$0xff]  ;;  %v1775_v61 = vor.u32 %v1773_v42, %v1755_v12 }
 0x279   :  { %v8336_v42 = vld [vmem:[%s13479_s0 + $0x3b0] sm:$0xf] }
 0x27e   :  { %v3123_v30 = vpop.f32.mrf.mxu3  ;;  %v2232_v58 = vpop.f32.mrf.mxu0 }
 0x27f   :  { %v2645_v1 = vpop.f32.mrf.mxu2  ;;  %v11311_v31 = vadd.f32 %v3123_v30, %v2641_v38  ;;  %v2445_v13 = vpop.f32.mrf.mxu1  ;;  %v9391_v38 = vld [vmem:[%s13478_s2 + $0xa0] sm:$0xff] }
 0x280   :  { %v11321_v49 = vadd.f32 %v2445_v13, %v2232_v58  ;;  %3411 = vmatpush.bf16.msrb.mxu1 %v9391_v38  ;;  %v11335_v13 = vpack.c.b16 %v698_v53, %v11316_v32  ;;  %v1745_v38 = vshll.u32 %v11337_v24, 16 }
 0x281   :  { %13822 = vst [vmem:[#allocation138_spill] sm:$0xff] %v11311_v31  ;;  %2271 = vmatmul.bf16.gmra.mxu0 %v1756_v6 }
 0x282   :  { %13823 = vst [vmem:[#allocation139_spill] sm:$0xff] %v11335_v13  ;;  %v1777_v53 = vshll.u32 %v11335_v13, 16 }
 0x283   :  { %3165 = vmatmul.bf16.gmra.mxu3 %v11144_v29  ;;  %v2438_v29 = vadd.f32 %v11261_v11, %v11259_v47  ;;  %v9370_v47 = vld [vmem:[%s13479_s0 + $0x3b8] sm:$0xf0] }
 0x284   :  { %2687 = vmatmul.bf16.gmra.mxu2 %v1724_v15  ;;  %3412 = vmatpush.bf16.msrb.mxu1 %v9390_v54  ;;  %v1741_v15 = vshrl.u32 %v11296_v14, 16  ;;  %v1779_v54 = vrot.slane %v1777_v53, 1 }
 0x286   :  { %v3126_v30 = vpop.f32.mrf.mxu3  ;;  %v11343_v17 = vpop.f32.mrf.mxu0  ;;  %v1780_v7 = vsel %vm824_vm0, %v1775_v61, %v1779_v54  ;;  %v1797_v61 = vshrl.u32 %v11335_v13, 16 }
 0x287   :  { %v2648_v1 = vpop.f32.mrf.mxu2  ;;  %13824 = vst [vmem:[#allocation140_spill] sm:$0xff] %v11343_v17  ;;  %v11345_v6 = vpop.f32.mrf.mxu1  ;;  %v9388_v30 = vld [vmem:[%s13478_s2 + $0x88] sm:$0xff] }
 0x288   :  { %v2649_v58 = vadd.f32 %v2648_v1, %v11238_v45  ;;  %13825 = vst [vmem:[#allocation141_spill] sm:$0xff] %v11345_v6  ;;  %3413 = vmatpush.bf16.msrb.mxu1 %v9389_v57  ;;  %v1743_v45 = vor.u32 %v1741_v15, %v1723_v10  ;;  %v1747_v1 = vrot.slane %v1745_v38, 1  ;;  %v9387_v10 = vld [vmem:[%s13478_s2 + $0x80] sm:$0xff]  ;;  %v1765_v15 = vshrl.u32 %v11337_v24, 16 }
 0x28a   :  { %v1748_v12 = vsel %vm824_vm0, %v1743_v45, %v1747_v1  ;;  %v1767_v45 = vor.u32 %v1765_v15, %v1747_v1 }
 0x28c   :  { %3414 = vmatpush.bf16.msrb.mxu1 %v9388_v30 }
 0x28e   :  { %v3128_v6 = vpop.f32.mrf.mxu3  ;;  %v2237_v14 = vpop.f32.mrf.mxu0 }
 0x28f   :  { %v2650_v44 = vpop.f32.mrf.mxu2  ;;  %v2450_v31 = vpop.f32.mrf.mxu1 }
 0x290   :  { %v2651_v17 = vadd.f32 %v2650_v44, %v2438_v29  ;;  %v2451_v57 = vadd.f32 %v2450_v31, %v2237_v14  ;;  %3415 = vmatpush.bf16.msrb.mxu1 %v9387_v10  ;;  %v9442_v44 = vld [vmem:[%s13478_s2 + $0x238] sm:$0xff]  ;;  %v11374_v29 = vor.u32 %v9370_v47, %v8336_v42  ;;  %v1799_v10 = vor.u32 %v1797_v61, %v1779_v54 }
 0x291   :  { %2276 = vmatmul.bf16.gmra.mxu0 %v1780_v7 }
 0x292   :  { %13826 = vst [vmem:[#allocation142_spill] sm:$0xff] %v11374_v29  ;;  %4617 = vmatpush.bf16.msra.mxu0 %v9442_v44  ;;  %v1769_v38 = vshll.u32 %v11374_v29, 16 }
 0x293   :  { %3170 = vmatmul.bf16.gmra.mxu3 %v11185_v0  ;;  %3416 = vmatmul.bf16.vlgmr.msrb.gmra.mxu1 %v9862_v2  ;;  %v191_v2 = vld [vmem:[%s13479_s0 + $0x3c8] sm:$0xf] }
 0x294   :  { %2692 = vmatmul.bf16.gmra.mxu2 %v1748_v12  ;;  %v1771_v30 = vrot.slane %v1769_v38, 1 }
 0x296   :  { %v3131_v14 = vpop.f32.mrf.mxu3  ;;  %v2239_v7 = vpop.f32.mrf.mxu0 }
 0x297   :  { %v2653_v11 = vpop.f32.mrf.mxu2  ;;  %v11378_v6 = vadd.f32 %v3131_v14, %v2649_v58  ;;  %v2452_v53 = vpop.f32.mrf.mxu1  ;;  %v11392_v14 = vunpack.c.l.b16 %v191_v2 }
 0x298   :  { %v2654_v31 = vadd.f32 %v2653_v11, %v11284_v41  ;;  %v241_v41 = vld [vmem:[%s13479_s0 + $0x3d4] sm:$0x1]  ;;  %v1772_v11 = vsel %vm824_vm0, %v1767_v45, %v1771_v30  ;;  %v1789_v45 = vshrl.u32 %v11374_v29, 16 }
 0x299   :  { %v700_v1 = vunpack.c.l.b16 %v241_v41 }
 0x29a   :  { %v1791_v41 = vor.u32 %v1789_v45, %v1771_v30 }
 0x29b   :  { %v11396_v7 = vpack.c.b16 %v700_v1, %v11392_v14 }
 0x29d   :  { %13827 = vst [vmem:[#allocation143_spill] sm:$0xff] %v11396_v7  ;;  %v1793_v2 = vshll.u32 %v11396_v7, 16 }
 0x29e   :  { %v3133_v12 = vpop.f32.mrf.mxu3  ;;  %v2242_v47 = vpop.f32.mrf.mxu0 }
 0x29f   :  { %v2655_v58 = vpop.f32.mrf.mxu2  ;;  %v11389_v42 = vadd.f32 %v3133_v12, %v2651_v17  ;;  %v2455_v44 = vpop.f32.mrf.mxu1 }
 0x2a0   :  { %v1795_v58 = vrot.slane %v1793_v2, 1  ;;  %v1803_v2 = vshrl.u32 %v11396_v7, 16 }
 0x2a1   :  { %2281 = vmatmul.bf16.gmra.mxu0 %v1799_v10 }
 0x2a3   :  { %3175 = vmatmul.bf16.gmra.mxu3 %v11223_v52  ;;  %3421 = vmatmul.bf16.gmra.mxu1 %v9880_v9 }
 0x2a4   :  { %2697 = vmatmul.bf16.gmra.mxu2 %v1772_v11 }
 0x2a6   :  { %v3136_v54 = vpop.f32.mrf.mxu3  ;;  %v11402_v38 = vpop.f32.mrf.mxu0 }
 0x2a7   :  { %v2658_v53 = vpop.f32.mrf.mxu2  ;;  %v11400_v15 = vadd.f32 %v3136_v54, %v2654_v31  ;;  %v11404_v61 = vpop.f32.mrf.mxu1 }
 0x2a8   :  { %v2659_v17 = vadd.f32 %v2658_v53, %v11321_v49  ;;  %v1796_v49 = vsel %vm824_vm0, %v1791_v41, %v1795_v58 }
 0x2ae   :  { %v3138_v10 = vpop.f32.mrf.mxu3  ;;  %v2247_v47 = vpop.f32.mrf.mxu0 }
 0x2af   :  { %v11408_v12 = vpop.f32.mrf.mxu2  ;;  %v2460_v44 = vpop.f32.mrf.mxu1 }
 0x2b0   :  { %v2461_v11 = vadd.f32 %v2460_v44, %v2247_v47  ;;  %v1805_v44 = vor.u32 %v1803_v2, %v1795_v58 }
 0x2b1   :  { %3203 = vmatmul.bf16.vlgmr.msrb.gmra.mxu0 %v9704_v25 }
 0x2b3   :  { %3180 = vmatmul.bf16.gmra.mxu3 %v11254_v21  ;;  %3426 = vmatmul.bf16.gmra.mxu1 %v9930_v60 }
 0x2b4   :  { %2702 = vmatmul.bf16.gmra.mxu2 %v1796_v49  ;;  %v9425_v49 = vld [vmem:[%s13478_s2 + $0x1b0] sm:$0xff] }
 0x2b5   :  { %4192 = vmatpush.bf16.msra.mxu2 %v9425_v49 }
 0x2b6   :  { %v3141_v1 = vpop.f32.mrf.mxu3  ;;  %v11416_v54 = vpop.f32.mrf.mxu0 }
 0x2b7   :  { %v2663_v31 = vpop.f32.mrf.mxu2  ;;  %v11414_v30 = vadd.f32 %v3141_v1, %v2659_v17  ;;  %v11418_v45 = vpop.f32.mrf.mxu1 }
 0x2b8   :  { %v2664_v53 = vadd.f32 %v2663_v31, %v2451_v57  ;;  %v9433_v57 = vld [vmem:[%s13478_s2 + $0x1f0] sm:$0xff] }
 0x2b9   :  { %4405 = vmatpush.bf16.msra.mxu3 %v9433_v57 }
 0x2be   :  { %v11421_v41 = vpop.f32.mrf.mxu3  ;;  %v2252_v25 = vpop.f32.mrf.mxu0 }
 0x2bf   :  { %v2665_v10 = vpop.f32.mrf.mxu2  ;;  %v2465_v47 = vpop.f32.mrf.mxu1 }
 0x2c1   :  { %3208 = vmatmul.bf16.gmra.mxu0 %v9724_v33 }
 0x2c3   :  { %3185 = vmatmul.bf16.gmra.mxu3 %v11293_v16  ;;  %3431 = vmatmul.bf16.gmra.mxu1 %v9967_v37 }
 0x2c4   :  { %2707 = vmatmul.bf16.gmra.mxu2 %v1805_v44  ;;  %v2712_v44 = vpack.c.b16 %v11316_v32, %v11316_v32  ;;  %v9441_v32 = vld [vmem:[%s13478_s2 + $0x230] sm:$0xff] }
 0x2c5   :  { %4618 = vmatpush.bf16.msra.mxu0 %v9441_v32 }
 0x2c6   :  { %v3146_v31 = vpop.f32.mrf.mxu3  ;;  %v11434_v1 = vpop.f32.mrf.mxu0 }
 0x2c7   :  { %v2668_v17 = vpop.f32.mrf.mxu2  ;;  %v11432_v58 = vadd.f32 %v3146_v31, %v2664_v53  ;;  %13828 = vst [vmem:[#allocation144_spill] sm:$0xff] %v11434_v1  ;;  %v11436_v2 = vpop.f32.mrf.mxu1 }
 0x2c8   :  { %13829 = vst [vmem:[#allocation145_spill] sm:$0xff] %v11436_v2 }
 0x2ce   :  { %v3148_v25 = vpop.f32.mrf.mxu3  ;;  %v2257_v47 = vpop.f32.mrf.mxu0 }
 0x2cf   :  { %v11438_v10 = vpop.f32.mrf.mxu2  ;;  %v2470_v7 = vpop.f32.mrf.mxu1 }
 0x2d0   :  { %v2471_v49 = vadd.f32 %v2470_v7, %v2257_v47 }
 0x2d1   :  { %3213 = vmatmul.bf16.gmra.mxu0 %v9804_v23 }
 0x2d3   :  { %3190 = vmatmul.bf16.gmra.mxu3 %v2712_v44  ;;  %3436 = vmatmul.bf16.gmra.mxu1 %v10001_v5 }
 0x2d6   :  { %v3151_v57 = vpop.f32.mrf.mxu3  ;;  %v11444_v31 = vpop.f32.mrf.mxu0 }
 0x2d7   :  { %v2673_v53 = vpop.f32.mrf.mxu2  ;;  %13830 = vst [vmem:[#allocation146_spill] sm:$0xff] %v11444_v31 }
 0x2d8   :  { %v2674_v17 = vadd.f32 %v2673_v53, %v2461_v11 }
 0x2de   :  { %v11448_v16 = vpop.f32.mrf.mxu3  ;;  %v2262_v25 = vpop.f32.mrf.mxu0 }
 0x2df   :  { %v11446_v13 = vpop.f32.mrf.mxu2 }
 0x2e1   :  { %3218 = vmatmul.bf16.gmra.mxu0 %v9878_v8 }
 0x2e3   :  { %3441 = vmatmul.bf16.gmra.mxu1 %v10035_v50 }
 0x2e6   :  { %v3156_v47 = vpop.f32.mrf.mxu3  ;;  %v2264_v11 = vpop.f32.mrf.mxu0 }
 0x2e7   :  { %v2678_v7 = vpop.f32.mrf.mxu2  ;;  %v11455_v44 = vadd.f32 %v3156_v47, %v2674_v17 }
 0x2ee   :  { %v11459_v57 = vpop.f32.mrf.mxu3  ;;  %v2267_v21 = vpop.f32.mrf.mxu0 }
 0x2ef   :  { %v11457_v53 = vpop.f32.mrf.mxu2 }
 0x2f0   :  { %13831 = vst [vmem:[#allocation147_spill] sm:$0xff] %v11457_v53 }
 0x2f1   :  { %3223 = vmatmul.bf16.gmra.mxu0 %v9928_v59 }
 0x2f3   :  { %3446 = vmatmul.bf16.gmra.mxu1 %v10069_v39  ;;  %v11473_v39 = vpop.f32.mrf.mxu1 }
 0x2f4   :  { %13836 = vst [vmem:[#allocation152_spill] sm:$0xff] %v11473_v39 }
 0x2f6   :  { %v3161_v52 = vpop.f32.mrf.mxu3  ;;  %v11463_v32 = vpop.f32.mrf.mxu0 }
 0x2f7   :  { %v2683_v25 = vpop.f32.mrf.mxu2  ;;  %13832 = vst [vmem:[#allocation148_spill] sm:$0xff] %v11463_v32 }
 0x2f8   :  { %v2684_v0 = vadd.f32 %v2683_v25, %v2471_v49 }
 0x2fe   :  { %v11467_v7 = vpop.f32.mrf.mxu3  ;;  %v2272_v17 = vpop.f32.mrf.mxu0 }
 0x2ff   :  { %v11465_v50 = vpop.f32.mrf.mxu2  ;;  %13834 = vst [vmem:[#allocation150_spill] sm:$0xff] %v11467_v7  ;;  %v2486_v37 = vadd.f32 %v10139_v27, %v2272_v17 }
 0x300   :  { %13833 = vst [vmem:[#allocation149_spill] sm:$0xff] %v11465_v50  ;;  %v9424_v50 = vld [vmem:[%s13478_s2 + $0x1a8] sm:$0xff] }
 0x301   :  { %3228 = vmatmul.bf16.gmra.mxu0 %v9962_v35  ;;  %4193 = vmatpush.bf16.msra.mxu2 %v9424_v50 }
 0x303   :  { %3451 = vmatmul.bf16.gmra.mxu1 %v10103_v19 }
 0x306   :  { %v3166_v11 = vpop.f32.mrf.mxu3  ;;  %v2274_v31 = vpop.f32.mrf.mxu0 }
 0x307   :  { %v2688_v47 = vpop.f32.mrf.mxu2  ;;  %v11471_v5 = vadd.f32 %v3166_v11, %v2684_v0  ;;  %v2481_v0 = vadd.f32 %v10180_v63, %v2267_v21 }
 0x308   :  { %v9432_v47 = vld [vmem:[%s13478_s2 + $0x1e8] sm:$0xff] }
 0x309   :  { %13835 = vst [vmem:[#allocation151_spill] sm:$0xff] %v11471_v5  ;;  %4406 = vmatpush.bf16.msra.mxu3 %v9432_v47 }
 0x30e   :  { %v11475_v49 = vpop.f32.mrf.mxu3  ;;  %v2277_v25 = vpop.f32.mrf.mxu0 }
 0x30f   :  { %v2690_v52 = vpop.f32.mrf.mxu2  ;;  %13837 = vst [vmem:[#allocation153_spill] sm:$0xff] %v11475_v49 }
 0x310   :  { %v3417_v32 = vpop.f32.mrf.mxu1 }
 0x311   :  { %3233 = vmatmul.bf16.gmra.mxu0 %v9999_v4 }
 0x313   :  { %3456 = vmatmul.bf16.gmra.mxu1 %v10137_v20 }
 0x316   :  { %v3171_v11 = vpop.f32.mrf.mxu3  ;;  %v2279_v25 = vpop.f32.mrf.mxu0 }
 0x317   :  { %v2693_v31 = vpop.f32.mrf.mxu2 }
 0x318   :  { %v2694_v52 = vadd.f32 %v2693_v31, %v2481_v0  ;;  %v3419_v19 = vpop.f32.mrf.mxu1 }
 0x31e   :  { %v3173_v49 = vpop.f32.mrf.mxu3  ;;  %v2282_v39 = vpop.f32.mrf.mxu0 }
 0x31f   :  { %v11486_v32 = vpop.f32.mrf.mxu2 }
 0x320   :  { %13838 = vst [vmem:[#allocation154_spill] sm:$0xff] %v11486_v32  ;;  %v3422_v5 = vpop.f32.mrf.mxu1 }
 0x321   :  { %3238 = vmatmul.bf16.gmra.mxu0 %v10033_v48 }
 0x323   :  { %3461 = vmatmul.bf16.gmra.mxu1 %v10178_v62 }
 0x326   :  { %v3176_v63 = vpop.f32.mrf.mxu3  ;;  %v2284_v11 = vpop.f32.mrf.mxu0 }
 0x327   :  { %v2698_v50 = vpop.f32.mrf.mxu2  ;;  %v11491_v47 = vadd.f32 %v3176_v63, %v2694_v52 }
 0x328   :  { %v2699_v21 = vadd.f32 %v2698_v50, %v2486_v37  ;;  %v3424_v0 = vpop.f32.mrf.mxu1  ;;  %v9440_v37 = vld [vmem:[%s13478_s2 + $0x228] sm:$0xff] }
 0x329   :  { %13839 = vst [vmem:[#allocation155_spill] sm:$0xff] %v11491_v47  ;;  %4619 = vmatpush.bf16.msra.mxu0 %v9440_v37  ;;  %v13884_v47 = vld [vmem:[#allocation66_spill] sm:$0xff] }
 0x32e   :  { %v11493_v19 = vpop.f32.mrf.mxu3  ;;  %v3204_v25 = vpop.f32.mrf.mxu0 }
 0x32f   :  { %v2700_v31 = vpop.f32.mrf.mxu2  ;;  %13840 = vst [vmem:[#allocation156_spill] sm:$0xff] %v11493_v19  ;;  %v13851_v19 = vld [vmem:[#allocation49_spill] sm:$0xff] }
 0x330   :  { %v3427_v39 = vpop.f32.mrf.mxu1 }
 0x331   :  { %3243 = vmatmul.bf16.gmra.mxu0 %v10067_v36 }
 0x333   :  { %3466 = vmatmul.bf16.gmra.mxu1 %v10220_v56 }
 0x336   :  { %v3181_v27 = vpop.f32.mrf.mxu3  ;;  %v3206_v62 = vpop.f32.mrf.mxu0 }
 0x337   :  { %v2703_v49 = vpop.f32.mrf.mxu2  ;;  %v11497_v17 = vadd.f32 %v3181_v27, %v2699_v21  ;;  %v9423_v62 = vld [vmem:[%s13478_s2 + $0x1a0] sm:$0xff] }
 0x338   :  { %v3429_v52 = vpop.f32.mrf.mxu1  ;;  %4194 = vmatpush.bf16.msra.mxu2 %v9423_v62 }
 0x339   :  { %13841 = vst [vmem:[#allocation157_spill] sm:$0xff] %v11497_v17  ;;  %v9422_v52 = vld [vmem:[%s13478_s2 + $0x198] sm:$0xff] }
 0x33c   :  { %4195 = vmatpush.bf16.msra.mxu2 %v9422_v52  ;;  %v13846_v52 = vld [vmem:[#allocation27_spill] sm:$0xff] }
 0x33e   :  { %v3183_v63 = vpop.f32.mrf.mxu3  ;;  %v3209_v11 = vpop.f32.mrf.mxu0 }
 0x33f   :  { %v2705_v50 = vpop.f32.mrf.mxu2  ;;  %v3210_v31 = vadd.f32 %v3209_v11, %v10301_v40  ;;  %v9421_v63 = vld [vmem:[%s13478_s2 + $0x190] sm:$0xff] }
 0x340   :  { %v3432_v49 = vpop.f32.mrf.mxu1  ;;  %4196 = vmatpush.bf16.msra.mxu2 %v9421_v63  ;;  %v9419_v63 = vld [vmem:[%s13478_s2 + $0x180] sm:$0xff] }
 0x341   :  { %v11503_v25 = vadd.f32 %v3422_v5, %v3210_v31  ;;  %3248 = vmatmul.bf16.gmra.mxu0 %v10101_v18 }
 0x343   :  { %13842 = vst [vmem:[#allocation158_spill] sm:$0xff] %v11503_v25  ;;  %3471 = vmatmul.bf16.gmra.mxu1 %v10256_v51  ;;  %v13849_v25 = vld [vmem:[#allocation41_spill] sm:$0xff] }
 0x346   :  { %v3186_v27 = vpop.f32.mrf.mxu3  ;;  %v3211_v37 = vpop.f32.mrf.mxu0 }
 0x347   :  { %v2708_v21 = vpop.f32.mrf.mxu2  ;;  %v3212_v5 = vadd.f32 %v3211_v37, %v10307_v22  ;;  %v13844_v27 = vld [vmem:[#allocation45_spill] sm:$0xff]  ;;  %v3621_v22 = vld [vmem:[%s13479_s0] sm:$0xee] }
 0x348   :  { %v3434_v50 = vpop.f32.mrf.mxu1  ;;  %v9420_v21 = vld [vmem:[%s13478_s2 + $0x188] sm:$0xff] }
 0x349   :  { %v11514_v40 = vadd.f32 %v3424_v0, %v3212_v5  ;;  %4197 = vmatpush.bf16.msra.mxu2 %v9420_v21  ;;  %v3674_v0 = vunpack.c.l.b16 %v3621_v22 }
 0x34b   :  { %13843 = vst [vmem:[#allocation159_spill] sm:$0xff] %v11514_v40 }
 0x34d   :  { %4198 = vmatpush.bf16.msra.mxu2 %v9419_v63 }
 0x34e   :  { %v3188_v11 = vpop.f32.mrf.mxu3  ;;  %v3214_v62 = vpop.f32.mrf.mxu0 }
 0x34f   :  { %v2710_v31 = vpop.f32.mrf.mxu2  ;;  %v3215_v51 = vadd.f32 %v3214_v62, %v13844_v27  ;;  %v13847_v11 = vld [vmem:[#allocation4_spill] sm:$0xff]  ;;  %v13850_v27 = vld [vmem:[#allocation7_spill] sm:$0xff] }
 0x350   :  { %v3437_v5 = vpop.f32.mrf.mxu1  ;;  %v13848_v31 = vunpack.c.l.b16 %v13847_v11  ;;  %v3682_v56 = vrot.slane %v13850_v27, 1  ;;  %v13854_v27 = vld [vmem:[#allocation44_spill] sm:$0xff] }
 0x351   :  { %v11526_v37 = vadd.f32 %v3427_v39, %v3215_v51  ;;  %3253 = vmatmul.bf16.gmra.mxu0 %v13846_v52 }
 0x352   :  { %v3677_v40 = vpack.c.b16 %v13848_v31, %v3674_v0  ;;  %v9431_v0 = vld [vmem:[%s13478_s2 + $0x1e0] sm:$0xff] }
 0x353   :  { %13845 = vst [vmem:[#allocation45_spill] sm:$0xff] %v11526_v37  ;;  %3476 = vmatmul.bf16.gmra.mxu1 %v13849_v25  ;;  %4407 = vmatpush.bf16.msra.mxu3 %v9431_v0  ;;  %v9428_v0 = vld [vmem:[%s13478_s2 + $0x1c8] sm:$0xff] }
 0x354   :  { %v3681_v62 = vrot.slane %v3677_v40, 1  ;;  %v13853_v40 = vld [vmem:[#allocation30_spill] sm:$0xff] }
 0x356   :  { %v3191_v21 = vpop.f32.mrf.mxu3  ;;  %v3216_v51 = vpop.f32.mrf.mxu0  ;;  %v3683_v39 = vsel %vm3680_vm1, %v3681_v62, %v3682_v56  ;;  %v9430_v62 = vld [vmem:[%s13478_s2 + $0x1d8] sm:$0xff] }
 0x357   :  { %4199 = vmatmul.bf16.vlgmr.msra.gmra.mxu2 %v3683_v39  ;;  %4408 = vmatpush.bf16.msra.mxu3 %v9430_v62  ;;  %v3675_v62 = vunpack.c.h.b16 %v3621_v22 }
 0x358   :  { %v3439_v37 = vpop.f32.mrf.mxu1 }
 0x35e   :  { %v3193_v20 = vpop.f32.mrf.mxu3  ;;  %v3219_v17 = vpop.f32.mrf.mxu0 }
 0x35f   :  { %v3220_v32 = vadd.f32 %v3219_v17, %v13851_v19  ;;  %v13855_v20 = vld [vmem:[#allocation11_spill] sm:$0xff]  ;;  %v13856_v17 = vld [vmem:[#allocation50_spill] sm:$0xff] }
 0x360   :  { %v3442_v63 = vpop.f32.mrf.mxu1  ;;  %v3690_v37 = vrot.slane %v13855_v20, 1  ;;  %v13858_v20 = vld [vmem:[#allocation54_spill] sm:$0xff] }
 0x361   :  { %v11541_v31 = vadd.f32 %v3432_v49, %v3220_v32  ;;  %3258 = vmatmul.bf16.gmra.mxu0 %v13853_v40  ;;  %v9429_v32 = vld [vmem:[%s13478_s2 + $0x1d0] sm:$0xff] }
 0x362   :  { %v3691_v19 = vsel %vm3680_vm1, %v3682_v56, %v3690_v37  ;;  %4409 = vmatpush.bf16.msra.mxu3 %v9429_v32 }
 0x363   :  { %13852 = vst [vmem:[#allocation27_spill] sm:$0xff] %v11541_v31  ;;  %3481 = vmatmul.bf16.gmra.mxu1 %v13854_v27  ;;  %v3685_v27 = vrot.slane %v9724_v33, 1  ;;  %v3692_v33 = vrot.slane %v9804_v23, 1 }
 0x366   :  { %v3221_v21 = vpop.f32.mrf.mxu0  ;;  %4410 = vmatpush.bf16.msra.mxu3 %v9428_v0  ;;  %v13862_v0 = vld [vmem:[#allocation48_spill] sm:$0xff] }
 0x367   :  { %v3222_v51 = vadd.f32 %v3221_v21, %v13856_v17  ;;  %4204 = vmatmul.bf16.gmra.mxu2 %v3691_v19  ;;  %v9427_v21 = vld [vmem:[%s13478_s2 + $0x1c0] sm:$0xff]  ;;  %v13859_v19 = vunpack.c.h.b16 %v13847_v11 }
 0x368   :  { %v3444_v39 = vpop.f32.mrf.mxu1 }
 0x369   :  { %v11554_v49 = vadd.f32 %v3434_v50, %v3222_v51  ;;  %v3678_v17 = vpack.c.b16 %v13859_v19, %v3675_v62  ;;  %v13861_v51 = vld [vmem:[#allocation34_spill] sm:$0xff] }
 0x36a   :  { %4411 = vmatpush.bf16.msra.mxu3 %v9427_v21  ;;  %v3693_v21 = vsel %vm3680_vm1, %v3685_v27, %v3692_v33 }
 0x36b   :  { %13857 = vst [vmem:[#allocation4_spill] sm:$0xff] %v11554_v49  ;;  %v3684_v49 = vrot.slane %v3678_v17, 1  ;;  %v13865_v17 = vld [vmem:[#allocation53_spill] sm:$0xff] }
 0x36d   :  { %v3686_v22 = vsel %vm3680_vm1, %v3684_v49, %v3685_v27 }
 0x36e   :  { %v3224_v63 = vpop.f32.mrf.mxu0  ;;  %4412 = vmatmul.bf16.vlgmr.msra.gmra.mxu3 %v3686_v22  ;;  %v13867_v22 = vld [vmem:[#allocation58_spill] sm:$0xff] }
 0x36f   :  { %v3225_v56 = vadd.f32 %v3224_v63, %v13858_v20  ;;  %v13863_v63 = vld [vmem:[#allocation14_spill] sm:$0xff] }
 0x370   :  { %v3447_v32 = vpop.f32.mrf.mxu1  ;;  %v3696_v20 = vrot.slane %v13863_v63, 1 }
 0x371   :  { %v11565_v50 = vadd.f32 %v3437_v5, %v3225_v56  ;;  %3263 = vmatmul.bf16.gmra.mxu0 %v13861_v51  ;;  %v13864_v56 = vld [vmem:[#allocation37_spill] sm:$0xff] }
 0x372   :  { %v3697_v11 = vsel %vm3680_vm1, %v3690_v37, %v3696_v20 }
 0x373   :  { %13860 = vst [vmem:[#allocation7_spill] sm:$0xff] %v11565_v50  ;;  %3486 = vmatmul.bf16.gmra.mxu1 %v13862_v0  ;;  %v13866_v0 = vld [vmem:[#allocation15_spill] sm:$0xff] }
 0x374   :  { %v3702_v49 = vrot.slane %v13866_v0, 1  ;;  %v13871_v0 = vld [vmem:[#allocation40_spill] sm:$0xff] }
 0x376   :  { %v3226_v31 = vpop.f32.mrf.mxu0 }
 0x377   :  { %4209 = vmatmul.bf16.gmra.mxu2 %v3697_v11  ;;  %v3703_v31 = vsel %vm3680_vm1, %v3696_v20, %v3702_v49  ;;  %v9439_v11 = vld [vmem:[%s13478_s2 + $0x220] sm:$0xff]  ;;  %v3698_v20 = vrot.slane %v9878_v8, 1 }
 0x378   :  { %v3449_v5 = vpop.f32.mrf.mxu1  ;;  %4620 = vmatpush.bf16.msra.mxu0 %v9439_v11  ;;  %v13874_v11 = vld [vmem:[#allocation63_spill] sm:$0xff] }
 0x37e   :  { %v3229_v62 = vpop.f32.mrf.mxu0  ;;  %4417 = vmatmul.bf16.gmra.mxu3 %v3693_v21 }
 0x380   :  { %v3452_v19 = vpop.f32.mrf.mxu1 }
 0x381   :  { %3268 = vmatmul.bf16.gmra.mxu0 %v13864_v56  ;;  %v13869_v19 = vld [vmem:[#allocation62_spill] sm:$0xff] }
 0x383   :  { %3491 = vmatmul.bf16.gmra.mxu1 %v13865_v17 }
 0x386   :  { %v3231_v63 = vpop.f32.mrf.mxu0 }
 0x387   :  { %v3232_v37 = vadd.f32 %v3231_v63, %v13867_v22  ;;  %4214 = vmatmul.bf16.gmra.mxu2 %v3703_v31  ;;  %v3699_v63 = vsel %vm3680_vm1, %v3692_v33, %v3698_v20  ;;  %v13872_v31 = vld [vmem:[#allocation57_spill] sm:$0xff]  ;;  %v13873_v22 = vld [vmem:[#allocation16_spill] sm:$0xff]  ;;  %v3704_v33 = vrot.slane %v9928_v59, 1 }
 0x388   :  { %v3454_v23 = vpop.f32.mrf.mxu1  ;;  %v3708_v25 = vrot.slane %v13873_v22, 1 }
 0x389   :  { %v11583_v62 = vadd.f32 %v3444_v39, %v3232_v37 }
 0x38a   :  { %v3709_v37 = vsel %vm3680_vm1, %v3702_v49, %v3708_v25 }
 0x38b   :  { %13868 = vst [vmem:[#allocation49_spill] sm:$0xff] %v11583_v62 }
 0x38e   :  { %v3234_v27 = vpop.f32.mrf.mxu0  ;;  %4422 = vmatmul.bf16.gmra.mxu3 %v3699_v63  ;;  %v13878_v63 = vld [vmem:[#allocation18_spill] sm:$0xff] }
 0x38f   :  { %v3235_v17 = vadd.f32 %v3234_v27, %v13869_v19  ;;  %v13876_v19 = vld [vmem:[#allocation43_spill] sm:$0xff]  ;;  %v3714_v22 = vrot.slane %v13878_v63, 1  ;;  %v3710_v63 = vrot.slane %v9962_v35, 1 }
 0x390   :  { %v3457_v21 = vpop.f32.mrf.mxu1 }
 0x391   :  { %v11586_v50 = vadd.f32 %v3447_v32, %v3235_v17  ;;  %3273 = vmatmul.bf16.gmra.mxu0 %v13871_v0 }
 0x393   :  { %13870 = vst [vmem:[#allocation30_spill] sm:$0xff] %v11586_v50  ;;  %3496 = vmatmul.bf16.gmra.mxu1 %v13872_v31  ;;  %v3705_v31 = vsel %vm3680_vm1, %v3698_v20, %v3704_v33  ;;  %v13877_v50 = vld [vmem:[#allocation61_spill] sm:$0xff]  ;;  %v13883_v20 = vld [vmem:[#allocation47_spill] sm:$0xff] }
 0x396   :  { %v3236_v39 = vpop.f32.mrf.mxu0 }
 0x397   :  { %v3237_v62 = vadd.f32 %v3236_v39, %v13874_v11  ;;  %4219 = vmatmul.bf16.gmra.mxu2 %v3709_v37  ;;  %v3715_v39 = vsel %vm3680_vm1, %v3708_v25, %v3714_v22  ;;  %v13879_v37 = vld [vmem:[#allocation67_spill] sm:$0xff]  ;;  %v13885_v25 = vld [vmem:[#allocation20_spill] sm:$0xff] }
 0x398   :  { %v3459_v17 = vpop.f32.mrf.mxu1 }
 0x399   :  { %v11595_v32 = vadd.f32 %v3449_v5, %v3237_v62 }
 0x39b   :  { %13875 = vst [vmem:[#allocation11_spill] sm:$0xff] %v11595_v32 }
 0x39e   :  { %v3239_v27 = vpop.f32.mrf.mxu0  ;;  %4427 = vmatmul.bf16.gmra.mxu3 %v3705_v31  ;;  %v3711_v31 = vsel %vm3680_vm1, %v3704_v33, %v3710_v63  ;;  %v3716_v33 = vrot.slane %v9999_v4, 1 }
 0x3a0   :  { %v3462_v8 = vpop.f32.mrf.mxu1 }
 0x3a1   :  { %3278 = vmatmul.bf16.gmra.mxu0 %v13876_v19  ;;  %v13881_v8 = vld [vmem:[#allocation71_spill] sm:$0xff] }
 0x3a3   :  { %3501 = vmatmul.bf16.gmra.mxu1 %v13877_v50 }
 0x3a6   :  { %v3241_v49 = vpop.f32.mrf.mxu0 }
 0x3a7   :  { %v3242_v5 = vadd.f32 %v3241_v49, %v13879_v37  ;;  %4224 = vmatmul.bf16.gmra.mxu2 %v3715_v39  ;;  %v3720_v49 = vrot.slane %v13885_v25, 1  ;;  %v13886_v37 = vld [vmem:[#allocation72_spill] sm:$0xff] }
 0x3a8   :  { %v3464_v11 = vpop.f32.mrf.mxu1 }
 0x3a9   :  { %v11604_v62 = vadd.f32 %v3454_v23, %v3242_v5  ;;  %v3721_v39 = vsel %vm3680_vm1, %v3714_v22, %v3720_v49 }
 0x3ab   :  { %13880 = vst [vmem:[#allocation50_spill] sm:$0xff] %v11604_v62  ;;  %v13908_v62 = vld [vmem:[#allocation89_spill] sm:$0xff] }
 0x3ae   :  { %v3244_v27 = vpop.f32.mrf.mxu0  ;;  %4432 = vmatmul.bf16.gmra.mxu3 %v3711_v31  ;;  %v13890_v31 = vld [vmem:[#allocation22_spill] sm:$0xff] }
 0x3af   :  { %v3245_v32 = vadd.f32 %v3244_v27, %v13881_v8  ;;  %v13888_v27 = vld [vmem:[#allocation52_spill] sm:$0xff]  ;;  %v3717_v8 = vsel %vm3680_vm1, %v3710_v63, %v3716_v33  ;;  %v3726_v25 = vrot.slane %v13890_v31, 1  ;;  %v3722_v63 = vrot.slane %v10033_v48, 1  ;;  %v9438_v48 = vld [vmem:[%s13478_s2 + $0x218] sm:$0xff] }
 0x3b0   :  { %v3467_v50 = vpop.f32.mrf.mxu1  ;;  %4621 = vmatpush.bf16.msra.mxu0 %v9438_v48 }
 0x3b1   :  { %v11607_v59 = vadd.f32 %v3457_v21, %v3245_v32  ;;  %3283 = vmatmul.bf16.gmra.mxu0 %v13883_v20 }
 0x3b3   :  { %13882 = vst [vmem:[#allocation54_spill] sm:$0xff] %v11607_v59  ;;  %3506 = vmatmul.bf16.gmra.mxu1 %v13884_v47  ;;  %v13889_v47 = vld [vmem:[#allocation70_spill] sm:$0xff]  ;;  %v13894_v59 = vld [vmem:[#allocation75_spill] sm:$0xff] }
 0x3b6   :  { %v3246_v23 = vpop.f32.mrf.mxu0 }
 0x3b7   :  { %v3247_v5 = vadd.f32 %v3246_v23, %v13886_v37  ;;  %4229 = vmatmul.bf16.gmra.mxu2 %v3721_v39  ;;  %v3727_v23 = vsel %vm3680_vm1, %v3720_v49, %v3726_v25  ;;  %v13891_v37 = vld [vmem:[#allocation79_spill] sm:$0xff] }
 0x3b8   :  { %v3469_v32 = vpop.f32.mrf.mxu1 }
 0x3b9   :  { %v11616_v21 = vadd.f32 %v3459_v17, %v3247_v5 }
 0x3bb   :  { %13887 = vst [vmem:[#allocation34_spill] sm:$0xff] %v11616_v21  ;;  %v13893_v21 = vld [vmem:[#allocation56_spill] sm:$0xff] }
 0x3be   :  { %v3249_v11 = vpop.f32.mrf.mxu0  ;;  %4437 = vmatmul.bf16.gmra.mxu3 %v3717_v8  ;;  %v13895_v8 = vld [vmem:[#allocation24_spill] sm:$0xff] }
 0x3bf   :  { %v3732_v31 = vrot.slane %v13895_v8, 1 }
 0x3c0   :  { %v3472_v35 = vpop.f32.mrf.mxu1 }
 0x3c1   :  { %3288 = vmatmul.bf16.gmra.mxu0 %v13888_v27 }
 0x3c3   :  { %3511 = vmatmul.bf16.gmra.mxu1 %v13889_v47  ;;  %v3723_v47 = vsel %vm3680_vm1, %v3716_v33, %v3722_v63 }
 0x3c6   :  { %v3251_v22 = vpop.f32.mrf.mxu0 }
 0x3c7   :  { %4234 = vmatmul.bf16.gmra.mxu2 %v3727_v23  ;;  %v3733_v22 = vsel %vm3680_vm1, %v3726_v25, %v3732_v31  ;;  %v13896_v23 = vld [vmem:[#allocation80_spill] sm:$0xff] }
 0x3c8   :  { %v3474_v17 = vpop.f32.mrf.mxu1 }
 0x3ce   :  { %v3254_v39 = vpop.f32.mrf.mxu0  ;;  %4442 = vmatmul.bf16.gmra.mxu3 %v3723_v47  ;;  %v13900_v47 = vld [vmem:[#allocation60_spill] sm:$0xff] }
 0x3cf   :  { %v3255_v5 = vadd.f32 %v3254_v39, %v13891_v37 }
 0x3d0   :  { %v3477_v4 = vpop.f32.mrf.mxu1 }
 0x3d1   :  { %v11625_v11 = vadd.f32 %v3467_v50, %v3255_v5  ;;  %3293 = vmatmul.bf16.gmra.mxu0 %v13893_v21  ;;  %v13898_v5 = vld [vmem:[#allocation84_spill] sm:$0xff] }
 0x3d3   :  { %13892 = vst [vmem:[#allocation14_spill] sm:$0xff] %v11625_v11  ;;  %3516 = vmatmul.bf16.gmra.mxu1 %v13894_v59 }
 0x3d6   :  { %v3256_v49 = vpop.f32.mrf.mxu0 }
 0x3d7   :  { %v3257_v17 = vadd.f32 %v3256_v49, %v13896_v23  ;;  %4239 = vmatmul.bf16.gmra.mxu2 %v3733_v22  ;;  %v3728_v49 = vrot.slane %v10067_v36, 1  ;;  %v13901_v23 = vld [vmem:[#allocation78_spill] sm:$0xff]  ;;  %v13905_v36 = vld [vmem:[#allocation65_spill] sm:$0xff] }
 0x3d8   :  { %v3479_v39 = vpop.f32.mrf.mxu1 }
 0x3d9   :  { %v11634_v50 = vadd.f32 %v3469_v32, %v3257_v17  ;;  %v3729_v32 = vsel %vm3680_vm1, %v3722_v63, %v3728_v49  ;;  %v13902_v17 = vld [vmem:[#allocation26_spill] sm:$0xff]  ;;  %v3734_v63 = vrot.slane %v10101_v18, 1 }
 0x3da   :  { %v4200_v37 = vpop.f32.mrf.mxu2 }
 0x3db   :  { %13897 = vst [vmem:[#allocation37_spill] sm:$0xff] %v11634_v50  ;;  %v3738_v50 = vrot.slane %v13902_v17, 1  ;;  %v3735_v17 = vsel %vm3680_vm1, %v3728_v49, %v3734_v63 }
 0x3dd   :  { %v3739_v48 = vsel %vm3680_vm1, %v3732_v31, %v3738_v50 }
 0x3de   :  { %v3259_v33 = vpop.f32.mrf.mxu0  ;;  %4447 = vmatmul.bf16.gmra.mxu3 %v3729_v32  ;;  %v13906_v32 = vld [vmem:[#allocation83_spill] sm:$0xff] }
 0x3df   :  { %v3260_v59 = vadd.f32 %v3259_v33, %v13898_v5  ;;  %v13903_v5 = vld [vmem:[#allocation88_spill] sm:$0xff] }
 0x3e0   :  { %v3482_v25 = vpop.f32.mrf.mxu1 }
 0x3e1   :  { %v11640_v8 = vadd.f32 %v3472_v35, %v3260_v59  ;;  %3298 = vmatmul.bf16.gmra.mxu0 %v13900_v47 }
 0x3e2   :  { %v4202_v22 = vpop.f32.mrf.mxu2 }
 0x3e3   :  { %13899 = vst [vmem:[#allocation15_spill] sm:$0xff] %v11640_v8  ;;  %3521 = vmatmul.bf16.gmra.mxu1 %v13901_v23 }
 0x3e6   :  { %v3261_v37 = vpop.f32.mrf.mxu0 }
 0x3e7   :  { %4244 = vmatmul.bf16.gmra.mxu2 %v3739_v48  ;;  %v13907_v37 = vld [vmem:[#allocation29_spill] sm:$0xff] }
 0x3e8   :  { %v3484_v33 = vpop.f32.mrf.mxu1  ;;  %v3744_v31 = vrot.slane %v13907_v37, 1  ;;  %v3740_v37 = vrot.slane %v13846_v52, 1  ;;  %v13916_v52 = vld [vmem:[#allocation74_spill] sm:$0xff] }
 0x3ea   :  { %v4205_v59 = vpop.f32.mrf.mxu2  ;;  %v3745_v33 = vsel %vm3680_vm1, %v3738_v50, %v3744_v31 }
 0x3ee   :  { %v3264_v35 = vpop.f32.mrf.mxu0  ;;  %4452 = vmatmul.bf16.gmra.mxu3 %v3735_v17 }
 0x3ef   :  { %v3265_v8 = vadd.f32 %v3264_v35, %v13903_v5 }
 0x3f0   :  { %v3487_v22 = vpop.f32.mrf.mxu1 }
 0x3f1   :  { %v11649_v11 = vadd.f32 %v3477_v4, %v3265_v8  ;;  %3303 = vmatmul.bf16.gmra.mxu0 %v13905_v36  ;;  %v4413_v4 = vpop.f32.mrf.mxu3 }
 0x3f2   :  { %v4207_v23 = vpop.f32.mrf.mxu2 }
 0x3f3   :  { %13904 = vst [vmem:[#allocation58_spill] sm:$0xff] %v11649_v11  ;;  %3526 = vmatmul.bf16.gmra.mxu1 %v13906_v32  ;;  %v13910_v11 = vld [vmem:[#allocation93_spill] sm:$0xff] }
 0x3f4   :  { %v13912_v32 = vld [vmem:[#allocation69_spill] sm:$0xff] }
 0x3f6   :  { %v3266_v48 = vpop.f32.mrf.mxu0 }
 0x3f7   :  { %v3267_v35 = vadd.f32 %v3266_v48, %v13908_v62  ;;  %4249 = vmatmul.bf16.gmra.mxu2 %v3745_v33  ;;  %v3741_v62 = vsel %vm3680_vm1, %v3734_v63, %v3740_v37  ;;  %v13913_v48 = vld [vmem:[#allocation87_spill] sm:$0xff] }
 0x3f8   :  { %v3489_v5 = vpop.f32.mrf.mxu1 }
 0x3f9   :  { %v11658_v8 = vadd.f32 %v3479_v39, %v3267_v35  ;;  %v4415_v49 = vpop.f32.mrf.mxu3  ;;  %v13914_v39 = vld [vmem:[#allocation33_spill] sm:$0xff] }
 0x3fa   :  { %v4210_v22 = vpop.f32.mrf.mxu2  ;;  %v3750_v33 = vrot.slane %v13914_v39, 1 }
 0x3fb   :  { %13909 = vst [vmem:[#allocation62_spill] sm:$0xff] %v11658_v8 }
 0x3fc   :  { %v3751_v4 = vsel %vm3680_vm1, %v3744_v31, %v3750_v33  ;;  %v13919_v31 = vld [vmem:[#allocation36_spill] sm:$0xff] }
 0x3fe   :  { %v3269_v18 = vpop.f32.mrf.mxu0  ;;  %4457 = vmatmul.bf16.gmra.mxu3 %v3741_v62 }
 0x3ff   :  { %v3270_v7 = vadd.f32 %v3269_v18, %v13910_v11 }
 0x400   :  { %v3492_v17 = vpop.f32.mrf.mxu1 }
 0x401   :  { %v11661_v53 = vadd.f32 %v3482_v25, %v3270_v7  ;;  %3308 = vmatmul.bf16.gmra.mxu0 %v13912_v32  ;;  %v4418_v11 = vpop.f32.mrf.mxu3 }
 0x402   :  { %v4212_v50 = vpop.f32.mrf.mxu2  ;;  %v11669_v7 = vadd.f32 %v4418_v11, %v4205_v59 }
 0x403   :  { %13911 = vst [vmem:[#allocation40_spill] sm:$0xff] %v11661_v53  ;;  %3531 = vmatmul.bf16.gmra.mxu1 %v13913_v48  ;;  %v3746_v48 = vrot.slane %v13853_v40, 1 }
 0x404   :  { %13915 = vst [vmem:[#allocation16_spill] sm:$0xff] %v11669_v7 }
 0x405   :  { %v3747_v62 = vsel %vm3680_vm1, %v3740_v37, %v3746_v48  ;;  %v13922_v37 = vld [vmem:[#allocation101_spill] sm:$0xff] }
 0x406   :  { %v3271_v35 = vpop.f32.mrf.mxu0 }
 0x407   :  { %4254 = vmatmul.bf16.gmra.mxu2 %v3751_v4  ;;  %v13918_v35 = vld [vmem:[#allocation92_spill] sm:$0xff]  ;;  %v3756_v4 = vrot.slane %v13919_v31, 1 }
 0x408   :  { %v3494_v25 = vpop.f32.mrf.mxu1 }
 0x409   :  { %v4420_v53 = vpop.f32.mrf.mxu3  ;;  %v3757_v11 = vsel %vm3680_vm1, %v3750_v33, %v3756_v4  ;;  %v3752_v33 = vrot.slane %v13861_v51, 1 }
 0x40a   :  { %v4215_v18 = vpop.f32.mrf.mxu2  ;;  %v11672_v50 = vadd.f32 %v4420_v53, %v4207_v23 }
 0x40c   :  { %13917 = vst [vmem:[#allocation63_spill] sm:$0xff] %v11672_v50 }
 0x40e   :  { %v3274_v49 = vpop.f32.mrf.mxu0  ;;  %4462 = vmatmul.bf16.gmra.mxu3 %v3747_v62  ;;  %v13924_v62 = vld [vmem:[#allocation77_spill] sm:$0xff] }
 0x40f   :  { %v13920_v49 = vld [vmem:[#allocation97_spill] sm:$0xff] }
 0x410   :  { %v3497_v63 = vpop.f32.mrf.mxu1 }
 0x411   :  { %3313 = vmatmul.bf16.gmra.mxu0 %v13916_v52  ;;  %v4423_v7 = vpop.f32.mrf.mxu3 }
 0x412   :  { %v4217_v39 = vpop.f32.mrf.mxu2  ;;  %v11682_v23 = vadd.f32 %v4423_v7, %v4210_v22 }
 0x413   :  { %3536 = vmatmul.bf16.gmra.mxu1 %v13918_v35 }
 0x416   :  { %v3276_v59 = vpop.f32.mrf.mxu0 }
 0x417   :  { %v3277_v8 = vadd.f32 %v3276_v59, %v13920_v49  ;;  %4259 = vmatmul.bf16.gmra.mxu2 %v3757_v11  ;;  %v3753_v11 = vsel %vm3680_vm1, %v3746_v48, %v3752_v33  ;;  %v9437_v48 = vld [vmem:[%s13478_s2 + $0x210] sm:$0xff] }
 0x418   :  { %v3499_v40 = vpop.f32.mrf.mxu1  ;;  %4622 = vmatpush.bf16.msra.mxu0 %v9437_v48 }
 0x419   :  { %v11680_v53 = vadd.f32 %v3489_v5, %v3277_v8  ;;  %v4425_v35 = vpop.f32.mrf.mxu3  ;;  %v13925_v8 = vld [vmem:[#allocation96_spill] sm:$0xff]  ;;  %v13926_v5 = vld [vmem:[#allocation39_spill] sm:$0xff] }
 0x41a   :  { %v4220_v63 = vpop.f32.mrf.mxu2  ;;  %v3762_v22 = vrot.slane %v13926_v5, 1 }
 0x41b   :  { %13921 = vst [vmem:[#allocation43_spill] sm:$0xff] %v11680_v53 }
 0x41c   :  { %v3763_v49 = vsel %vm3680_vm1, %v3756_v4, %v3762_v22 }
 0x41e   :  { %v3279_v50 = vpop.f32.mrf.mxu0  ;;  %4467 = vmatmul.bf16.gmra.mxu3 %v3753_v11 }
 0x41f   :  { %v3280_v2 = vadd.f32 %v3279_v50, %v13922_v37  ;;  %v13927_v50 = vld [vmem:[#allocation102_spill] sm:$0xff] }
 0x420   :  { %v3502_v31 = vpop.f32.mrf.mxu1 }
 0x421   :  { %v11685_v1 = vadd.f32 %v3492_v17, %v3280_v2  ;;  %3318 = vmatmul.bf16.gmra.mxu0 %v13924_v62  ;;  %v4428_v2 = vpop.f32.mrf.mxu3 }
 0x422   :  { %v4222_v59 = vpop.f32.mrf.mxu2  ;;  %v11696_v37 = vadd.f32 %v4428_v2, %v4215_v18 }
 0x423   :  { %13923 = vst [vmem:[#allocation18_spill] sm:$0xff] %v11685_v1  ;;  %3541 = vmatmul.bf16.gmra.mxu1 %v13925_v8  ;;  %v13930_v8 = vld [vmem:[#allocation82_spill] sm:$0xff] }
 0x424   :  { %13929 = vst [vmem:[#allocation71_spill] sm:$0xff] %v11696_v37 }
 0x426   :  { %v3281_v7 = vpop.f32.mrf.mxu0 }
 0x427   :  { %v3282_v35 = vadd.f32 %v3281_v7, %v13927_v50  ;;  %4264 = vmatmul.bf16.gmra.mxu2 %v3763_v49  ;;  %v3758_v49 = vrot.slane %v13864_v56, 1  ;;  %v13932_v50 = vld [vmem:[#allocation100_spill] sm:$0xff] }
 0x428   :  { %v3504_v51 = vpop.f32.mrf.mxu1 }
 0x429   :  { %v11694_v17 = vadd.f32 %v3494_v25, %v3282_v35  ;;  %v4430_v11 = vpop.f32.mrf.mxu3  ;;  %v3759_v18 = vsel %vm3680_vm1, %v3752_v33, %v3758_v49  ;;  %v13933_v35 = vld [vmem:[#allocation42_spill] sm:$0xff] }
 0x42a   :  { %v4225_v59 = vpop.f32.mrf.mxu2  ;;  %v11702_v4 = vadd.f32 %v4430_v11, %v4217_v39  ;;  %v3768_v2 = vrot.slane %v13933_v35, 1  ;;  %v13936_v33 = vld [vmem:[#allocation110_spill] sm:$0xff] }
 0x42b   :  { %13928 = vst [vmem:[#allocation67_spill] sm:$0xff] %v11694_v17  ;;  %v13934_v59 = vld [vmem:[#allocation106_spill] sm:$0xff] }
 0x42c   :  { %13931 = vst [vmem:[#allocation47_spill] sm:$0xff] %v11702_v4  ;;  %v3769_v48 = vsel %vm3680_vm1, %v3762_v22, %v3768_v2  ;;  %v3764_v22 = vrot.slane %v13871_v0, 1 }
 0x42e   :  { %v3284_v5 = vpop.f32.mrf.mxu0  ;;  %4472 = vmatmul.bf16.gmra.mxu3 %v3759_v18  ;;  %v13938_v18 = vld [vmem:[#allocation86_spill] sm:$0xff] }
 0x430   :  { %v3507_v7 = vpop.f32.mrf.mxu1 }
 0x431   :  { %3323 = vmatmul.bf16.gmra.mxu0 %v13930_v8  ;;  %v4433_v1 = vpop.f32.mrf.mxu3 }
 0x432   :  { %v4227_v25 = vpop.f32.mrf.mxu2  ;;  %v11712_v11 = vadd.f32 %v4433_v1, %v4220_v63  ;;  %v13940_v1 = vld [vmem:[#allocation46_spill] sm:$0xff] }
 0x433   :  { %3546 = vmatmul.bf16.gmra.mxu1 %v13932_v50  ;;  %v3774_v63 = vrot.slane %v13940_v1, 1 }
 0x436   :  { %v3286_v17 = vpop.f32.mrf.mxu0 }
 0x437   :  { %v3287_v5 = vadd.f32 %v3286_v17, %v13934_v59  ;;  %4269 = vmatmul.bf16.gmra.mxu2 %v3769_v48  ;;  %v3765_v48 = vsel %vm3680_vm1, %v3758_v49, %v3764_v22 }
 0x438   :  { %v3509_v56 = vpop.f32.mrf.mxu1 }
 0x439   :  { %v11710_v39 = vadd.f32 %v3499_v40, %v3287_v5  ;;  %v4435_v50 = vpop.f32.mrf.mxu3  ;;  %v13939_v40 = vld [vmem:[#allocation105_spill] sm:$0xff]  ;;  %v3775_v5 = vsel %vm3680_vm1, %v3768_v2, %v3774_v63 }
 0x43a   :  { %v4230_v7 = vpop.f32.mrf.mxu2 }
 0x43b   :  { %13935 = vst [vmem:[#allocation20_spill] sm:$0xff] %v11710_v39  ;;  %v13945_v39 = vld [vmem:[#allocation109_spill] sm:$0xff] }
 0x43e   :  { %v3289_v53 = vpop.f32.mrf.mxu0  ;;  %4477 = vmatmul.bf16.gmra.mxu3 %v3765_v48  ;;  %v3770_v48 = vrot.slane %v13876_v19, 1  ;;  %v13948_v19 = vld [vmem:[#allocation95_spill] sm:$0xff] }
 0x43f   :  { %v3290_v4 = vadd.f32 %v3289_v53, %v13936_v33  ;;  %v13941_v53 = vld [vmem:[#allocation111_spill] sm:$0xff] }
 0x440   :  { %v3512_v35 = vpop.f32.mrf.mxu1  ;;  %v3771_v2 = vsel %vm3680_vm1, %v3764_v22, %v3770_v48 }
 0x441   :  { %v11715_v37 = vadd.f32 %v3502_v31, %v3290_v4  ;;  %3328 = vmatmul.bf16.gmra.mxu0 %v13938_v18  ;;  %v4438_v31 = vpop.f32.mrf.mxu3 }
 0x442   :  { %v4232_v17 = vpop.f32.mrf.mxu2 }
 0x443   :  { %13937 = vst [vmem:[#allocation72_spill] sm:$0xff] %v11715_v37  ;;  %3551 = vmatmul.bf16.gmra.mxu1 %v13939_v40  ;;  %v13943_v37 = vld [vmem:[#allocation91_spill] sm:$0xff] }
 0x446   :  { %v3291_v59 = vpop.f32.mrf.mxu0 }
 0x447   :  { %v3292_v50 = vadd.f32 %v3291_v59, %v13941_v53  ;;  %4274 = vmatmul.bf16.gmra.mxu2 %v3775_v5  ;;  %v13946_v59 = vld [vmem:[#allocation51_spill] sm:$0xff] }
 0x448   :  { %v3514_v56 = vpop.f32.mrf.mxu1  ;;  %v3780_v5 = vrot.slane %v13946_v59, 1 }
 0x449   :  { %v11724_v4 = vadd.f32 %v3504_v51, %v3292_v50  ;;  %v4440_v35 = vpop.f32.mrf.mxu3 }
 0x44a   :  { %v4235_v33 = vpop.f32.mrf.mxu2  ;;  %v11727_v49 = vadd.f32 %v4440_v35, %v4227_v25  ;;  %v3781_v53 = vsel %vm3680_vm1, %v3774_v63, %v3780_v5  ;;  %v3776_v35 = vrot.slane %v13883_v20, 1  ;;  %v13951_v63 = vld [vmem:[#allocation55_spill] sm:$0xff] }
 0x44b   :  { %13942 = vst [vmem:[#allocation52_spill] sm:$0xff] %v11724_v4  ;;  %v13952_v4 = vld [vmem:[#allocation99_spill] sm:$0xff] }
 0x44c   :  { %13944 = vst [vmem:[#allocation22_spill] sm:$0xff] %v11727_v49 }
 0x44e   :  { %v3294_v0 = vpop.f32.mrf.mxu0  ;;  %4482 = vmatmul.bf16.gmra.mxu3 %v3771_v2  ;;  %v3777_v2 = vsel %vm3680_vm1, %v3770_v48, %v3776_v35  ;;  %v3782_v48 = vrot.slane %v13888_v27, 1  ;;  %v9436_v27 = vld [vmem:[%s13478_s2 + $0x208] sm:$0xff] }
 0x44f   :  { %4623 = vmatpush.bf16.msra.mxu0 %v9436_v27  ;;  %v13961_v27 = vld [vmem:[#allocation120_spill] sm:$0xff] }
 0x450   :  { %v3517_v40 = vpop.f32.mrf.mxu1 }
 0x451   :  { %3333 = vmatmul.bf16.gmra.mxu0 %v13943_v37  ;;  %v4443_v50 = vpop.f32.mrf.mxu3 }
 0x452   :  { %v4237_v1 = vpop.f32.mrf.mxu2  ;;  %v11734_v31 = vadd.f32 %v4443_v50, %v4230_v7 }
 0x453   :  { %3556 = vmatmul.bf16.gmra.mxu1 %v13945_v39 }
 0x454   :  { %13947 = vst [vmem:[#allocation79_spill] sm:$0xff] %v11734_v31 }
 0x456   :  { %v3296_v51 = vpop.f32.mrf.mxu0 }
 0x457   :  { %4279 = vmatmul.bf16.gmra.mxu2 %v3781_v53  ;;  %v13950_v51 = vld [vmem:[#allocation114_spill] sm:$0xff]  ;;  %v3786_v53 = vrot.slane %v13951_v63, 1  ;;  %v3783_v63 = vsel %vm3680_vm1, %v3776_v35, %v3782_v48 }
 0x458   :  { %v3519_v25 = vpop.f32.mrf.mxu1 }
 0x459   :  { %v4445_v33 = vpop.f32.mrf.mxu3  ;;  %v3787_v50 = vsel %vm3680_vm1, %v3780_v5, %v3786_v53 }
 0x45a   :  { %v4240_v56 = vpop.f32.mrf.mxu2  ;;  %v11737_v0 = vadd.f32 %v4445_v33, %v4232_v17 }
 0x45c   :  { %13949 = vst [vmem:[#allocation56_spill] sm:$0xff] %v11737_v0 }
 0x45e   :  { %v3299_v40 = vpop.f32.mrf.mxu0  ;;  %4487 = vmatmul.bf16.gmra.mxu3 %v3777_v2  ;;  %v13954_v2 = vld [vmem:[#allocation117_spill] sm:$0xff] }
 0x460   :  { %v3522_v22 = vpop.f32.mrf.mxu1 }
 0x461   :  { %3338 = vmatmul.bf16.gmra.mxu0 %v13948_v19  ;;  %v4448_v25 = vpop.f32.mrf.mxu3 }
 0x462   :  { %v4242_v59 = vpop.f32.mrf.mxu2 }
 0x463   :  { %3561 = vmatmul.bf16.gmra.mxu1 %v13950_v51 }
 0x466   :  { %v3301_v7 = vpop.f32.mrf.mxu0 }
 0x467   :  { %4284 = vmatmul.bf16.gmra.mxu2 %v3787_v50  ;;  %v13955_v7 = vld [vmem:[#allocation59_spill] sm:$0xff] }
 0x468   :  { %v3524_v40 = vpop.f32.mrf.mxu1  ;;  %v3792_v5 = vrot.slane %v13955_v7, 1 }
 0x469   :  { %v4450_v33 = vpop.f32.mrf.mxu3 }
 0x46a   :  { %v4245_v39 = vpop.f32.mrf.mxu2  ;;  %v11745_v20 = vadd.f32 %v4450_v33, %v4237_v1  ;;  %v13957_v33 = vld [vmem:[#allocation124_spill] sm:$0xff] }
 0x46b   :  { %v3793_v39 = vsel %vm3680_vm1, %v3786_v53, %v3792_v5 }
 0x46c   :  { %13953 = vst [vmem:[#allocation24_spill] sm:$0xff] %v11745_v20 }
 0x46e   :  { %v3304_v17 = vpop.f32.mrf.mxu0  ;;  %4492 = vmatmul.bf16.gmra.mxu3 %v3783_v63  ;;  %v13959_v63 = vld [vmem:[#allocation104_spill] sm:$0xff] }
 0x470   :  { %v3527_v0 = vpop.f32.mrf.mxu1 }
 0x471   :  { %3343 = vmatmul.bf16.gmra.mxu0 %v13952_v4  ;;  %v4453_v25 = vpop.f32.mrf.mxu3 }
 0x472   :  { %v4247_v51 = vpop.f32.mrf.mxu2  ;;  %v11752_v17 = vadd.f32 %v4453_v25, %v4240_v56  ;;  %v9458_v56 = vld [vmem:[%s13480_s6 + $0x38] sm:$0xff] }
 0x473   :  { %3566 = vmatmul.bf16.gmra.mxu1 %v13954_v2 }
 0x474   :  { %13956 = vst [vmem:[#allocation80_spill] sm:$0xff] %v11752_v17  ;;  %5290 = vmatpush.bf16.msra.mxu1 %v9458_v56  ;;  %v13965_v56 = vld [vmem:[#allocation129_spill] sm:$0xff] }
 0x476   :  { %v3306_v50 = vpop.f32.mrf.mxu0 }
 0x477   :  { %4289 = vmatmul.bf16.gmra.mxu2 %v3793_v39  ;;  %v3788_v39 = vrot.slane %v13893_v21, 1 }
 0x478   :  { %v3529_v1 = vpop.f32.mrf.mxu1 }
 0x479   :  { %v4455_v20 = vpop.f32.mrf.mxu3  ;;  %v3789_v1 = vsel %vm3680_vm1, %v3782_v48, %v3788_v39 }
 0x47a   :  { %v4250_v51 = vpop.f32.mrf.mxu2  ;;  %v11761_v53 = vadd.f32 %v4455_v20, %v4242_v59  ;;  %v13963_v20 = vld [vmem:[#allocation125_spill] sm:$0xff] }
 0x47c   :  { %13960 = vst [vmem:[#allocation60_spill] sm:$0xff] %v11761_v53 }
 0x47e   :  { %v3309_v35 = vpop.f32.mrf.mxu0  ;;  %4497 = vmatmul.bf16.gmra.mxu3 %v3789_v1 }
 0x47f   :  { %v3310_v2 = vadd.f32 %v3309_v35, %v13957_v33  ;;  %v13962_v35 = vld [vmem:[#allocation64_spill] sm:$0xff] }
 0x480   :  { %v3532_v50 = vpop.f32.mrf.mxu1 }
 0x481   :  { %v11758_v7 = vadd.f32 %v3522_v22, %v3310_v2  ;;  %3348 = vmatmul.bf16.gmra.mxu0 %v13959_v63  ;;  %v3798_v22 = vrot.slane %v13962_v35, 1  ;;  %v4458_v50 = vpop.f32.mrf.mxu3  ;;  %v3794_v35 = vrot.slane %v13900_v47, 1  ;;  %v13971_v47 = vld [vmem:[#allocation113_spill] sm:$0xff] }
 0x482   :  { %v4252_v25 = vpop.f32.mrf.mxu2 }
 0x483   :  { %13958 = vst [vmem:[#allocation84_spill] sm:$0xff] %v11758_v7  ;;  %3571 = vmatmul.bf16.gmra.mxu1 %v13961_v27  ;;  %v3799_v59 = vsel %vm3680_vm1, %v3792_v5, %v3798_v22  ;;  %v13967_v27 = vld [vmem:[#allocation108_spill] sm:$0xff] }
 0x486   :  { %v3311_v2 = vpop.f32.mrf.mxu0 }
 0x487   :  { %v3312_v33 = vadd.f32 %v3311_v2, %v13963_v20  ;;  %4294 = vmatmul.bf16.gmra.mxu2 %v3799_v59  ;;  %v3795_v2 = vsel %vm3680_vm1, %v3788_v39, %v3794_v35  ;;  %v13968_v59 = vld [vmem:[#allocation123_spill] sm:$0xff] }
 0x488   :  { %v3534_v53 = vpop.f32.mrf.mxu1 }
 0x489   :  { %v11772_v7 = vadd.f32 %v3524_v40, %v3312_v33  ;;  %v4460_v48 = vpop.f32.mrf.mxu3  ;;  %v13969_v40 = vld [vmem:[#allocation68_spill] sm:$0xff] }
 0x48a   :  { %v4255_v21 = vpop.f32.mrf.mxu2  ;;  %v3804_v20 = vrot.slane %v13969_v40, 1 }
 0x48b   :  { %13964 = vst [vmem:[#allocation26_spill] sm:$0xff] %v11772_v7 }
 0x48c   :  { %v3805_v50 = vsel %vm3680_vm1, %v3798_v22, %v3804_v20  ;;  %v13974_v22 = vld [vmem:[#allocation73_spill] sm:$0xff] }
 0x48e   :  { %v3314_v17 = vpop.f32.mrf.mxu0  ;;  %4502 = vmatmul.bf16.gmra.mxu3 %v3795_v2 }
 0x48f   :  { %v3315_v31 = vadd.f32 %v3314_v17, %v13965_v56 }
 0x490   :  { %v3537_v1 = vpop.f32.mrf.mxu1 }
 0x491   :  { %v11775_v49 = vadd.f32 %v3527_v0, %v3315_v31  ;;  %3353 = vmatmul.bf16.gmra.mxu0 %v13967_v27  ;;  %v4463_v17 = vpop.f32.mrf.mxu3 }
 0x492   :  { %v4257_v5 = vpop.f32.mrf.mxu2  ;;  %v11783_v31 = vadd.f32 %v4463_v17, %v4250_v51 }
 0x493   :  { %13966 = vst [vmem:[#allocation88_spill] sm:$0xff] %v11775_v49  ;;  %3576 = vmatmul.bf16.gmra.mxu1 %v13968_v59  ;;  %v3800_v59 = vrot.slane %v13905_v36, 1 }
 0x494   :  { %13970 = vst [vmem:[#allocation65_spill] sm:$0xff] %v11783_v31 }
 0x495   :  { %v3801_v2 = vsel %vm3680_vm1, %v3794_v35, %v3800_v59 }
 0x496   :  { %v3316_v33 = vpop.f32.mrf.mxu0 }
 0x497   :  { %4299 = vmatmul.bf16.gmra.mxu2 %v3805_v50  ;;  %v13973_v33 = vld [vmem:[#allocation128_spill] sm:$0xff]  ;;  %v3810_v50 = vrot.slane %v13974_v22, 1 }
 0x498   :  { %v3539_v0 = vpop.f32.mrf.mxu1 }
 0x499   :  { %v4465_v49 = vpop.f32.mrf.mxu3  ;;  %v3811_v17 = vsel %vm3680_vm1, %v3804_v20, %v3810_v50  ;;  %v3806_v20 = vrot.slane %v13912_v32, 1 }
 0x49a   :  { %v4260_v56 = vpop.f32.mrf.mxu2  ;;  %v11786_v5 = vadd.f32 %v4465_v49, %v4252_v25 }
 0x49c   :  { %13972 = vst [vmem:[#allocation29_spill] sm:$0xff] %v11786_v5 }
 0x49e   :  { %v3319_v48 = vpop.f32.mrf.mxu0  ;;  %4507 = vmatmul.bf16.gmra.mxu3 %v3801_v2  ;;  %v13975_v2 = vld [vmem:[#allocation116_spill] sm:$0xff] }
 0x4a0   :  { %v3542_v39 = vpop.f32.mrf.mxu1 }
 0x4a1   :  { %3358 = vmatmul.bf16.gmra.mxu0 %v13971_v47  ;;  %v4468_v7 = vpop.f32.mrf.mxu3 }
 0x4a2   :  { %v4262_v40 = vpop.f32.mrf.mxu2  ;;  %v11796_v25 = vadd.f32 %v4468_v7, %v4255_v21  ;;  %v13976_v7 = vld [vmem:[#allocation76_spill] sm:$0xff] }
 0x4a3   :  { %3581 = vmatmul.bf16.gmra.mxu1 %v13973_v33 }
 0x4a6   :  { %v3321_v51 = vpop.f32.mrf.mxu0 }
 0x4a7   :  { %v3322_v48 = vadd.f32 %v3321_v51, %v11204_v43  ;;  %4304 = vmatmul.bf16.gmra.mxu2 %v3811_v17  ;;  %v3807_v51 = vsel %vm3680_vm1, %v3800_v59, %v3806_v20 }
 0x4a8   :  { %v3544_v36 = vpop.f32.mrf.mxu1 }
 0x4a9   :  { %v11794_v49 = vadd.f32 %v3534_v53, %v3322_v48  ;;  %v4470_v33 = vpop.f32.mrf.mxu3  ;;  %v3816_v53 = vrot.slane %v13976_v7, 1  ;;  %v3812_v7 = vrot.slane %v13916_v52, 1 }
 0x4aa   :  { %v4265_v39 = vpop.f32.mrf.mxu2 }
 0x4ab   :  { %v3817_v17 = vsel %vm3680_vm1, %v3810_v50, %v3816_v53 }
 0x4ae   :  { %v3324_v5 = vpop.f32.mrf.mxu0  ;;  %4512 = vmatmul.bf16.gmra.mxu3 %v3807_v51 }
 0x4af   :  { %v3325_v35 = vadd.f32 %v3324_v5, %v11227_v55 }
 0x4b0   :  { %v3547_v22 = vpop.f32.mrf.mxu1 }
 0x4b1   :  { %v11799_v31 = vadd.f32 %v3537_v1, %v3325_v35  ;;  %3363 = vmatmul.bf16.gmra.mxu0 %v13975_v2  ;;  %v4473_v1 = vpop.f32.mrf.mxu3 }
 0x4b2   :  { %v4267_v43 = vpop.f32.mrf.mxu2  ;;  %v11810_v33 = vadd.f32 %v4473_v1, %v4260_v56 }
 0x4b3   :  { %3586 = vmatmul.bf16.gmra.mxu1 %v11190_v26  ;;  %v13978_v43 = vld [vmem:[#allocation119_spill] sm:$0xff] }
 0x4b6   :  { %v3326_v21 = vpop.f32.mrf.mxu0 }
 0x4b7   :  { %v3327_v55 = vadd.f32 %v3326_v21, %v11235_v28  ;;  %4309 = vmatmul.bf16.gmra.mxu2 %v3817_v17  ;;  %v3813_v28 = vsel %vm3680_vm1, %v3806_v20, %v3812_v7 }
 0x4b8   :  { %v3549_v32 = vpop.f32.mrf.mxu1 }
 0x4b9   :  { %v11808_v5 = vadd.f32 %v3539_v0, %v3327_v55  ;;  %v4475_v59 = vpop.f32.mrf.mxu3  ;;  %v13979_v0 = vld [vmem:[#allocation81_spill] sm:$0xff] }
 0x4ba   :  { %v4270_v48 = vpop.f32.mrf.mxu2  ;;  %v11813_v26 = vadd.f32 %v4475_v59, %v4262_v40  ;;  %v3822_v21 = vrot.slane %v13979_v0, 1 }
 0x4bb   :  { %13977 = vst [vmem:[#allocation89_spill] sm:$0xff] %v11808_v5  ;;  %v13988_v5 = vld [vmem:[#allocation137_spill] sm:$0xff] }
 0x4bc   :  { %v3823_v17 = vsel %vm3680_vm1, %v3816_v53, %v3822_v21  ;;  %v13982_v53 = vld [vmem:[#allocation122_spill] sm:$0xff] }
 0x4be   :  { %v3329_v35 = vpop.f32.mrf.mxu0  ;;  %4517 = vmatmul.bf16.gmra.mxu3 %v3813_v28 }
 0x4c0   :  { %v3552_v51 = vpop.f32.mrf.mxu1 }
 0x4c1   :  { %3368 = vmatmul.bf16.gmra.mxu0 %v13978_v43  ;;  %v4478_v1 = vpop.f32.mrf.mxu3  ;;  %v9435_v51 = vld [vmem:[%s13478_s2 + $0x200] sm:$0xff] }
 0x4c2   :  { %v4272_v50 = vpop.f32.mrf.mxu2  ;;  %v11823_v48 = vadd.f32 %v4478_v1, %v4265_v39  ;;  %v9457_v39 = vld [vmem:[%s13480_s6 + $0x30] sm:$0xff]  ;;  %4624 = vmatpush.bf16.msra.mxu0 %v9435_v51 }
 0x4c3   :  { %3591 = vmatmul.bf16.gmra.mxu1 %v11225_v34 }
 0x4c4   :  { %5291 = vmatpush.bf16.msra.mxu1 %v9457_v39 }
 0x4c6   :  { %v3331_v56 = vpop.f32.mrf.mxu0 }
 0x4c7   :  { %v3332_v55 = vadd.f32 %v3331_v56, %v11272_v46  ;;  %4314 = vmatmul.bf16.gmra.mxu2 %v3823_v17  ;;  %v13983_v17 = vld [vmem:[#allocation135_spill] sm:$0xff] }
 0x4c8   :  { %v3554_v52 = vpop.f32.mrf.mxu1 }
 0x4c9   :  { %v11821_v40 = vadd.f32 %v3544_v36, %v3332_v55  ;;  %v4480_v28 = vpop.f32.mrf.mxu3  ;;  %v3818_v36 = vrot.slane %v13924_v62, 1  ;;  %v13984_v55 = vld [vmem:[#allocation85_spill] sm:$0xff] }
 0x4ca   :  { %v4275_v35 = vpop.f32.mrf.mxu2  ;;  %v3828_v1 = vrot.slane %v13984_v55, 1 }
 0x4cb   :  { %13980 = vst [vmem:[#allocation93_spill] sm:$0xff] %v11821_v40 }
 0x4cc   :  { %v3829_v52 = vsel %vm3680_vm1, %v3822_v21, %v3828_v1 }
 0x4ce   :  { %v3334_v59 = vpop.f32.mrf.mxu0 }
 0x4cf   :  { %v3335_v20 = vadd.f32 %v3334_v59, %v11300_v3  ;;  %v3819_v3 = vsel %vm3680_vm1, %v3812_v7, %v3818_v36  ;;  %v13985_v59 = vld [vmem:[#allocation138_spill] sm:$0xff]  ;;  %v13987_v7 = vld [vmem:[#allocation127_spill] sm:$0xff] }
 0x4d0   :  { %v3557_v46 = vpop.f32.mrf.mxu1  ;;  %4522 = vmatmul.bf16.gmra.mxu3 %v3819_v3  ;;  %v3824_v3 = vrot.slane %v13930_v8, 1 }
 0x4d1   :  { %v11829_v0 = vadd.f32 %v3547_v22, %v3335_v20  ;;  %3373 = vmatmul.bf16.gmra.mxu0 %v13982_v53  ;;  %v4483_v62 = vpop.f32.mrf.mxu3 }
 0x4d2   :  { %v4277_v56 = vpop.f32.mrf.mxu2  ;;  %v3825_v21 = vsel %vm3680_vm1, %v3818_v36, %v3824_v3  ;;  %v13990_v36 = vld [vmem:[#allocation5_spill] sm:$0xff] }
 0x4d3   :  { %13981 = vst [vmem:[#allocation69_spill] sm:$0xff] %v11829_v0  ;;  %3596 = vmatmul.bf16.gmra.mxu1 %v13983_v17 }
 0x4d6   :  { %v3336_v22 = vpop.f32.mrf.mxu0 }
 0x4d7   :  { %v3337_v20 = vadd.f32 %v3336_v22, %v13985_v59  ;;  %4319 = vmatmul.bf16.gmra.mxu2 %v3829_v52  ;;  %v13989_v22 = vld [vmem:[#allocation90_spill] sm:$0xff] }
 0x4d8   :  { %v3559_v0 = vpop.f32.mrf.mxu1  ;;  %v3834_v52 = vrot.slane %v13989_v22, 1  ;;  %v3830_v22 = vrot.slane %v13938_v18, 1  ;;  %v9523_v18 = vld [vmem:[%s13481_s4 + $0xf8] sm:$0xff] }
 0x4d9   :  { %v11841_v28 = vadd.f32 %v3549_v32, %v3337_v20  ;;  %v4485_v40 = vpop.f32.mrf.mxu3  ;;  %6493 = vmatpush.bf16.msrb.mxu2 %v9523_v18  ;;  %v13995_v18 = vld [vmem:[#allocation98_spill] sm:$0xff] }
 0x4da   :  { %v4280_v51 = vpop.f32.mrf.mxu2  ;;  %v11844_v39 = vadd.f32 %v4485_v40, %v4272_v50  ;;  %v3835_v59 = vsel %vm3680_vm1, %v3828_v1, %v3834_v52 }
 0x4db   :  { %13986 = vst [vmem:[#allocation33_spill] sm:$0xff] %v11841_v28 }
 0x4de   :  { %v3339_v34 = vpop.f32.mrf.mxu0 }
 0x4e0   :  { %v3562_v17 = vpop.f32.mrf.mxu1  ;;  %4527 = vmatmul.bf16.gmra.mxu3 %v3825_v21 }
 0x4e1   :  { %3378 = vmatmul.bf16.gmra.mxu0 %v13987_v7  ;;  %v4488_v34 = vpop.f32.mrf.mxu3 }
 0x4e2   :  { %v4282_v55 = vpop.f32.mrf.mxu2  ;;  %v11851_v20 = vadd.f32 %v4488_v34, %v4275_v35  ;;  %v13991_v35 = vld [vmem:[#allocation94_spill] sm:$0xff] }
 0x4e3   :  { %3601 = vmatmul.bf16.gmra.mxu1 %v13988_v5 }
 0x4e6   :  { %v3341_v32 = vpop.f32.mrf.mxu0 }
 0x4e7   :  { %4324 = vmatmul.bf16.gmra.mxu2 %v3835_v59  ;;  %v3831_v32 = vsel %vm3680_vm1, %v3824_v3, %v3830_v22  ;;  %v3840_v59 = vrot.slane %v13991_v35, 1  ;;  %v9531_v3 = vld [vmem:[%s13481_s4 + $0x138] sm:$0xff] }
 0x4e8   :  { %v3564_v50 = vpop.f32.mrf.mxu1  ;;  %6563 = vmatpush.bf16.msrb.mxu3 %v9531_v3  ;;  %v3846_v3 = vrot.slane %v13995_v18, 1  ;;  %v13998_v18 = vld [vmem:[#allocation6_spill] sm:$0xff] }
 0x4e9   :  { %v4490_v51 = vpop.f32.mrf.mxu3 }
 0x4ea   :  { %v4285_v40 = vpop.f32.mrf.mxu2  ;;  %v11857_v5 = vadd.f32 %v4490_v51, %v4277_v56 }
 0x4ee   :  { %v3344_v62 = vpop.f32.mrf.mxu0 }
 0x4ef   :  { %v3345_v8 = vadd.f32 %v3344_v62, %v11378_v6  ;;  %v3841_v6 = vsel %vm3680_vm1, %v3834_v52, %v3840_v59 }
 0x4f0   :  { %v3567_v21 = vpop.f32.mrf.mxu1  ;;  %4532 = vmatmul.bf16.gmra.mxu3 %v3831_v32 }
 0x4f1   :  { %v11854_v28 = vadd.f32 %v3557_v46, %v3345_v8  ;;  %3383 = vmatmul.bf16.gmra.mxu0 %v13990_v36  ;;  %v4493_v50 = vpop.f32.mrf.mxu3 }
 0x4f2   :  { %v4287_v1 = vpop.f32.mrf.mxu2 }
 0x4f3   :  { %3606 = vmatmul.bf16.gmra.mxu1 %v11337_v24 }
 0x4f6   :  { %v3346_v34 = vpop.f32.mrf.mxu0 }
 0x4f7   :  { %v3347_v46 = vadd.f32 %v3346_v34, %v11389_v42  ;;  %4329 = vmatmul.bf16.gmra.mxu2 %v3841_v6  ;;  %v3836_v6 = vrot.slane %v13943_v37, 1 }
 0x4f8   :  { %v11867_v62 = vpop.f32.mrf.mxu1 }
 0x4f9   :  { %v11865_v56 = vadd.f32 %v3559_v0, %v3347_v46  ;;  %13992 = vst [vmem:[#allocation74_spill] sm:$0xff] %v11867_v62  ;;  %v4495_v51 = vpop.f32.mrf.mxu3  ;;  %v13994_v0 = vld [vmem:[#allocation8_spill] sm:$0xff]  ;;  %v3837_v50 = vsel %vm3680_vm1, %v3830_v22, %v3836_v6  ;;  %v13997_v62 = vld [vmem:[#allocation141_spill] sm:$0xff] }
 0x4fa   :  { %v4290_v8 = vpop.f32.mrf.mxu2  ;;  %v11879_v35 = vadd.f32 %v4495_v51, %v4282_v55 }
 0x4fe   :  { %v3349_v52 = vpop.f32.mrf.mxu0 }
 0x4ff   :  { %v3350_v42 = vadd.f32 %v3349_v52, %v11400_v15  ;;  %v3847_v15 = vsel %vm3680_vm1, %v3840_v59, %v3846_v3 }
 0x500   :  { %v3572_v34 = vpop.f32.mrf.mxu1  ;;  %4537 = vmatmul.bf16.gmra.mxu3 %v3837_v50 }
 0x501   :  { %v11876_v32 = vadd.f32 %v3562_v17, %v3350_v42  ;;  %3388 = vmatmul.bf16.gmra.mxu0 %v13994_v0  ;;  %v4498_v17 = vpop.f32.mrf.mxu3 }
 0x502   :  { %v4292_v46 = vpop.f32.mrf.mxu2  ;;  %v11886_v52 = vadd.f32 %v4498_v17, %v4285_v40  ;;  %v2714_v40 = vpack.c.b16 %v11392_v14, %v11392_v14 }
 0x503   :  { %13993 = vst [vmem:[#allocation36_spill] sm:$0xff] %v11876_v32  ;;  %3611 = vmatmul.bf16.gmra.mxu1 %v11374_v29  ;;  %v13996_v46 = vld [vmem:[#allocation140_spill] sm:$0xff] }
 0x504   :  { %v2448_v22 = vadd.f32 %v13997_v62, %v13996_v46  ;;  %v13999_v62 = vld [vmem:[#allocation103_spill] sm:$0xff] }
 0x506   :  { %v3351_v8 = vpop.f32.mrf.mxu0  ;;  %v2661_v17 = vadd.f32 %v11408_v12, %v2448_v22  ;;  %v14001_v22 = vld [vmem:[#allocation9_spill] sm:$0xff] }
 0x507   :  { %4334 = vmatmul.bf16.gmra.mxu2 %v3847_v15  ;;  %v3842_v8 = vrot.slane %v13948_v19, 1 }
 0x508   :  { %v3574_v55 = vpop.f32.mrf.mxu1 }
 0x509   :  { %v4500_v32 = vpop.f32.mrf.mxu3  ;;  %v3852_v55 = vrot.slane %v13999_v62, 1 }
 0x50a   :  { %v4295_v42 = vpop.f32.mrf.mxu2  ;;  %v11894_v50 = vadd.f32 %v4500_v32, %v4287_v1 }
 0x50b   :  { %v3853_v1 = vsel %vm3680_vm1, %v3846_v3, %v3852_v55 }
 0x50e   :  { %v3354_v51 = vpop.f32.mrf.mxu0 }
 0x50f   :  { %v3355_v37 = vadd.f32 %v3354_v51, %v11414_v30  ;;  %v3843_v30 = vsel %vm3680_vm1, %v3836_v6, %v3842_v8 }
 0x510   :  { %v3577_v59 = vpop.f32.mrf.mxu1  ;;  %4542 = vmatmul.bf16.gmra.mxu3 %v3843_v30 }
 0x511   :  { %v11891_v29 = vadd.f32 %v3567_v21, %v3355_v37  ;;  %3393 = vmatmul.bf16.gmra.mxu0 %v13998_v18  ;;  %v3144_v21 = vadd.f32 %v11421_v41, %v2661_v17  ;;  %v4503_v14 = vpop.f32.mrf.mxu3  ;;  %v3848_v59 = vrot.slane %v13952_v4, 1  ;;  %v14004_v4 = vld [vmem:[#allocation10_spill] sm:$0xff] }
 0x512   :  { %v4297_v15 = vpop.f32.mrf.mxu2  ;;  %v3622_v14 = vld [vmem:[%s13479_s0 + $0x8] sm:$0xe] }
 0x513   :  { %3616 = vmatmul.bf16.gmra.mxu1 %v2714_v40  ;;  %v3849_v3 = vsel %vm3680_vm1, %v3842_v8, %v3848_v59  ;;  %v14002_v15 = vld [vmem:[#allocation107_spill] sm:$0xff] }
 0x514   :  { %v3858_v17 = vrot.slane %v14002_v15, 1 }
 0x516   :  { %v3356_v42 = vpop.f32.mrf.mxu0  ;;  %v3859_v62 = vsel %vm3680_vm1, %v3852_v55, %v3858_v17  ;;  %v2458_v55 = vadd.f32 %v11404_v61, %v11402_v38 }
 0x517   :  { %v11904_v32 = vadd.f32 %v3356_v42, %v3144_v21  ;;  %4339 = vmatmul.bf16.gmra.mxu2 %v3853_v1  ;;  %v2713_v1 = vpack.c.b16 %v14004_v4, %v14004_v4  ;;  %v14006_v4 = vld [vmem:[#allocation13_spill] sm:$0xff] }
 0x518   :  { %v11906_v51 = vpop.f32.mrf.mxu1 }
 0x519   :  { %14000 = vst [vmem:[#allocation97_spill] sm:$0xff] %v11906_v51  ;;  %v4505_v6 = vpop.f32.mrf.mxu3 }
 0x51a   :  { %v4300_v19 = vpop.f32.mrf.mxu2  ;;  %v3676_v6 = vunpack.c.l.b16 %v3622_v14 }
 0x51e   :  { %v3359_v37 = vpop.f32.mrf.mxu0 }
 0x51f   :  { %v3360_v12 = vadd.f32 %v3359_v37, %v11432_v58  ;;  %v9456_v58 = vld [vmem:[%s13480_s6 + $0x28] sm:$0xff] }
 0x520   :  { %v3582_v41 = vpop.f32.mrf.mxu1  ;;  %4547 = vmatmul.bf16.gmra.mxu3 %v3849_v3  ;;  %5292 = vmatpush.bf16.msra.mxu1 %v9456_v58  ;;  %v2671_v3 = vadd.f32 %v11438_v10, %v2458_v55 }
 0x521   :  { %v11909_v46 = vadd.f32 %v3572_v34, %v3360_v12  ;;  %3398 = vmatmul.bf16.gmra.mxu0 %v14001_v22  ;;  %v4508_v34 = vpop.f32.mrf.mxu3  ;;  %v3854_v12 = vrot.slane %v13959_v63, 1 }
 0x522   :  { %v4302_v40 = vpop.f32.mrf.mxu2  ;;  %v3154_v58 = vadd.f32 %v11448_v16, %v2671_v3 }
 0x523   :  { %v3855_v15 = vsel %vm3680_vm1, %v3848_v59, %v3854_v12  ;;  %v3688_v59 = vrot.slane %v9880_v9, 1 }
 0x526   :  { %v3361_v30 = vpop.f32.mrf.mxu0 }
 0x527   :  { %4344 = vmatmul.bf16.gmra.mxu2 %v3859_v62  ;;  %v14005_v30 = vld [vmem:[#allocation112_spill] sm:$0xff] }
 0x528   :  { %v11919_v21 = vpop.f32.mrf.mxu1  ;;  %v3864_v62 = vrot.slane %v14005_v30, 1  ;;  %v3860_v30 = vrot.slane %v13967_v27, 1 }
 0x529   :  { %14003 = vst [vmem:[#allocation101_spill] sm:$0xff] %v11919_v21  ;;  %v4510_v19 = vpop.f32.mrf.mxu3 }
 0x52a   :  { %v4305_v42 = vpop.f32.mrf.mxu2  ;;  %v3865_v38 = vsel %vm3680_vm1, %v3858_v17, %v3864_v62  ;;  %v3861_v9 = vsel %vm3680_vm1, %v3854_v12, %v3860_v30 }
 0x52e   :  { %v3364_v8 = vpop.f32.mrf.mxu0 }
 0x52f   :  { %v14007_v8 = vunpack.c.l.b16 %v14006_v4  ;;  %v14011_v4 = vld [vmem:[#allocation115_spill] sm:$0xff] }
 0x530   :  { %v3587_v37 = vpop.f32.mrf.mxu1  ;;  %4552 = vmatmul.bf16.gmra.mxu3 %v3855_v15 }
 0x531   :  { %3403 = vmatmul.bf16.gmra.mxu0 %v2713_v1  ;;  %v3679_v19 = vpack.c.b16 %v14007_v8, %v3676_v6  ;;  %v4513_v63 = vpop.f32.mrf.mxu3  ;;  %v2463_v6 = vadd.f32 %v11418_v45, %v11416_v54  ;;  %v3870_v8 = vrot.slane %v14011_v4, 1  ;;  %v14017_v4 = vld [vmem:[#allocation118_spill] sm:$0xff] }
 0x532   :  { %v4307_v40 = vpop.f32.mrf.mxu2 }
 0x533   :  { %v3687_v10 = vrot.slane %v3679_v19, 1 }
 0x535   :  { %v3689_v16 = vsel %vm3680_vm1, %v3687_v10, %v3688_v59 }
 0x536   :  { %v3366_v34 = vpop.f32.mrf.mxu0 }
 0x537   :  { %v11936_v61 = vadd.f32 %v3366_v34, %v3154_v58  ;;  %4349 = vmatmul.bf16.gmra.mxu2 %v3865_v38  ;;  %v2676_v34 = vadd.f32 %v11446_v13, %v2463_v6  ;;  %v3871_v38 = vsel %vm3680_vm1, %v3864_v62, %v3870_v8  ;;  %v3694_v13 = vrot.slane %v9930_v60, 1  ;;  %v9530_v62 = vld [vmem:[%s13481_s4 + $0x130] sm:$0xff] }
 0x538   :  { %v11938_v1 = vpop.f32.mrf.mxu1  ;;  %v3866_v6 = vrot.slane %v13971_v47, 1  ;;  %6564 = vmatpush.bf16.msrb.mxu3 %v9530_v62 }
 0x539   :  { %14008 = vst [vmem:[#allocation77_spill] sm:$0xff] %v11936_v61  ;;  %v4515_v3 = vpop.f32.mrf.mxu3  ;;  %v3159_v19 = vadd.f32 %v11459_v57, %v2676_v34  ;;  %v3695_v10 = vsel %vm3680_vm1, %v3688_v59, %v3694_v13  ;;  %v9522_v57 = vld [vmem:[%s13481_s4 + $0xf0] sm:$0xff] }
 0x53a   :  { %14009 = vst [vmem:[#allocation39_spill] sm:$0xff] %v11938_v1  ;;  %v4310_v14 = vpop.f32.mrf.mxu2  ;;  %6494 = vmatpush.bf16.msrb.mxu2 %v9522_v57  ;;  %v14020_v57 = vld [vmem:[#allocation17_spill] sm:$0xff] }
 0x53b   :  { %v3700_v62 = vrot.slane %v14020_v57, 1 }
 0x53e   :  { %v3369_v55 = vpop.f32.mrf.mxu0 }
 0x53f   :  { %v3370_v37 = vadd.f32 %v3369_v55, %v11455_v44 }
 0x540   :  { %v3592_v15 = vpop.f32.mrf.mxu1  ;;  %4557 = vmatmul.bf16.gmra.mxu3 %v3861_v9  ;;  %v3867_v9 = vsel %vm3680_vm1, %v3860_v30, %v3866_v6  ;;  %v3701_v30 = vsel %vm3680_vm1, %v3694_v13, %v3700_v62  ;;  %v14027_v13 = vld [vmem:[#allocation153_spill] sm:$0xff] }
 0x541   :  { %v11945_v17 = vadd.f32 %v3582_v41, %v3370_v37  ;;  %4625 = vmatmul.bf16.vlgmr.msra.gmra.mxu0 %v3689_v16  ;;  %v4518_v45 = vpop.f32.mrf.mxu3  ;;  %v14014_v16 = vld [vmem:[#allocation144_spill] sm:$0xff] }
 0x542   :  { %v4312_v58 = vpop.f32.mrf.mxu2  ;;  %v11955_v41 = vadd.f32 %v4518_v45, %v4305_v42  ;;  %v14015_v42 = vld [vmem:[#allocation145_spill] sm:$0xff] }
 0x543   :  { %14010 = vst [vmem:[#allocation102_spill] sm:$0xff] %v11945_v17  ;;  %v2468_v37 = vadd.f32 %v14015_v42, %v14014_v16  ;;  %v14016_v58 = vld [vmem:[#allocation147_spill] sm:$0xff] }
 0x544   :  { %v14021_v42 = vld [vmem:[#allocation151_spill] sm:$0xff] }
 0x545   :  { %v2681_v34 = vadd.f32 %v14016_v58, %v2468_v37  ;;  %v14022_v58 = vld [vmem:[#allocation146_spill] sm:$0xff] }
 0x546   :  { %v3371_v44 = vpop.f32.mrf.mxu0 }
 0x547   :  { %v11953_v54 = vadd.f32 %v3371_v44, %v3159_v19  ;;  %4354 = vmatmul.bf16.gmra.mxu2 %v3871_v38  ;;  %v3876_v19 = vrot.slane %v14017_v4, 1  ;;  %v14018_v44 = vld [vmem:[#allocation150_spill] sm:$0xff] }
 0x548   :  { %v11957_v27 = vpop.f32.mrf.mxu1  ;;  %v3164_v38 = vadd.f32 %v14018_v44, %v2681_v34  ;;  %v14023_v34 = vld [vmem:[#allocation152_spill] sm:$0xff] }
 0x549   :  { %14012 = vst [vmem:[#allocation82_spill] sm:$0xff] %v11953_v54  ;;  %v4520_v55 = vpop.f32.mrf.mxu3 }
 0x54a   :  { %14013 = vst [vmem:[#allocation42_spill] sm:$0xff] %v11957_v27  ;;  %v4315_v63 = vpop.f32.mrf.mxu2  ;;  %v11969_v3 = vadd.f32 %v4520_v55, %v4307_v40 }
 0x54b   :  { %v3877_v63 = vsel %vm3680_vm1, %v3870_v8, %v3876_v19 }
 0x54e   :  { %v3374_v12 = vpop.f32.mrf.mxu0 }
 0x550   :  { %v3597_v60 = vpop.f32.mrf.mxu1  ;;  %4562 = vmatmul.bf16.gmra.mxu3 %v3867_v9  ;;  %v2473_v9 = vadd.f32 %v14023_v34, %v14022_v58 }
 0x551   :  { %4630 = vmatmul.bf16.gmra.mxu0 %v3695_v10 }
 0x552   :  { %v4317_v59 = vpop.f32.mrf.mxu2 }
 0x553   :  { %v4523_v40 = vpop.f32.mrf.mxu3 }
 0x554   :  { %v11979_v10 = vadd.f32 %v4523_v40, %v4310_v14  ;;  %v3872_v14 = vrot.slane %v13975_v2, 1  ;;  %v14026_v40 = vld [vmem:[#allocation121_spill] sm:$0xff]  ;;  %v14030_v2 = vld [vmem:[#allocation19_spill] sm:$0xff] }
 0x556   :  { %v3376_v45 = vpop.f32.mrf.mxu0 }
 0x557   :  { %v11977_v12 = vadd.f32 %v3376_v45, %v3164_v38  ;;  %4359 = vmatmul.bf16.gmra.mxu2 %v3877_v63  ;;  %v14025_v38 = vld [vmem:[#allocation149_spill] sm:$0xff]  ;;  %v3873_v63 = vsel %vm3680_vm1, %v3866_v6, %v3872_v14 }
 0x558   :  { %v3599_v47 = vpop.f32.mrf.mxu1  ;;  %v2686_v45 = vadd.f32 %v14025_v38, %v2473_v9 }
 0x559   :  { %14019 = vst [vmem:[#allocation106_spill] sm:$0xff] %v11977_v12  ;;  %v3882_v47 = vrot.slane %v14026_v40, 1 }
 0x55a   :  { %v4320_v55 = vpop.f32.mrf.mxu2  ;;  %v3169_v57 = vadd.f32 %v14027_v13, %v2686_v45  ;;  %v14031_v13 = vld [vmem:[#allocation126_spill] sm:$0xff] }
 0x55b   :  { %v4525_v60 = vpop.f32.mrf.mxu3 }
 0x55e   :  { %v3379_v16 = vpop.f32.mrf.mxu0 }
 0x55f   :  { %v3380_v37 = vadd.f32 %v3379_v16, %v14021_v42  ;;  %v3883_v42 = vsel %vm3680_vm1, %v3876_v19, %v3882_v47 }
 0x560   :  { %v3602_v4 = vpop.f32.mrf.mxu1  ;;  %4567 = vmatmul.bf16.gmra.mxu3 %v3873_v63  ;;  %v3878_v63 = vrot.slane %v13978_v43, 1 }
 0x561   :  { %v11986_v8 = vadd.f32 %v3592_v15, %v3380_v37  ;;  %4635 = vmatmul.bf16.gmra.mxu0 %v3701_v30  ;;  %v3706_v37 = vrot.slane %v14030_v2, 1 }
 0x562   :  { %v4322_v44 = vpop.f32.mrf.mxu2  ;;  %v3879_v40 = vsel %vm3680_vm1, %v3872_v14, %v3878_v63 }
 0x563   :  { %14024 = vst [vmem:[#allocation110_spill] sm:$0xff] %v11986_v8  ;;  %v4528_v15 = vpop.f32.mrf.mxu3  ;;  %v3707_v6 = vsel %vm3680_vm1, %v3700_v62, %v3706_v37  ;;  %v14039_v8 = vld [vmem:[#allocation156_spill] sm:$0xff] }
 0x566   :  { %v3381_v16 = vpop.f32.mrf.mxu0 }
 0x567   :  { %v11994_v60 = vadd.f32 %v3381_v16, %v3169_v57  ;;  %4364 = vmatmul.bf16.gmra.mxu2 %v3883_v42  ;;  %v3888_v57 = vrot.slane %v14031_v13, 1 }
 0x568   :  { %v11996_v30 = vpop.f32.mrf.mxu1 }
 0x569   :  { %14028 = vst [vmem:[#allocation86_spill] sm:$0xff] %v11994_v60  ;;  %v3889_v42 = vsel %vm3680_vm1, %v3882_v47, %v3888_v57  ;;  %v14034_v47 = vld [vmem:[#allocation148_spill] sm:$0xff]  ;;  %v14038_v60 = vld [vmem:[#allocation130_spill] sm:$0xff] }
 0x56a   :  { %14029 = vst [vmem:[#allocation46_spill] sm:$0xff] %v11996_v30  ;;  %v4325_v58 = vpop.f32.mrf.mxu2  ;;  %v3884_v30 = vrot.slane %v13982_v53, 1  ;;  %v14041_v53 = vld [vmem:[#allocation23_spill] sm:$0xff] }
 0x56b   :  { %v4530_v9 = vpop.f32.mrf.mxu3  ;;  %v14032_v58 = vld [vmem:[#allocation21_spill] sm:$0xff] }
 0x56c   :  { %v12000_v38 = vadd.f32 %v4530_v9, %v4317_v59  ;;  %v9455_v59 = vld [vmem:[%s13480_s6 + $0x20] sm:$0xff]  ;;  %v3712_v43 = vrot.slane %v14032_v58, 1  ;;  %v14033_v9 = vld [vmem:[#allocation155_spill] sm:$0xff]  ;;  %v14037_v58 = vld [vmem:[#allocation154_spill] sm:$0xff]  ;;  %v3885_v27 = vsel %vm3680_vm1, %v3878_v63, %v3884_v30 }
 0x56d   :  { %5293 = vmatpush.bf16.msra.mxu1 %v9455_v59 }
 0x56e   :  { %v3384_v34 = vpop.f32.mrf.mxu0 }
 0x570   :  { %v3607_v45 = vpop.f32.mrf.mxu1  ;;  %4572 = vmatmul.bf16.gmra.mxu3 %v3879_v40 }
 0x571   :  { %4640 = vmatmul.bf16.gmra.mxu0 %v3707_v6  ;;  %v3713_v6 = vsel %vm3680_vm1, %v3706_v37, %v3712_v43  ;;  %v3894_v37 = vrot.slane %v14038_v60, 1 }
 0x572   :  { %v4327_v19 = vpop.f32.mrf.mxu2 }
 0x573   :  { %v4533_v15 = vpop.f32.mrf.mxu3 }
 0x574   :  { %v12006_v2 = vadd.f32 %v4533_v15, %v4320_v55 }
 0x576   :  { %v3386_v16 = vpop.f32.mrf.mxu0 }
 0x577   :  { %4369 = vmatmul.bf16.gmra.mxu2 %v3889_v42  ;;  %v14035_v16 = vld [vmem:[#allocation32_spill] sm:$0xff] }
 0x578   :  { %v3609_v62 = vpop.f32.mrf.mxu1  ;;  %v2483_v42 = vadd.f32 %v14035_v16, %v14034_v47  ;;  %v14042_v16 = vld [vmem:[#allocation157_spill] sm:$0xff] }
 0x57a   :  { %v4330_v34 = vpop.f32.mrf.mxu2  ;;  %v2696_v59 = vadd.f32 %v14037_v58, %v2483_v42  ;;  %v3890_v58 = vrot.slane %v13987_v7, 1 }
 0x57b   :  { %v4535_v13 = vpop.f32.mrf.mxu3 }
 0x57c   :  { %v12018_v15 = vadd.f32 %v4535_v13, %v4322_v44  ;;  %v3718_v13 = vrot.slane %v14041_v53, 1  ;;  %v14045_v53 = vld [vmem:[#allocation25_spill] sm:$0xff] }
 0x57d   :  { %v3724_v7 = vrot.slane %v14045_v53, 1 }
 0x57e   :  { %v3389_v14 = vpop.f32.mrf.mxu0  ;;  %v3719_v63 = vsel %vm3680_vm1, %v3712_v43, %v3718_v13 }
 0x57f   :  { %v3390_v40 = vadd.f32 %v3389_v14, %v14033_v9  ;;  %v3179_v14 = vadd.f32 %v14039_v8, %v2696_v59  ;;  %v3891_v59 = vsel %vm3680_vm1, %v3884_v30, %v3890_v58 }
 0x580   :  { %v3612_v62 = vpop.f32.mrf.mxu1  ;;  %4577 = vmatmul.bf16.gmra.mxu3 %v3885_v27 }
 0x581   :  { %v12016_v55 = vadd.f32 %v3602_v4, %v3390_v40  ;;  %4645 = vmatmul.bf16.gmra.mxu0 %v3713_v6  ;;  %v3895_v4 = vsel %vm3680_vm1, %v3888_v57, %v3894_v37 }
 0x582   :  { %v12025_v1 = vpop.f32.mrf.mxu2 }
 0x583   :  { %14036 = vst [vmem:[#allocation111_spill] sm:$0xff] %v12016_v55  ;;  %v4538_v44 = vpop.f32.mrf.mxu3 }
 0x584   :  { %v9454_v44 = vld [vmem:[%s13480_s6 + $0x18] sm:$0xff] }
 0x585   :  { %5294 = vmatpush.bf16.msra.mxu1 %v9454_v44 }
 0x586   :  { %v3391_v9 = vpop.f32.mrf.mxu0 }
 0x587   :  { %v12028_v6 = vadd.f32 %v3391_v9, %v3179_v14  ;;  %4374 = vmatmul.bf16.gmra.mxu2 %v3895_v4  ;;  %v14044_v14 = vld [vmem:[#allocation132_spill] sm:$0xff] }
 0x588   :  { %v3614_v40 = vpop.f32.mrf.mxu1  ;;  %v3900_v9 = vrot.slane %v14044_v14, 1 }
 0x589   :  { %14040 = vst [vmem:[#allocation91_spill] sm:$0xff] %v12028_v6 }
 0x58a   :  { %v4335_v42 = vpop.f32.mrf.mxu2  ;;  %v3901_v43 = vsel %vm3680_vm1, %v3894_v37, %v3900_v9  ;;  %v9453_v37 = vld [vmem:[%s13480_s6 + $0x10] sm:$0xff] }
 0x58b   :  { %v4540_v8 = vpop.f32.mrf.mxu3  ;;  %5295 = vmatpush.bf16.msra.mxu1 %v9453_v37 }
 0x58c   :  { %v12035_v62 = vadd.f32 %v4540_v8, %v4327_v19  ;;  %v9452_v8 = vld [vmem:[%s13480_s6 + $0x8] sm:$0xff] }
 0x58e   :  { %v3394_v47 = vpop.f32.mrf.mxu0 }
 0x58f   :  { %v3395_v60 = vadd.f32 %v3394_v47, %v14042_v16  ;;  %5296 = vmatpush.bf16.msra.mxu1 %v9452_v8 }
 0x590   :  { %v3617_v57 = vpop.f32.mrf.mxu1  ;;  %4582 = vmatmul.bf16.gmra.mxu3 %v3891_v59 }
 0x591   :  { %v12033_v27 = vadd.f32 %v3607_v45, %v3395_v60  ;;  %4650 = vmatmul.bf16.gmra.mxu0 %v3719_v63  ;;  %v3725_v63 = vsel %vm3680_vm1, %v3718_v13, %v3724_v7  ;;  %v3896_v60 = vrot.slane %v13990_v36, 1  ;;  %v14046_v57 = vld [vmem:[#allocation134_spill] sm:$0xff]  ;;  %v9529_v36 = vld [vmem:[%s13481_s4 + $0x128] sm:$0xff] }
 0x592   :  { %v4337_v47 = vpop.f32.mrf.mxu2  ;;  %v3906_v59 = vrot.slane %v14046_v57, 1  ;;  %6565 = vmatpush.bf16.msrb.mxu3 %v9529_v36 }
 0x593   :  { %14043 = vst [vmem:[#allocation51_spill] sm:$0xff] %v12033_v27  ;;  %v4543_v45 = vpop.f32.mrf.mxu3 }
 0x594   :  { %v12044_v19 = vadd.f32 %v4543_v45, %v4330_v34  ;;  %v3897_v34 = vsel %vm3680_vm1, %v3890_v58, %v3896_v60  ;;  %v3907_v14 = vsel %vm3680_vm1, %v3900_v9, %v3906_v59  ;;  %v9451_v58 = vld [vmem:[%s13480_s6] sm:$0xff] }
 0x595   :  { %5297 = vmatpush.bf16.msra.mxu1 %v9451_v58  ;;  %v9443_v9 = vld [vmem:[%s13483_s1] sm:$0xff] }
 0x596   :  { %v3396_v4 = vpop.f32.mrf.mxu0 }
 0x597   :  { %4379 = vmatmul.bf16.gmra.mxu2 %v3901_v43  ;;  %v9521_v4 = vld [vmem:[%s13481_s4 + $0xe8] sm:$0xff]  ;;  %v14047_v43 = vld [vmem:[#allocation28_spill] sm:$0xff] }
 0x598   :  { %v3619_v40 = vpop.f32.mrf.mxu1  ;;  %6495 = vmatpush.bf16.msrb.mxu2 %v9521_v4  ;;  %v3730_v44 = vrot.slane %v14047_v43, 1  ;;  %5298 = vmatmul.bf16.vlgmr.msra.gmra.mxu1 %v9443_v9  ;;  %v14049_v4 = vld [vmem:[#allocation31_spill] sm:$0xff]  ;;  %v12090_v43 = vld [vmem:[%s13482_s3] ss:$0 sm:$0xff]  ;;  %v3908_v9 = vrot.slane %v13998_v18, 1  ;;  %v9518_v18 = vld [vmem:[%s13481_s4 + $0xd0] sm:$0xff] }
 0x599   :  { %v3736_v36 = vrot.slane %v14049_v4, 1 }
 0x59a   :  { %v4340_v42 = vpop.f32.mrf.mxu2  ;;  %v3731_v53 = vsel %vm3680_vm1, %v3724_v7, %v3730_v44  ;;  %v9444_v7 = vld [vmem:[%s13483_s1 + $0x8] sm:$0xff] }
 0x59b   :  { %v12048_v16 = vpop.f32.mrf.mxu3  ;;  %v3737_v58 = vsel %vm3680_vm1, %v3730_v44, %v3736_v36  ;;  %v9588_v44 = vmov 0  }
 0x59c   :  { %5340 = vst [vmem:[#allocation3 + $0x8] sm:$0xf] %v9588_v44 }
 0x59d   :  { %5341 = vst [vmem:[#allocation3 + $0xc] sm:$0xff] %v9588_v44 }
 0x59e   :  { %v3399_v30 = vpop.f32.mrf.mxu0  ;;  %5342 = vst [vmem:[#allocation3 + $0x14] sm:$0xf] %v9588_v44 }
 0x59f   :  { %v3902_v30 = vrot.slane %v13994_v0, 1  ;;  %5343 = vst [vmem:[#allocation3 + $0x18] sm:$0xff] %v9588_v44 }
 0x5a0   :  { %4587 = vmatmul.bf16.gmra.mxu3 %v3897_v34  ;;  %v14048_v34 = vld [vmem:[#allocation136_spill] sm:$0xff]  ;;  %5345 = vst [vmem:[#allocation3 + $0x24] sm:$0xff] %v9588_v44 }
 0x5a1   :  { %4655 = vmatmul.bf16.gmra.mxu0 %v3725_v63  ;;  %v3903_v37 = vsel %vm3680_vm1, %v3896_v60, %v3902_v30  ;;  %v3912_v8 = vrot.slane %v14048_v34, 1  ;;  %v14051_v34 = vld [vmem:[#allocation35_spill] sm:$0xff]  ;;  %5339 = vst [vmem:[#allocation3] sm:$0xff] %v9588_v44 }
 0x5a2   :  { %v12074_v47 = vpop.f32.mrf.mxu2  ;;  %5344 = vst [vmem:[#allocation3 + $0x20] sm:$0xf] %v9588_v44 }
 0x5a3   :  { %v4548_v45 = vpop.f32.mrf.mxu3  ;;  %5346 = vst [vmem:[#allocation3 + $0x2c] sm:$0xf] %v9588_v44 }
 0x5a4   :  { %5347 = vst [vmem:[#allocation3 + $0x30] sm:$0xff] %v9588_v44 }
 0x5a5   :  { %5348 = vst [vmem:[#allocation3 + $0x38] sm:$0xf] %v9588_v44 }
 0x5a6   :  { %v3401_v13 = vpop.f32.mrf.mxu0  ;;  %5349 = vst [vmem:[#allocation3 + $0x3c] sm:$0xff] %v9588_v44 }
 0x5a7   :  { %4384 = vmatmul.bf16.gmra.mxu2 %v3907_v14  ;;  %v3913_v13 = vsel %vm3680_vm1, %v3906_v59, %v3912_v8  ;;  %5350 = vst [vmem:[#allocation3 + $0x44] sm:$0xf] %v9588_v44 }
 0x5a8   :  { %5303 = vmatmul.bf16.gmra.mxu1 %v9444_v7  ;;  %v14052_v7 = vld [vmem:[#allocation16_spill] sm:$0xff]  ;;  %5351 = vst [vmem:[#allocation3 + $0x48] sm:$0xff] %v9588_v44 }
 0x5a9   :  { %5352 = vst [vmem:[#allocation3 + $0x50] sm:$0xf] %v9588_v44 }
 0x5aa   :  { %v12080_v14 = vpop.f32.mrf.mxu2  ;;  %5353 = vst [vmem:[#allocation3 + $0x54] sm:$0xff] %v9588_v44 }
 0x5ab   :  { %v4550_v63 = vpop.f32.mrf.mxu3  ;;  %5354 = vst [vmem:[#allocation3 + $0x5c] sm:$0xf] %v9588_v44 }
 0x5ac   :  { %v14050_v63 = vld [vmem:[#allocation139_spill] sm:$0xff]  ;;  %5355 = vst [vmem:[#allocation3 + $0x60] sm:$0xff] %v9588_v44 }
 0x5ad   :  { %5356 = vst [vmem:[#allocation3 + $0x68] sm:$0xf] %v9588_v44 }
 0x5ae   :  { %v3404_v40 = vpop.f32.mrf.mxu0  ;;  %5357 = vst [vmem:[#allocation3 + $0x6c] sm:$0xff] %v9588_v44 }
 0x5af   :  { %5358 = vst [vmem:[#allocation3 + $0x74] sm:$0xf] %v9588_v44 }
 0x5b0   :  { %4592 = vmatmul.bf16.gmra.mxu3 %v3903_v37  ;;  %v3918_v37 = vrot.slane %v14050_v63, 1  ;;  %v14054_v63 = vld [vmem:[#allocation63_spill] sm:$0xff]  ;;  %5359 = vst [vmem:[#allocation3 + $0x78] sm:$0xff] %v9588_v44 }
 0x5b1   :  { %4660 = vmatmul.bf16.gmra.mxu0 %v3731_v53  ;;  %v3909_v53 = vsel %vm3680_vm1, %v3902_v30, %v3908_v9  ;;  %5360 = vst [vmem:[#allocation3 + $0x80] sm:$0xf] %v9588_v44 }
 0x5b2   :  { %v4347_v45 = vpop.f32.mrf.mxu2  ;;  %5361 = vst [vmem:[#allocation3 + $0x84] sm:$0xff] %v9588_v44 }
 0x5b3   :  { %v4553_v60 = vpop.f32.mrf.mxu3  ;;  %5362 = vst [vmem:[#allocation3 + $0x8c] sm:$0xf] %v9588_v44 }
 0x5b4   :  { %v12092_v59 = vadd.f32 %v4553_v60, %v4340_v42  ;;  %v3919_v42 = vsel %vm3680_vm1, %v3912_v8, %v3918_v37  ;;  %5363 = vst [vmem:[#allocation3 + $0x90] sm:$0xff] %v9588_v44 }
 0x5b5   :  { %5364 = vst [vmem:[#allocation3 + $0x98] sm:$0xf] %v9588_v44 }
 0x5b6   :  { %v3406_v57 = vpop.f32.mrf.mxu0  ;;  %5365 = vst [vmem:[#allocation3 + $0x9c] sm:$0xff] %v9588_v44 }
 0x5b7   :  { %4389 = vmatmul.bf16.gmra.mxu2 %v3913_v13  ;;  %v3742_v57 = vrot.slane %v14051_v34, 1  ;;  %v14055_v34 = vld [vmem:[#allocation159_spill] sm:$0xff]  ;;  %5366 = vst [vmem:[#allocation3 + $0xa4] sm:$0xf] %v9588_v44 }
 0x5b8   :  { %5367 = vst [vmem:[#allocation3 + $0xa8] sm:$0xff] %v9588_v44 }
 0x5b9   :  { %v3743_v4 = vsel %vm3680_vm1, %v3736_v36, %v3742_v57  ;;  %5368 = vst [vmem:[#allocation3 + $0xb0] sm:$0xf] %v9588_v44 }
 0x5ba   :  { %v12105_v13 = vpop.f32.mrf.mxu2  ;;  %5369 = vst [vmem:[#allocation3 + $0xb4] sm:$0xff] %v9588_v44 }
 0x5bb   :  { %v4555_v36 = vpop.f32.mrf.mxu3  ;;  %5370 = vst [vmem:[#allocation3 + $0xbc] sm:$0xf] %v9588_v44 }
 0x5bc   :  { %5371 = vst [vmem:[#allocation3 + $0xc0] sm:$0xff] %v9588_v44 }
 0x5bd   :  { %5372 = vst [vmem:[#allocation3 + $0xc8] sm:$0xf] %v9588_v44 }
 0x5be   :  { %v4626_v0 = vpop.f32.mrf.mxu0  ;;  %5373 = vst [vmem:[#allocation3 + $0xcc] sm:$0xff] %v9588_v44 }
 0x5bf   :  { %v14053_v0 = vld [vmem:[#allocation158_spill] sm:$0xff]  ;;  %5374 = vst [vmem:[#allocation3 + $0xd4] sm:$0xf] %v9588_v44 }
 0x5c0   :  { %4597 = vmatmul.bf16.gmra.mxu3 %v3909_v53  ;;  %5375 = vst [vmem:[#allocation3 + $0xd8] sm:$0xff] %v9588_v44 }
 0x5c1   :  { %4665 = vmatmul.bf16.gmra.mxu0 %v3737_v58  ;;  %5376 = vst [vmem:[#allocation3 + $0xe0] sm:$0xf] %v9588_v44 }
 0x5c2   :  { %v12121_v53 = vpop.f32.mrf.mxu2  ;;  %5377 = vst [vmem:[#allocation3 + $0xe4] sm:$0xff] %v9588_v44 }
 0x5c3   :  { %5378 = vst [vmem:[#allocation3 + $0xec] sm:$0xf] %v9588_v44 }
 0x5c4   :  { %5379 = vst [vmem:[#allocation3 + $0xf0] sm:$0xff] %v9588_v44 }
 0x5c5   :  { %5380 = vst [vmem:[#allocation3 + $0xf8] sm:$0xf] %v9588_v44 }
 0x5c6   :  { %v4628_v40 = vpop.f32.mrf.mxu0  ;;  %5381 = vst [vmem:[#allocation3 + $0xfc] sm:$0xff] %v9588_v44 }
 0x5c7   :  { %4394 = vmatmul.bf16.gmra.mxu2 %v3919_v42  ;;  %5382 = vst [vmem:[#allocation3 + $0x104] sm:$0xf] %v9588_v44 }
 0x5c8   :  { %5383 = vst [vmem:[#allocation3 + $0x108] sm:$0xff] %v9588_v44 }
 0x5c9   :  { %5384 = vst [vmem:[#allocation3 + $0x110] sm:$0xf] %v9588_v44 }
 0x5ca   :  { %5385 = vst [vmem:[#allocation3 + $0x114] sm:$0xff] %v9588_v44 }
 0x5cb   :  { %5386 = vst [vmem:[#allocation3 + $0x11c] sm:$0xf] %v9588_v44 }
 0x5cc   :  { %5387 = vst [vmem:[#allocation3 + $0x120] sm:$0xff] %v9588_v44 }
 0x5cd   :  { %5388 = vst [vmem:[#allocation3 + $0x128] sm:$0xf] %v9588_v44 }
 0x5ce   :  { %v4631_v30 = vpop.f32.mrf.mxu0  ;;  %5389 = vst [vmem:[#allocation3 + $0x12c] sm:$0x11] %v9588_v44 }
 0x5cf   :  { %v4632_v8 = vadd.f32 %v4631_v30, %v14052_v7  ;;  %5390 = vst [vmem:[#allocation3 + $0x134] sm:$0x1] %v9588_v44 }
 0x5d1   :  { %v4832_v58 = vadd.f32 %v4632_v8, %v14053_v0  ;;  %4670 = vmatmul.bf16.gmra.mxu0 %v3743_v4  ;;  %v14056_v4 = vld [vmem:[#allocation38_spill] sm:$0xff] }
 0x5d2   :  { %v3748_v7 = vrot.slane %v14056_v4, 1 }
 0x5d3   :  { %v4917_v60 = vadd.f32 %v12090_v43, %v4832_v58 }
 0x5d5   :  { %v4998_v45 = vmax.f32 %v4917_v60, 0.0  ;;  %v3749_v60 = vsel %vm3680_vm1, %v3742_v57, %v3748_v7 }
 0x5d6   :  { %v4633_v40 = vpop.f32.mrf.mxu0 }
 0x5d7   :  { %5079 = vst [vmem:[#allocation2 + $0x10] sm:$0xff] %v4998_v45  ;;  %v4634_v42 = vadd.f32 %v4633_v40, %v14054_v63  ;;  %4399 = vmatmul.bf16.gmra.mxu2 %v3918_v37  ;;  %v4558_v45 = vpop.f32.mrf.mxu3  ;;  %v12137_v37 = vpop.f32.mrf.mxu2  ;;  %v14057_v63 = vld [vmem:[#allocation45_spill] sm:$0xff] }
 0x5d9   :  { %v4833_v30 = vadd.f32 %v4634_v42, %v14055_v34  ;;  %v9445_v34 = vld [vmem:[%s13483_s1 + $0x10] sm:$0xff] }
 0x5da   :  { %5308 = vmatmul.bf16.gmra.mxu1 %v9445_v34 }
 0x5db   :  { %v4918_v8 = vadd.f32 %v12090_v43, %v4833_v30  ;;  %v12150_v30 = vadd.f32 %v4555_v36, %v12074_v47  ;;  %v14058_v36 = vld [vmem:[#allocation41_spill] sm:$0xff] }
 0x5dd   :  { %v4999_v0 = vmax.f32 %v4918_v8, 0.0  ;;  %v12154_v8 = vadd.f32 %v4558_v45, %v12080_v14  ;;  %v9519_v14 = vld [vmem:[%s13481_s4 + $0xd8] sm:$0xff]  ;;  %v13657_v45 = vrot.slane %v14058_v36, 1 }
 0x5de   :  { %v4636_v58 = vpop.f32.mrf.mxu0 }
 0x5df   :  { %5080 = vst [vmem:[#allocation2 + $0x18] sm:$0xff] %v4999_v0  ;;  %v4637_v40 = vadd.f32 %v4636_v58, %v11682_v23  ;;  %v4560_v0 = vpop.f32.mrf.mxu3  ;;  %v9520_v58 = vld [vmem:[%s13481_s4 + $0xe0] sm:$0xff] }
 0x5e0   :  { %6496 = vmatpush.bf16.msrb.mxu2 %v9520_v58  ;;  %v9446_v0 = vld [vmem:[%s13483_s1 + $0x18] sm:$0xff] }
 0x5e1   :  { %v4834_v42 = vadd.f32 %v4637_v40, %v14057_v63  ;;  %4675 = vmatmul.bf16.gmra.mxu0 %v3749_v60  ;;  %v3914_v60 = vrot.slane %v14001_v22, 1  ;;  %v4357_v40 = vpop.f32.mrf.mxu2  ;;  %v3755_v63 = vsel %vm3680_vm1, %v3748_v7, %v13657_v45  ;;  %v14060_v7 = vld [vmem:[#allocation27_spill] sm:$0xff] }
 0x5e3   :  { %v4919_v57 = vadd.f32 %v12090_v43, %v4834_v42  ;;  %v3915_v47 = vsel %vm3680_vm1, %v3908_v9, %v3914_v60 }
 0x5e4   :  { %4602 = vmatmul.bf16.gmra.mxu3 %v3915_v47  ;;  %6497 = vmatpush.bf16.msrb.mxu2 %v9519_v14 }
 0x5e5   :  { %v5000_v23 = vmax.f32 %v4919_v57, 0.0  ;;  %v14059_v57 = vld [vmem:[#allocation71_spill] sm:$0xff] }
 0x5e6   :  { %v4638_v4 = vpop.f32.mrf.mxu0 }
 0x5e7   :  { %5081 = vst [vmem:[#allocation2 + $0x20] sm:$0xff] %v5000_v23  ;;  %v4563_v42 = vpop.f32.mrf.mxu3 }
 0x5e8   :  { %v12183_v4 = vadd.f32 %v4563_v42, %v12105_v13  ;;  %6498 = vmatpush.bf16.msrb.mxu2 %v9518_v18  ;;  %v14061_v18 = vld [vmem:[#allocation47_spill] sm:$0xff] }
 0x5e9   :  { %v4360_v58 = vpop.f32.mrf.mxu2 }
 0x5ea   :  { %5313 = vmatmul.bf16.gmra.mxu1 %v9446_v0  ;;  %v9516_v0 = vld [vmem:[%s13481_s4 + $0xc0] sm:$0xff] }
 0x5ee   :  { %v5392_v22 = vld [vmem:[#allocation2 + $0x13] ss:$2 sm:$0xff]  ;;  %v4641_v9 = vpop.f32.mrf.mxu0 }
 0x5ef   :  { %v5393_v34 = vpack.c.bf16 %v5392_v22, %v5392_v22  ;;  %v4642_v23 = vadd.f32 %v4641_v9, %v14059_v57  ;;  %v9517_v57 = vld [vmem:[%s13481_s4 + $0xc8] sm:$0xff]  ;;  %v12195_v58 = vpop.f32.mrf.mxu3 }
 0x5f0   :  { %6499 = vmatpush.bf16.msrb.mxu2 %v9517_v57 }
 0x5f1   :  { %v5395_v40 = vrot.slane %v5393_v34, 5  ;;  %v5401_v47 = vrot.slane %v5393_v34, 6  ;;  %v5407_v14 = vrot.slane %v5393_v34, 7  ;;  %v4836_v22 = vadd.f32 %v4642_v23, %v14060_v7  ;;  %4680 = vmatmul.bf16.gmra.mxu0 %v3755_v63  ;;  %v12198_v23 = vpop.f32.mrf.mxu2  ;;  %v14063_v7 = vld [vmem:[#allocation4_spill] sm:$0xff] }
 0x5f3   :  { %v5396_v13 = vrot.slane %v5395_v40, 4  ;;  %5399 = vst [vmem:[#allocation3 + $0x18] sm:$0x8] %v5395_v40  ;;  %v5402_v9 = vrot.slane %v5401_v47, 4  ;;  %v5408_v42 = vrot.slane %v5407_v14, 4  ;;  %v14062_v40 = vld [vmem:[#allocation12_spill] sm:$0xff]  ;;  %v4921_v55 = vadd.f32 %v12090_v43, %v4836_v22 }
 0x5f4   :  { %5405 = vst [vmem:[#allocation3 + $0x10] sm:$0xc] %v5401_v47  ;;  %v13658_v47 = vrot.slane %v14062_v40, 1  ;;  %6500 = vmatpush.bf16.msrb.mxu2 %v9516_v0  ;;  %v9527_v0 = vld [vmem:[%s13481_s4 + $0x118] sm:$0xff] }
 0x5f5   :  { %5400 = vst [vmem:[#allocation3 + $0x24] sm:$0x7] %v5396_v13 }
 0x5f6   :  { %5406 = vst [vmem:[#allocation3 + $0x1c] sm:$0x3] %v5402_v9  ;;  %v4643_v34 = vpop.f32.mrf.mxu0  ;;  %v9528_v9 = vld [vmem:[%s13481_s4 + $0x120] sm:$0xff]  ;;  %v3921_v57 = vsel %vm3680_vm1, %v3914_v60, %v13658_v47  ;;  %v14067_v47 = vrot.slane %v14058_v36, 1 }
 0x5f7   :  { %5411 = vst [vmem:[#allocation3 + $0x8] sm:$0xe] %v5407_v14  ;;  %v4644_v63 = vadd.f32 %v4643_v34, %v14061_v18  ;;  %v14064_v14 = vld [vmem:[#allocation44_spill] sm:$0xff]  ;;  %v5884_v34 = vunpack.c.l.b16 %v9588_v44  ;;  %4607 = vmatmul.bf16.gmra.mxu3 %v3921_v57  ;;  %v4568_v6 = vpop.f32.mrf.mxu3 }
 0x5f8   :  { %5412 = vst [vmem:[#allocation3 + $0x14] sm:$0x1] %v5408_v42  ;;  %v13660_v42 = vrot.slane %v14064_v14, 1  ;;  %6566 = vmatpush.bf16.msrb.mxu3 %v9528_v9  ;;  %v9447_v36 = vld [vmem:[%s13483_s1 + $0x20] sm:$0xff] }
 0x5f9   :  { %v4837_v13 = vadd.f32 %v4644_v63, %v14063_v7 }
 0x5fa   :  { %v8788_v63 = vld [vmem:[#allocation3 + $0x18] sm:$0xf]  ;;  %v3761_v27 = vsel %vm3680_vm1, %v14067_v47, %v13660_v42  ;;  %v12249_v42 = vpop.f32.mrf.mxu2  ;;  %5318 = vmatmul.bf16.gmra.mxu1 %v9447_v36 }
 0x5fb   :  { %v12216_v18 = vld [vmem:[#allocation3 + $0xc] sm:$0xff]  ;;  %v4922_v47 = vadd.f32 %v12090_v43, %v4837_v13 }
 0x5fc   :  { %14065 = vst [vmem:[#allocation95_spill] sm:$0xff] %v12216_v18  ;;  %v9460_v7 = vld [vmem:[#allocation3 + $0x20] sm:$0xf0]  ;;  %v13659_v45 = vunpack.c.l.b16 %v12216_v18  ;;  %6567 = vmatpush.bf16.msrb.mxu3 %v9527_v0 }
 0x5fd   :  { %v12224_v60 = vor.u32 %v9460_v7, %v8788_v63  ;;  %v12240_v7 = vadd.f32 %v4568_v6, %v12137_v37  ;;  %v14069_v6 = vld [vmem:[#allocation7_spill] sm:$0xff]  ;;  %v5003_v0 = vmax.f32 %v4922_v47, 0.0  ;;  %v14071_v47 = vld [vmem:[#allocation48_spill] sm:$0xff] }
 0x5fe   :  { %v4646_v57 = vpop.f32.mrf.mxu0  ;;  %v12234_v9 = vpack.c.b16 %v13659_v45, %v5884_v34 }
 0x5ff   :  { %14066 = vst [vmem:[#allocation55_spill] sm:$0xff] %v12224_v60  ;;  %v4647_v63 = vadd.f32 %v4646_v57, %v11712_v11  ;;  %v6009_v45 = vshll.u32 %v12224_v60, 16  ;;  %v9526_v11 = vld [vmem:[%s13481_s4 + $0x110] sm:$0xff]  ;;  %v5002_v57 = vmax.f32 %v4921_v55, 0.0 }
 0x600   :  { %14068 = vst [vmem:[#allocation99_spill] sm:$0xff] %v12234_v9  ;;  %v6004_v34 = vshll.u32 %v12234_v9, 16  ;;  %v6002_v22 = vshrl.u32 %v12234_v9, 16  ;;  %6568 = vmatpush.bf16.msrb.mxu3 %v9526_v11  ;;  %v3766_v11 = vrot.slane %v14071_v47, 1 }
 0x601   :  { %v4838_v37 = vadd.f32 %v4647_v63, %v14069_v6  ;;  %4685 = vmatmul.bf16.gmra.mxu0 %v3761_v27  ;;  %v12261_v54 = vrot.slane %v6009_v45, 1  ;;  %v9525_v27 = vld [vmem:[%s13481_s4 + $0x108] sm:$0xff]  ;;  %v4570_v6 = vpop.f32.mrf.mxu3  ;;  %5083 = vst [vmem:[#allocation2 + $0x30] sm:$0xff] %v5002_v57  ;;  %v9524_v45 = vld [vmem:[%s13481_s4 + $0x100] sm:$0xff] }
 0x602   :  { %v6006_v13 = vrot.slane %v6004_v34, 1  ;;  %5084 = vst [vmem:[#allocation2 + $0x38] sm:$0xff] %v5003_v0  ;;  %v12269_v36 = vpop.f32.mrf.mxu2  ;;  %v9448_v57 = vld [vmem:[%s13483_s1 + $0x28] sm:$0xff]  ;;  %v13664_v6 = vunpack.c.h.b16 %v12216_v18 }
 0x603   :  { %v4923_v12 = vadd.f32 %v12090_v43, %v4838_v37  ;;  %14070 = vst [vmem:[#allocation59_spill] sm:$0xff] %v12269_v36 }
 0x604   :  { %v6007_v21 = vor.u32 %v6006_v13, %v6002_v22  ;;  %6569 = vmatpush.bf16.msrb.mxu3 %v9525_v27 }
 0x605   :  { %v5004_v63 = vmax.f32 %v4923_v12, 0.0  ;;  %v14072_v12 = vrot.slane %v14062_v40, 1 }
 0x606   :  { %v4648_v34 = vpop.f32.mrf.mxu0  ;;  %v6012_v55 = vsel %vm824_vm0, %v6007_v21, %v12261_v54  ;;  %v14073_v21 = vrot.slane %v14064_v14, 1 }
 0x607   :  { %6501 = vmatmul.bf16.vlgmr.msrb.gmra.mxu2 %v6012_v55  ;;  %5085 = vst [vmem:[#allocation2 + $0x40] sm:$0xff] %v5004_v63  ;;  %4612 = vmatmul.bf16.gmra.mxu3 %v14072_v12  ;;  %v5885_v63 = vunpack.c.h.b16 %v9588_v44 }
 0x608   :  { %6570 = vmatpush.bf16.msrb.mxu3 %v9524_v45  ;;  %v3767_v22 = vsel %vm3680_vm1, %v14073_v21, %v3766_v11 }
 0x609   :  { %v4573_v13 = vpop.f32.mrf.mxu3 }
 0x60a   :  { %v4370_v27 = vpop.f32.mrf.mxu2  ;;  %5323 = vmatmul.bf16.gmra.mxu1 %v9448_v57  ;;  %v14077_v13 = vld [vmem:[#allocation49_spill] sm:$0xff] }
 0x60e   :  { %v4651_v37 = vpop.f32.mrf.mxu0  ;;  %v5414_v0 = vld [vmem:[#allocation2 + $0x37] ss:$2 sm:$0xff] }
 0x60f   :  { %v5415_v34 = vpack.c.bf16 %v5414_v0, %v5414_v0  ;;  %v14074_v37 = vld [vmem:[#allocation22_spill] sm:$0xff]  ;;  %v14078_v0 = vld [vmem:[#allocation53_spill] sm:$0xff] }
 0x610   :  { %v3772_v27 = vrot.slane %v14078_v0, 1 }
 0x611   :  { %4690 = vmatmul.bf16.gmra.mxu0 %v3767_v22  ;;  %5416 = vst [vmem:[#allocation3 + $0x30] sm:$0xf] %v5415_v34  ;;  %v5418_v40 = vrot.slane %v5415_v34, 5  ;;  %v5424_v55 = vrot.slane %v5415_v34, 6  ;;  %v12285_v12 = vpop.f32.mrf.mxu3  ;;  %v12290_v22 = vpack.c.b16 %v13664_v6, %v5885_v63  ;;  %v9539_v63 = vld [vmem:[%s13481_s4 + $0x178] sm:$0xff]  ;;  %v9538_v6 = vld [vmem:[%s13481_s4 + $0x170] sm:$0xff] }
 0x612   :  { %v12292_v44 = vpop.f32.mrf.mxu2  ;;  %6633 = vmatpush.bf16.msrb.mxu1 %v9539_v63 }
 0x613   :  { %v5419_v14 = vrot.slane %v5418_v40, 4  ;;  %5422 = vst [vmem:[#allocation3 + $0x1c] sm:$0x8] %v5418_v40  ;;  %v5425_v45 = vrot.slane %v5424_v55, 4  ;;  %v6016_v40 = vshll.u32 %v12290_v22, 16 }
 0x614   :  { %5428 = vst [vmem:[#allocation3 + $0x14] sm:$0xc] %v5424_v55 }
 0x615   :  { %5423 = vst [vmem:[#allocation3 + $0x28] sm:$0x7] %v5419_v14  ;;  %v3773_v14 = vsel %vm3680_vm1, %v3766_v11, %v3772_v27  ;;  %v6018_v0 = vrot.slane %v6016_v40, 1  ;;  %v9449_v11 = vld [vmem:[%s13483_s1 + $0x30] sm:$0xff] }
 0x616   :  { %v4653_v47 = vpop.f32.mrf.mxu0  ;;  %14075 = vst [vmem:[#allocation124_spill] sm:$0xff] %v12290_v22  ;;  %6634 = vmatpush.bf16.msrb.mxu1 %v9538_v6  ;;  %v9536_v6 = vld [vmem:[%s13481_s4 + $0x160] sm:$0xff] }
 0x617   :  { %v4654_v21 = vadd.f32 %v4653_v47, %v14074_v37  ;;  %5429 = vst [vmem:[#allocation3 + $0x20] sm:$0x3] %v5425_v45  ;;  %v14079_v45 = vld [vmem:[#allocation79_spill] sm:$0xff] }
 0x618   :  { %14076 = vst [vmem:[#allocation104_spill] sm:$0xff] %v12292_v44 }
 0x619   :  { %v4841_v57 = vadd.f32 %v4654_v21, %v14077_v13  ;;  %v4578_v18 = vpop.f32.mrf.mxu3 }
 0x61a   :  { %v9459_v47 = vld [vmem:[#allocation3 + $0x1c] sm:$0xf]  ;;  %5328 = vmatmul.bf16.gmra.mxu1 %v9449_v11  ;;  %v14086_v11 = vld [vmem:[#allocation11_spill] sm:$0xff] }
 0x61b   :  { %v4926_v34 = vadd.f32 %v12090_v43, %v4841_v57  ;;  %v12306_v57 = vadd.f32 %v4578_v18, %v12249_v42 }
 0x61c   :  { %v8790_v37 = vld [vmem:[#allocation3 + $0x24] sm:$0xf0] }
 0x61d   :  { %v5007_v55 = vmax.f32 %v4926_v34, 0.0  ;;  %v12303_v13 = vor.u32 %v9459_v47, %v8790_v37  ;;  %14081 = vst [vmem:[#allocation125_spill] sm:$0xff] %v12306_v57  ;;  %v12311_v34 = vpop.f32.mrf.mxu2  ;;  %v9537_v37 = vld [vmem:[%s13481_s4 + $0x168] sm:$0xff] }
 0x61e   :  { %v4656_v9 = vpop.f32.mrf.mxu0  ;;  %6635 = vmatpush.bf16.msrb.mxu1 %v9537_v37 }
 0x61f   :  { %5088 = vst [vmem:[#allocation2 + $0x58] sm:$0xff] %v5007_v55  ;;  %v4657_v21 = vadd.f32 %v4656_v9, %v14079_v45  ;;  %v14082_v55 = vld [vmem:[#allocation30_spill] sm:$0xff]  ;;  %v6014_v9 = vshrl.u32 %v12290_v22, 16  ;;  %v6021_v40 = vshll.u32 %v12303_v13, 16  ;;  %v9450_v22 = vld [vmem:[%s13483_s1 + $0x38] sm:$0xff]  ;;  %v6045_v61 = vshrl.u32 %v12303_v13, 16 }
 0x620   :  { %14080 = vst [vmem:[#allocation64_spill] sm:$0xff] %v12303_v13 }
 0x621   :  { %v4842_v44 = vadd.f32 %v4657_v21, %v14082_v55  ;;  %4695 = vmatmul.bf16.gmra.mxu0 %v3773_v14  ;;  %v6019_v18 = vor.u32 %v6018_v0, %v6014_v9  ;;  %v12320_v47 = vrot.slane %v6021_v40, 1  ;;  %v12327_v21 = vpop.f32.mrf.mxu3  ;;  %v14084_v55 = vld [vmem:[#allocation56_spill] sm:$0xff]  ;;  %v14087_v40 = vld [vmem:[#allocation57_spill] sm:$0xff] }
 0x622   :  { %14083 = vst [vmem:[#allocation129_spill] sm:$0xff] %v12327_v21  ;;  %6636 = vmatpush.bf16.msrb.mxu1 %v9536_v6  ;;  %v9534_v6 = vld [vmem:[%s13481_s4 + $0x150] sm:$0xff]  ;;  %v14092_v21 = vld [vmem:[#allocation61_spill] sm:$0xff] }
 0x623   :  { %v4927_v42 = vadd.f32 %v12090_v43, %v4842_v44  ;;  %v6024_v45 = vsel %vm824_vm0, %v6019_v18, %v12320_v47  ;;  %v3784_v36 = vrot.slane %v14092_v21, 1  ;;  %v9532_v21 = vld [vmem:[%s13481_s4 + $0x140] sm:$0xff] }
 0x624   :  { %6571 = vmatmul.bf16.vlgmr.msrb.gmra.mxu3 %v6024_v45 }
 0x625   :  { %v5008_v63 = vmax.f32 %v4927_v42, 0.0  ;;  %v12330_v0 = vpop.f32.mrf.mxu2  ;;  %v3778_v42 = vrot.slane %v14087_v40, 1 }
 0x626   :  { %v4658_v14 = vpop.f32.mrf.mxu0  ;;  %14085 = vst [vmem:[#allocation108_spill] sm:$0xff] %v12330_v0  ;;  %v5684_v0 = vld [vmem:[#allocation3 + $0x8] sm:$0xf] }
 0x627   :  { %5089 = vst [vmem:[#allocation2 + $0x60] sm:$0xff] %v5008_v63  ;;  %v4659_v44 = vadd.f32 %v4658_v14, %v14084_v55  ;;  %v9535_v63 = vld [vmem:[%s13481_s4 + $0x158] sm:$0xff]  ;;  %v3779_v55 = vsel %vm3680_vm1, %v3772_v27, %v3778_v42 }
 0x628   :  { %6637 = vmatpush.bf16.msrb.mxu1 %v9535_v63 }
 0x629   :  { %v4843_v9 = vadd.f32 %v4659_v44, %v14086_v11  ;;  %v4583_v37 = vpop.f32.mrf.mxu3  ;;  %v9533_v11 = vld [vmem:[%s13481_s4 + $0x148] sm:$0xff] }
 0x62a   :  { %5333 = vmatmul.bf16.gmra.mxu1 %v9450_v22  ;;  %v12354_v37 = vld [vmem:[#allocation3 + $0x14] sm:$0xf]  ;;  %v14091_v22 = vld [vmem:[#allocation50_spill] sm:$0xff] }
 0x62b   :  { %v4928_v18 = vadd.f32 %v12090_v43, %v4843_v9  ;;  %14090 = vst [vmem:[#allocation113_spill] sm:$0xff] %v12354_v37  ;;  %v13667_v17 = vunpack.c.l.b16 %v12354_v37 }
 0x62c   :  { %6638 = vmatpush.bf16.msrb.mxu1 %v9534_v6 }
 0x62d   :  { %v5009_v45 = vmax.f32 %v4928_v18, 0.0  ;;  %v4380_v44 = vpop.f32.mrf.mxu2 }
 0x62e   :  { %v4661_v14 = vpop.f32.mrf.mxu0 }
 0x62f   :  { %5090 = vst [vmem:[#allocation2 + $0x68] sm:$0xff] %v5009_v45  ;;  %v14089_v45 = vld [vmem:[#allocation24_spill] sm:$0xff] }
 0x630   :  { %6639 = vmatpush.bf16.msrb.mxu1 %v9533_v11 }
 0x631   :  { %4700 = vmatmul.bf16.gmra.mxu0 %v3779_v55  ;;  %v12351_v40 = vpop.f32.mrf.mxu3 }
 0x632   :  { %14088 = vst [vmem:[#allocation68_spill] sm:$0xff] %v12351_v40 }
 0x634   :  { %6640 = vmatpush.bf16.msrb.mxu1 %v9532_v21 }
 0x635   :  { %v4382_v63 = vpop.f32.mrf.mxu2 }
 0x636   :  { %v5431_v27 = vld [vmem:[#allocation2 + $0x5b] ss:$2 sm:$0xff]  ;;  %v4663_v9 = vpop.f32.mrf.mxu0 }
 0x637   :  { %v5432_v18 = vpack.c.bf16 %v5431_v27, %v5431_v27  ;;  %v4664_v14 = vadd.f32 %v4663_v9, %v14089_v45  ;;  %v5886_v9 = vunpack.c.l.b16 %v5684_v0 }
 0x639   :  { %v5434_v44 = vrot.slane %v5432_v18, 7  ;;  %5440 = vst [vmem:[#allocation3 + $0x34] sm:$0xf] %v5432_v18  ;;  %v5441_v55 = vrot.slane %v5432_v18, 5  ;;  %v4845_v6 = vadd.f32 %v4664_v14, %v14091_v22  ;;  %v3785_v18 = vsel %vm3680_vm1, %v3778_v42, %v3784_v36  ;;  %v4588_v63 = vpop.f32.mrf.mxu3  ;;  %v14097_v42 = vld [vmem:[#allocation54_spill] sm:$0xff] }
 0x63a   :  { %v12366_v14 = vpack.c.b16 %v13667_v17, %v5886_v9  ;;  %v12370_v0 = vadd.f32 %v4588_v63, %v12311_v34 }
 0x63b   :  { %v5435_v57 = vrot.slane %v5434_v44, 4  ;;  %5438 = vst [vmem:[#allocation3 + $0x3c] sm:$0xe] %v5434_v44  ;;  %v5442_v40 = vrot.slane %v5441_v55, 4  ;;  %v4930_v27 = vadd.f32 %v12090_v43, %v4845_v6  ;;  %v14094_v44 = vld [vmem:[#allocation80_spill] sm:$0xff] }
 0x63c   :  { %5445 = vst [vmem:[#allocation3 + $0x20] sm:$0x8] %v5441_v55  ;;  %v8800_v6 = vld [vmem:[#allocation3 + $0x30] sm:$0xf]  ;;  %v6028_v37 = vshll.u32 %v12366_v14, 16 }
 0x63d   :  { %5439 = vst [vmem:[#allocation3 + $0x48] sm:$0x1] %v5435_v57  ;;  %v5011_v45 = vmax.f32 %v4930_v27, 0.0  ;;  %v12372_v57 = vpop.f32.mrf.mxu1 }
 0x63e   :  { %5446 = vst [vmem:[#allocation3 + $0x2c] sm:$0x7] %v5442_v40  ;;  %v4666_v11 = vpop.f32.mrf.mxu0  ;;  %v12374_v40 = vpop.f32.mrf.mxu2 }
 0x63f   :  { %14093 = vst [vmem:[#allocation73_spill] sm:$0xff] %v12366_v14  ;;  %v4667_v22 = vadd.f32 %v4666_v11, %v14094_v44  ;;  %v6037_v11 = vshrl.u32 %v12224_v60, 16 }
 0x640   :  { %5092 = vst [vmem:[#allocation2 + $0x78] sm:$0xff] %v5011_v45 }
 0x641   :  { %14095 = vst [vmem:[#allocation116_spill] sm:$0xff] %v12370_v0  ;;  %v4846_v55 = vadd.f32 %v4667_v22, %v14097_v42  ;;  %4705 = vmatmul.bf16.gmra.mxu0 %v3785_v18  ;;  %v6030_v22 = vrot.slane %v6028_v37, 1  ;;  %v12385_v18 = vpop.f32.mrf.mxu3  ;;  %v14099_v42 = vld [vmem:[#allocation60_spill] sm:$0xff] }
 0x642   :  { %14096 = vst [vmem:[#allocation76_spill] sm:$0xff] %v12372_v57  ;;  %v9463_v27 = vld [vmem:[#allocation3 + $0x38] sm:$0xf0] }
 0x643   :  { %v4931_v9 = vadd.f32 %v12090_v43, %v4846_v55  ;;  %v12379_v45 = vor.u32 %v9463_v27, %v8800_v6  ;;  %v8796_v44 = vld [vmem:[#allocation3 + $0x20] sm:$0xf]  ;;  %14098 = vst [vmem:[#allocation119_spill] sm:$0xff] %v12385_v18  ;;  %v6039_v55 = vor.u32 %v6037_v11, %v12261_v54  ;;  %v14103_v54 = vld [vmem:[#allocation66_spill] sm:$0xff] }
 0x644   :  { %v3790_v11 = vrot.slane %v14103_v54, 1 }
 0x645   :  { %v5012_v34 = vmax.f32 %v4931_v9, 0.0  ;;  %v6041_v63 = vshll.u32 %v12379_v45, 16  ;;  %v9461_v17 = vld [vmem:[#allocation3 + $0x28] sm:$0xf0]  ;;  %v12391_v27 = vpop.f32.mrf.mxu1  ;;  %v6026_v9 = vshrl.u32 %v12366_v14, 16 }
 0x646   :  { %v4668_v57 = vpop.f32.mrf.mxu0  ;;  %v12383_v21 = vor.u32 %v9461_v17, %v8796_v44  ;;  %14100 = vst [vmem:[#allocation81_spill] sm:$0xff] %v12391_v27  ;;  %v12395_v51 = vpop.f32.mrf.mxu2  ;;  %v14102_v17 = vld [vmem:[#allocation34_spill] sm:$0xff] }
 0x647   :  { %5093 = vst [vmem:[#allocation2 + $0x80] sm:$0xff] %v5012_v34  ;;  %v4669_v0 = vadd.f32 %v4668_v57, %v14099_v42  ;;  %v12389_v6 = vrot.slane %v6041_v63, 1  ;;  %v6031_v34 = vor.u32 %v6030_v22, %v6026_v9 }
 0x648   :  { %v6033_v60 = vshll.u32 %v12383_v21, 16  ;;  %14101 = vst [vmem:[#allocation122_spill] sm:$0xff] %v12395_v51  ;;  %v3791_v51 = vsel %vm3680_vm1, %v3784_v36, %v3790_v11 }
 0x649   :  { %v4847_v44 = vadd.f32 %v4669_v0, %v14102_v17  ;;  %v6044_v37 = vsel %vm824_vm0, %v6039_v55, %v12389_v6  ;;  %v4593_v0 = vpop.f32.mrf.mxu3 }
 0x64a   :  { %6505 = vmatmul.bf16.gmra.mxu2 %v6044_v37  ;;  %v12400_v57 = vrot.slane %v6033_v60, 1 }
 0x64b   :  { %v4932_v63 = vadd.f32 %v12090_v43, %v4847_v44 }
 0x64c   :  { %v6036_v42 = vsel %vm824_vm0, %v6031_v34, %v12400_v57 }
 0x64d   :  { %v5013_v27 = vmax.f32 %v4932_v63, 0.0  ;;  %6641 = vmatmul.bf16.vlgmr.msrb.gmra.mxu1 %v6036_v42  ;;  %v12407_v17 = vpop.f32.mrf.mxu1  ;;  %v14106_v63 = vld [vmem:[#allocation70_spill] sm:$0xff] }
 0x64e   :  { %v4671_v14 = vpop.f32.mrf.mxu0  ;;  %14104 = vst [vmem:[#allocation85_spill] sm:$0xff] %v12407_v17  ;;  %v4390_v55 = vpop.f32.mrf.mxu2 }
 0x64f   :  { %5094 = vst [vmem:[#allocation2 + $0x88] sm:$0xff] %v5013_v27  ;;  %v3796_v14 = vrot.slane %v14106_v63, 1 }
 0x651   :  { %4710 = vmatmul.bf16.gmra.mxu0 %v3791_v51  ;;  %v4595_v9 = vpop.f32.mrf.mxu3  ;;  %v3797_v51 = vsel %vm3680_vm1, %v3790_v11, %v3796_v14 }
 0x655   :  { %v12409_v54 = vpop.f32.mrf.mxu1 }
 0x656   :  { %v5448_v60 = vld [vmem:[#allocation2 + $0x7f] ss:$2 sm:$0xff]  ;;  %v4673_v22 = vpop.f32.mrf.mxu0  ;;  %14105 = vst [vmem:[#allocation138_spill] sm:$0xff] %v12409_v54  ;;  %v4392_v44 = vpop.f32.mrf.mxu2 }
 0x657   :  { %v5449_v37 = vpack.c.bf16 %v5448_v60, %v5448_v60  ;;  %v14107_v22 = vld [vmem:[#allocation65_spill] sm:$0xff] }
 0x659   :  { %v5451_v18 = vrot.slane %v5449_v37, 6  ;;  %v5457_v34 = vrot.slane %v5449_v37, 7  ;;  %5463 = vst [vmem:[#allocation3 + $0x38] sm:$0xf] %v5449_v37  ;;  %v4598_v0 = vpop.f32.mrf.mxu3  ;;  %v14109_v37 = vld [vmem:[#allocation14_spill] sm:$0xff] }
 0x65a   :  { %v12415_v9 = vadd.f32 %v4598_v0, %v12374_v40  ;;  %v14111_v0 = vld [vmem:[#allocation29_spill] sm:$0xff] }
 0x65b   :  { %v5452_v42 = vrot.slane %v5451_v18, 4  ;;  %5455 = vst [vmem:[#allocation3 + $0x48] sm:$0xc] %v5451_v18  ;;  %v5458_v36 = vrot.slane %v5457_v34, 4 }
 0x65c   :  { %5461 = vst [vmem:[#allocation3 + $0x40] sm:$0xe] %v5457_v34  ;;  %v9462_v34 = vld [vmem:[#allocation3 + $0x34] sm:$0xf] }
 0x65d   :  { %5456 = vst [vmem:[#allocation3 + $0x54] sm:$0x3] %v5452_v42  ;;  %v12417_v54 = vpop.f32.mrf.mxu1 }
 0x65e   :  { %5462 = vst [vmem:[#allocation3 + $0x4c] sm:$0x1] %v5458_v36  ;;  %v4676_v27 = vpop.f32.mrf.mxu0  ;;  %v4395_v44 = vpop.f32.mrf.mxu2 }
 0x65f   :  { %v4677_v60 = vadd.f32 %v4676_v27, %v14107_v22  ;;  %14108 = vst [vmem:[#allocation127_spill] sm:$0xff] %v12417_v54 }
 0x661   :  { %v4850_v63 = vadd.f32 %v4677_v60, %v14109_v37  ;;  %4715 = vmatmul.bf16.gmra.mxu0 %v3797_v51  ;;  %v12425_v40 = vpop.f32.mrf.mxu3  ;;  %v6047_v60 = vor.u32 %v6045_v61, %v12320_v47 }
 0x662   :  { %14110 = vst [vmem:[#allocation90_spill] sm:$0xff] %v12425_v40 }
 0x663   :  { %v4935_v18 = vadd.f32 %v12090_v43, %v4850_v63  ;;  %v8802_v42 = vld [vmem:[#allocation3 + $0x3c] sm:$0xf0] }
 0x664   :  { %v12421_v36 = vor.u32 %v9462_v34, %v8802_v42  ;;  %v14113_v63 = vld [vmem:[#allocation37_spill] sm:$0xff]  ;;  %v14114_v42 = vld [vmem:[#allocation75_spill] sm:$0xff] }
 0x665   :  { %v5016_v17 = vmax.f32 %v4935_v18, 0.0  ;;  %v12431_v37 = vpop.f32.mrf.mxu1  ;;  %v3802_v54 = vrot.slane %v14114_v42, 1 }
 0x666   :  { %v4678_v11 = vpop.f32.mrf.mxu0  ;;  %v6049_v27 = vshll.u32 %v12421_v36, 16  ;;  %v4397_v44 = vpop.f32.mrf.mxu2  ;;  %14112 = vst [vmem:[#allocation5_spill] sm:$0xff] %v12431_v37 }
 0x667   :  { %5097 = vst [vmem:[#allocation2 + $0xa0] sm:$0xff] %v5016_v17  ;;  %v4679_v22 = vadd.f32 %v4678_v11, %v14111_v0  ;;  %v3803_v11 = vsel %vm3680_vm1, %v3796_v14, %v3802_v54  ;;  %v14116_v44 = vld [vmem:[#allocation15_spill] sm:$0xff] }
 0x668   :  { %v12429_v51 = vrot.slane %v6049_v27, 1 }
 0x669   :  { %v4851_v34 = vadd.f32 %v4679_v22, %v14113_v63  ;;  %v4603_v61 = vpop.f32.mrf.mxu3 }
 0x66a   :  { %v6052_v18 = vsel %vm824_vm0, %v6047_v60, %v12429_v51  ;;  %v12440_v27 = vadd.f32 %v4603_v61, %v4390_v55 }
 0x66b   :  { %v4936_v13 = vadd.f32 %v12090_v43, %v4851_v34  ;;  %6575 = vmatmul.bf16.gmra.mxu3 %v6052_v18 }
 0x66d   :  { %v5017_v17 = vmax.f32 %v4936_v13, 0.0  ;;  %v12442_v22 = vpop.f32.mrf.mxu1 }
 0x66e   :  { %v4681_v40 = vpop.f32.mrf.mxu0  ;;  %v4400_v0 = vpop.f32.mrf.mxu2  ;;  %14115 = vst [vmem:[#allocation94_spill] sm:$0xff] %v12442_v22 }
 0x66f   :  { %5098 = vst [vmem:[#allocation2 + $0xa8] sm:$0xff] %v5017_v17  ;;  %v4682_v47 = vadd.f32 %v4681_v40, %v11796_v25  ;;  %v14118_v17 = vld [vmem:[#allocation78_spill] sm:$0xff] }
 0x670   :  { %v3808_v37 = vrot.slane %v14118_v17, 1 }
 0x671   :  { %v4852_v60 = vadd.f32 %v4682_v47, %v14116_v44  ;;  %4720 = vmatmul.bf16.gmra.mxu0 %v3803_v11  ;;  %v4605_v13 = vpop.f32.mrf.mxu3 }
 0x672   :  { %v3809_v40 = vsel %vm3680_vm1, %v3802_v54, %v3808_v37 }
 0x673   :  { %v4937_v63 = vadd.f32 %v12090_v43, %v4852_v60 }
 0x675   :  { %v5018_v34 = vmax.f32 %v4937_v63, 0.0  ;;  %v12446_v14 = vpop.f32.mrf.mxu1 }
 0x676   :  { %v4683_v18 = vpop.f32.mrf.mxu0  ;;  %v4402_v42 = vpop.f32.mrf.mxu2  ;;  %14117 = vst [vmem:[#allocation8_spill] sm:$0xff] %v12446_v14 }
 0x677   :  { %5099 = vst [vmem:[#allocation2 + $0xb0] sm:$0xff] %v5018_v34  ;;  %v14120_v18 = vld [vmem:[#allocation58_spill] sm:$0xff] }
 0x67a   :  { %v4608_v61 = vpop.f32.mrf.mxu3 }
 0x67d   :  { %v12451_v11 = vpop.f32.mrf.mxu1 }
 0x67e   :  { %v5465_v25 = vld [vmem:[#allocation2 + $0xa3] ss:$2 sm:$0xff]  ;;  %v4686_v55 = vpop.f32.mrf.mxu0  ;;  %14119 = vst [vmem:[#allocation98_spill] sm:$0xff] %v12451_v11 }
 0x67f   :  { %v5466_v0 = vpack.c.bf16 %v5465_v25, %v5465_v25  ;;  %v4687_v47 = vadd.f32 %v4686_v55, %v11810_v33 }
 0x681   :  { %v5468_v44 = vrot.slane %v5466_v0, 5  ;;  %v5474_v60 = vrot.slane %v5466_v0, 6  ;;  %v5480_v63 = vrot.slane %v5466_v0, 7  ;;  %v4854_v34 = vadd.f32 %v4687_v47, %v14120_v18  ;;  %4725 = vmatmul.bf16.gmra.mxu0 %v3809_v40  ;;  %v14122_v40 = vld [vmem:[#allocation62_spill] sm:$0xff] }
 0x682   :  { %v4610_v33 = vpop.f32.mrf.mxu3 }
 0x683   :  { %v5469_v13 = vrot.slane %v5468_v44, 4  ;;  %5472 = vst [vmem:[#allocation3 + $0x54] sm:$0x8] %v5468_v44  ;;  %v5475_v42 = vrot.slane %v5474_v60, 4  ;;  %v4939_v17 = vadd.f32 %v12090_v43, %v4854_v34  ;;  %v5481_v14 = vrot.slane %v5480_v63, 4  ;;  %v14123_v44 = vld [vmem:[#allocation83_spill] sm:$0xff] }
 0x684   :  { %5478 = vst [vmem:[#allocation3 + $0x4c] sm:$0xc] %v5474_v60  ;;  %v3814_v18 = vrot.slane %v14123_v44, 1  ;;  %v8812_v34 = vld [vmem:[#allocation3 + $0x48] sm:$0xf] }
 0x685   :  { %5473 = vst [vmem:[#allocation3 + $0x60] sm:$0x7] %v5469_v13  ;;  %v5020_v54 = vmax.f32 %v4939_v17, 0.0  ;;  %v12456_v61 = vpop.f32.mrf.mxu1  ;;  %v8808_v33 = vld [vmem:[#allocation3 + $0x38] sm:$0xf] }
 0x686   :  { %5479 = vst [vmem:[#allocation3 + $0x58] sm:$0x3] %v5475_v42  ;;  %v4688_v25 = vpop.f32.mrf.mxu0  ;;  %v6061_v42 = vshrl.u32 %v12379_v45, 16 }
 0x687   :  { %5484 = vst [vmem:[#allocation3 + $0x44] sm:$0xe] %v5480_v63  ;;  %v4689_v55 = vadd.f32 %v4688_v25, %v11813_v26  ;;  %v3815_v25 = vsel %vm3680_vm1, %v3808_v37, %v3814_v18  ;;  %v6053_v37 = vshrl.u32 %v12383_v21, 16 }
 0x688   :  { %5485 = vst [vmem:[#allocation3 + $0x50] sm:$0x1] %v5481_v14 }
 0x689   :  { %14121 = vst [vmem:[#allocation140_spill] sm:$0xff] %v12456_v61  ;;  %v4855_v0 = vadd.f32 %v4689_v55, %v14122_v40  ;;  %v14132_v61 = vld [vmem:[#allocation18_spill] sm:$0xff] }
 0x68a   :  { %5101 = vst [vmem:[#allocation2 + $0xc0] sm:$0xff] %v5020_v54  ;;  %v6502_v47 = vpop.f32.mrf.mxu2  ;;  %v9466_v60 = vld [vmem:[#allocation3 + $0x50] sm:$0xf0]  ;;  %v6063_v54 = vor.u32 %v6061_v42, %v12389_v6  ;;  %v4613_v40 = vpop.f32.mrf.mxu3  ;;  %v12479_v42 = vld [vmem:[%s13482_s3] ss:$0 sm:$0xff] }
 0x68b   :  { %v4940_v13 = vadd.f32 %v12090_v43, %v4855_v0  ;;  %v12461_v17 = vor.u32 %v9466_v60, %v8812_v34  ;;  %v14125_v34 = vld [vmem:[#allocation40_spill] sm:$0xff]  ;;  %v14127_v40 = vld [vmem:[#allocation87_spill] sm:$0xff] }
 0x68d   :  { %v5021_v63 = vmax.f32 %v4940_v13, 0.0  ;;  %v6065_v26 = vshll.u32 %v12461_v17, 16  ;;  %v12470_v0 = vpop.f32.mrf.mxu1 }
 0x68e   :  { %v4691_v14 = vpop.f32.mrf.mxu0  ;;  %v9464_v55 = vld [vmem:[#allocation3 + $0x40] sm:$0xf0]  ;;  %14124 = vst [vmem:[#allocation141_spill] sm:$0xff] %v12470_v0 }
 0x68f   :  { %5102 = vst [vmem:[#allocation2 + $0xc8] sm:$0xff] %v5021_v63  ;;  %v4692_v47 = vadd.f32 %v4691_v14, %v11823_v48  ;;  %v6067_v44 = vrot.slane %v6065_v26, 1  ;;  %v12468_v43 = vor.u32 %v9464_v55, %v8808_v33  ;;  %v6055_v63 = vor.u32 %v6053_v37, %v12400_v57 }
 0x691   :  { %v4856_v60 = vadd.f32 %v4692_v47, %v14125_v34  ;;  %4730 = vmatmul.bf16.gmra.mxu0 %v3815_v25  ;;  %v6068_v13 = vsel %vm824_vm0, %v6063_v54, %v6067_v44  ;;  %v6057_v6 = vshll.u32 %v12468_v43, 16  ;;  %v3820_v47 = vrot.slane %v14127_v40, 1  ;;  %v14129_v40 = vld [vmem:[#allocation43_spill] sm:$0xff] }
 0x692   :  { %6510 = vmatmul.bf16.gmra.mxu2 %v6068_v13  ;;  %v4615_v33 = vpop.f32.mrf.mxu3 }
 0x693   :  { %v4941_v48 = vadd.f32 %v12479_v42, %v4856_v60  ;;  %v12483_v26 = vrot.slane %v6057_v6, 1  ;;  %v3821_v60 = vsel %vm3680_vm1, %v3814_v18, %v3820_v47 }
 0x695   :  { %v5022_v14 = vmax.f32 %v4941_v48, 0.0  ;;  %v6060_v25 = vsel %vm824_vm0, %v6055_v63, %v12483_v26  ;;  %v12487_v55 = vpop.f32.mrf.mxu1 }
 0x696   :  { %6645 = vmatmul.bf16.gmra.mxu1 %v6060_v25  ;;  %v4693_v54 = vpop.f32.mrf.mxu0  ;;  %14126 = vst [vmem:[#allocation6_spill] sm:$0xff] %v12487_v55  ;;  %v9465_v55 = vld [vmem:[#allocation3 + $0x4c] sm:$0xf] }
 0x697   :  { %5103 = vst [vmem:[#allocation2 + $0xd0] sm:$0xff] %v5022_v14  ;;  %v8824_v54 = vld [vmem:[#allocation3 + $0x60] sm:$0xf] }
 0x69d   :  { %v12491_v6 = vpop.f32.mrf.mxu1 }
 0x69e   :  { %v5487_v34 = vld [vmem:[#allocation2 + $0xc7] ss:$2 sm:$0xff]  ;;  %v4696_v13 = vpop.f32.mrf.mxu0  ;;  %14128 = vst [vmem:[#allocation103_spill] sm:$0xff] %v12491_v6 }
 0x69f   :  { %v5488_v0 = vpack.c.bf16 %v5487_v34, %v5487_v34 }
 0x6a1   :  { %5489 = vst [vmem:[#allocation3 + $0x6c] sm:$0xf] %v5488_v0  ;;  %v5491_v57 = vrot.slane %v5488_v0, 5  ;;  %v5497_v37 = vrot.slane %v5488_v0, 6  ;;  %4735 = vmatmul.bf16.gmra.mxu0 %v3821_v60  ;;  %v14130_v0 = vld [vmem:[#allocation92_spill] sm:$0xff] }
 0x6a2   :  { %v3826_v60 = vrot.slane %v14130_v0, 1 }
 0x6a3   :  { %v5492_v48 = vrot.slane %v5491_v57, 4  ;;  %5495 = vst [vmem:[#allocation3 + $0x58] sm:$0x8] %v5491_v57  ;;  %v5498_v63 = vrot.slane %v5497_v37, 4 }
 0x6a4   :  { %5501 = vst [vmem:[#allocation3 + $0x50] sm:$0xc] %v5497_v37  ;;  %v6085_v37 = vshrl.u32 %v12461_v17, 16  ;;  %v3827_v0 = vsel %vm3680_vm1, %v3820_v47, %v3826_v60 }
 0x6a5   :  { %5496 = vst [vmem:[#allocation3 + $0x64] sm:$0x7] %v5492_v48 }
 0x6a6   :  { %5502 = vst [vmem:[#allocation3 + $0x5c] sm:$0x3] %v5498_v63  ;;  %v4698_v14 = vpop.f32.mrf.mxu0 }
 0x6a7   :  { %v4699_v25 = vadd.f32 %v4698_v14, %v11844_v39  ;;  %v6572_v34 = vpop.f32.mrf.mxu3  ;;  %v12503_v39 = vpop.f32.mrf.mxu1  ;;  %v6069_v14 = vshrl.u32 %v12421_v36, 16 }
 0x6a8   :  { %v9469_v33 = vld [vmem:[#allocation3 + $0x68] sm:$0xf0]  ;;  %14131 = vst [vmem:[#allocation9_spill] sm:$0xff] %v12503_v39 }
 0x6a9   :  { %v4859_v18 = vadd.f32 %v4699_v25, %v14129_v40  ;;  %v12495_v13 = vor.u32 %v9469_v33, %v8824_v54  ;;  %v6087_v40 = vor.u32 %v6085_v37, %v6067_v44 }
 0x6aa   :  { %v8814_v6 = vld [vmem:[#allocation3 + $0x54] sm:$0xf0] }
 0x6ab   :  { %v4944_v57 = vadd.f32 %v12479_v42, %v4859_v18  ;;  %v6089_v48 = vshll.u32 %v12495_v13, 16  ;;  %v12501_v63 = vor.u32 %v9465_v55, %v8814_v6  ;;  %v6071_v6 = vor.u32 %v6069_v14, %v12429_v51  ;;  %v14135_v51 = vld [vmem:[#allocation96_spill] sm:$0xff] }
 0x6ac   :  { %v3832_v14 = vrot.slane %v14135_v51, 1 }
 0x6ad   :  { %v5025_v25 = vmax.f32 %v4944_v57, 0.0  ;;  %v12506_v54 = vrot.slane %v6089_v48, 1  ;;  %v6073_v33 = vshll.u32 %v12501_v63, 16 }
 0x6ae   :  { %v4701_v34 = vpop.f32.mrf.mxu0 }
 0x6af   :  { %5106 = vst [vmem:[#allocation2 + $0xe8] sm:$0xff] %v5025_v25  ;;  %v4702_v18 = vadd.f32 %v4701_v34, %v11851_v20  ;;  %v6092_v55 = vsel %vm824_vm0, %v6087_v40, %v12506_v54  ;;  %v6075_v39 = vrot.slane %v6073_v33, 1  ;;  %v12517_v25 = vpop.f32.mrf.mxu1  ;;  %v14134_v40 = vld [vmem:[#allocation67_spill] sm:$0xff] }
 0x6b0   :  { %6515 = vmatmul.bf16.gmra.mxu2 %v6092_v55  ;;  %14133 = vst [vmem:[#allocation107_spill] sm:$0xff] %v12517_v25 }
 0x6b1   :  { %v4860_v57 = vadd.f32 %v4702_v18, %v14132_v61  ;;  %4740 = vmatmul.bf16.gmra.mxu0 %v3827_v0  ;;  %v6076_v44 = vsel %vm824_vm0, %v6071_v6, %v6075_v39  ;;  %v3833_v18 = vsel %vm3680_vm1, %v3826_v60, %v3832_v14 }
 0x6b2   :  { %6580 = vmatmul.bf16.gmra.mxu3 %v6076_v44 }
 0x6b3   :  { %v4945_v37 = vadd.f32 %v12479_v42, %v4860_v57 }
 0x6b5   :  { %v5026_v48 = vmax.f32 %v4945_v37, 0.0 }
 0x6b6   :  { %v4703_v47 = vpop.f32.mrf.mxu0 }
 0x6b7   :  { %5107 = vst [vmem:[#allocation2 + $0xf0] sm:$0xff] %v5026_v48  ;;  %v4704_v20 = vadd.f32 %v4703_v47, %v11857_v5  ;;  %v12524_v55 = vpop.f32.mrf.mxu1  ;;  %v14137_v47 = vld [vmem:[#allocation20_spill] sm:$0xff] }
 0x6b8   :  { %14136 = vst [vmem:[#allocation10_spill] sm:$0xff] %v12524_v55 }
 0x6b9   :  { %v4861_v34 = vadd.f32 %v4704_v20, %v14134_v40 }
 0x6bb   :  { %v4946_v33 = vadd.f32 %v12479_v42, %v4861_v34  ;;  %v14138_v34 = vld [vmem:[#allocation100_spill] sm:$0xff] }
 0x6bc   :  { %v3838_v51 = vrot.slane %v14138_v34, 1  ;;  %v8820_v34 = vld [vmem:[#allocation3 + $0x50] sm:$0xf] }
 0x6bd   :  { %v5027_v61 = vmax.f32 %v4946_v33, 0.0 }
 0x6be   :  { %v4706_v0 = vpop.f32.mrf.mxu0 }
 0x6bf   :  { %5108 = vst [vmem:[#allocation2 + $0xf8] sm:$0xff] %v5027_v61 }
 0x6c1   :  { %4745 = vmatmul.bf16.gmra.mxu0 %v3833_v18 }
 0x6c6   :  { %v5504_v6 = vld [vmem:[#allocation2 + $0xeb] ss:$2 sm:$0xff]  ;;  %v4708_v57 = vpop.f32.mrf.mxu0 }
 0x6c7   :  { %v5505_v44 = vpack.c.bf16 %v5504_v6, %v5504_v6  ;;  %v4709_v37 = vadd.f32 %v4708_v57, %v11879_v35  ;;  %v3839_v35 = vsel %vm3680_vm1, %v3832_v14, %v3838_v51  ;;  %v9468_v57 = vld [vmem:[#allocation3 + $0x64] sm:$0xf] }
 0x6c9   :  { %v5507_v5 = vrot.slane %v5505_v44, 7  ;;  %5513 = vst [vmem:[#allocation3 + $0x70] sm:$0xf] %v5505_v44  ;;  %v5514_v48 = vrot.slane %v5505_v44, 5  ;;  %v4863_v20 = vadd.f32 %v4709_v37, %v14137_v47  ;;  %v14139_v37 = vld [vmem:[#allocation72_spill] sm:$0xff] }
 0x6ca   :  { %v6642_v40 = vpop.f32.mrf.mxu1 }
 0x6cb   :  { %v5508_v33 = vrot.slane %v5507_v5, 4  ;;  %5511 = vst [vmem:[#allocation3 + $0x78] sm:$0xe] %v5507_v5  ;;  %v5515_v60 = vrot.slane %v5514_v48, 4  ;;  %v4948_v61 = vadd.f32 %v12479_v42, %v4863_v20 }
 0x6cc   :  { %5518 = vst [vmem:[#allocation3 + $0x5c] sm:$0x8] %v5514_v48  ;;  %v6093_v48 = vshrl.u32 %v12501_v63, 16 }
 0x6cd   :  { %5512 = vst [vmem:[#allocation3 + $0x84] sm:$0x1] %v5508_v33  ;;  %v5029_v0 = vmax.f32 %v4948_v61, 0.0 }
 0x6ce   :  { %5519 = vst [vmem:[#allocation3 + $0x68] sm:$0x7] %v5515_v60  ;;  %v4711_v18 = vpop.f32.mrf.mxu0  ;;  %v6095_v61 = vor.u32 %v6093_v48, %v6075_v39  ;;  %v14142_v48 = vld [vmem:[#allocation105_spill] sm:$0xff] }
 0x6cf   :  { %5110 = vst [vmem:[#allocation2 + $0x108] sm:$0xff] %v5029_v0  ;;  %v4712_v6 = vadd.f32 %v4711_v18, %v11886_v52  ;;  %v6077_v18 = vshrl.u32 %v12468_v43, 16 }
 0x6d0   :  { %v8826_v44 = vld [vmem:[#allocation3 + $0x6c] sm:$0xf0] }
 0x6d1   :  { %v4864_v47 = vadd.f32 %v4712_v6, %v14139_v37  ;;  %4750 = vmatmul.bf16.gmra.mxu0 %v3839_v35  ;;  %v12533_v40 = vor.u32 %v9468_v57, %v8826_v44  ;;  %v6079_v44 = vor.u32 %v6077_v18, %v12483_v26 }
 0x6d3   :  { %14140 = vst [vmem:[#allocation112_spill] sm:$0xff] %v12533_v40  ;;  %v4949_v5 = vadd.f32 %v12479_v42, %v4864_v47  ;;  %v6097_v20 = vshll.u32 %v12533_v40, 16  ;;  %v9467_v33 = vld [vmem:[#allocation3 + $0x58] sm:$0xf0] }
 0x6d4   :  { %v12538_v60 = vor.u32 %v9467_v33, %v8820_v34  ;;  %v14141_v47 = vld [vmem:[#allocation52_spill] sm:$0xff] }
 0x6d5   :  { %v5030_v14 = vmax.f32 %v4949_v5, 0.0  ;;  %v12540_v52 = vrot.slane %v6097_v20, 1  ;;  %v3844_v20 = vrot.slane %v14142_v48, 1 }
 0x6d6   :  { %v4713_v0 = vpop.f32.mrf.mxu0  ;;  %v6081_v35 = vshll.u32 %v12538_v60, 16 }
 0x6d7   :  { %5111 = vst [vmem:[#allocation2 + $0x110] sm:$0xff] %v5030_v14  ;;  %v4714_v6 = vadd.f32 %v4713_v0, %v11894_v50  ;;  %v6100_v57 = vsel %vm824_vm0, %v6095_v61, %v12540_v52  ;;  %v3845_v50 = vsel %vm3680_vm1, %v3838_v51, %v3844_v20  ;;  %v12553_v61 = vpop.f32.mrf.mxu2  ;;  %v12555_v0 = vpop.f32.mrf.mxu3 }
 0x6d8   :  { %6585 = vmatmul.bf16.gmra.mxu3 %v6100_v57  ;;  %v6083_v37 = vrot.slane %v6081_v35, 1  ;;  %14143 = vst [vmem:[#allocation13_spill] sm:$0xff] %v12553_v61 }
 0x6d9   :  { %v4865_v5 = vadd.f32 %v4714_v6, %v14141_v47  ;;  %14144 = vst [vmem:[#allocation115_spill] sm:$0xff] %v12555_v0 }
 0x6da   :  { %v6084_v39 = vsel %vm824_vm0, %v6079_v44, %v6083_v37  ;;  %v14145_v44 = vld [vmem:[#allocation109_spill] sm:$0xff] }
 0x6db   :  { %v4950_v34 = vadd.f32 %v12479_v42, %v4865_v5  ;;  %6650 = vmatmul.bf16.gmra.mxu1 %v6084_v39  ;;  %v3850_v47 = vrot.slane %v14145_v44, 1 }
 0x6dd   :  { %v5031_v33 = vmax.f32 %v4950_v34, 0.0 }
 0x6de   :  { %v4716_v14 = vpop.f32.mrf.mxu0 }
 0x6df   :  { %5112 = vst [vmem:[#allocation2 + $0x118] sm:$0xff] %v5031_v33  ;;  %v6506_v48 = vpop.f32.mrf.mxu2  ;;  %v3851_v33 = vsel %vm3680_vm1, %v3844_v20, %v3850_v47 }
 0x6e1   :  { %4755 = vmatmul.bf16.gmra.mxu0 %v3845_v50  ;;  %v8832_v50 = vld [vmem:[#allocation3 + $0x68] sm:$0xf] }
 0x6e6   :  { %v5521_v26 = vld [vmem:[#allocation2 + $0x10f] ss:$2 sm:$0xff]  ;;  %v4718_v18 = vpop.f32.mrf.mxu0 }
 0x6e7   :  { %v5522_v35 = vpack.c.bf16 %v5521_v26, %v5521_v26 }
 0x6e9   :  { %v5524_v6 = vrot.slane %v5522_v35, 6  ;;  %v5530_v57 = vrot.slane %v5522_v35, 7  ;;  %5536 = vst [vmem:[#allocation3 + $0x74] sm:$0xf] %v5522_v35  ;;  %v8836_v35 = vld [vmem:[#allocation3 + $0x78] sm:$0xf] }
 0x6eb   :  { %v5525_v5 = vrot.slane %v5524_v6, 4  ;;  %5528 = vst [vmem:[#allocation3 + $0x84] sm:$0xc] %v5524_v6  ;;  %v5531_v39 = vrot.slane %v5530_v57, 4  ;;  %v6101_v6 = vshrl.u32 %v12538_v60, 16 }
 0x6ec   :  { %5534 = vst [vmem:[#allocation3 + $0x7c] sm:$0xe] %v5530_v57 }
 0x6ed   :  { %5529 = vst [vmem:[#allocation3 + $0x90] sm:$0x3] %v5525_v5  ;;  %v6109_v5 = vshrl.u32 %v12495_v13, 16 }
 0x6ee   :  { %5535 = vst [vmem:[#allocation3 + $0x88] sm:$0x1] %v5531_v39  ;;  %v6576_v51 = vpop.f32.mrf.mxu3  ;;  %v4721_v34 = vpop.f32.mrf.mxu0 }
 0x6ef   :  { %v12559_v14 = vadd.f32 %v6576_v51, %v6506_v48  ;;  %v6103_v34 = vor.u32 %v6101_v6, %v6083_v37  ;;  %v8844_v37 = vld [vmem:[#allocation3 + $0x80] sm:$0xf]  ;;  %v9473_v6 = vld [vmem:[#allocation3 + $0x88] sm:$0xf0] }
 0x6f0   :  { %v9470_v26 = vld [vmem:[#allocation3 + $0x70] sm:$0xf0] }
 0x6f1   :  { %4760 = vmatmul.bf16.gmra.mxu0 %v3851_v33  ;;  %v12561_v18 = vor.u32 %v9470_v26, %v8832_v50  ;;  %v6111_v26 = vor.u32 %v6109_v5, %v12506_v54  ;;  %v12579_v5 = vor.u32 %v9473_v6, %v8844_v37 }
 0x6f2   :  { %v9472_v44 = vld [vmem:[#allocation3 + $0x80] sm:$0xf0] }
 0x6f3   :  { %14146 = vst [vmem:[#allocation144_spill] sm:$0xff] %v12561_v18  ;;  %v6105_v57 = vshll.u32 %v12561_v18, 16  ;;  %v12565_v55 = vor.u32 %v9472_v44, %v8836_v35  ;;  %v9471_v39 = vld [vmem:[#allocation3 + $0x7c] sm:$0xf]  ;;  %v6117_v35 = vshrl.u32 %v12533_v40, 16  ;;  %v6129_v61 = vshll.u32 %v12579_v5, 16 }
 0x6f4   :  { %v8848_v0 = vld [vmem:[#allocation3 + $0x90] sm:$0xf]  ;;  %v8850_v40 = vld [vmem:[#allocation3 + $0x9c] sm:$0xf0] }
 0x6f5   :  { %v6107_v20 = vrot.slane %v6105_v57, 1  ;;  %v6113_v48 = vshll.u32 %v12565_v55, 16  ;;  %v8838_v51 = vld [vmem:[#allocation3 + $0x84] sm:$0xf0]  ;;  %v6119_v57 = vor.u32 %v6117_v35, %v12540_v52  ;;  %v6125_v52 = vshrl.u32 %v12561_v18, 16 }
 0x6f6   :  { %v4723_v25 = vpop.f32.mrf.mxu0  ;;  %v12569_v33 = vor.u32 %v9471_v39, %v8838_v51  ;;  %v14148_v39 = vld [vmem:[#allocation114_spill] sm:$0xff] }
 0x6f7   :  { %v6108_v50 = vsel %vm824_vm0, %v6103_v34, %v6107_v20  ;;  %v6115_v11 = vrot.slane %v6113_v48, 1  ;;  %v3856_v51 = vrot.slane %v14148_v39, 1  ;;  %v9475_v34 = vld [vmem:[#allocation3 + $0x98] sm:$0xf0]  ;;  %v12589_v39 = vrot.slane %v6129_v61, 1 }
 0x6f8   :  { %14147 = vst [vmem:[#allocation145_spill] sm:$0xff] %v12569_v33  ;;  %6655 = vmatmul.bf16.gmra.mxu1 %v6108_v50  ;;  %v6121_v44 = vshll.u32 %v12569_v33, 16  ;;  %v12581_v48 = vor.u32 %v9475_v34, %v8848_v0  ;;  %v6133_v0 = vshrl.u32 %v12565_v55, 16 }
 0x6f9   :  { %v6116_v22 = vsel %vm824_vm0, %v6111_v26, %v6115_v11  ;;  %v3857_v26 = vsel %vm3680_vm1, %v3850_v47, %v3856_v51 }
 0x6fa   :  { %6520 = vmatmul.bf16.gmra.mxu2 %v6116_v22  ;;  %v6123_v25 = vrot.slane %v6121_v44, 1  ;;  %14149 = vst [vmem:[#allocation147_spill] sm:$0xff] %v12581_v48  ;;  %v9474_v22 = vld [vmem:[#allocation3 + $0x94] sm:$0xf]  ;;  %v6137_v35 = vshll.u32 %v12581_v48, 16  ;;  %v6135_v6 = vor.u32 %v6133_v0, %v6115_v11 }
 0x6fb   :  { %v12587_v44 = vor.u32 %v9474_v22, %v8850_v40 }
 0x6fc   :  { %v6124_v54 = vsel %vm824_vm0, %v6119_v57, %v6123_v25  ;;  %v6127_v57 = vor.u32 %v6125_v52, %v6107_v20  ;;  %v12593_v47 = vrot.slane %v6137_v35, 1  ;;  %v14150_v20 = vld [vmem:[#allocation117_spill] sm:$0xff]  ;;  %v12603_v52 = vpop.f32.mrf.mxu1 }
 0x6fd   :  { %6590 = vmatmul.bf16.gmra.mxu3 %v6124_v54  ;;  %v6145_v37 = vshll.u32 %v12587_v44, 16  ;;  %v6141_v54 = vshrl.u32 %v12569_v33, 16  ;;  %v3862_v22 = vrot.slane %v14150_v20, 1  ;;  %14151 = vst [vmem:[#allocation118_spill] sm:$0xff] %v12603_v52  ;;  %v14153_v20 = vld [vmem:[#allocation26_spill] sm:$0xff]  ;;  %v14154_v52 = vld [vmem:[#allocation120_spill] sm:$0xff] }
 0x6fe   :  { %v4726_v50 = vpop.f32.mrf.mxu0  ;;  %v6140_v61 = vsel %vm824_vm0, %v6135_v6, %v12593_v47 }
 0x6ff   :  { %v6132_v50 = vsel %vm824_vm0, %v6127_v57, %v12589_v39  ;;  %v12598_v40 = vrot.slane %v6145_v37, 1  ;;  %v3863_v0 = vsel %vm3680_vm1, %v3856_v51, %v3862_v22  ;;  %v3868_v51 = vrot.slane %v14154_v52, 1  ;;  %v12623_v52 = vpop.f32.mrf.mxu2 }
 0x701   :  { %4765 = vmatmul.bf16.gmra.mxu0 %v3857_v26  ;;  %v6143_v26 = vor.u32 %v6141_v54, %v6123_v25  ;;  %v14152_v25 = vld [vmem:[#allocation84_spill] sm:$0xff] }
 0x703   :  { %v6148_v11 = vsel %vm824_vm0, %v6143_v26, %v12598_v40 }
 0x706   :  { %v4728_v34 = vpop.f32.mrf.mxu0 }
 0x708   :  { %6660 = vmatmul.bf16.gmra.mxu1 %v6132_v50 }
 0x70a   :  { %6525 = vmatmul.bf16.gmra.mxu2 %v6140_v61 }
 0x70d   :  { %6595 = vmatmul.bf16.gmra.mxu3 %v6148_v11 }
 0x70e   :  { %v4731_v35 = vpop.f32.mrf.mxu0 }
 0x70f   :  { %v4732_v57 = vadd.f32 %v4731_v35, %v11955_v41 }
 0x711   :  { %v4872_v37 = vadd.f32 %v4732_v57, %v14152_v25  ;;  %4770 = vmatmul.bf16.gmra.mxu0 %v3863_v0  ;;  %v3869_v0 = vsel %vm3680_vm1, %v3862_v22, %v3868_v51 }
 0x713   :  { %v4957_v34 = vadd.f32 %v12479_v42, %v4872_v37  ;;  %v6646_v6 = vpop.f32.mrf.mxu1 }
 0x714   :  { %v12612_v54 = vadd.f32 %v6646_v6, %v12559_v14  ;;  %v14155_v14 = vld [vmem:[#allocation88_spill] sm:$0xff] }
 0x715   :  { %v5038_v50 = vmax.f32 %v4957_v34, 0.0 }
 0x716   :  { %v4733_v61 = vpop.f32.mrf.mxu0 }
 0x717   :  { %5119 = vst [vmem:[#allocation2 + $0x150] sm:$0xff] %v5038_v50  ;;  %v4734_v26 = vadd.f32 %v4733_v61, %v11969_v3  ;;  %v14156_v50 = vld [vmem:[#allocation123_spill] sm:$0xff] }
 0x718   :  { %v3874_v61 = vrot.slane %v14156_v50, 1  ;;  %v14158_v50 = vld [vmem:[#allocation128_spill] sm:$0xff] }
 0x719   :  { %v4873_v11 = vadd.f32 %v4734_v26, %v14153_v20  ;;  %v12625_v26 = vpop.f32.mrf.mxu3 }
 0x71a   :  { %14157 = vst [vmem:[#allocation150_spill] sm:$0xff] %v12625_v26  ;;  %v3875_v22 = vsel %vm3680_vm1, %v3868_v51, %v3874_v61 }
 0x71b   :  { %v4958_v41 = vadd.f32 %v12479_v42, %v4873_v11 }
 0x71d   :  { %v5039_v35 = vmax.f32 %v4958_v41, 0.0 }
 0x71e   :  { %v4736_v57 = vpop.f32.mrf.mxu0 }
 0x71f   :  { %5120 = vst [vmem:[#allocation2 + $0x158] sm:$0xff] %v5039_v35  ;;  %v4737_v25 = vadd.f32 %v4736_v57, %v11979_v10 }
 0x721   :  { %v4874_v37 = vadd.f32 %v4737_v25, %v14155_v14  ;;  %4775 = vmatmul.bf16.gmra.mxu0 %v3869_v0  ;;  %v6511_v25 = vpop.f32.mrf.mxu2 }
 0x723   :  { %v4959_v34 = vadd.f32 %v12479_v42, %v4874_v37 }
 0x725   :  { %v5040_v6 = vmax.f32 %v4959_v34, 0.0 }
 0x726   :  { %v4738_v3 = vpop.f32.mrf.mxu0 }
 0x727   :  { %5121 = vst [vmem:[#allocation2 + $0x160] sm:$0xff] %v5040_v6  ;;  %v8860_v3 = vld [vmem:[#allocation3 + $0xa8] sm:$0xf] }
 0x72e   :  { %v5538_v20 = vld [vmem:[#allocation2 + $0x157] ss:$2 sm:$0xff]  ;;  %v4741_v11 = vpop.f32.mrf.mxu0 }
 0x72f   :  { %v5539_v41 = vpack.c.bf16 %v5538_v20, %v5538_v20  ;;  %v3880_v20 = vrot.slane %v14158_v50, 1 }
 0x731   :  { %v5541_v10 = vrot.slane %v5539_v41, 7  ;;  %5547 = vst [vmem:[#allocation3 + $0xac] sm:$0xf] %v5539_v41  ;;  %v5548_v35 = vrot.slane %v5539_v41, 5  ;;  %4780 = vmatmul.bf16.gmra.mxu0 %v3875_v22 }
 0x733   :  { %v5542_v57 = vrot.slane %v5541_v10, 4  ;;  %5545 = vst [vmem:[#allocation3 + $0xb4] sm:$0xe] %v5541_v10  ;;  %v5549_v0 = vrot.slane %v5548_v35, 4  ;;  %v6157_v10 = vshrl.u32 %v12581_v48, 16 }
 0x734   :  { %5552 = vst [vmem:[#allocation3 + $0x98] sm:$0x8] %v5548_v35  ;;  %v6149_v35 = vshrl.u32 %v12579_v5, 16 }
 0x735   :  { %5546 = vst [vmem:[#allocation3 + $0xc0] sm:$0x1] %v5542_v57  ;;  %v6581_v14 = vpop.f32.mrf.mxu3 }
 0x736   :  { %5553 = vst [vmem:[#allocation3 + $0xa4] sm:$0x7] %v5549_v0  ;;  %v6582_v37 = vadd.f32 %v6581_v14, %v6511_v25  ;;  %v4743_v34 = vpop.f32.mrf.mxu0  ;;  %v6151_v50 = vor.u32 %v6149_v35, %v12589_v39  ;;  %v14159_v35 = vld [vmem:[#allocation89_spill] sm:$0xff] }
 0x737   :  { %v4744_v6 = vadd.f32 %v4743_v34, %v12000_v38  ;;  %v3881_v34 = vsel %vm3680_vm1, %v3874_v61, %v3880_v20 }
 0x739   :  { %v4877_v51 = vadd.f32 %v4744_v6, %v11794_v49 }
 0x73a   :  { %v9478_v11 = vld [vmem:[#allocation3 + $0xb0] sm:$0xf0] }
 0x73b   :  { %v4962_v22 = vadd.f32 %v12479_v42, %v4877_v51  ;;  %v12632_v41 = vor.u32 %v9478_v11, %v8860_v3  ;;  %v8856_v25 = vld [vmem:[#allocation3 + $0x98] sm:$0xf]  ;;  %v6159_v3 = vor.u32 %v6157_v10, %v12593_v47 }
 0x73d   :  { %v5043_v57 = vmax.f32 %v4962_v22, 0.0  ;;  %v6161_v0 = vshll.u32 %v12632_v41, 16  ;;  %v9476_v14 = vld [vmem:[#allocation3 + $0xa0] sm:$0xf0] }
 0x73e   :  { %v4746_v38 = vpop.f32.mrf.mxu0  ;;  %v12638_v49 = vor.u32 %v9476_v14, %v8856_v25 }
 0x73f   :  { %5124 = vst [vmem:[#allocation2 + $0x178] sm:$0xff] %v5043_v57  ;;  %v4747_v6 = vadd.f32 %v4746_v38, %v12006_v2  ;;  %v12642_v51 = vrot.slane %v6161_v0, 1  ;;  %v14160_v0 = vld [vmem:[#allocation131_spill] sm:$0xff] }
 0x740   :  { %v6153_v11 = vshll.u32 %v12638_v49, 16  ;;  %v3886_v25 = vrot.slane %v14160_v0, 1 }
 0x741   :  { %v4878_v22 = vadd.f32 %v4747_v6, %v11799_v31  ;;  %4785 = vmatmul.bf16.gmra.mxu0 %v3881_v34  ;;  %v6164_v26 = vsel %vm824_vm0, %v6159_v3, %v12642_v51  ;;  %v12659_v6 = vpop.f32.mrf.mxu1  ;;  %v12661_v3 = vpop.f32.mrf.mxu2 }
 0x742   :  { %6530 = vmatmul.bf16.gmra.mxu2 %v6164_v26  ;;  %v12649_v61 = vrot.slane %v6153_v11, 1  ;;  %v3887_v34 = vsel %vm3680_vm1, %v3880_v20, %v3886_v25 }
 0x743   :  { %v4963_v57 = vadd.f32 %v12479_v42, %v4878_v22 }
 0x744   :  { %v6156_v2 = vsel %vm824_vm0, %v6151_v50, %v12649_v61  ;;  %v12663_v50 = vpop.f32.mrf.mxu3 }
 0x745   :  { %v5044_v47 = vmax.f32 %v4963_v57, 0.0  ;;  %6665 = vmatmul.bf16.gmra.mxu1 %v6156_v2  ;;  %14161 = vst [vmem:[#allocation17_spill] sm:$0xff] %v12663_v50 }
 0x746   :  { %v4748_v10 = vpop.f32.mrf.mxu0 }
 0x747   :  { %5125 = vst [vmem:[#allocation2 + $0x180] sm:$0xff] %v5044_v47  ;;  %v4749_v39 = vadd.f32 %v4748_v10, %v12018_v15 }
 0x749   :  { %v4879_v31 = vadd.f32 %v4749_v39, %v14159_v35  ;;  %v14162_v39 = vld [vmem:[#allocation93_spill] sm:$0xff] }
 0x74b   :  { %v4964_v14 = vadd.f32 %v12479_v42, %v4879_v31  ;;  %v14163_v31 = vld [vmem:[#allocation133_spill] sm:$0xff] }
 0x74c   :  { %v3892_v0 = vrot.slane %v14163_v31, 1 }
 0x74d   :  { %v5045_v26 = vmax.f32 %v4964_v14, 0.0  ;;  %v6516_v14 = vpop.f32.mrf.mxu2 }
 0x74e   :  { %v4751_v38 = vpop.f32.mrf.mxu0 }
 0x74f   :  { %5126 = vst [vmem:[#allocation2 + $0x188] sm:$0xff] %v5045_v26 }
 0x751   :  { %4790 = vmatmul.bf16.gmra.mxu0 %v3887_v34 }
 0x756   :  { %v5555_v11 = vld [vmem:[#allocation2 + $0x17b] ss:$2 sm:$0xff]  ;;  %v4753_v15 = vpop.f32.mrf.mxu0 }
 0x757   :  { %v5556_v22 = vpack.c.bf16 %v5555_v11, %v5555_v11  ;;  %v4754_v57 = vadd.f32 %v4753_v15, %v12035_v62 }
 0x758   :  { %v6651_v2 = vpop.f32.mrf.mxu1 }
 0x759   :  { %v5558_v47 = vrot.slane %v5556_v22, 6  ;;  %v5564_v10 = vrot.slane %v5556_v22, 7  ;;  %5570 = vst [vmem:[#allocation3 + $0xb0] sm:$0xf] %v5556_v22  ;;  %v4881_v35 = vadd.f32 %v4754_v57, %v14162_v39  ;;  %v12667_v20 = vadd.f32 %v6651_v2, %v6582_v37  ;;  %v14164_v57 = vld [vmem:[#allocation69_spill] sm:$0xff] }
 0x75a   :  { %v3893_v22 = vsel %vm3680_vm1, %v3886_v25, %v3892_v0 }
 0x75b   :  { %v5559_v26 = vrot.slane %v5558_v47, 4  ;;  %5562 = vst [vmem:[#allocation3 + $0xc0] sm:$0xc] %v5558_v47  ;;  %v5565_v38 = vrot.slane %v5564_v10, 4  ;;  %v4966_v34 = vadd.f32 %v12479_v42, %v4881_v35  ;;  %v6586_v50 = vpop.f32.mrf.mxu3  ;;  %v6165_v47 = vshrl.u32 %v12587_v44, 16 }
 0x75c   :  { %5568 = vst [vmem:[#allocation3 + $0xb8] sm:$0xe] %v5564_v10  ;;  %v6587_v11 = vadd.f32 %v6586_v50, %v6516_v14  ;;  %v9477_v35 = vld [vmem:[#allocation3 + $0xac] sm:$0xf]  ;;  %v4546_v50 = vadd.f32 %v12048_v16, %v12025_v1 }
 0x75d   :  { %5563 = vst [vmem:[#allocation3 + $0xcc] sm:$0x3] %v5559_v26  ;;  %v5047_v62 = vmax.f32 %v4966_v34, 0.0  ;;  %v6167_v25 = vor.u32 %v6165_v47, %v12598_v40 }
 0x75e   :  { %5569 = vst [vmem:[#allocation3 + $0xc4] sm:$0x1] %v5565_v38  ;;  %v4756_v15 = vpop.f32.mrf.mxu0 }
 0x75f   :  { %5128 = vst [vmem:[#allocation2 + $0x198] sm:$0xff] %v5047_v62  ;;  %v4757_v37 = vadd.f32 %v4756_v15, %v12044_v19  ;;  %v14166_v62 = vld [vmem:[#allocation33_spill] sm:$0xff] }
 0x760   :  { %v12689_v1 = vpop.f32.mrf.mxu1 }
 0x761   :  { %v4882_v2 = vadd.f32 %v4757_v37, %v14164_v57  ;;  %4795 = vmatmul.bf16.gmra.mxu0 %v3893_v22  ;;  %v14167_v37 = vld [vmem:[#allocation135_spill] sm:$0xff] }
 0x762   :  { %v3898_v57 = vrot.slane %v14167_v37, 1 }
 0x763   :  { %v4967_v39 = vadd.f32 %v12479_v42, %v4882_v2  ;;  %v8862_v31 = vld [vmem:[#allocation3 + $0xb4] sm:$0xf0] }
 0x764   :  { %v12676_v10 = vor.u32 %v9477_v35, %v8862_v31  ;;  %v3899_v47 = vsel %vm3680_vm1, %v3892_v0, %v3898_v57 }
 0x765   :  { %v5048_v14 = vmax.f32 %v4967_v39, 0.0  ;;  %v12692_v39 = vpop.f32.mrf.mxu2 }
 0x766   :  { %14165 = vst [vmem:[#allocation151_spill] sm:$0xff] %v12676_v10  ;;  %v4758_v26 = vpop.f32.mrf.mxu0  ;;  %v6169_v19 = vshll.u32 %v12676_v10, 16 }
 0x767   :  { %5129 = vst [vmem:[#allocation2 + $0x1a0] sm:$0xff] %v5048_v14  ;;  %v4759_v38 = vadd.f32 %v4758_v26, %v4546_v50 }
 0x768   :  { %v12682_v34 = vrot.slane %v6169_v19, 1  ;;  %14168 = vst [vmem:[#allocation146_spill] sm:$0xff] %v12692_v39 }
 0x769   :  { %v4883_v15 = vadd.f32 %v4759_v38, %v14166_v62 }
 0x76a   :  { %v6172_v22 = vsel %vm824_vm0, %v6167_v25, %v12682_v34  ;;  %v12696_v25 = vpop.f32.mrf.mxu3 }
 0x76b   :  { %v4968_v2 = vadd.f32 %v12479_v42, %v4883_v15  ;;  %6600 = vmatmul.bf16.gmra.mxu3 %v6172_v22  ;;  %14169 = vst [vmem:[#allocation152_spill] sm:$0xff] %v12696_v25  ;;  %v14170_v15 = vld [vmem:[#allocation137_spill] sm:$0xff]  ;;  %v6181_v25 = vshrl.u32 %v12632_v41, 16 }
 0x76c   :  { %v3904_v22 = vrot.slane %v14170_v15, 1 }
 0x76d   :  { %v5049_v16 = vmax.f32 %v4968_v2, 0.0 }
 0x76e   :  { %v4761_v40 = vpop.f32.mrf.mxu0 }
 0x76f   :  { %5130 = vst [vmem:[#allocation2 + $0x1a8] sm:$0xff] %v5049_v16 }
 0x771   :  { %4800 = vmatmul.bf16.gmra.mxu0 %v3899_v47  ;;  %v3905_v47 = vsel %vm3680_vm1, %v3898_v57, %v3904_v22 }
 0x775   :  { %v6656_v35 = vpop.f32.mrf.mxu1 }
 0x776   :  { %v5572_v31 = vld [vmem:[#allocation2 + $0x19f] ss:$2 sm:$0xff]  ;;  %v12694_v50 = vadd.f32 %v6656_v35, %v6587_v11  ;;  %v4763_v14 = vpop.f32.mrf.mxu0 }
 0x777   :  { %v5573_v26 = vpack.c.bf16 %v5572_v31, %v5572_v31 }
 0x779   :  { %v5575_v19 = vrot.slane %v5573_v26, 5  ;;  %v5581_v38 = vrot.slane %v5573_v26, 6  ;;  %v5587_v62 = vrot.slane %v5573_v26, 7 }
 0x77b   :  { %v5576_v37 = vrot.slane %v5575_v19, 4  ;;  %5579 = vst [vmem:[#allocation3 + $0xcc] sm:$0x8] %v5575_v19  ;;  %v5582_v0 = vrot.slane %v5581_v38, 4  ;;  %v5588_v2 = vrot.slane %v5587_v62, 4 }
 0x77c   :  { %5585 = vst [vmem:[#allocation3 + $0xc4] sm:$0xc] %v5581_v38  ;;  %v8872_v19 = vld [vmem:[#allocation3 + $0xc0] sm:$0xf] }
 0x77d   :  { %5580 = vst [vmem:[#allocation3 + $0xd8] sm:$0x7] %v5576_v37  ;;  %v6521_v16 = vpop.f32.mrf.mxu2  ;;  %v12699_v40 = vpop.f32.mrf.mxu1 }
 0x77e   :  { %14171 = vst [vmem:[#allocation149_spill] sm:$0xff] %v12699_v40  ;;  %v4766_v11 = vpop.f32.mrf.mxu0 }
 0x77f   :  { %5586 = vst [vmem:[#allocation3 + $0xd0] sm:$0x3] %v5582_v0  ;;  %v4767_v35 = vadd.f32 %v4766_v11, %v12092_v59 }
 0x780   :  { %5591 = vst [vmem:[#allocation3 + $0xbc] sm:$0xe] %v5587_v62  ;;  %v6591_v31 = vpop.f32.mrf.mxu3 }
 0x781   :  { %5592 = vst [vmem:[#allocation3 + $0xc8] sm:$0x1] %v5588_v2  ;;  %v4886_v14 = vadd.f32 %v4767_v35, %v11854_v28  ;;  %v6592_v26 = vadd.f32 %v6591_v31, %v6521_v16  ;;  %4805 = vmatmul.bf16.gmra.mxu0 %v3905_v47  ;;  %v8868_v28 = vld [vmem:[#allocation3 + $0xb0] sm:$0xf]  ;;  %v6183_v47 = vor.u32 %v6181_v25, %v12642_v51 }
 0x782   :  { %v9481_v38 = vld [vmem:[#allocation3 + $0xc8] sm:$0xf0] }
 0x783   :  { %v4971_v15 = vadd.f32 %v12479_v42, %v4886_v14  ;;  %v12705_v37 = vor.u32 %v9481_v38, %v8872_v19  ;;  %v6173_v38 = vshrl.u32 %v12638_v49, 16 }
 0x785   :  { %v5052_v40 = vmax.f32 %v4971_v15, 0.0  ;;  %v6661_v0 = vpop.f32.mrf.mxu1  ;;  %v6185_v57 = vshll.u32 %v12705_v37, 16  ;;  %v12709_v62 = vpop.f32.mrf.mxu2  ;;  %v6175_v25 = vor.u32 %v6173_v38, %v12649_v61  ;;  %v9507_v61 = vld [vmem:[%s13481_s4 + $0x78] sm:$0xff] }
 0x786   :  { %14172 = vst [vmem:[#allocation121_spill] sm:$0xff] %v12709_v62  ;;  %v12711_v59 = vadd.f32 %v6661_v0, %v6592_v26  ;;  %v4768_v2 = vpop.f32.mrf.mxu0  ;;  %6959 = vmatpush.bf16.msra.mxu3 %v9507_v61  ;;  %v12752_v61 = vld [vmem:[%s13482_s3] ss:$0 sm:$0xff] }
 0x787   :  { %v9479_v16 = vld [vmem:[#allocation3 + $0xb8] sm:$0xf0]  ;;  %5133 = vst [vmem:[#allocation2 + $0x1c0] sm:$0xff] %v5052_v40  ;;  %v4769_v11 = vadd.f32 %v4768_v2, %v12150_v30  ;;  %v12715_v35 = vrot.slane %v6185_v57, 1  ;;  %v3910_v30 = vrot.slane %v11337_v24, 1  ;;  %v9499_v24 = vld [vmem:[%s13481_s4 + $0x38] sm:$0xff] }
 0x788   :  { %v12717_v31 = vor.u32 %v9479_v16, %v8868_v28  ;;  %v12719_v14 = vpop.f32.mrf.mxu3  ;;  %6889 = vmatpush.bf16.msra.mxu2 %v9499_v24 }
 0x789   :  { %14174 = vst [vmem:[#allocation19_spill] sm:$0xff] %v12719_v14  ;;  %v4887_v19 = vadd.f32 %v4769_v11, %v11865_v56  ;;  %v6188_v26 = vsel %vm824_vm0, %v6183_v47, %v12715_v35  ;;  %v3911_v2 = vsel %vm3680_vm1, %v3904_v22, %v3910_v30  ;;  %v14175_v47 = vld [vmem:[#allocation36_spill] sm:$0xff] }
 0x78a   :  { %14173 = vst [vmem:[#allocation153_spill] sm:$0xff] %v12717_v31  ;;  %v6177_v15 = vshll.u32 %v12717_v31, 16  ;;  %6534 = vmatmul.bf16.gmra.mxu2 %v6188_v26 }
 0x78b   :  { %v4972_v51 = vadd.f32 %v12479_v42, %v4887_v19 }
 0x78c   :  { %v12729_v40 = vrot.slane %v6177_v15, 1  ;;  %v14176_v15 = vld [vmem:[#allocation142_spill] sm:$0xff] }
 0x78d   :  { %v5053_v0 = vmax.f32 %v4972_v51, 0.0  ;;  %v6526_v16 = vpop.f32.mrf.mxu2  ;;  %v3916_v51 = vrot.slane %v14176_v15, 1 }
 0x78e   :  { %v6180_v56 = vsel %vm824_vm0, %v6175_v25, %v12729_v40  ;;  %v4771_v57 = vpop.f32.mrf.mxu0 }
 0x78f   :  { %6670 = vmatmul.bf16.gmra.mxu1 %v6180_v56  ;;  %5134 = vst [vmem:[#allocation2 + $0x1c8] sm:$0xff] %v5053_v0  ;;  %v4772_v28 = vadd.f32 %v4771_v57, %v12154_v8  ;;  %v3917_v56 = vsel %vm3680_vm1, %v3910_v30, %v3916_v51 }
 0x790   :  { %v6596_v11 = vpop.f32.mrf.mxu3 }
 0x791   :  { %v4888_v19 = vadd.f32 %v4772_v28, %v14175_v47  ;;  %v12742_v26 = vadd.f32 %v6596_v11, %v6526_v16  ;;  %4810 = vmatmul.bf16.gmra.mxu0 %v3911_v2 }
 0x793   :  { %v4973_v22 = vadd.f32 %v12479_v42, %v4888_v19 }
 0x795   :  { %v5054_v8 = vmax.f32 %v4973_v22, 0.0 }
 0x796   :  { %v4773_v38 = vpop.f32.mrf.mxu0 }
 0x797   :  { %5135 = vst [vmem:[#allocation2 + $0x1d0] sm:$0xff] %v5054_v8  ;;  %v8884_v8 = vld [vmem:[#allocation3 + $0xd8] sm:$0xf] }
 0x79e   :  { %v5594_v25 = vld [vmem:[#allocation2 + $0x1c3] ss:$2 sm:$0xff]  ;;  %v4776_v0 = vpop.f32.mrf.mxu0 }
 0x79f   :  { %v5595_v57 = vpack.c.bf16 %v5594_v25, %v5594_v25  ;;  %v4777_v14 = vadd.f32 %v4776_v0, %v12183_v4  ;;  %v4566_v4 = vadd.f32 %v12195_v58, %v12121_v53  ;;  %v14179_v53 = vld [vmem:[#allocation143_spill] sm:$0xff]  ;;  %v9480_v0 = vld [vmem:[#allocation3 + $0xc4] sm:$0xf] }
 0x7a0   :  { %v3922_v58 = vrot.slane %v14179_v53, 1 }
 0x7a1   :  { %5596 = vst [vmem:[#allocation3 + $0xe4] sm:$0xf] %v5595_v57  ;;  %v5598_v28 = vrot.slane %v5595_v57, 5  ;;  %v5604_v16 = vrot.slane %v5595_v57, 6  ;;  %v4890_v2 = vadd.f32 %v4777_v14, %v11891_v29  ;;  %4815 = vmatmul.bf16.gmra.mxu0 %v3917_v56  ;;  %v9515_v29 = vld [vmem:[%s13481_s4 + $0xb8] sm:$0xff]  ;;  %v14177_v14 = vld [vmem:[#allocation74_spill] sm:$0xff] }
 0x7a2   :  { %v3570_v19 = vadd.f32 %v14177_v14, %v11904_v32  ;;  %7029 = vmatpush.bf16.msra.mxu1 %v9515_v29  ;;  %v6189_v32 = vshrl.u32 %v12676_v10, 16 }
 0x7a3   :  { %v5599_v24 = vrot.slane %v5598_v28, 4  ;;  %5602 = vst [vmem:[#allocation3 + $0xd0] sm:$0x8] %v5598_v28  ;;  %v5605_v42 = vrot.slane %v5604_v16, 4  ;;  %v4975_v11 = vadd.f32 %v12752_v61, %v4890_v2  ;;  %v6205_v28 = vshrl.u32 %v12705_v37, 16 }
 0x7a4   :  { %5608 = vst [vmem:[#allocation3 + $0xc8] sm:$0xc] %v5604_v16 }
 0x7a5   :  { %5603 = vst [vmem:[#allocation3 + $0xdc] sm:$0x7] %v5599_v24  ;;  %v5056_v30 = vmax.f32 %v4975_v11, 0.0 }
 0x7a6   :  { %5609 = vst [vmem:[#allocation3 + $0xd4] sm:$0x3] %v5605_v42  ;;  %v4778_v47 = vpop.f32.mrf.mxu0  ;;  %v6207_v42 = vor.u32 %v6205_v28, %v12715_v35  ;;  %v9498_v35 = vld [vmem:[%s13481_s4 + $0x30] sm:$0xff] }
 0x7a7   :  { %5137 = vst [vmem:[#allocation2 + $0x1e0] sm:$0xff] %v5056_v30  ;;  %v4779_v22 = vadd.f32 %v4778_v47, %v4566_v4  ;;  %v3923_v47 = vsel %vm3680_vm1, %v3916_v51, %v3922_v58  ;;  %v9514_v51 = vld [vmem:[%s13481_s4 + $0xb0] sm:$0xff]  ;;  %6890 = vmatpush.bf16.msra.mxu2 %v9498_v35  ;;  %v14185_v35 = vld [vmem:[#allocation97_spill] sm:$0xff] }
 0x7a8   :  { %v9484_v38 = vld [vmem:[#allocation3 + $0xe0] sm:$0xf0]  ;;  %7030 = vmatpush.bf16.msra.mxu1 %v9514_v51 }
 0x7a9   :  { %v4891_v15 = vadd.f32 %v4779_v22, %v3570_v19  ;;  %v12762_v25 = vor.u32 %v9484_v38, %v8884_v8  ;;  %v6191_v19 = vor.u32 %v6189_v32, %v12682_v34  ;;  %v9506_v8 = vld [vmem:[%s13481_s4 + $0x70] sm:$0xff] }
 0x7aa   :  { %v8874_v56 = vld [vmem:[#allocation3 + $0xcc] sm:$0xf0]  ;;  %6960 = vmatpush.bf16.msra.mxu3 %v9506_v8 }
 0x7ab   :  { %14178 = vst [vmem:[#allocation126_spill] sm:$0xff] %v12762_v25  ;;  %v4976_v57 = vadd.f32 %v12752_v61, %v4891_v15  ;;  %v6209_v16 = vshll.u32 %v12762_v25, 16  ;;  %v12768_v2 = vor.u32 %v9480_v0, %v8874_v56  ;;  %v12792_v0 = vpop.f32.mrf.mxu1  ;;  %v12794_v56 = vpop.f32.mrf.mxu2 }
 0x7ac   :  { %14181 = vst [vmem:[#allocation155_spill] sm:$0xff] %v12792_v0 }
 0x7ad   :  { %14180 = vst [vmem:[#allocation21_spill] sm:$0xff] %v12768_v2  ;;  %v5057_v24 = vmax.f32 %v4976_v57, 0.0  ;;  %v12772_v11 = vrot.slane %v6209_v16, 1  ;;  %v6193_v4 = vshll.u32 %v12768_v2, 16 }
 0x7ae   :  { %v4781_v30 = vpop.f32.mrf.mxu0  ;;  %14182 = vst [vmem:[#allocation148_spill] sm:$0xff] %v12794_v56 }
 0x7af   :  { %5138 = vst [vmem:[#allocation2 + $0x1e8] sm:$0xff] %v5057_v24  ;;  %v4782_v29 = vadd.f32 %v4781_v30, %v12240_v7  ;;  %v6212_v14 = vsel %vm824_vm0, %v6207_v42, %v12772_v11  ;;  %v6195_v22 = vrot.slane %v6193_v4, 1 }
 0x7b0   :  { %6539 = vmatmul.bf16.gmra.mxu2 %v6212_v14 }
 0x7b1   :  { %v4892_v7 = vadd.f32 %v4782_v29, %v11909_v46  ;;  %4820 = vmatmul.bf16.gmra.mxu0 %v3923_v47  ;;  %v6196_v38 = vsel %vm824_vm0, %v6191_v19, %v6195_v22  ;;  %v4576_v47 = vadd.f32 %v12285_v12, %v12198_v23  ;;  %v14184_v19 = vld [vmem:[#allocation77_spill] sm:$0xff]  ;;  %v8880_v23 = vld [vmem:[#allocation3 + $0xc8] sm:$0xf] }
 0x7b2   :  { %6604 = vmatmul.bf16.gmra.mxu3 %v6196_v38  ;;  %v3580_v8 = vadd.f32 %v14185_v35, %v14184_v19  ;;  %v9513_v19 = vld [vmem:[%s13481_s4 + $0xa8] sm:$0xff] }
 0x7b3   :  { %v4977_v34 = vadd.f32 %v12752_v61, %v4892_v7  ;;  %7031 = vmatpush.bf16.msra.mxu1 %v9513_v19  ;;  %v12837_v19 = vpop.f32.mrf.mxu3 }
 0x7b4   :  { %14195 = vst [vmem:[#allocation130_spill] sm:$0xff] %v12837_v19 }
 0x7b5   :  { %v5058_v15 = vmax.f32 %v4977_v34, 0.0 }
 0x7b6   :  { %v4783_v53 = vpop.f32.mrf.mxu0 }
 0x7b7   :  { %5139 = vst [vmem:[#allocation2 + $0x1f0] sm:$0xff] %v5058_v15  ;;  %v6213_v15 = vshrl.u32 %v12768_v2, 16 }
 0x7be   :  { %v5611_v57 = vld [vmem:[#allocation2 + $0x1e7] ss:$2 sm:$0xff]  ;;  %v4786_v28 = vpop.f32.mrf.mxu0 }
 0x7bf   :  { %v5612_v16 = vpack.c.bf16 %v5611_v57, %v5611_v57 }
 0x7c1   :  { %v5614_v46 = vrot.slane %v5612_v16, 7  ;;  %5620 = vst [vmem:[#allocation3 + $0xe8] sm:$0xf] %v5612_v16  ;;  %v5621_v32 = vrot.slane %v5612_v16, 5  ;;  %4825 = vmatmul.bf16.gmra.mxu0 %v3922_v58  ;;  %v9483_v58 = vld [vmem:[#allocation3 + $0xdc] sm:$0xf]  ;;  %v6215_v16 = vor.u32 %v6213_v15, %v6195_v22 }
 0x7c2   :  { %v6666_v24 = vpop.f32.mrf.mxu1  ;;  %v14190_v15 = vld [vmem:[#allocation129_spill] sm:$0xff] }
 0x7c3   :  { %v5615_v42 = vrot.slane %v5614_v46, 4  ;;  %5618 = vst [vmem:[#allocation3 + $0xf0] sm:$0xe] %v5614_v46  ;;  %v5622_v4 = vrot.slane %v5621_v32, 4  ;;  %v12797_v30 = vadd.f32 %v6666_v24, %v12742_v26  ;;  %v6197_v24 = vshrl.u32 %v12717_v31, 16 }
 0x7c4   :  { %5625 = vst [vmem:[#allocation3 + $0xd4] sm:$0x8] %v5621_v32 }
 0x7c5   :  { %14183 = vst [vmem:[#allocation32_spill] sm:$0xff] %v12797_v30  ;;  %v6531_v29 = vpop.f32.mrf.mxu2  ;;  %v6199_v35 = vor.u32 %v6197_v24, %v12729_v40 }
 0x7c6   :  { %5619 = vst [vmem:[#allocation3 + $0xfc] sm:$0x1] %v5615_v42  ;;  %v4788_v14 = vpop.f32.mrf.mxu0  ;;  %v14187_v29 = vld [vmem:[#allocation125_spill] sm:$0xff] }
 0x7c7   :  { %5626 = vst [vmem:[#allocation3 + $0xe0] sm:$0x7] %v5622_v4  ;;  %v4789_v51 = vadd.f32 %v4788_v14, %v4576_v47  ;;  %v9497_v4 = vld [vmem:[%s13481_s4 + $0x28] sm:$0xff] }
 0x7c8   :  { %v8886_v7 = vld [vmem:[#allocation3 + $0xe4] sm:$0xf0]  ;;  %v9505_v47 = vld [vmem:[%s13481_s4 + $0x68] sm:$0xff]  ;;  %6891 = vmatpush.bf16.msra.mxu2 %v9497_v4 }
 0x7c9   :  { %v4895_v38 = vadd.f32 %v4789_v51, %v3580_v8  ;;  %v12803_v34 = vor.u32 %v9483_v58, %v8886_v7  ;;  %v14188_v51 = vld [vmem:[#allocation102_spill] sm:$0xff]  ;;  %6961 = vmatpush.bf16.msra.mxu3 %v9505_v47 }
 0x7cb   :  { %v4980_v26 = vadd.f32 %v12752_v61, %v4895_v38  ;;  %v6217_v53 = vshll.u32 %v12803_v34, 16  ;;  %v9482_v12 = vld [vmem:[#allocation3 + $0xd0] sm:$0xf0] }
 0x7cc   :  { %v12808_v57 = vor.u32 %v9482_v12, %v8880_v23 }
 0x7cd   :  { %v5061_v28 = vmax.f32 %v4980_v26, 0.0  ;;  %v12810_v46 = vrot.slane %v6217_v53, 1  ;;  %v14189_v26 = vld [vmem:[#allocation59_spill] sm:$0xff] }
 0x7ce   :  { %14186 = vst [vmem:[#allocation154_spill] sm:$0xff] %v12808_v57  ;;  %v4791_v32 = vpop.f32.mrf.mxu0  ;;  %v6201_v42 = vshll.u32 %v12808_v57, 16  ;;  %v4581_v53 = vadd.f32 %v14190_v15, %v14189_v26 }
 0x7cf   :  { %5142 = vst [vmem:[#allocation2 + $0x208] sm:$0xff] %v5061_v28  ;;  %v4792_v14 = vadd.f32 %v4791_v32, %v14187_v29  ;;  %v6220_v22 = vsel %vm824_vm0, %v6215_v16, %v12810_v46  ;;  %v14191_v28 = vld [vmem:[#allocation82_spill] sm:$0xff]  ;;  %v14192_v16 = vld [vmem:[#allocation101_spill] sm:$0xff]  ;;  %v14193_v29 = vld [vmem:[#allocation104_spill] sm:$0xff] }
 0x7d0   :  { %6609 = vmatmul.bf16.gmra.mxu3 %v6220_v22  ;;  %v6203_v8 = vrot.slane %v6201_v42, 1  ;;  %v3585_v32 = vadd.f32 %v14192_v16, %v14191_v28 }
 0x7d1   :  { %v4896_v58 = vadd.f32 %v4792_v14, %v14188_v51  ;;  %v14194_v14 = vld [vmem:[#allocation68_spill] sm:$0xff] }
 0x7d2   :  { %v6204_v7 = vsel %vm824_vm0, %v6199_v35, %v6203_v8  ;;  %v4586_v22 = vadd.f32 %v14194_v14, %v14193_v29  ;;  %v8892_v29 = vld [vmem:[#allocation3 + $0xe0] sm:$0xf] }
 0x7d3   :  { %v4981_v38 = vadd.f32 %v12752_v61, %v4896_v58  ;;  %6674 = vmatmul.bf16.gmra.mxu1 %v6204_v7  ;;  %v14196_v58 = vld [vmem:[#allocation106_spill] sm:$0xff]  ;;  %v14197_v7 = vld [vmem:[#allocation39_spill] sm:$0xff] }
 0x7d5   :  { %v5062_v23 = vmax.f32 %v4981_v38, 0.0  ;;  %v3590_v38 = vadd.f32 %v14197_v7, %v14196_v58 }
 0x7d6   :  { %v4793_v12 = vpop.f32.mrf.mxu0 }
 0x7d7   :  { %5143 = vst [vmem:[#allocation2 + $0x210] sm:$0xff] %v5062_v23  ;;  %v4794_v40 = vadd.f32 %v4793_v12, %v4581_v53 }
 0x7d9   :  { %v4897_v24 = vadd.f32 %v4794_v40, %v3585_v32 }
 0x7db   :  { %v4982_v42 = vadd.f32 %v12752_v61, %v4897_v24 }
 0x7dd   :  { %v5063_v4 = vmax.f32 %v4982_v42, 0.0 }
 0x7de   :  { %v4796_v47 = vpop.f32.mrf.mxu0 }
 0x7df   :  { %5144 = vst [vmem:[#allocation2 + $0x218] sm:$0xff] %v5063_v4  ;;  %v14198_v4 = vld [vmem:[#allocation116_spill] sm:$0xff] }
 0x7e6   :  { %v5628_v35 = vld [vmem:[#allocation2 + $0x20b] ss:$2 sm:$0xff]  ;;  %v4798_v51 = vpop.f32.mrf.mxu0 }
 0x7e7   :  { %v5629_v26 = vpack.c.bf16 %v5628_v35, %v5628_v35  ;;  %v4799_v15 = vadd.f32 %v4798_v51, %v4586_v22  ;;  %v9496_v22 = vld [vmem:[%s13481_s4 + $0x20] sm:$0xff]  ;;  %v14199_v51 = vld [vmem:[#allocation110_spill] sm:$0xff] }
 0x7e8   :  { %v9504_v35 = vld [vmem:[%s13481_s4 + $0x60] sm:$0xff]  ;;  %6892 = vmatpush.bf16.msra.mxu2 %v9496_v22  ;;  %v14204_v22 = vld [vmem:[#allocation42_spill] sm:$0xff] }
 0x7e9   :  { %v5631_v23 = vrot.slane %v5629_v26, 6  ;;  %v5637_v53 = vrot.slane %v5629_v26, 7  ;;  %5643 = vst [vmem:[#allocation3 + $0xec] sm:$0xf] %v5629_v26  ;;  %v4899_v12 = vadd.f32 %v4799_v15, %v3590_v38  ;;  %v9512_v38 = vld [vmem:[%s13481_s4 + $0xa0] sm:$0xff]  ;;  %6962 = vmatpush.bf16.msra.mxu3 %v9504_v35 }
 0x7ea   :  { %v8896_v26 = vld [vmem:[#allocation3 + $0xf0] sm:$0xf]  ;;  %7032 = vmatpush.bf16.msra.mxu1 %v9512_v38 }
 0x7eb   :  { %v5632_v28 = vrot.slane %v5631_v23, 4  ;;  %5635 = vst [vmem:[#allocation3 + $0xfc] sm:$0xc] %v5631_v23  ;;  %v5638_v16 = vrot.slane %v5637_v53, 4  ;;  %v4984_v32 = vadd.f32 %v12752_v61, %v4899_v12 }
 0x7ec   :  { %5641 = vst [vmem:[#allocation3 + $0xf4] sm:$0xe] %v5637_v53  ;;  %v6221_v53 = vshrl.u32 %v12808_v57, 16 }
 0x7ed   :  { %5636 = vst [vmem:[#allocation3 + $0x108] sm:$0x3] %v5632_v28  ;;  %v5065_v40 = vmax.f32 %v4984_v32, 0.0  ;;  %v14202_v32 = vld [vmem:[#allocation119_spill] sm:$0xff] }
 0x7ee   :  { %5642 = vst [vmem:[#allocation3 + $0x100] sm:$0x1] %v5638_v16  ;;  %v6601_v24 = vpop.f32.mrf.mxu3  ;;  %v4801_v42 = vpop.f32.mrf.mxu0  ;;  %v14201_v16 = vld [vmem:[#allocation108_spill] sm:$0xff] }
 0x7ef   :  { %5146 = vst [vmem:[#allocation2 + $0x228] sm:$0xff] %v5065_v40  ;;  %v4802_v47 = vadd.f32 %v4801_v42, %v14198_v4  ;;  %v4591_v40 = vadd.f32 %v14202_v32, %v14201_v16  ;;  %v6229_v24 = vshrl.u32 %v12762_v25, 16  ;;  %v6223_v4 = vor.u32 %v6221_v53, %v6203_v8  ;;  %v9495_v8 = vld [vmem:[%s13481_s4 + $0x18] sm:$0xff] }
 0x7f0   :  { %v9485_v14 = vld [vmem:[#allocation3 + $0xe8] sm:$0xf0]  ;;  %6893 = vmatpush.bf16.msra.mxu2 %v9495_v8 }
 0x7f1   :  { %v4900_v58 = vadd.f32 %v4802_v47, %v14199_v51  ;;  %v12850_v7 = vor.u32 %v9485_v14, %v8892_v29  ;;  %v14203_v14 = vld [vmem:[#allocation86_spill] sm:$0xff] }
 0x7f2   :  { %v9487_v15 = vld [vmem:[#allocation3 + $0xf8] sm:$0xf0]  ;;  %v3595_v35 = vadd.f32 %v14204_v22, %v14203_v14 }
 0x7f3   :  { %v4985_v23 = vadd.f32 %v12752_v61, %v4900_v58  ;;  %v6225_v12 = vshll.u32 %v12850_v7, 16  ;;  %v12858_v28 = vor.u32 %v9487_v15, %v8896_v26  ;;  %v6231_v26 = vor.u32 %v6229_v24, %v12772_v11  ;;  %v12882_v24 = vpop.f32.mrf.mxu1 }
 0x7f4   :  { %14205 = vst [vmem:[#allocation23_spill] sm:$0xff] %v12882_v24 }
 0x7f5   :  { %14200 = vst [vmem:[#allocation156_spill] sm:$0xff] %v12858_v28  ;;  %v5066_v42 = vmax.f32 %v4985_v23, 0.0  ;;  %v12863_v47 = vrot.slane %v6225_v12, 1  ;;  %v6233_v29 = vshll.u32 %v12858_v28, 16  ;;  %v9503_v23 = vld [vmem:[%s13481_s4 + $0x58] sm:$0xff] }
 0x7f6   :  { %v4803_v51 = vpop.f32.mrf.mxu0  ;;  %6963 = vmatpush.bf16.msra.mxu3 %v9503_v23 }
 0x7f7   :  { %5147 = vst [vmem:[#allocation2 + $0x230] sm:$0xff] %v5066_v42  ;;  %v4804_v58 = vadd.f32 %v4803_v51, %v4591_v40  ;;  %v6228_v38 = vsel %vm824_vm0, %v6223_v4, %v12863_v47  ;;  %v6235_v15 = vrot.slane %v6233_v29, 1  ;;  %v9511_v40 = vld [vmem:[%s13481_s4 + $0x98] sm:$0xff] }
 0x7f8   :  { %6679 = vmatmul.bf16.gmra.mxu1 %v6228_v38 }
 0x7f9   :  { %v4901_v53 = vadd.f32 %v4804_v58, %v3595_v35  ;;  %v6236_v12 = vsel %vm824_vm0, %v6231_v26, %v6235_v15  ;;  %7033 = vmatpush.bf16.msra.mxu1 %v9511_v40 }
 0x7fa   :  { %6544 = vmatmul.bf16.gmra.mxu2 %v6236_v12 }
 0x7fb   :  { %v4986_v16 = vadd.f32 %v12752_v61, %v4901_v53  ;;  %v14206_v53 = vld [vmem:[#allocation111_spill] sm:$0xff] }
 0x7fd   :  { %v5067_v32 = vmax.f32 %v4986_v16, 0.0 }
 0x7fe   :  { %v4806_v11 = vpop.f32.mrf.mxu0 }
 0x7ff   :  { %5148 = vst [vmem:[#allocation2 + $0x238] sm:$0xff] %v5067_v32  ;;  %v9486_v32 = vld [vmem:[#allocation3 + $0xf4] sm:$0xf] }
 0x806   :  { %v5645_v42 = vld [vmem:[#allocation2 + $0x22f] ss:$2 sm:$0xff]  ;;  %v4808_v4 = vpop.f32.mrf.mxu0 }
 0x807   :  { %v5646_v29 = vpack.c.bf16 %v5645_v42, %v5645_v42 }
 0x809   :  { %v5648_v14 = vrot.slane %v5646_v29, 5  ;;  %v5654_v22 = vrot.slane %v5646_v29, 6  ;;  %v5660_v35 = vrot.slane %v5646_v29, 7  ;;  %v14207_v29 = vld [vmem:[#allocation122_spill] sm:$0xff] }
 0x80b   :  { %v5649_v51 = vrot.slane %v5648_v14, 4  ;;  %5652 = vst [vmem:[#allocation3 + $0x108] sm:$0x8] %v5648_v14  ;;  %v5655_v58 = vrot.slane %v5654_v22, 4  ;;  %v5661_v26 = vrot.slane %v5660_v35, 4  ;;  %v14208_v14 = vld [vmem:[#allocation90_spill] sm:$0xff] }
 0x80c   :  { %v6671_v38 = vpop.f32.mrf.mxu1  ;;  %5658 = vst [vmem:[#allocation3 + $0x100] sm:$0xc] %v5654_v22  ;;  %v4601_v22 = vadd.f32 %v14208_v14, %v14207_v29 }
 0x80d   :  { %5653 = vst [vmem:[#allocation3 + $0x114] sm:$0x7] %v5649_v51 }
 0x80e   :  { %5659 = vst [vmem:[#allocation3 + $0x10c] sm:$0x3] %v5655_v58  ;;  %v4811_v8 = vpop.f32.mrf.mxu0 }
 0x80f   :  { %5664 = vst [vmem:[#allocation3 + $0xf8] sm:$0xe] %v5660_v35  ;;  %v4812_v23 = vadd.f32 %v4811_v8, %v12415_v9  ;;  %v6237_v9 = vshrl.u32 %v12803_v34, 16  ;;  %v14210_v8 = vld [vmem:[#allocation46_spill] sm:$0xff] }
 0x810   :  { %5665 = vst [vmem:[#allocation3 + $0x104] sm:$0x1] %v5661_v26  ;;  %v14209_v26 = vld [vmem:[#allocation91_spill] sm:$0xff] }
 0x811   :  { %v4904_v12 = vadd.f32 %v4812_v23, %v14206_v53  ;;  %v3605_v23 = vadd.f32 %v14210_v8, %v14209_v26 }
 0x812   :  { %v8908_v42 = vld [vmem:[#allocation3 + $0x108] sm:$0xf] }
 0x813   :  { %v4989_v16 = vadd.f32 %v12752_v61, %v4904_v12  ;;  %v8898_v11 = vld [vmem:[#allocation3 + $0xfc] sm:$0xf0]  ;;  %v6253_v12 = vshrl.u32 %v12858_v28, 16 }
 0x814   :  { %v12887_v40 = vor.u32 %v9486_v32, %v8898_v11  ;;  %v9490_v4 = vld [vmem:[#allocation3 + $0x110] sm:$0xf0]  ;;  %v9502_v11 = vld [vmem:[%s13481_s4 + $0x50] sm:$0xff] }
 0x815   :  { %v5070_v51 = vmax.f32 %v4989_v16, 0.0  ;;  %v12891_v58 = vor.u32 %v9490_v4, %v8908_v42  ;;  %v9494_v16 = vld [vmem:[%s13481_s4 + $0x10] sm:$0xff]  ;;  %v6239_v4 = vor.u32 %v6237_v9, %v12810_v46  ;;  %6964 = vmatpush.bf16.msra.mxu3 %v9502_v11  ;;  %v14211_v9 = vld [vmem:[#allocation51_spill] sm:$0xff] }
 0x816   :  { %v4813_v35 = vpop.f32.mrf.mxu0  ;;  %v6241_v38 = vshll.u32 %v12887_v40, 16  ;;  %v9510_v42 = vld [vmem:[%s13481_s4 + $0x90] sm:$0xff]  ;;  %6894 = vmatpush.bf16.msra.mxu2 %v9494_v16 }
 0x817   :  { %5151 = vst [vmem:[#allocation2 + $0x250] sm:$0xff] %v5070_v51  ;;  %v4814_v53 = vadd.f32 %v4813_v35, %v4601_v22  ;;  %v6257_v32 = vshll.u32 %v12891_v58, 16  ;;  %v6255_v22 = vor.u32 %v6253_v12, %v6235_v15  ;;  %7034 = vmatpush.bf16.msra.mxu1 %v9510_v42  ;;  %v9493_v12 = vld [vmem:[%s13481_s4 + $0x8] sm:$0xff] }
 0x818   :  { %v12909_v29 = vrot.slane %v6241_v38, 1 }
 0x819   :  { %v4905_v14 = vadd.f32 %v4814_v53, %v3605_v23  ;;  %v6259_v51 = vrot.slane %v6257_v32, 1  ;;  %v9501_v32 = vld [vmem:[%s13481_s4 + $0x48] sm:$0xff] }
 0x81a   :  { %v6244_v35 = vsel %vm824_vm0, %v6239_v4, %v12909_v29  ;;  %6895 = vmatpush.bf16.msra.mxu2 %v9493_v12  ;;  %6965 = vmatpush.bf16.msra.mxu3 %v9501_v32  ;;  %v8904_v12 = vld [vmem:[#allocation3 + $0xf8] sm:$0xf] }
 0x81b   :  { %v4990_v26 = vadd.f32 %v12752_v61, %v4905_v14  ;;  %6614 = vmatmul.bf16.gmra.mxu3 %v6244_v35  ;;  %v6260_v8 = vsel %vm824_vm0, %v6255_v22, %v6259_v51  ;;  %v5781_v35 = vld [vmem:[#allocation3 + $0x12c] sm:$0x11] }
 0x81c   :  { %6549 = vmatmul.bf16.gmra.mxu2 %v6260_v8 }
 0x81d   :  { %v5071_v24 = vmax.f32 %v4990_v26, 0.0 }
 0x81e   :  { %v4816_v19 = vpop.f32.mrf.mxu0 }
 0x81f   :  { %5152 = vst [vmem:[#allocation2 + $0x258] sm:$0xff] %v5071_v24  ;;  %v4817_v46 = vadd.f32 %v4816_v19, %v12440_v27  ;;  %v9509_v24 = vld [vmem:[%s13481_s4 + $0x88] sm:$0xff]  ;;  %v12927_v27 = vpop.f32.mrf.mxu2 }
 0x820   :  { %7035 = vmatpush.bf16.msra.mxu1 %v9509_v24  ;;  %14212 = vst [vmem:[#allocation157_spill] sm:$0xff] %v12927_v27 }
 0x821   :  { %v4906_v15 = vadd.f32 %v4817_v46, %v14211_v9 }
 0x823   :  { %v4991_v38 = vadd.f32 %v12752_v61, %v4906_v15  ;;  %v12929_v61 = vpop.f32.mrf.mxu3  ;;  %v5959_v15 = vunpack.c.l.b16 %v5781_v35 }
 0x824   :  { %14213 = vst [vmem:[#allocation132_spill] sm:$0xff] %v12929_v61 }
 0x825   :  { %v5072_v23 = vmax.f32 %v4991_v38, 0.0 }
 0x826   :  { %v4818_v53 = vpop.f32.mrf.mxu0 }
 0x827   :  { %5153 = vst [vmem:[#allocation2 + $0x260] sm:$0xff] %v5072_v23  ;;  %v6535_v26 = vpop.f32.mrf.mxu2 }
 0x82e   :  { %v5667_v19 = vld [vmem:[#allocation2 + $0x253] ss:$2 sm:$0xff]  ;;  %v4821_v16 = vpop.f32.mrf.mxu0 }
 0x82f   :  { %v5668_v11 = vpack.c.bf16 %v5667_v19, %v5667_v19 }
 0x831   :  { %5669 = vst [vmem:[#allocation3 + $0x120] sm:$0xf] %v5668_v11  ;;  %v5671_v42 = vrot.slane %v5668_v11, 5  ;;  %v5677_v4 = vrot.slane %v5668_v11, 6  ;;  %v9492_v11 = vld [vmem:[%s13481_s4] sm:$0xff] }
 0x832   :  { %6896 = vmatpush.bf16.msra.mxu2 %v9492_v11  ;;  %v9491_v11 = vld [vmem:[#allocation3 + $0x118] sm:$0xf0] }
 0x833   :  { %v5672_v14 = vrot.slane %v5671_v42, 4  ;;  %5675 = vst [vmem:[#allocation3 + $0x10c] sm:$0x8] %v5671_v42  ;;  %v5678_v22 = vrot.slane %v5677_v4, 4  ;;  %v6277_v42 = vshrl.u32 %v12891_v58, 16 }
 0x834   :  { %5681 = vst [vmem:[#allocation3 + $0x104] sm:$0xc] %v5677_v4 }
 0x835   :  { %5676 = vst [vmem:[#allocation3 + $0x118] sm:$0x7] %v5672_v14  ;;  %v6605_v8 = vpop.f32.mrf.mxu3 }
 0x836   :  { %5682 = vst [vmem:[#allocation3 + $0x110] sm:$0x3] %v5678_v22  ;;  %v6606_v46 = vadd.f32 %v6605_v8, %v6535_v26  ;;  %v4823_v9 = vpop.f32.mrf.mxu0  ;;  %v6245_v26 = vshrl.u32 %v12850_v7, 16 }
 0x837   :  { %v6261_v9 = vshrl.u32 %v12887_v40, 16 }
 0x838   :  { %v5731_v38 = vld [vmem:[#allocation3 + $0x120] sm:$0xff]  ;;  %v6247_v61 = vor.u32 %v6245_v26, %v12863_v47  ;;  %v9508_v47 = vld [vmem:[%s13481_s4 + $0x80] sm:$0xff] }
 0x839   :  { %v12931_v23 = vunpack.c.l.b16 %v5731_v38  ;;  %7036 = vmatpush.bf16.msra.mxu1 %v9508_v47 }
 0x83a   :  { %v9489_v19 = vld [vmem:[#allocation3 + $0x10c] sm:$0xf] }
 0x83b   :  { %v12934_v53 = vpack.c.b16 %v5959_v15, %v12931_v23  ;;  %v9488_v32 = vld [vmem:[#allocation3 + $0x100] sm:$0xf0]  ;;  %v6279_v15 = vor.u32 %v6277_v42, %v6259_v51  ;;  %v9500_v51 = vld [vmem:[%s13481_s4 + $0x40] sm:$0xff]  ;;  %v12960_v42 = vunpack.c.h.b16 %v5731_v38 }
 0x83c   :  { %v12936_v24 = vor.u32 %v9488_v32, %v8904_v12  ;;  %v8910_v16 = vld [vmem:[#allocation3 + $0x114] sm:$0xf0]  ;;  %6966 = vmatpush.bf16.msra.mxu3 %v9500_v51 }
 0x83d   :  { %14214 = vst [vmem:[#allocation25_spill] sm:$0xff] %v12934_v53  ;;  %v6281_v4 = vshll.u32 %v12934_v53, 16  ;;  %v12943_v14 = vor.u32 %v9489_v19, %v8910_v16  ;;  %v6263_v19 = vor.u32 %v6261_v9, %v12909_v29  ;;  %v8916_v62 = vld [vmem:[#allocation3 + $0x110] sm:$0xf]  ;;  %v5960_v29 = vunpack.c.h.b16 %v5781_v35  ;;  %v12972_v9 = vpop.f32.mrf.mxu3 }
 0x83e   :  { %v4826_v22 = vpop.f32.mrf.mxu0  ;;  %v6249_v8 = vshll.u32 %v12936_v24, 16  ;;  %14215 = vst [vmem:[#allocation134_spill] sm:$0xff] %v12960_v42  ;;  %v6269_v38 = vshrl.u32 %v12936_v24, 16 }
 0x83f   :  { %v6283_v12 = vrot.slane %v6281_v4, 1  ;;  %v6265_v32 = vshll.u32 %v12943_v14, 16  ;;  %v12964_v4 = vpop.f32.mrf.mxu1  ;;  %v12967_v26 = vpack.c.b16 %v5960_v29, %v12960_v42  ;;  %14219 = vst [vmem:[#allocation139_spill] sm:$0xff] %v12972_v9  ;;  %v6285_v35 = vshrl.u32 %v12943_v14, 16 }
 0x840   :  { %v6251_v27 = vrot.slane %v6249_v8, 1  ;;  %14216 = vst [vmem:[#allocation28_spill] sm:$0xff] %v12964_v4 }
 0x841   :  { %v6284_v56 = vsel %vm824_vm0, %v6279_v15, %v6283_v12  ;;  %v6267_v16 = vrot.slane %v6265_v32, 1  ;;  %14217 = vst [vmem:[#allocation136_spill] sm:$0xff] %v12967_v26  ;;  %v6301_v15 = vshrl.u32 %v12934_v53, 16 }
 0x842   :  { %6554 = vmatmul.bf16.gmra.mxu2 %v6284_v56  ;;  %v6252_v22 = vsel %vm824_vm0, %v6247_v61, %v6251_v27  ;;  %v12962_v56 = vor.u32 %v9491_v11, %v8916_v62  ;;  %v6289_v62 = vshll.u32 %v12967_v26, 16  ;;  %v6271_v32 = vor.u32 %v6269_v38, %v6251_v27 }
 0x843   :  { %6684 = vmatmul.bf16.gmra.mxu1 %v6252_v22  ;;  %v6268_v0 = vsel %vm824_vm0, %v6263_v19, %v6267_v16  ;;  %v6287_v22 = vor.u32 %v6285_v35, %v6267_v16  ;;  %v6303_v51 = vor.u32 %v6301_v15, %v6283_v12  ;;  %v9555_v12 = vld [vmem:[%s13481_s4 + $0x1f8] sm:$0xff] }
 0x844   :  { %6619 = vmatmul.bf16.gmra.mxu3 %v6268_v0  ;;  %v6273_v8 = vshll.u32 %v12962_v56, 16  ;;  %v12970_v0 = vpop.f32.mrf.mxu2  ;;  %v6291_v29 = vrot.slane %v6289_v62, 1  ;;  %v14221_v35 = vld [vmem:[#allocation99_spill] sm:$0xff] }
 0x845   :  { %14218 = vst [vmem:[#allocation31_spill] sm:$0xff] %v12970_v0  ;;  %v5782_v0 = vld [vmem:[#allocation3 + $0x134] sm:$0x1]  ;;  %7486 = vmatpush.bf16.msrb.mxu3 %v9555_v12 }
 0x846   :  { %v4828_v61 = vpop.f32.mrf.mxu0  ;;  %v6275_v19 = vrot.slane %v6273_v8, 1  ;;  %v6292_v42 = vsel %vm824_vm0, %v6287_v22, %v6291_v29  ;;  %v5961_v16 = vunpack.c.l.b16 %v5782_v0  ;;  %v6304_v0 = vshrl.u32 %v12967_v26, 16  ;;  %v9563_v15 = vld [vmem:[%s13481_s4 + $0x238] sm:$0xff] }
 0x847   :  { %v5732_v61 = vld [vmem:[#allocation3 + $0x128] sm:$0xf]  ;;  %7556 = vmatpush.bf16.msrb.mxu1 %v9563_v15 }
 0x848   :  { %v6276_v9 = vsel %vm824_vm0, %v6271_v32, %v6275_v19  ;;  %v12982_v27 = vunpack.c.l.b16 %v5732_v61  ;;  %v6306_v62 = vor.u32 %v6304_v0, %v6291_v29  ;;  %v9546_v29 = vld [vmem:[%s13481_s4 + $0x1b0] sm:$0xff] }
 0x849   :  { %v9554_v61 = vld [vmem:[%s13481_s4 + $0x1f0] sm:$0xff] }
 0x84a   :  { %v12991_v8 = vpack.c.b16 %v5961_v16, %v12982_v27  ;;  %v9562_v16 = vld [vmem:[%s13481_s4 + $0x230] sm:$0xff]  ;;  %7487 = vmatpush.bf16.msrb.mxu3 %v9554_v61 }
 0x84b   :  { %7557 = vmatpush.bf16.msrb.mxu1 %v9562_v16  ;;  %v14226_v16 = vld [vmem:[#allocation112_spill] sm:$0xff] }
 0x84c   :  { %v6540_v4 = vpop.f32.mrf.mxu2  ;;  %14220 = vst [vmem:[#allocation35_spill] sm:$0xff] %v12991_v8  ;;  %v6307_v32 = vshrl.u32 %v12991_v8, 16 }
 0x850   :  { %v6675_v11 = vpop.f32.mrf.mxu1 }
 0x851   :  { %v12978_v47 = vadd.f32 %v6675_v11, %v6606_v46  ;;  %v9547_v46 = vld [vmem:[%s13481_s4 + $0x1b8] sm:$0xff] }
 0x852   :  { %6559 = vmatmul.bf16.gmra.mxu2 %v6303_v51  ;;  %v14222_v11 = vld [vmem:[#allocation55_spill] sm:$0xff]  ;;  %v14223_v51 = vld [vmem:[#allocation124_spill] sm:$0xff] }
 0x853   :  { %6689 = vmatmul.bf16.gmra.mxu1 %v6276_v9  ;;  %v6610_v30 = vpop.f32.mrf.mxu3  ;;  %7416 = vmatpush.bf16.msrb.mxu2 %v9547_v46  ;;  %v6297_v9 = vshll.u32 %v12991_v8, 16 }
 0x854   :  { %v6611_v39 = vadd.f32 %v6610_v30, %v6540_v4  ;;  %6624 = vmatmul.bf16.gmra.mxu3 %v6292_v42  ;;  %v6293_v30 = vshrl.u32 %v12962_v56, 16  ;;  %v13032_v0 = vpop.f32.mrf.mxu2 }
 0x855   :  { %v6299_v4 = vrot.slane %v6297_v9, 1  ;;  %v14224_v9 = vld [vmem:[#allocation73_spill] sm:$0xff] }
 0x856   :  { %v6295_v42 = vor.u32 %v6293_v30, %v6275_v19  ;;  %v14225_v30 = vld [vmem:[#allocation64_spill] sm:$0xff] }
 0x857   :  { %v6309_v19 = vor.u32 %v6307_v32, %v6299_v4  ;;  %7417 = vmatpush.bf16.msrb.mxu2 %v9546_v29  ;;  %v9544_v32 = vld [vmem:[%s13481_s4 + $0x1a0] sm:$0xff] }
 0x858   :  { %v6300_v38 = vsel %vm824_vm0, %v6295_v42, %v6299_v4  ;;  %v13002_v22 = vpop.f32.mrf.mxu1  ;;  %v9545_v42 = vld [vmem:[%s13481_s4 + $0x1a8] sm:$0xff]  ;;  %v9560_v29 = vld [vmem:[%s13481_s4 + $0x220] sm:$0xff] }
 0x859   :  { %v9553_v4 = vld [vmem:[%s13481_s4 + $0x1e8] sm:$0xff] }
 0x85a   :  { %7488 = vmatpush.bf16.msrb.mxu3 %v9553_v4 }
 0x85b   :  { %7418 = vmatpush.bf16.msrb.mxu2 %v9545_v42 }
 0x85f   :  { %7419 = vmatpush.bf16.msrb.mxu2 %v9544_v32 }
 0x862   :  { %6897 = vmatmul.bf16.vlgmr.msra.gmra.mxu2 %v14221_v35 }
 0x863   :  { %6694 = vmatmul.bf16.gmra.mxu1 %v6300_v38  ;;  %v13034_v38 = vpop.f32.mrf.mxu3 }
 0x864   :  { %6629 = vmatmul.bf16.gmra.mxu3 %v6306_v62 }
 0x872   :  { %6901 = vmatmul.bf16.gmra.mxu2 %v14222_v11 }
 0x873   :  { %6699 = vmatmul.bf16.gmra.mxu1 %v6309_v19  ;;  %v9552_v19 = vld [vmem:[%s13481_s4 + $0x1e0] sm:$0xff] }
 0x874   :  { %6967 = vmatmul.bf16.vlgmr.msra.gmra.mxu3 %v14223_v51 }
 0x875   :  { %v6680_v46 = vpop.f32.mrf.mxu1  ;;  %7489 = vmatpush.bf16.msrb.mxu3 %v9552_v19 }
 0x876   :  { %v13015_v12 = vadd.f32 %v6680_v46, %v6611_v39  ;;  %v9561_v39 = vld [vmem:[%s13481_s4 + $0x228] sm:$0xff] }
 0x877   :  { %7558 = vmatpush.bf16.msrb.mxu1 %v9561_v39 }
 0x87b   :  { %7559 = vmatpush.bf16.msrb.mxu1 %v9560_v29 }
 0x87d   :  { %v6545_v35 = vpop.f32.mrf.mxu2  ;;  %v13053_v46 = vpop.f32.mrf.mxu1 }
 0x882   :  { %6906 = vmatmul.bf16.gmra.mxu2 %v12379_v45 }
 0x883   :  { %7037 = vmatmul.bf16.vlgmr.msra.gmra.mxu1 %v14224_v9 }
 0x884   :  { %6971 = vmatmul.bf16.gmra.mxu3 %v14225_v30 }
 0x885   :  { %v13045_v51 = vpop.f32.mrf.mxu2 }
 0x892   :  { %6911 = vmatmul.bf16.gmra.mxu2 %v12461_v17 }
 0x893   :  { %7041 = vmatmul.bf16.gmra.mxu1 %v12383_v21 }
 0x894   :  { %6976 = vmatmul.bf16.gmra.mxu3 %v12421_v36 }
 0x89e   :  { %v6615_v62 = vpop.f32.mrf.mxu3 }
 0x89f   :  { %v6616_v15 = vadd.f32 %v6615_v62, %v6545_v35  ;;  %v6550_v61 = vpop.f32.mrf.mxu2  ;;  %v9543_v35 = vld [vmem:[%s13481_s4 + $0x198] sm:$0xff] }
 0x8a0   :  { %v9551_v62 = vld [vmem:[%s13481_s4 + $0x1d8] sm:$0xff]  ;;  %7420 = vmatpush.bf16.msrb.mxu2 %v9543_v35 }
 0x8a1   :  { %7490 = vmatpush.bf16.msrb.mxu3 %v9551_v62 }
 0x8a2   :  { %6916 = vmatmul.bf16.gmra.mxu2 %v12495_v13 }
 0x8a3   :  { %7046 = vmatmul.bf16.gmra.mxu1 %v12468_v43 }
 0x8a4   :  { %6981 = vmatmul.bf16.gmra.mxu3 %v12501_v63 }
 0x8a6   :  { %v13055_v42 = vpop.f32.mrf.mxu3 }
 0x8a7   :  { %v6552_v9 = vpop.f32.mrf.mxu2 }
 0x8b2   :  { %6921 = vmatmul.bf16.gmra.mxu2 %v12565_v55 }
 0x8b3   :  { %7051 = vmatmul.bf16.gmra.mxu1 %v12538_v60 }
 0x8b4   :  { %6986 = vmatmul.bf16.gmra.mxu3 %v14226_v16 }
 0x8c0   :  { %v6685_v4 = vpop.f32.mrf.mxu1 }
 0x8c1   :  { %v13057_v39 = vadd.f32 %v6685_v4, %v6616_v15  ;;  %v9559_v4 = vld [vmem:[%s13481_s4 + $0x218] sm:$0xff] }
 0x8c2   :  { %6926 = vmatmul.bf16.gmra.mxu2 %v12581_v48  ;;  %7560 = vmatpush.bf16.msrb.mxu1 %v9559_v4 }
 0x8c3   :  { %7056 = vmatmul.bf16.gmra.mxu1 %v12561_v18 }
 0x8c4   :  { %6991 = vmatmul.bf16.gmra.mxu3 %v12569_v33 }
 0x8c5   :  { %v6555_v32 = vpop.f32.mrf.mxu2 }
 0x8c7   :  { %v6620_v19 = vpop.f32.mrf.mxu3 }
 0x8c8   :  { %v6621_v15 = vadd.f32 %v6620_v19, %v6550_v61  ;;  %v13068_v29 = vpop.f32.mrf.mxu1 }
 0x8c9   :  { %14227 = vst [vmem:[#allocation16_spill] sm:$0xff] %v13068_v29 }
 0x8cd   :  { %v6557_v8 = vpop.f32.mrf.mxu2 }
 0x8cf   :  { %v6622_v26 = vpop.f32.mrf.mxu3 }
 0x8d0   :  { %v6623_v53 = vadd.f32 %v6622_v26, %v6552_v9  ;;  %v6690_v33 = vpop.f32.mrf.mxu1  ;;  %v9542_v26 = vld [vmem:[%s13481_s4 + $0x190] sm:$0xff] }
 0x8d1   :  { %v13073_v18 = vadd.f32 %v6690_v33, %v6621_v15  ;;  %v9550_v33 = vld [vmem:[%s13481_s4 + $0x1d0] sm:$0xff]  ;;  %7421 = vmatpush.bf16.msrb.mxu2 %v9542_v26 }
 0x8d2   :  { %6930 = vmatmul.bf16.gmra.mxu2 %v12632_v41  ;;  %7491 = vmatpush.bf16.msrb.mxu3 %v9550_v33 }
 0x8d3   :  { %7061 = vmatmul.bf16.gmra.mxu1 %v12579_v5 }
 0x8d4   :  { %6996 = vmatmul.bf16.gmra.mxu3 %v12587_v44 }
 0x8d5   :  { %v6560_v61 = vpop.f32.mrf.mxu2 }
 0x8d7   :  { %v6625_v35 = vpop.f32.mrf.mxu3 }
 0x8d8   :  { %v6626_v62 = vadd.f32 %v6625_v35, %v6555_v32  ;;  %v6692_v19 = vpop.f32.mrf.mxu1 }
 0x8d9   :  { %v13078_v48 = vadd.f32 %v6692_v19, %v6623_v53  ;;  %v9558_v53 = vld [vmem:[%s13481_s4 + $0x210] sm:$0xff] }
 0x8da   :  { %7561 = vmatpush.bf16.msrb.mxu1 %v9558_v53  ;;  %v9541_v53 = vld [vmem:[%s13481_s4 + $0x188] sm:$0xff] }
 0x8db   :  { %7422 = vmatpush.bf16.msrb.mxu2 %v9541_v53 }
 0x8dd   :  { %v6561_v29 = vpop.f32.mrf.mxu2 }
 0x8df   :  { %v6627_v9 = vpop.f32.mrf.mxu3 }
 0x8e0   :  { %v6628_v15 = vadd.f32 %v6627_v9, %v6557_v8  ;;  %v6695_v4 = vpop.f32.mrf.mxu1 }
 0x8e1   :  { %v13086_v61 = vadd.f32 %v6695_v4, %v6626_v62 }
 0x8e2   :  { %6935 = vmatmul.bf16.gmra.mxu2 %v12705_v37 }
 0x8e3   :  { %7066 = vmatmul.bf16.gmra.mxu1 %v12638_v49 }
 0x8e4   :  { %7000 = vmatmul.bf16.gmra.mxu3 %v12676_v10 }
 0x8e5   :  { %v6898_v32 = vpop.f32.mrf.mxu2 }
 0x8e6   :  { %v14228_v32 = vld [vmem:[#allocation13_spill] sm:$0xff] }
 0x8e7   :  { %v6630_v29 = vpop.f32.mrf.mxu3 }
 0x8e8   :  { %v6697_v35 = vpop.f32.mrf.mxu1  ;;  %v14229_v29 = vld [vmem:[#allocation115_spill] sm:$0xff] }
 0x8e9   :  { %v13094_v8 = vadd.f32 %v6697_v35, %v6628_v15  ;;  %v9549_v15 = vld [vmem:[%s13481_s4 + $0x1c8] sm:$0xff]  ;;  %v6574_v35 = vadd.f32 %v14229_v29, %v14228_v32 }
 0x8ea   :  { %7492 = vmatpush.bf16.msrb.mxu3 %v9549_v15 }
 0x8ed   :  { %v6899_v19 = vpop.f32.mrf.mxu2 }
 0x8ef   :  { %v6631_v26 = vpop.f32.mrf.mxu3 }
 0x8f0   :  { %v6700_v62 = vpop.f32.mrf.mxu1  ;;  %v14230_v26 = vld [vmem:[#allocation118_spill] sm:$0xff] }
 0x8f1   :  { %v6644_v62 = vadd.f32 %v14230_v26, %v6574_v35  ;;  %v14231_v26 = vld [vmem:[#allocation150_spill] sm:$0xff] }
 0x8f2   :  { %6940 = vmatmul.bf16.gmra.mxu2 %v12762_v25 }
 0x8f3   :  { %7070 = vmatmul.bf16.gmra.mxu1 %v12717_v31  ;;  %v6900_v31 = vadd.f32 %v6899_v19, %v6644_v62  ;;  %v6579_v62 = vadd.f32 %v14231_v26, %v12623_v52  ;;  %v9548_v52 = vld [vmem:[%s13481_s4 + $0x1c0] sm:$0xff] }
 0x8f4   :  { %7005 = vmatmul.bf16.gmra.mxu3 %v12768_v2 }
 0x8f5   :  { %v6902_v33 = vpop.f32.mrf.mxu2  ;;  %7493 = vmatpush.bf16.msrb.mxu3 %v9548_v52 }
 0x8f6   :  { %v6903_v9 = vadd.f32 %v6902_v33, %v12612_v54  ;;  %v9557_v54 = vld [vmem:[%s13481_s4 + $0x208] sm:$0xff] }
 0x8f7   :  { %v6968_v4 = vpop.f32.mrf.mxu3  ;;  %7562 = vmatpush.bf16.msrb.mxu1 %v9557_v54 }
 0x8f8   :  { %v6701_v10 = vpop.f32.mrf.mxu1 }
 0x8fd   :  { %v6904_v2 = vpop.f32.mrf.mxu2 }
 0x8ff   :  { %v6969_v10 = vpop.f32.mrf.mxu3 }
 0x900   :  { %v6970_v33 = vadd.f32 %v6969_v10, %v6900_v31  ;;  %v7038_v4 = vpop.f32.mrf.mxu1  ;;  %v6649_v31 = vadd.f32 %v12659_v6, %v6579_v62 }
 0x902   :  { %6945 = vmatmul.bf16.gmra.mxu2 %v12858_v28  ;;  %v6905_v10 = vadd.f32 %v6904_v2, %v6649_v31 }
 0x903   :  { %7075 = vmatmul.bf16.gmra.mxu1 %v12808_v57 }
 0x904   :  { %7010 = vmatmul.bf16.gmra.mxu3 %v12803_v34 }
 0x905   :  { %v6907_v53 = vpop.f32.mrf.mxu2 }
 0x906   :  { %v6908_v15 = vadd.f32 %v6907_v53, %v12667_v20  ;;  %v9540_v20 = vld [vmem:[%s13481_s4 + $0x180] sm:$0xff] }
 0x907   :  { %v6972_v32 = vpop.f32.mrf.mxu3  ;;  %7423 = vmatpush.bf16.msrb.mxu2 %v9540_v20  ;;  %v7099_v20 = vld [vmem:[#allocation3] sm:$0xee] }
 0x908   :  { %v6973_v29 = vadd.f32 %v6972_v32, %v6903_v9  ;;  %v7039_v19 = vpop.f32.mrf.mxu1  ;;  %v9556_v32 = vld [vmem:[%s13481_s4 + $0x200] sm:$0xff]  ;;  %v7152_v52 = vunpack.c.l.b16 %v7099_v20 }
 0x909   :  { %v13116_v35 = vadd.f32 %v7039_v19, %v6970_v33  ;;  %7563 = vmatpush.bf16.msrb.mxu1 %v9556_v32  ;;  %v14236_v32 = vld [vmem:[#allocation95_spill] sm:$0xff] }
 0x90d   :  { %v6909_v54 = vpop.f32.mrf.mxu2 }
 0x90f   :  { %v6974_v4 = vpop.f32.mrf.mxu3 }
 0x910   :  { %v6975_v28 = vadd.f32 %v6974_v4, %v6905_v10  ;;  %v7042_v57 = vpop.f32.mrf.mxu1 }
 0x911   :  { %v13121_v25 = vadd.f32 %v7042_v57, %v6973_v29  ;;  %v14234_v29 = vld [vmem:[#allocation17_spill] sm:$0xff] }
 0x912   :  { %6950 = vmatmul.bf16.gmra.mxu2 %v12891_v58  ;;  %v6584_v19 = vadd.f32 %v14234_v29, %v12661_v3  ;;  %v14237_v29 = vunpack.c.l.b16 %v14236_v32 }
 0x913   :  { %14232 = vst [vmem:[#allocation158_spill] sm:$0xff] %v13121_v25  ;;  %7080 = vmatmul.bf16.gmra.mxu1 %v12850_v7 }
 0x914   :  { %7015 = vmatmul.bf16.gmra.mxu3 %v12887_v40  ;;  %v6654_v26 = vadd.f32 %v12689_v1, %v6584_v19  ;;  %v14239_v19 = vld [vmem:[#allocation152_spill] sm:$0xff] }
 0x915   :  { %v6912_v6 = vpop.f32.mrf.mxu2 }
 0x916   :  { %v6913_v2 = vadd.f32 %v6912_v6, %v12694_v50  ;;  %v6910_v31 = vadd.f32 %v6909_v54, %v6654_v26 }
 0x917   :  { %v6977_v57 = vpop.f32.mrf.mxu3 }
 0x918   :  { %v6978_v9 = vadd.f32 %v6977_v57, %v6908_v15  ;;  %v7044_v33 = vpop.f32.mrf.mxu1  ;;  %v6703_v15 = vpack.c.b16 %v12931_v23, %v12931_v23  ;;  %v7155_v23 = vpack.c.b16 %v14237_v29, %v7152_v52  ;;  %v14243_v29 = vld [vmem:[#allocation32_spill] sm:$0xff] }
 0x919   :  { %v13133_v53 = vadd.f32 %v7044_v33, %v6975_v28 }
 0x91b   :  { %14233 = vst [vmem:[#allocation63_spill] sm:$0xff] %v13133_v53 }
 0x91d   :  { %v6914_v62 = vpop.f32.mrf.mxu2 }
 0x91f   :  { %v6979_v10 = vpop.f32.mrf.mxu3 }
 0x920   :  { %v6980_v4 = vadd.f32 %v6979_v10, %v6910_v31  ;;  %v7047_v50 = vpop.f32.mrf.mxu1  ;;  %v14240_v31 = vld [vmem:[#allocation149_spill] sm:$0xff] }
 0x921   :  { %v13143_v28 = vadd.f32 %v7047_v50, %v6978_v9  ;;  %v14238_v9 = vld [vmem:[#allocation146_spill] sm:$0xff] }
 0x922   :  { %6955 = vmatmul.bf16.gmra.mxu2 %v6703_v15  ;;  %v6589_v26 = vadd.f32 %v14239_v19, %v14238_v9  ;;  %v7158_v15 = vrot.slane %v7155_v23, 1 }
 0x923   :  { %14235 = vst [vmem:[#allocation159_spill] sm:$0xff] %v13143_v28  ;;  %7085 = vmatmul.bf16.gmra.mxu1 %v12936_v24  ;;  %v7159_v28 = vrot.slane %v14222_v11, 1 }
 0x924   :  { %7020 = vmatmul.bf16.gmra.mxu3 %v12943_v14  ;;  %v6659_v10 = vadd.f32 %v14240_v31, %v6589_v26  ;;  %v14246_v31 = vld [vmem:[#allocation155_spill] sm:$0xff] }
 0x925   :  { %v6917_v3 = vpop.f32.mrf.mxu2 }
 0x926   :  { %v6918_v1 = vadd.f32 %v6917_v3, %v12711_v59  ;;  %v6915_v53 = vadd.f32 %v6914_v62, %v6659_v10 }
 0x927   :  { %v6982_v6 = vpop.f32.mrf.mxu3 }
 0x928   :  { %v6983_v54 = vadd.f32 %v6982_v6, %v6913_v2  ;;  %v7049_v57 = vpop.f32.mrf.mxu1  ;;  %v14242_v6 = vld [vmem:[#allocation134_spill] sm:$0xff] }
 0x929   :  { %v13148_v33 = vadd.f32 %v7049_v57, %v6980_v4  ;;  %v7160_v4 = vsel %vm3680_vm1, %v7158_v15, %v7159_v28  ;;  %v6704_v52 = vpack.c.b16 %v14242_v6, %v14242_v6 }
 0x92d   :  { %v6919_v50 = vpop.f32.mrf.mxu2 }
 0x92f   :  { %v6984_v25 = vpop.f32.mrf.mxu3 }
 0x930   :  { %v6985_v59 = vadd.f32 %v6984_v25, %v6915_v53  ;;  %v7052_v3 = vpop.f32.mrf.mxu1  ;;  %v7153_v25 = vunpack.c.h.b16 %v7099_v20  ;;  %v14244_v53 = vld [vmem:[#allocation121_spill] sm:$0xff] }
 0x931   :  { %v13156_v2 = vadd.f32 %v7052_v3, %v6983_v54  ;;  %v14245_v54 = vld [vmem:[#allocation19_spill] sm:$0xff]  ;;  %v7167_v3 = vrot.slane %v12379_v45, 1 }
 0x932   :  { %7424 = vmatmul.bf16.vlgmr.msrb.gmra.mxu2 %v7160_v4  ;;  %v6594_v26 = vadd.f32 %v14245_v54, %v14244_v53  ;;  %v14247_v4 = vunpack.c.h.b16 %v14236_v32 }
 0x933   :  { %14241 = vst [vmem:[#allocation38_spill] sm:$0xff] %v13156_v2  ;;  %7090 = vmatmul.bf16.gmra.mxu1 %v12962_v56 }
 0x934   :  { %7025 = vmatmul.bf16.gmra.mxu3 %v6704_v52  ;;  %v6664_v10 = vadd.f32 %v14246_v31, %v6594_v26  ;;  %v7156_v6 = vpack.c.b16 %v14247_v4, %v7153_v25  ;;  %v7100_v25 = vld [vmem:[#allocation3 + $0x8] sm:$0xe]  ;;  %v14250_v31 = vld [vmem:[#allocation23_spill] sm:$0xff] }
 0x935   :  { %v6922_v57 = vpop.f32.mrf.mxu2 }
 0x936   :  { %v6923_v23 = vadd.f32 %v6922_v57, %v14243_v29  ;;  %v6920_v52 = vadd.f32 %v6919_v50, %v6664_v10 }
 0x937   :  { %v6987_v9 = vpop.f32.mrf.mxu3 }
 0x938   :  { %v6988_v11 = vadd.f32 %v6987_v9, %v6918_v1  ;;  %v7054_v62 = vpop.f32.mrf.mxu1  ;;  %v6705_v1 = vpack.c.b16 %v12982_v27, %v12982_v27  ;;  %v7168_v9 = vsel %vm3680_vm1, %v7159_v28, %v7167_v3  ;;  %v14251_v28 = vld [vmem:[#allocation113_spill] sm:$0xff] }
 0x939   :  { %v13163_v19 = vadd.f32 %v7054_v62, %v6985_v59  ;;  %v7162_v59 = vrot.slane %v14225_v30, 1  ;;  %v7161_v62 = vrot.slane %v7156_v6, 1  ;;  %v14248_v30 = vld [vmem:[#allocation148_spill] sm:$0xff]  ;;  %v14252_v4 = vunpack.c.l.b16 %v14251_v28 }
 0x93a   :  { %v7179_v28 = vrot.slane %v12495_v13, 1 }
 0x93b   :  { %v7163_v45 = vsel %vm3680_vm1, %v7161_v62, %v7162_v59 }
 0x93d   :  { %v6924_v15 = vpop.f32.mrf.mxu2 }
 0x93f   :  { %v6989_v2 = vpop.f32.mrf.mxu3 }
 0x940   :  { %v6990_v57 = vadd.f32 %v6989_v2, %v6920_v52  ;;  %v7057_v20 = vpop.f32.mrf.mxu1  ;;  %v14249_v2 = vld [vmem:[#allocation130_spill] sm:$0xff] }
 0x941   :  { %v13174_v29 = vadd.f32 %v7057_v20, %v6988_v11  ;;  %v6599_v26 = vadd.f32 %v14249_v2, %v14248_v30  ;;  %v7154_v11 = vunpack.c.l.b16 %v7100_v25 }
 0x942   :  { %7428 = vmatmul.bf16.gmra.mxu2 %v7168_v9  ;;  %v7165_v9 = vrot.slane %v12383_v21, 1 }
 0x943   :  { %7095 = vmatmul.bf16.gmra.mxu1 %v6705_v1  ;;  %v6669_v10 = vadd.f32 %v14250_v31, %v6599_v26  ;;  %v7157_v6 = vpack.c.b16 %v14252_v4, %v7154_v11  ;;  %v7173_v1 = vrot.slane %v12461_v17, 1  ;;  %v14253_v26 = vld [vmem:[#allocation157_spill] sm:$0xff]  ;;  %v14254_v11 = vld [vmem:[#allocation132_spill] sm:$0xff] }
 0x944   :  { %7494 = vmatmul.bf16.vlgmr.msrb.gmra.mxu3 %v7163_v45  ;;  %v14255_v31 = vld [vmem:[#allocation28_spill] sm:$0xff] }
 0x945   :  { %v6927_v32 = vpop.f32.mrf.mxu2  ;;  %v6925_v20 = vadd.f32 %v6924_v15, %v6669_v10  ;;  %v7174_v25 = vsel %vm3680_vm1, %v7167_v3, %v7173_v1 }
 0x946   :  { %v7164_v32 = vrot.slane %v7157_v6, 1  ;;  %v7171_v6 = vrot.slane %v12468_v43, 1 }
 0x947   :  { %v6992_v50 = vpop.f32.mrf.mxu3 }
 0x948   :  { %v6993_v53 = vadd.f32 %v6992_v50, %v6923_v23  ;;  %v7059_v54 = vpop.f32.mrf.mxu1  ;;  %v7169_v23 = vrot.slane %v12421_v36, 1 }
 0x949   :  { %v13178_v27 = vadd.f32 %v7059_v54, %v6990_v57  ;;  %v7166_v54 = vsel %vm3680_vm1, %v7164_v32, %v7165_v9 }
 0x94a   :  { %v7170_v30 = vsel %vm3680_vm1, %v7162_v59, %v7169_v23 }
 0x94d   :  { %v6928_v52 = vpop.f32.mrf.mxu2 }
 0x94f   :  { %v6994_v62 = vpop.f32.mrf.mxu3 }
 0x950   :  { %v6995_v57 = vadd.f32 %v6994_v62, %v6925_v20  ;;  %v7062_v45 = vpop.f32.mrf.mxu1  ;;  %v7175_v20 = vrot.slane %v12501_v63, 1  ;;  %v14256_v63 = vld [vmem:[#allocation31_spill] sm:$0xff] }
 0x951   :  { %v13188_v50 = vadd.f32 %v7062_v45, %v6993_v53  ;;  %v6603_v53 = vadd.f32 %v14254_v11, %v14253_v26  ;;  %v7180_v45 = vsel %vm3680_vm1, %v7173_v1, %v7179_v28 }
 0x952   :  { %7433 = vmatmul.bf16.gmra.mxu2 %v7174_v25  ;;  %v7176_v32 = vsel %vm3680_vm1, %v7169_v23, %v7175_v20  ;;  %v7177_v23 = vrot.slane %v12538_v60, 1 }
 0x953   :  { %7564 = vmatmul.bf16.vlgmr.msrb.gmra.mxu1 %v7166_v54  ;;  %v6673_v10 = vadd.f32 %v14255_v31, %v6603_v53  ;;  %v7181_v53 = vrot.slane %v14226_v16, 1 }
 0x954   :  { %7498 = vmatmul.bf16.gmra.mxu3 %v7170_v30 }
 0x955   :  { %v6931_v17 = vpop.f32.mrf.mxu2  ;;  %v6929_v4 = vadd.f32 %v6928_v52, %v6673_v10 }
 0x956   :  { %v6932_v21 = vadd.f32 %v6931_v17, %v12978_v47  ;;  %v14257_v17 = vld [vmem:[#allocation139_spill] sm:$0xff] }
 0x957   :  { %v6997_v15 = vpop.f32.mrf.mxu3 }
 0x958   :  { %v7064_v2 = vpop.f32.mrf.mxu1  ;;  %v6608_v15 = vadd.f32 %v14257_v17, %v14256_v63  ;;  %v14261_v63 = vld [vmem:[#allocation145_spill] sm:$0xff] }
 0x959   :  { %v13194_v36 = vadd.f32 %v7064_v2, %v6995_v57  ;;  %v7172_v57 = vsel %vm3680_vm1, %v7165_v9, %v7171_v6  ;;  %v7185_v9 = vrot.slane %v12565_v55, 1  ;;  %v7187_v17 = vrot.slane %v14261_v63, 1 }
 0x95a   :  { %v6678_v1 = vadd.f32 %v13002_v22, %v6608_v15  ;;  %v7182_v22 = vsel %vm3680_vm1, %v7175_v20, %v7181_v53 }
 0x95b   :  { %v7186_v10 = vsel %vm3680_vm1, %v7179_v28, %v7185_v9  ;;  %v6618_v28 = vadd.f32 %v13055_v42, %v13045_v51 }
 0x95d   :  { %v6933_v3 = vpop.f32.mrf.mxu2 }
 0x95e   :  { %v6934_v26 = vadd.f32 %v6933_v3, %v6678_v1 }
 0x95f   :  { %v6998_v59 = vpop.f32.mrf.mxu3 }
 0x960   :  { %v6999_v62 = vadd.f32 %v6998_v59, %v6929_v4  ;;  %v7067_v47 = vpop.f32.mrf.mxu1  ;;  %v7178_v4 = vsel %vm3680_vm1, %v7171_v6, %v7177_v23 }
 0x961   :  { %v6613_v47 = vadd.f32 %v13034_v38, %v13032_v0 }
 0x962   :  { %7438 = vmatmul.bf16.gmra.mxu2 %v7180_v45  ;;  %v14258_v45 = vld [vmem:[#allocation16_spill] sm:$0xff] }
 0x963   :  { %7568 = vmatmul.bf16.gmra.mxu1 %v7172_v57  ;;  %v6683_v6 = vadd.f32 %v13053_v46, %v6613_v47  ;;  %v6688_v57 = vadd.f32 %v14258_v45, %v6618_v28  ;;  %v7188_v46 = vsel %vm3680_vm1, %v7181_v53, %v7187_v17  ;;  %v7203_v45 = vrot.slane %v12705_v37, 1 }
 0x964   :  { %7503 = vmatmul.bf16.gmra.mxu3 %v7176_v32  ;;  %v14259_v32 = vld [vmem:[#allocation147_spill] sm:$0xff] }
 0x965   :  { %v6936_v25 = vpop.f32.mrf.mxu2 }
 0x966   :  { %v6937_v13 = vadd.f32 %v6936_v25, %v13015_v12  ;;  %v7191_v25 = vrot.slane %v14259_v32, 1 }
 0x967   :  { %v7001_v52 = vpop.f32.mrf.mxu3 }
 0x968   :  { %v7002_v54 = vadd.f32 %v7001_v52, %v6932_v21  ;;  %v7068_v43 = vpop.f32.mrf.mxu1  ;;  %v7192_v38 = vsel %vm3680_vm1, %v7185_v9, %v7191_v25 }
 0x969   :  { %v13206_v30 = vadd.f32 %v7068_v43, %v6999_v62 }
 0x96d   :  { %v6938_v2 = vpop.f32.mrf.mxu2 }
 0x96e   :  { %v6939_v52 = vadd.f32 %v6938_v2, %v6683_v6 }
 0x96f   :  { %v7003_v11 = vpop.f32.mrf.mxu3 }
 0x970   :  { %v7004_v12 = vadd.f32 %v7003_v11, %v6934_v26  ;;  %v7071_v31 = vpop.f32.mrf.mxu1 }
 0x971   :  { %v13214_v21 = vadd.f32 %v7071_v31, %v7002_v54  ;;  %v14260_v54 = vld [vmem:[#allocation144_spill] sm:$0xff] }
 0x972   :  { %7443 = vmatmul.bf16.gmra.mxu2 %v7186_v10 }
 0x973   :  { %7573 = vmatmul.bf16.gmra.mxu1 %v7178_v4  ;;  %v7197_v4 = vrot.slane %v12632_v41, 1 }
 0x974   :  { %7508 = vmatmul.bf16.gmra.mxu3 %v7182_v22  ;;  %v7189_v22 = vrot.slane %v12579_v5, 1 }
 0x975   :  { %v6941_v55 = vpop.f32.mrf.mxu2 }
 0x976   :  { %v6942_v3 = vadd.f32 %v6941_v55, %v13057_v39  ;;  %v7193_v55 = vrot.slane %v12587_v44, 1 }
 0x977   :  { %v7006_v60 = vpop.f32.mrf.mxu3 }
 0x978   :  { %v7007_v59 = vadd.f32 %v7006_v60, %v6937_v13  ;;  %v7073_v62 = vpop.f32.mrf.mxu1  ;;  %v7183_v13 = vrot.slane %v14260_v54, 1 }
 0x979   :  { %v13220_v16 = vadd.f32 %v7073_v62, %v7004_v12  ;;  %v7194_v62 = vsel %vm3680_vm1, %v7187_v17, %v7193_v55 }
 0x97a   :  { %v7184_v51 = vsel %vm3680_vm1, %v7177_v23, %v7183_v13 }
 0x97d   :  { %v6943_v20 = vpop.f32.mrf.mxu2 }
 0x97e   :  { %v6944_v39 = vadd.f32 %v6943_v20, %v6688_v57  ;;  %v7195_v20 = vrot.slane %v12638_v49, 1 }
 0x97f   :  { %v7008_v43 = vpop.f32.mrf.mxu3 }
 0x980   :  { %v7009_v15 = vadd.f32 %v7008_v43, %v6939_v52  ;;  %v7076_v1 = vpop.f32.mrf.mxu1  ;;  %v7196_v43 = vsel %vm3680_vm1, %v7189_v22, %v7195_v20 }
 0x981   :  { %v13231_v0 = vadd.f32 %v7076_v1, %v7007_v59 }
 0x982   :  { %7448 = vmatmul.bf16.gmra.mxu2 %v7192_v38  ;;  %v14263_v38 = vld [vmem:[#allocation126_spill] sm:$0xff] }
 0x983   :  { %7578 = vmatmul.bf16.gmra.mxu1 %v7184_v51  ;;  %v7209_v51 = vrot.slane %v14263_v38, 1 }
 0x984   :  { %7513 = vmatmul.bf16.gmra.mxu3 %v7188_v46  ;;  %v14264_v46 = vld [vmem:[#allocation153_spill] sm:$0xff] }
 0x985   :  { %v6946_v42 = vpop.f32.mrf.mxu2 }
 0x986   :  { %v6947_v2 = vadd.f32 %v6946_v42, %v13073_v18  ;;  %v7198_v18 = vsel %vm3680_vm1, %v7191_v25, %v7197_v4  ;;  %v14262_v25 = vld [vmem:[#allocation151_spill] sm:$0xff]  ;;  %v7201_v42 = vrot.slane %v14264_v46, 1 }
 0x987   :  { %v7011_v26 = vpop.f32.mrf.mxu3  ;;  %v7199_v52 = vrot.slane %v14262_v25, 1 }
 0x988   :  { %v7012_v11 = vadd.f32 %v7011_v26, %v6942_v3  ;;  %v7078_v12 = vpop.f32.mrf.mxu1  ;;  %v7190_v3 = vsel %vm3680_vm1, %v7183_v13, %v7189_v22  ;;  %v14265_v26 = vld [vmem:[#allocation21_spill] sm:$0xff]  ;;  %v7202_v22 = vsel %vm3680_vm1, %v7195_v20, %v7201_v42 }
 0x989   :  { %v13237_v31 = vadd.f32 %v7078_v12, %v7009_v15  ;;  %v7200_v63 = vsel %vm3680_vm1, %v7193_v55, %v7199_v52 }
 0x98d   :  { %v6948_v10 = vpop.f32.mrf.mxu2 }
 0x98e   :  { %v6949_v9 = vadd.f32 %v6948_v10, %v13078_v48 }
 0x98f   :  { %v7013_v23 = vpop.f32.mrf.mxu3 }
 0x990   :  { %v7014_v53 = vadd.f32 %v7013_v23, %v6944_v39  ;;  %v7081_v60 = vpop.f32.mrf.mxu1 }
 0x991   :  { %v13243_v59 = vadd.f32 %v7081_v60, %v7012_v11  ;;  %v7205_v11 = vrot.slane %v14265_v26, 1 }
 0x992   :  { %7453 = vmatmul.bf16.gmra.mxu2 %v7198_v18 }
 0x993   :  { %7583 = vmatmul.bf16.gmra.mxu1 %v7190_v3  ;;  %v7206_v23 = vsel %vm3680_vm1, %v7199_v52, %v7205_v11 }
 0x994   :  { %7518 = vmatmul.bf16.gmra.mxu3 %v7194_v62  ;;  %v14266_v62 = vld [vmem:[#allocation156_spill] sm:$0xff] }
 0x995   :  { %v6951_v41 = vpop.f32.mrf.mxu2 }
 0x996   :  { %v6952_v48 = vadd.f32 %v6951_v41, %v13086_v61  ;;  %v7204_v61 = vsel %vm3680_vm1, %v7197_v4, %v7203_v45  ;;  %v7215_v41 = vrot.slane %v14266_v62, 1  ;;  %v14270_v62 = vld [vmem:[#allocation81_spill] sm:$0xff] }
 0x997   :  { %v7016_v5 = vpop.f32.mrf.mxu3 }
 0x998   :  { %v7017_v47 = vadd.f32 %v7016_v5, %v6947_v2  ;;  %v7083_v28 = vpop.f32.mrf.mxu1 }
 0x999   :  { %v13249_v44 = vadd.f32 %v7083_v28, %v7014_v53  ;;  %v7211_v28 = vrot.slane %v12803_v34, 1  ;;  %v7217_v34 = vrot.slane %v12887_v40, 1  ;;  %v14268_v40 = vld [vmem:[#allocation76_spill] sm:$0xff] }
 0x99b   :  { %v7212_v20 = vsel %vm3680_vm1, %v7205_v11, %v7211_v28 }
 0x99d   :  { %v6953_v6 = vpop.f32.mrf.mxu2 }
 0x99e   :  { %v6954_v57 = vadd.f32 %v6953_v6, %v13094_v8 }
 0x99f   :  { %v7018_v32 = vpop.f32.mrf.mxu3 }
 0x9a0   :  { %v7019_v39 = vadd.f32 %v7018_v32, %v6949_v9  ;;  %v7086_v54 = vpop.f32.mrf.mxu1  ;;  %v7210_v9 = vsel %vm3680_vm1, %v7203_v45, %v7209_v51  ;;  %v7216_v45 = vsel %vm3680_vm1, %v7209_v51, %v7215_v41 }
 0x9a1   :  { %v13255_v13 = vadd.f32 %v7086_v54, %v7017_v47  ;;  %v7221_v54 = vrot.slane %v12891_v58, 1 }
 0x9a2   :  { %7457 = vmatmul.bf16.gmra.mxu2 %v7204_v61  ;;  %v7213_v61 = vrot.slane %v12850_v7, 1 }
 0x9a3   :  { %7588 = vmatmul.bf16.gmra.mxu1 %v7196_v43 }
 0x9a4   :  { %7523 = vmatmul.bf16.gmra.mxu3 %v7200_v63 }
 0x9a5   :  { %v6956_v37 = vpop.f32.mrf.mxu2 }
 0x9a6   :  { %v7222_v37 = vsel %vm3680_vm1, %v7215_v41, %v7221_v54 }
 0x9a7   :  { %v7021_v8 = vpop.f32.mrf.mxu3 }
 0x9a8   :  { %v7022_v17 = vadd.f32 %v7021_v8, %v6952_v48  ;;  %v7088_v49 = vpop.f32.mrf.mxu1  ;;  %v14267_v48 = vld [vmem:[#allocation154_spill] sm:$0xff] }
 0x9a9   :  { %v13260_v15 = vadd.f32 %v7088_v49, %v7019_v39  ;;  %v7207_v5 = vrot.slane %v14267_v48, 1  ;;  %v13287_v49 = vld [vmem:[%s13484_s7] ss:$0 sm:$0xff] }
 0x9aa   :  { %v5300_v51 = vadd.f32 %v13287_v49, %v14268_v40  ;;  %v5302_v41 = vadd.f32 %v13287_v49, %v14270_v62  ;;  %v14275_v62 = vld [vmem:[#allocation159_spill] sm:$0xff] }
 0x9ab   :  { %v7214_v8 = vsel %vm3680_vm1, %v7207_v5, %v7213_v61 }
 0x9ac   :  { %v7655_v26 = vrot.slane %v5300_v51, 5 }
 0x9ad   :  { %v6957_v1 = vpop.f32.mrf.mxu2 }
 0x9af   :  { %v7023_v2 = vpop.f32.mrf.mxu3 }
 0x9b0   :  { %v7024_v12 = vadd.f32 %v7023_v2, %v6954_v57  ;;  %v7091_v10 = vpop.f32.mrf.mxu1  ;;  %v7208_v57 = vsel %vm3680_vm1, %v7201_v42, %v7207_v5  ;;  %v13294_v42 = vld [vmem:[%s13485_s5] ss:$0 sm:$0xff] }
 0x9b1   :  { %v13265_v4 = vadd.f32 %v7091_v10, %v7022_v17  ;;  %v7218_v17 = vsel %vm3680_vm1, %v7211_v28, %v7217_v34  ;;  %v14269_v10 = vld [vmem:[#allocation25_spill] sm:$0xff] }
 0x9b2   :  { %7462 = vmatmul.bf16.gmra.mxu2 %v7210_v9  ;;  %v7227_v9 = vrot.slane %v14269_v10, 1 }
 0x9b3   :  { %7593 = vmatmul.bf16.gmra.mxu1 %v7202_v22  ;;  %v7219_v22 = vrot.slane %v12936_v24, 1  ;;  %v14271_v24 = vld [vmem:[#allocation158_spill] sm:$0xff] }
 0x9b4   :  { %7527 = vmatmul.bf16.gmra.mxu3 %v7206_v23 }
 0x9b5   :  { %v7425_v55 = vpop.f32.mrf.mxu2 }
 0x9b7   :  { %v7026_v53 = vpop.f32.mrf.mxu3 }
 0x9b8   :  { %v7093_v60 = vpop.f32.mrf.mxu1 }
 0x9b9   :  { %v13270_v18 = vadd.f32 %v7093_v60, %v7024_v12  ;;  %v7223_v60 = vrot.slane %v12943_v14, 1 }
 0x9bb   :  { %v7224_v14 = vsel %vm3680_vm1, %v7217_v34, %v7223_v60  ;;  %v14273_v34 = vld [vmem:[#allocation63_spill] sm:$0xff] }
 0x9bd   :  { %v7426_v3 = vpop.f32.mrf.mxu2 }
 0x9bf   :  { %v7027_v47 = vpop.f32.mrf.mxu3 }
 0x9c0   :  { %v7096_v6 = vpop.f32.mrf.mxu1  ;;  %v7220_v47 = vsel %vm3680_vm1, %v7213_v61, %v7219_v22  ;;  %v14272_v61 = vld [vmem:[#allocation85_spill] sm:$0xff] }
 0x9c1   :  { %v7665_v6 = vrot.slane %v5302_v41, 3 }
 0x9c2   :  { %7467 = vmatmul.bf16.gmra.mxu2 %v7216_v45 }
 0x9c3   :  { %7597 = vmatmul.bf16.gmra.mxu1 %v7208_v57 }
 0x9c4   :  { %7532 = vmatmul.bf16.gmra.mxu3 %v7212_v20 }
 0x9c5   :  { %v7429_v32 = vpop.f32.mrf.mxu2 }
 0x9c7   :  { %v7495_v25 = vpop.f32.mrf.mxu3 }
 0x9c8   :  { %v7097_v52 = vpop.f32.mrf.mxu1 }
 0x9cd   :  { %v7431_v39 = vpop.f32.mrf.mxu2 }
 0x9cf   :  { %v7496_v43 = vpop.f32.mrf.mxu3 }
 0x9d0   :  { %v7565_v63 = vpop.f32.mrf.mxu1  ;;  %v7497_v7 = vadd.f32 %v7496_v43, %v7426_v3  ;;  %v5305_v43 = vadd.f32 %v13287_v49, %v14272_v61 }
 0x9d2   :  { %7472 = vmatmul.bf16.gmra.mxu2 %v7222_v37 }
 0x9d3   :  { %7602 = vmatmul.bf16.gmra.mxu1 %v7214_v8 }
 0x9d4   :  { %7537 = vmatmul.bf16.gmra.mxu3 %v7218_v17 }
 0x9d5   :  { %v7434_v58 = vpop.f32.mrf.mxu2 }
 0x9d7   :  { %v7499_v1 = vpop.f32.mrf.mxu3 }
 0x9d8   :  { %v7566_v38 = vpop.f32.mrf.mxu1  ;;  %v7500_v23 = vadd.f32 %v7499_v1, %v7429_v32 }
 0x9d9   :  { %v7567_v46 = vadd.f32 %v7566_v38, %v7497_v7  ;;  %v7225_v38 = vrot.slane %v12962_v56, 1 }
 0x9db   :  { %v7626_v2 = vadd.f32 %v7567_v46, %v13116_v35  ;;  %v7228_v35 = vsel %vm3680_vm1, %v7221_v54, %v7227_v9 }
 0x9dd   :  { %v7652_v11 = vadd.f32 %v13294_v42, %v7626_v2  ;;  %v7436_v12 = vpop.f32.mrf.mxu2 }
 0x9df   :  { %v7657_v55 = vadd.f32 %v7655_v26, %v7652_v11  ;;  %v7501_v53 = vpop.f32.mrf.mxu3 }
 0x9e0   :  { %v7569_v3 = vpop.f32.mrf.mxu1  ;;  %v7502_v20 = vadd.f32 %v7501_v53, %v7431_v39  ;;  %v7675_v39 = vrot.slane %v5305_v43, 1  ;;  %v14278_v43 = vld [vmem:[#allocation127_spill] sm:$0xff] }
 0x9e1   :  { %v7659_v48 = vmax.f32 %v7657_v55, 0.0  ;;  %v7570_v5 = vadd.f32 %v7569_v3, %v7500_v23  ;;  %v14274_v55 = vld [vmem:[#allocation136_spill] sm:$0xff]  ;;  %v7226_v3 = vsel %vm3680_vm1, %v7219_v22, %v7225_v38 }
 0x9e2   :  { %7477 = vmatmul.bf16.gmra.mxu2 %v7228_v35  ;;  %v7229_v53 = vrot.slane %v14274_v55, 1 }
 0x9e3   :  { %7661 = vst [vmem:[%s13486_s8 - $0x3] sm:$0xf8] %v7659_v48  ;;  %v7627_v28 = vadd.f32 %v7570_v5, %v14271_v24  ;;  %7607 = vmatmul.bf16.gmra.mxu1 %v7220_v47  ;;  %v14276_v47 = vld [vmem:[#allocation138_spill] sm:$0xff] }
 0x9e4   :  { %7542 = vmatmul.bf16.gmra.mxu3 %v7224_v14  ;;  %v7230_v56 = vsel %vm3680_vm1, %v7223_v60, %v7229_v53  ;;  %v5307_v24 = vadd.f32 %v13287_v49, %v14276_v47 }
 0x9e5   :  { %v7653_v45 = vadd.f32 %v13294_v42, %v7627_v28  ;;  %v7439_v57 = vpop.f32.mrf.mxu2 }
 0x9e7   :  { %v7658_v32 = vadd.f32 %v7655_v26, %v7653_v45  ;;  %v7667_v25 = vadd.f32 %v7665_v6, %v7653_v45  ;;  %v7504_v52 = vpop.f32.mrf.mxu3 }
 0x9e8   :  { %v7571_v54 = vpop.f32.mrf.mxu1  ;;  %v7505_v40 = vadd.f32 %v7504_v52, %v7434_v58 }
 0x9e9   :  { %v7660_v63 = vmax.f32 %v7658_v32, 0.0  ;;  %v7669_v37 = vmax.f32 %v7667_v25, 0.0  ;;  %v7572_v8 = vadd.f32 %v7571_v54, %v7502_v20  ;;  %v14277_v32 = vld [vmem:[#allocation35_spill] sm:$0xff] }
 0x9eb   :  { %7662 = vst [vmem:[%s13486_s8 + $0x5] sm:$0x7] %v7660_v63  ;;  %v7628_v17 = vadd.f32 %v7572_v8, %v14273_v34  ;;  %v5310_v63 = vadd.f32 %v13287_v49, %v14278_v43 }
 0x9ec   :  { %7671 = vst [vmem:[%s13486_s8 + $0x3] sm:$0xe0] %v7669_v37 }
 0x9ed   :  { %v7663_v7 = vadd.f32 %v13294_v42, %v7628_v17  ;;  %v7441_v1 = vpop.f32.mrf.mxu2 }
 0x9ef   :  { %v7668_v51 = vadd.f32 %v7665_v6, %v7663_v7  ;;  %v7677_v46 = vadd.f32 %v7675_v39, %v7663_v7  ;;  %v7506_v2 = vpop.f32.mrf.mxu3  ;;  %v7686_v6 = vrot.slane %v5307_v24, 7 }
 0x9f0   :  { %v7574_v26 = vpop.f32.mrf.mxu1 }
 0x9f1   :  { %v7670_v11 = vmax.f32 %v7668_v51, 0.0  ;;  %v7679_v10 = vmax.f32 %v7677_v46, 0.0  ;;  %v7575_v23 = vadd.f32 %v7574_v26, %v7505_v40 }
 0x9f2   :  { %7482 = vmatmul.bf16.gmra.mxu2 %v7227_v9  ;;  %v7507_v9 = vadd.f32 %v7506_v2, %v7436_v12  ;;  %v7231_v12 = vrot.slane %v14277_v32, 1 }
 0x9f3   :  { %7672 = vst [vmem:[%s13486_s8 + $0xb] sm:$0x1f] %v7670_v11  ;;  %v7629_v41 = vadd.f32 %v7575_v23, %v14275_v62  ;;  %7612 = vmatmul.bf16.gmra.mxu1 %v7226_v3  ;;  %v14280_v11 = vld [vmem:[#allocation5_spill] sm:$0xff] }
 0x9f4   :  { %7681 = vst [vmem:[%s13486_s8 + $0x9] sm:$0x80] %v7679_v10  ;;  %7547 = vmatmul.bf16.gmra.mxu3 %v7230_v56  ;;  %v7232_v34 = vsel %vm3680_vm1, %v7225_v38, %v7231_v12  ;;  %v5312_v38 = vadd.f32 %v13287_v49, %v14280_v11 }
 0x9f5   :  { %v7673_v58 = vadd.f32 %v13294_v42, %v7629_v41  ;;  %v7444_v48 = vpop.f32.mrf.mxu2 }
 0x9f7   :  { %v7678_v5 = vadd.f32 %v7675_v39, %v7673_v58  ;;  %v7509_v22 = vpop.f32.mrf.mxu3  ;;  %v7696_v39 = vrot.slane %v5310_v63, 5 }
 0x9f8   :  { %v7576_v35 = vpop.f32.mrf.mxu1  ;;  %v7510_v25 = vadd.f32 %v7509_v22, %v7439_v57  ;;  %v14281_v22 = vld [vmem:[#allocation94_spill] sm:$0xff] }
 0x9f9   :  { %v7680_v28 = vmax.f32 %v7678_v5, 0.0  ;;  %v7577_v14 = vadd.f32 %v7576_v35, %v7507_v9  ;;  %v5315_v35 = vadd.f32 %v13287_v49, %v14281_v22 }
 0x9fb   :  { %7682 = vst [vmem:[%s13486_s8 + $0x11] sm:$0x7f] %v7680_v28  ;;  %v7630_v60 = vadd.f32 %v7577_v14, %v13148_v33  ;;  %v14279_v33 = vld [vmem:[#allocation38_spill] sm:$0xff] }
 0x9fd   :  { %v7683_v45 = vadd.f32 %v13294_v42, %v7630_v60  ;;  %v7446_v20 = vpop.f32.mrf.mxu2 }
 0x9ff   :  { %v7688_v52 = vadd.f32 %v7686_v6, %v7683_v45  ;;  %v7511_v54 = vpop.f32.mrf.mxu3 }
 0xa00   :  { %v7579_v61 = vpop.f32.mrf.mxu1  ;;  %v7512_v40 = vadd.f32 %v7511_v54, %v7441_v1  ;;  %v7706_v1 = vrot.slane %v5312_v38, 3 }
 0xa01   :  { %v7690_v37 = vmax.f32 %v7688_v52, 0.0  ;;  %v7580_v8 = vadd.f32 %v7579_v61, %v7510_v25 }
 0xa03   :  { %7692 = vst [vmem:[%s13486_s8 + $0x17] sm:$0xfe] %v7690_v37  ;;  %v7631_v17 = vadd.f32 %v7580_v8, %v14279_v33  ;;  %7617 = vmatmul.bf16.gmra.mxu1 %v7232_v34  ;;  %v14282_v33 = vld [vmem:[#allocation8_spill] sm:$0xff] }
 0xa04   :  { %7552 = vmatmul.bf16.gmra.mxu3 %v7229_v53 }
 0xa05   :  { %v7684_v57 = vadd.f32 %v13294_v42, %v7631_v17  ;;  %v7449_v7 = vpop.f32.mrf.mxu2  ;;  %v5317_v17 = vadd.f32 %v13287_v49, %v14282_v33 }
 0xa07   :  { %v7689_v51 = vadd.f32 %v7686_v6, %v7684_v57  ;;  %v7698_v46 = vadd.f32 %v7696_v39, %v7684_v57  ;;  %v7514_v2 = vpop.f32.mrf.mxu3 }
 0xa08   :  { %v7581_v26 = vpop.f32.mrf.mxu1  ;;  %v7515_v41 = vadd.f32 %v7514_v2, %v7444_v48  ;;  %v7716_v48 = vrot.slane %v5315_v35, 1 }
 0xa09   :  { %v7691_v10 = vmax.f32 %v7689_v51, 0.0  ;;  %v7700_v23 = vmax.f32 %v7698_v46, 0.0  ;;  %v7582_v55 = vadd.f32 %v7581_v26, %v7512_v40  ;;  %v7727_v40 = vrot.slane %v5317_v17, 7 }
 0xa0b   :  { %7693 = vst [vmem:[%s13486_s8 + $0x1f] sm:$0x1] %v7691_v10  ;;  %v7632_v53 = vadd.f32 %v7582_v55, %v13163_v19 }
 0xa0c   :  { %7702 = vst [vmem:[%s13486_s8 + $0x1d] sm:$0xf8] %v7700_v23 }
 0xa0d   :  { %v7694_v3 = vadd.f32 %v13294_v42, %v7632_v53  ;;  %v7451_v62 = vpop.f32.mrf.mxu2 }
 0xa0f   :  { %v7699_v56 = vadd.f32 %v7696_v39, %v7694_v3  ;;  %v7708_v58 = vadd.f32 %v7706_v1, %v7694_v3  ;;  %v7516_v9 = vpop.f32.mrf.mxu3 }
 0xa10   :  { %v7584_v5 = vpop.f32.mrf.mxu1  ;;  %v7517_v6 = vadd.f32 %v7516_v9, %v7446_v20 }
 0xa11   :  { %v7701_v47 = vmax.f32 %v7699_v56, 0.0  ;;  %v7710_v24 = vmax.f32 %v7708_v58, 0.0  ;;  %v7585_v28 = vadd.f32 %v7584_v5, %v7515_v41  ;;  %v14283_v5 = vld [vmem:[#allocation98_spill] sm:$0xff] }
 0xa12   :  { %v5320_v22 = vadd.f32 %v13287_v49, %v14283_v5 }
 0xa13   :  { %7703 = vst [vmem:[%s13486_s8 + $0x25] sm:$0x7] %v7701_v47  ;;  %v7633_v19 = vadd.f32 %v7585_v28, %v13174_v29  ;;  %7622 = vmatmul.bf16.gmra.mxu1 %v7231_v12 }
 0xa14   :  { %7712 = vst [vmem:[%s13486_s8 + $0x23] sm:$0xe0] %v7710_v24  ;;  %v7738_v47 = vrot.slane %v5320_v22, 1 }
 0xa15   :  { %v7704_v14 = vadd.f32 %v13294_v42, %v7633_v19  ;;  %v7454_v60 = vpop.f32.mrf.mxu2 }
 0xa17   :  { %v7709_v45 = vadd.f32 %v7706_v1, %v7704_v14  ;;  %v7718_v32 = vadd.f32 %v7716_v48, %v7704_v14  ;;  %v7519_v25 = vpop.f32.mrf.mxu3 }
 0xa18   :  { %v7586_v52 = vpop.f32.mrf.mxu1  ;;  %v7520_v63 = vadd.f32 %v7519_v25, %v7449_v7 }
 0xa19   :  { %v7711_v54 = vmax.f32 %v7709_v45, 0.0  ;;  %v7720_v61 = vmax.f32 %v7718_v32, 0.0  ;;  %v7587_v43 = vadd.f32 %v7586_v52, %v7517_v6 }
 0xa1b   :  { %7713 = vst [vmem:[%s13486_s8 + $0x2b] sm:$0x1f] %v7711_v54  ;;  %v7634_v29 = vadd.f32 %v7587_v43, %v13178_v27 }
 0xa1c   :  { %7722 = vst [vmem:[%s13486_s8 + $0x29] sm:$0x80] %v7720_v61 }
 0xa1d   :  { %v7714_v12 = vadd.f32 %v13294_v42, %v7634_v29  ;;  %v7455_v20 = vpop.f32.mrf.mxu2  ;;  %v14284_v29 = vld [vmem:[#allocation140_spill] sm:$0xff] }
 0xa1f   :  { %v7719_v37 = vadd.f32 %v7716_v48, %v7714_v12  ;;  %v7521_v8 = vpop.f32.mrf.mxu3  ;;  %v5322_v12 = vadd.f32 %v13287_v49, %v14284_v29 }
 0xa20   :  { %v7589_v34 = vpop.f32.mrf.mxu1  ;;  %v7522_v2 = vadd.f32 %v7521_v8, %v7451_v62 }
 0xa21   :  { %v7721_v39 = vmax.f32 %v7719_v37, 0.0  ;;  %v7590_v57 = vadd.f32 %v7589_v34, %v7520_v63  ;;  %v7749_v8 = vrot.slane %v5322_v12, 7 }
 0xa23   :  { %7723 = vst [vmem:[%s13486_s8 + $0x31] sm:$0x7f] %v7721_v39  ;;  %v7635_v27 = vadd.f32 %v7590_v57, %v13188_v50 }
 0xa25   :  { %v7724_v51 = vadd.f32 %v13294_v42, %v7635_v27  ;;  %v7458_v46 = vpop.f32.mrf.mxu2  ;;  %v14285_v27 = vld [vmem:[#allocation141_spill] sm:$0xff] }
 0xa27   :  { %v7729_v7 = vadd.f32 %v7727_v40, %v7724_v51  ;;  %v7524_v26 = vpop.f32.mrf.mxu3 }
 0xa28   :  { %v7591_v11 = vpop.f32.mrf.mxu1 }
 0xa29   :  { %v7731_v38 = vmax.f32 %v7729_v7, 0.0  ;;  %v7592_v10 = vadd.f32 %v7591_v11, %v7522_v2 }
 0xa2b   :  { %7733 = vst [vmem:[%s13486_s8 + $0x37] sm:$0xfe] %v7731_v38  ;;  %v7636_v23 = vadd.f32 %v7592_v10, %v13194_v36 }
 0xa2d   :  { %v7725_v55 = vadd.f32 %v13294_v42, %v7636_v23  ;;  %v7460_v53 = vpop.f32.mrf.mxu2 }
 0xa2f   :  { %v7730_v50 = vadd.f32 %v7727_v40, %v7725_v55  ;;  %v7525_v1 = vpop.f32.mrf.mxu3  ;;  %v5325_v40 = vadd.f32 %v13287_v49, %v14285_v27 }
 0xa30   :  { %v7594_v3 = vpop.f32.mrf.mxu1  ;;  %v7526_v56 = vadd.f32 %v7525_v1, %v7455_v20 }
 0xa31   :  { %v7732_v41 = vmax.f32 %v7730_v50, 0.0 }
 0xa33   :  { %7734 = vst [vmem:[%s13486_s8 + $0x3f] sm:$0x1] %v7732_v41 }
 0xa35   :  { %v7463_v62 = vpop.f32.mrf.mxu2 }
 0xa37   :  { %v7528_v58 = vpop.f32.mrf.mxu3 }
 0xa38   :  { %v7595_v9 = vpop.f32.mrf.mxu1  ;;  %v7529_v19 = vadd.f32 %v7528_v58, %v7458_v46 }
 0xa39   :  { %v7596_v35 = vadd.f32 %v7595_v9, %v7526_v56 }
 0xa3b   :  { %v7637_v36 = vadd.f32 %v7596_v35, %v13206_v30 }
 0xa3d   :  { %v7735_v24 = vadd.f32 %v13294_v42, %v7637_v36  ;;  %v7465_v28 = vpop.f32.mrf.mxu2 }
 0xa3f   :  { %v7740_v48 = vadd.f32 %v7738_v47, %v7735_v24  ;;  %v7530_v14 = vpop.f32.mrf.mxu3 }
 0xa40   :  { %v7598_v60 = vpop.f32.mrf.mxu1  ;;  %v7531_v30 = vadd.f32 %v7530_v14, %v7460_v53  ;;  %v14286_v53 = vld [vmem:[#allocation6_spill] sm:$0xff] }
 0xa41   :  { %v7742_v6 = vmax.f32 %v7740_v48, 0.0  ;;  %v7599_v45 = vadd.f32 %v7598_v60, %v7529_v19  ;;  %v5327_v50 = vadd.f32 %v13287_v49, %v14286_v53 }
 0xa43   :  { %7744 = vst [vmem:[%s13486_s8 + $0x39] sm:$0x80] %v7742_v6  ;;  %v7638_v32 = vadd.f32 %v7599_v45, %v13214_v21 }
 0xa45   :  { %v7736_v25 = vadd.f32 %v13294_v42, %v7638_v32  ;;  %v7468_v52 = vpop.f32.mrf.mxu2 }
 0xa47   :  { %v7741_v54 = vadd.f32 %v7738_v47, %v7736_v25  ;;  %v7533_v61 = vpop.f32.mrf.mxu3  ;;  %v14287_v47 = vld [vmem:[#allocation103_spill] sm:$0xff] }
 0xa48   :  { %v7600_v43 = vpop.f32.mrf.mxu1  ;;  %v7534_v33 = vadd.f32 %v7533_v61, %v7463_v62  ;;  %v7769_v62 = vrot.slane %v5327_v50, 3  ;;  %v5330_v24 = vadd.f32 %v13287_v49, %v14287_v47 }
 0xa49   :  { %v7743_v20 = vmax.f32 %v7741_v54, 0.0  ;;  %v7601_v63 = vadd.f32 %v7600_v43, %v7531_v30 }
 0xa4a   :  { %v7779_v14 = vrot.slane %v5330_v24, 1 }
 0xa4b   :  { %7745 = vst [vmem:[%s13486_s8 + $0x41] sm:$0x7f] %v7743_v20  ;;  %v7639_v37 = vadd.f32 %v7601_v63, %v13220_v16  ;;  %v7759_v16 = vrot.slane %v5325_v40, 5 }
 0xa4d   :  { %v7746_v21 = vadd.f32 %v13294_v42, %v7639_v37  ;;  %v7470_v34 = vpop.f32.mrf.mxu2 }
 0xa4f   :  { %v7751_v17 = vadd.f32 %v7749_v8, %v7746_v21  ;;  %v7535_v39 = vpop.f32.mrf.mxu3  ;;  %v14288_v21 = vld [vmem:[#allocation9_spill] sm:$0xff] }
 0xa50   :  { %v7603_v57 = vpop.f32.mrf.mxu1  ;;  %v7536_v11 = vadd.f32 %v7535_v39, %v7465_v28 }
 0xa51   :  { %v7753_v51 = vmax.f32 %v7751_v17, 0.0  ;;  %v7604_v46 = vadd.f32 %v7603_v57, %v7534_v33 }
 0xa53   :  { %7755 = vst [vmem:[%s13486_s8 + $0x47] sm:$0xfe] %v7753_v51  ;;  %v7640_v2 = vadd.f32 %v7604_v46, %v13231_v0 }
 0xa55   :  { %v7747_v7 = vadd.f32 %v13294_v42, %v7640_v2  ;;  %v7473_v26 = vpop.f32.mrf.mxu2 }
 0xa57   :  { %v7752_v38 = vadd.f32 %v7749_v8, %v7747_v7  ;;  %v7761_v10 = vadd.f32 %v7759_v16, %v7747_v7  ;;  %v7538_v23 = vpop.f32.mrf.mxu3 }
 0xa58   :  { %v7605_v55 = vpop.f32.mrf.mxu1  ;;  %v7539_v9 = vadd.f32 %v7538_v23, %v7468_v52 }
 0xa59   :  { %v7754_v1 = vmax.f32 %v7752_v38, 0.0  ;;  %v7763_v3 = vmax.f32 %v7761_v10, 0.0  ;;  %v7606_v41 = vadd.f32 %v7605_v55, %v7536_v11 }
 0xa5b   :  { %7756 = vst [vmem:[%s13486_s8 + $0x4f] sm:$0x1] %v7754_v1  ;;  %v7641_v0 = vadd.f32 %v7606_v41, %v13237_v31  ;;  %v14290_v41 = vld [vmem:[#allocation10_spill] sm:$0xff] }
 0xa5c   :  { %7765 = vst [vmem:[%s13486_s8 + $0x4d] sm:$0xf8] %v7763_v3 }
 0xa5d   :  { %v7757_v56 = vadd.f32 %v13294_v42, %v7641_v0  ;;  %v7475_v58 = vpop.f32.mrf.mxu2  ;;  %v5337_v0 = vadd.f32 %v13287_v49, %v14290_v41 }
 0xa5f   :  { %v7762_v5 = vadd.f32 %v7759_v16, %v7757_v56  ;;  %v7771_v22 = vadd.f32 %v7769_v62, %v7757_v56  ;;  %v7540_v35 = vpop.f32.mrf.mxu3  ;;  %v14289_v16 = vld [vmem:[#allocation107_spill] sm:$0xff] }
 0xa60   :  { %v7608_v36 = vpop.f32.mrf.mxu1  ;;  %v7541_v45 = vadd.f32 %v7540_v35, %v7470_v34  ;;  %v5332_v34 = vadd.f32 %v13287_v49, %v14288_v21  ;;  %v5335_v7 = vadd.f32 %v13287_v49, %v14289_v16 }
 0xa61   :  { %v7764_v28 = vmax.f32 %v7762_v5, 0.0  ;;  %v7773_v19 = vmax.f32 %v7771_v22, 0.0  ;;  %v7609_v48 = vadd.f32 %v7608_v36, %v7539_v9  ;;  %v7810_v9 = vrot.slane %v5337_v0, 3 }
 0xa62   :  { %v7790_v39 = vrot.slane %v5332_v34, 7 }
 0xa63   :  { %7766 = vst [vmem:[%s13486_s8 + $0x55] sm:$0x7] %v7764_v28  ;;  %v7642_v31 = vadd.f32 %v7609_v48, %v13243_v59 }
 0xa64   :  { %7775 = vst [vmem:[%s13486_s8 + $0x53] sm:$0xe0] %v7773_v19 }
 0xa65   :  { %v7767_v60 = vadd.f32 %v13294_v42, %v7642_v31  ;;  %v7478_v6 = vpop.f32.mrf.mxu2 }
 0xa67   :  { %v7772_v32 = vadd.f32 %v7769_v62, %v7767_v60  ;;  %v7781_v25 = vadd.f32 %v7779_v14, %v7767_v60  ;;  %v7543_v52 = vpop.f32.mrf.mxu3 }
 0xa68   :  { %v7610_v30 = vpop.f32.mrf.mxu1  ;;  %v7544_v20 = vadd.f32 %v7543_v52, %v7473_v26 }
 0xa69   :  { %v7774_v54 = vmax.f32 %v7772_v32, 0.0  ;;  %v7783_v61 = vmax.f32 %v7781_v25, 0.0  ;;  %v7611_v43 = vadd.f32 %v7610_v30, %v7541_v45 }
 0xa6b   :  { %7776 = vst [vmem:[%s13486_s8 + $0x5b] sm:$0x1f] %v7774_v54  ;;  %v7643_v59 = vadd.f32 %v7611_v43, %v13249_v44 }
 0xa6c   :  { %7785 = vst [vmem:[%s13486_s8 + $0x59] sm:$0x80] %v7783_v61 }
 0xa6d   :  { %v7777_v29 = vadd.f32 %v13294_v42, %v7643_v59  ;;  %v7480_v12 = vpop.f32.mrf.mxu2 }
 0xa6f   :  { %v7782_v63 = vadd.f32 %v7779_v14, %v7777_v29  ;;  %v7545_v37 = vpop.f32.mrf.mxu3 }
 0xa70   :  { %v7613_v8 = vpop.f32.mrf.mxu1  ;;  %v7546_v40 = vadd.f32 %v7545_v37, %v7475_v58 }
 0xa71   :  { %v7784_v33 = vmax.f32 %v7782_v63, 0.0  ;;  %v7614_v17 = vadd.f32 %v7613_v8, %v7544_v20 }
 0xa73   :  { %7786 = vst [vmem:[%s13486_s8 + $0x61] sm:$0x7f] %v7784_v33  ;;  %v7644_v44 = vadd.f32 %v7614_v17, %v13255_v13  ;;  %v7800_v13 = vrot.slane %v5335_v7, 5 }
 0xa75   :  { %v7787_v57 = vadd.f32 %v13294_v42, %v7644_v44  ;;  %v7483_v27 = vpop.f32.mrf.mxu2 }
 0xa77   :  { %v7792_v51 = vadd.f32 %v7790_v39, %v7787_v57  ;;  %v7548_v46 = vpop.f32.mrf.mxu3 }
 0xa78   :  { %v7615_v2 = vpop.f32.mrf.mxu1  ;;  %v7549_v55 = vadd.f32 %v7548_v46, %v7478_v6 }
 0xa79   :  { %v7794_v26 = vmax.f32 %v7792_v51, 0.0  ;;  %v7616_v11 = vadd.f32 %v7615_v2, %v7546_v40 }
 0xa7b   :  { %7796 = vst [vmem:[%s13486_s8 + $0x67] sm:$0xfe] %v7794_v26  ;;  %v7645_v38 = vadd.f32 %v7616_v11, %v13260_v15 }
 0xa7d   :  { %v7788_v10 = vadd.f32 %v13294_v42, %v7645_v38  ;;  %v7484_v23 = vpop.f32.mrf.mxu2 }
 0xa7f   :  { %v7793_v53 = vadd.f32 %v7790_v39, %v7788_v10  ;;  %v7802_v50 = vadd.f32 %v7800_v13, %v7788_v10  ;;  %v7550_v1 = vpop.f32.mrf.mxu3 }
 0xa80   :  { %v7618_v3 = vpop.f32.mrf.mxu1  ;;  %v7551_v22 = vadd.f32 %v7550_v1, %v7480_v12 }
 0xa81   :  { %v7795_v62 = vmax.f32 %v7793_v53, 0.0  ;;  %v7804_v56 = vmax.f32 %v7802_v50, 0.0  ;;  %v7619_v58 = vadd.f32 %v7618_v3, %v7549_v55 }
 0xa83   :  { %7797 = vst [vmem:[%s13486_s8 + $0x6f] sm:$0x1] %v7795_v62  ;;  %v7646_v15 = vadd.f32 %v7619_v58, %v13265_v4 }
 0xa84   :  { %7806 = vst [vmem:[%s13486_s8 + $0x6d] sm:$0xf8] %v7804_v56 }
 0xa85   :  { %v7798_v5 = vadd.f32 %v13294_v42, %v7646_v15 }
 0xa87   :  { %v7803_v35 = vadd.f32 %v7800_v13, %v7798_v5  ;;  %v7812_v36 = vadd.f32 %v7810_v9, %v7798_v5  ;;  %v7553_v49 = vpop.f32.mrf.mxu3 }
 0xa88   :  { %v7620_v47 = vpop.f32.mrf.mxu1 }
 0xa89   :  { %v7805_v24 = vmax.f32 %v7803_v35, 0.0  ;;  %v7814_v28 = vmax.f32 %v7812_v36, 0.0  ;;  %v7621_v19 = vadd.f32 %v7620_v47, %v7551_v22 }
 0xa8b   :  { %7807 = vst [vmem:[%s13486_s8 + $0x75] sm:$0x7] %v7805_v24  ;;  %v7647_v4 = vadd.f32 %v7621_v19, %v13270_v18 }
 0xa8c   :  { %7816 = vst [vmem:[%s13486_s8 + $0x73] sm:$0xe0] %v7814_v28 }
 0xa8d   :  { %v7808_v48 = vadd.f32 %v13294_v42, %v7647_v4 }
 0xa8f   :  { %v7813_v31 = vadd.f32 %v7810_v9, %v7808_v48  ;;  %v7554_v14 = vpop.f32.mrf.mxu3 }
 0xa90   :  { %v7623_v60 = vpop.f32.mrf.mxu1 }
 0xa91   :  { %v7815_v6 = vmax.f32 %v7813_v31, 0.0 }
 0xa93   :  { %7817 = vst [vmem:[%s13486_s8 + $0x7b] sm:$0x1f] %v7815_v6 }
 0xa98   :  { %v7624_v45 = vpop.f32.mrf.mxu1 }

</bundles_post_ra>
